<compile_context>
chip_gen: v5e
topology: v5e:2x2
jax: 0.10.0
libtpu: 0.0.40
codegen_flags: <defaults>
</compile_context>

<pallas_src>
import numpy as np
import jax
import jax.numpy as jnp
from jax.experimental import pallas as pl
from jax.experimental.pallas import tpu as pltpu

USE_BF16_MATMUL = False   # optional: bf16 MXU inputs (keeps f32 accumulate/elementwise)


# ----------------------------------------------------------------------------
# In-kernel math helpers (pure jnp on values -> usable inside Pallas bodies)
# ----------------------------------------------------------------------------
def _mm(a, b):
    if USE_BF16_MATMUL:
        a = a.astype(jnp.bfloat16)
        b = b.astype(jnp.bfloat16)
    return jnp.dot(a, b, preferred_element_type=jnp.float32)


def _erf_approx(x):
    """Abramowitz & Stegun 7.1.26, |err| < 1.5e-7 (exact-GELU without an erf lowering)."""
    a1, a2, a3, a4, a5 = 0.254829592, -0.284496736, 1.421413741, -1.453152027, 1.061405429
    pc = 0.3275911
    sgn = jnp.where(x < 0.0, -1.0, 1.0)
    ax = jnp.abs(x)
    t = 1.0 / (1.0 + pc * ax)
    poly = ((((a5 * t + a4) * t + a3) * t + a2) * t + a1) * t
    return sgn * (1.0 - poly * jnp.exp(-ax * ax))


def _gelu(x):
    # exact (erf) GELU == PyTorch nn.GELU()
    return 0.5 * x * (1.0 + _erf_approx(x * 0.7071067811865476))


def _hardswish(x):
    return x * jnp.clip(x + 3.0, 0.0, 6.0) * (1.0 / 6.0)


def _ln(x, g, b, eps):
    mu = jnp.mean(x, axis=-1, keepdims=True)
    d = x - mu
    var = jnp.mean(d * d, axis=-1, keepdims=True)
    return d * jax.lax.rsqrt(var + eps) * g + b


# ----------------------------------------------------------------------------
# Pallas kernel: batched conv-as-matmul (BN folded) + GELU (+ pos embed)
# ----------------------------------------------------------------------------
def conv_matmul_batched(cols, w, bias, *, act=None, pos=None):
    """cols: (B, M, K) im2col matrix; w: (K, Cout); bias: (1, Cout); pos: (M, Cout)|None."""
    B, M, K = cols.shape
    Cout = w.shape[1]
    has_pos = pos is not None

    def kernel(*refs):
        if has_pos:
            x_ref, w_ref, b_ref, p_ref, o_ref = refs
        else:
            x_ref, w_ref, b_ref, o_ref = refs
        y = _mm(x_ref[0], w_ref[...]) + b_ref[...]
        if act == "gelu":
            y = _gelu(y)
        if has_pos:
            y = y + p_ref[...]
        o_ref[0] = y

    in_specs = [pl.BlockSpec((1, M, K), lambda b: (b, 0, 0)),
                pl.BlockSpec((K, Cout), lambda b: (0, 0)),
                pl.BlockSpec((1, Cout), lambda b: (0, 0))]
    args = [cols.astype(jnp.float32), w, bias]
    if has_pos:
        in_specs.append(pl.BlockSpec((M, Cout), lambda b: (0, 0)))
        args.append(pos)

    return pl.pallas_call(
        kernel,
        out_shape=jax.ShapeDtypeStruct((B, M, Cout), jnp.float32),
        grid=(B,),
        in_specs=in_specs,
        out_specs=pl.BlockSpec((1, M, Cout), lambda b: (b, 0, 0)),
        compiler_params=pltpu.CompilerParams(dimension_semantics=("parallel",)),
    )(*args)


# ----------------------------------------------------------------------------
# Pallas kernel: one fused SVTR stage
#   all blocks of the stage + (SubSample conv+LN)  OR  (pool + 1x1 conv + head)
# ----------------------------------------------------------------------------
def run_stage(x, blk, num_heads, *, mask=None, use_mask=(), sub=None, head=None):
    B, N, D = x.shape
    nb = blk["qkv_w"].shape[0]
    H = num_heads
    Dh = D // H
    scale = float(Dh) ** -0.5
    has_mask = mask is not None
    if len(use_mask) < nb:
        use_mask = tuple(use_mask) + (False,) * (nb - len(use_mask))

    if sub is not None:
        Hs, Ws = sub["H"], sub["W"]
        Dout = sub["w"].shape[1]
        N_out, C_out = (Hs // 2) * Ws, Dout
    elif head is not None:
        N_out = head["pool"].shape[0]
        C_out = head["head_w"].shape[1]
    else:
        N_out, C_out = N, D

    def kernel(*refs):
        it = iter(refs)
        x_ref = next(it)
        qkv_w = next(it); qkv_b = next(it); proj_w = next(it); proj_b = next(it)
        n1g = next(it); n1b = next(it)
        f1w = next(it); f1b = next(it); f2w = next(it); f2b = next(it)
        n2g = next(it); n2b = next(it)
        m_ref = next(it) if has_mask else None
        if sub is not None:
            sw = next(it); sb = next(it); sg = next(it); sbb = next(it)
        if head is not None:
            pool = next(it); lcw = next(it); hw_ = next(it); hb_ = next(it)
        o_ref = next(it)

        xv = x_ref[0]                                                     # (N, D)

        # ---- transformer blocks (all weights / activations VMEM-resident)
        for ib in range(nb):
            qkv = _mm(xv, qkv_w[ib]) + qkv_b[ib]                          # (N, 3D)
            qh = jnp.stack([qkv[:, h * Dh:(h + 1) * Dh] for h in range(H)], 0) * scale
            kh = jnp.stack([qkv[:, D + h * Dh:D + (h + 1) * Dh] for h in range(H)], 0)
            vh = jnp.stack([qkv[:, 2 * D + h * Dh:2 * D + (h + 1) * Dh] for h in range(H)], 0)
            s = jnp.einsum('hnd,hmd->hnm', qh, kh,
                           preferred_element_type=jnp.float32)            # (H, N, N)
            if use_mask[ib]:
                s = s + m_ref[...]
            s = s - jnp.max(s, axis=-1, keepdims=True)                    # batched softmax
            p = jnp.exp(s)
            p = p * pl.reciprocal(jnp.sum(p, axis=-1, keepdims=True), approx=True)
            ctx = jnp.einsum('hnm,hmd->hnd', p, vh,
                             preferred_element_type=jnp.float32)          # (H, N, Dh)
            ctx2 = jnp.concatenate([ctx[h] for h in range(H)], axis=-1)   # (N, D)
            a = _mm(ctx2, proj_w[ib]) + proj_b[ib]
            x1 = _ln(xv + a, n1g[ib], n1b[ib], 1e-6)                      # prenorm=True
            hm = _gelu(_mm(x1, f1w[ib]) + f1b[ib])
            hm = _mm(hm, f2w[ib]) + f2b[ib]
            xv = _ln(x1 + hm, n2g[ib], n2b[ib], 1e-6)

        if sub is not None:
            # SubSample(types='Conv'): conv3x3 stride(2,1) pad1 (+bias) + LayerNorm,
            # computed in-kernel on the VMEM-resident (H, W, D) view of xv.
            sw_v = sw[...]                                                # (9*D, Dout)
            sb_v = sb[...]
            zrow = jnp.zeros((1, D), jnp.float32)
            rows = []
            for i in range(Hs // 2):                                      # output rows
                pieces = []
                for di in range(3):
                    r = 2 * i + di - 1
                    if 0 <= r < Hs:
                        base = xv[r * Ws:(r + 1) * Ws, :]                 # (Ws, D)
                    else:
                        base = jnp.zeros((Ws, D), jnp.float32)
                    rowp = jnp.concatenate([zrow, base, zrow], axis=0)    # width pad 1
                    pieces += [rowp[0:Ws], rowp[1:Ws + 1], rowp[2:Ws + 2]]
                cols_i = jnp.concatenate(pieces, axis=-1)                 # (Ws, 9*D)
                rows.append(_mm(cols_i, sw_v) + sb_v)                     # (Ws, Dout)
            y = jnp.concatenate(rows, axis=0)                             # (Ho*Ws, Dout)
            o_ref[0] = _ln(y, sg[...], sbb[...], 1e-5)
        elif head is not None:
            # AdaptiveAvgPool2d((1,ocn)) as a matmul + 1x1 conv + Hardswish + CTC Linear
            pooled = _mm(pool[...], xv)                                   # (ocn, D)
            feat = _hardswish(_mm(pooled, lcw[...]))                      # (ocn, oc)
            o_ref[0] = _mm(feat, hw_[...]) + hb_[...]                     # (ocn, nc)
        else:
            o_ref[0] = xv

    in_specs = [pl.BlockSpec((1, N, D), lambda b: (b, 0, 0))]
    args = [x.astype(jnp.float32)]

    def add(arr):
        nd = arr.ndim
        in_specs.append(pl.BlockSpec(tuple(arr.shape), lambda b, nd=nd: (0,) * nd))
        args.append(arr)

    for k in ("qkv_w", "qkv_b", "proj_w", "proj_b", "n1g", "n1b",
              "fc1_w", "fc1_b", "fc2_w", "fc2_b", "n2g", "n2b"):
        add(blk[k])
    if has_mask:
        add(mask)
    if sub is not None:
        for k in ("w", "b", "g", "bb"):
            add(sub[k])
    if head is not None:
        for k in ("pool", "lc_w", "head_w", "head_b"):
            add(head[k])

    return pl.pallas_call(
        kernel,
        out_shape=jax.ShapeDtypeStruct((B, N_out, C_out), jnp.float32),
        grid=(B,),
        in_specs=in_specs,
        out_specs=pl.BlockSpec((1, N_out, C_out), lambda b: (b, 0, 0)),
        compiler_params=pltpu.CompilerParams(dimension_semantics=("parallel",)),
    )(*args)


# ----------------------------------------------------------------------------
# Trace-time / one-time helpers (layout only, no per-forward weight math)
# ----------------------------------------------------------------------------
def im2col_nhwc(x, kh, kw, sh, sw, ph, pw):
    """x: (B, H, W, C) NHWC -> (B, Ho*Wo, kh*kw*C), column order (kh, kw, c)."""
    B, H, W, C = x.shape
    xp = jnp.pad(x, ((0, 0), (ph, ph), (pw, pw), (0, 0)))
    Ho = (H + 2 * ph - kh) // sh + 1
    Wo = (W + 2 * pw - kw) // sw + 1
    patches = []
    for i in range(kh):
        for j in range(kw):
            patches.append(xp[:, i:i + (Ho - 1) * sh + 1:sh,
                              j:j + (Wo - 1) * sw + 1:sw, :])
    cols = jnp.concatenate(patches, axis=-1)                  # (B, Ho, Wo, kh*kw*C)
    return cols.reshape(B, Ho * Wo, kh * kw * C), Ho, Wo


def local_attn_mask(H, W, hk, wk):
    m = np.ones((H * W, H + hk - 1, W + wk - 1), np.float32)
    for h in range(H):
        for w in range(W):
            m[h * W + w, h:h + hk, w:w + wk] = 0.0
    m = m[:, hk // 2:H + hk // 2, wk // 2:W + wk // 2].reshape(H * W, H * W)
    return jnp.asarray(np.where(m < 1.0, 0.0, -np.inf).astype(np.float32))


def adaptive_pool_matrix(h, w, ow):
    """(h*w, ow) weights replicating AdaptiveAvgPool2d((1, ow)) on an (h, w) map."""
    P = np.zeros((h * w, ow), np.float32)
    for j in range(ow):
        s = (j * w) // ow
        e = -(-((j + 1) * w) // ow)
        for i in range(h):
            P[i * w + s:i * w + e, j] = 1.0 / (h * (e - s))
    return P


# ----------------------------------------------------------------------------
# Parameter init (PyTorch-layout) and one-time kernel-ready re-layout
# ----------------------------------------------------------------------------
def init_params(key, cfg):
    d0, d1, d2 = cfg["embed_dim"]
    cin = cfg["in_channels"]
    H, W = cfg["img_size"]
    N1 = (H // 4) * (W // 4)
    oc = cfg["out_channels"]
    nc = cfg["num_classes"]
    kit = iter(jax.random.split(key, 256))

    def nrm(shape, std=0.02):
        return jax.random.normal(next(kit), shape, jnp.float32) * std

    def conv_bn(ci, co):
        return dict(w=nrm((co, ci, 3, 3), 0.1),
                    bn_g=jnp.ones((co,), jnp.float32), bn_b=jnp.zeros((co,), jnp.float32),
                    bn_rm=jnp.zeros((co,), jnp.float32), bn_rv=jnp.ones((co,), jnp.float32))

    def block(d):
        hid = int(d * cfg["mlp_ratio"])
        return dict(qkv_w=nrm((d, 3 * d)), qkv_b=jnp.zeros((3 * d,), jnp.float32),
                    proj_w=nrm((d, d)), proj_b=jnp.zeros((d,), jnp.float32),
                    norm1_g=jnp.ones((d,), jnp.float32), norm1_b=jnp.zeros((d,), jnp.float32),
                    fc1_w=nrm((d, hid)), fc1_b=jnp.zeros((hid,), jnp.float32),
                    fc2_w=nrm((hid, d)), fc2_b=jnp.zeros((d,), jnp.float32),
                    norm2_g=jnp.ones((d,), jnp.float32), norm2_b=jnp.zeros((d,), jnp.float32))

    def subsample(ci, co):
        return dict(conv_w=nrm((co, ci, 3, 3), 0.1), conv_b=nrm((co,), 0.02),
                    ln_g=jnp.ones((co,), jnp.float32), ln_b=jnp.zeros((co,), jnp.float32))

    return dict(
        pe_conv1=conv_bn(cin, d0 // 2),
        pe_conv2=conv_bn(d0 // 2, d0),
        pos_embed=nrm((1, N1, d0), 0.02),
        blocks1=[block(d0) for _ in range(cfg["depth"][0])],
        sub1=subsample(d0, d1),
        blocks2=[block(d1) for _ in range(cfg["depth"][1])],
        sub2=subsample(d1, d2),
        blocks3=[block(d2) for _ in range(cfg["depth"][2])],
        last_conv_w=nrm((oc, d2, 1, 1), 0.1),
        head_w=nrm((oc, nc), 0.05),
        head_b=nrm((nc,), 0.02),
    )


def prepare_params(params, cfg):
    """One-time (outside jit) BN folding + weight stacking / re-layout."""
    d0, d1, d2 = cfg["embed_dim"]
    H, W = cfg["img_size"]
    depth = cfg["depth"]
    mixer = cfg["mixer"]
    hk, wk = cfg["local_mixer"]
    ocn, oc, nc = cfg["out_char_num"], cfg["out_channels"], cfg["num_classes"]
    HW1, HW2, HW3 = (H // 4, W // 4), (H // 8, W // 4), (H // 16, W // 4)
    f32 = jnp.float32

    def fold_convbn(p):
        w = p["w"].astype(f32)                                   # (Cout, Cin, 3, 3)
        scl = p["bn_g"] / jnp.sqrt(p["bn_rv"] + 1e-5)
        sft = p["bn_b"] - p["bn_rm"] * scl
        wf = jnp.transpose(w, (2, 3, 1, 0)).reshape(-1, w.shape[0]) * scl[None, :]
        return wf.astype(f32), sft.reshape(1, -1).astype(f32)

    def stack_blocks(blks):
        nb = len(blks)
        d = blks[0]["qkv_w"].shape[0]
        hid = blks[0]["fc1_w"].shape[1]
        st = lambda k: jnp.stack([b[k] for b in blks], 0).astype(f32)
        return dict(
            qkv_w=st("qkv_w"), qkv_b=st("qkv_b").reshape(nb, 1, 3 * d),
            proj_w=st("proj_w"), proj_b=st("proj_b").reshape(nb, 1, d),
            n1g=st("norm1_g").reshape(nb, 1, d), n1b=st("norm1_b").reshape(nb, 1, d),
            fc1_w=st("fc1_w"), fc1_b=st("fc1_b").reshape(nb, 1, hid),
            fc2_w=st("fc2_w"), fc2_b=st("fc2_b").reshape(nb, 1, d),
            n2g=st("norm2_g").reshape(nb, 1, d), n2b=st("norm2_b").reshape(nb, 1, d))

    def sub_flat(p):
        w = p["conv_w"].astype(f32)                              # (Cout, Cin, 3, 3)
        wf = jnp.transpose(w, (2, 3, 1, 0)).reshape(-1, w.shape[0])   # rows = (kh, kw, cin)
        return dict(w=wf, b=p["conv_b"].reshape(1, -1).astype(f32),
                    g=p["ln_g"].reshape(1, -1).astype(f32),
                    bb=p["ln_b"].reshape(1, -1).astype(f32))

    kp = {}
    kp["pe1_w"], kp["pe1_b"] = fold_convbn(params["pe_conv1"])
    kp["pe2_w"], kp["pe2_b"] = fold_convbn(params["pe_conv2"])
    kp["pos"] = params["pos_embed"].reshape(HW1[0] * HW1[1], d0).astype(f32)

    kp["blk1"] = stack_blocks(params["blocks1"])
    kp["blk2"] = stack_blocks(params["blocks2"])
    kp["blk3"] = stack_blocks(params["blocks3"])
    kp["sub1"] = sub_flat(params["sub1"])
    kp["sub2"] = sub_flat(params["sub2"])

    m1 = mixer[:depth[0]]
    m2 = mixer[depth[0]:depth[0] + depth[1]]
    m3 = mixer[depth[0] + depth[1]:]
    if any(m == "Local" for m in m1):
        kp["mask1"] = local_attn_mask(HW1[0], HW1[1], hk, wk)
    if any(m == "Local" for m in m2):
        kp["mask2"] = local_attn_mask(HW2[0], HW2[1], hk, wk)
    if any(m == "Local" for m in m3):
        kp["mask3"] = local_attn_mask(HW3[0], HW3[1], hk, wk)

    kp["pool_T"] = jnp.asarray(adaptive_pool_matrix(HW3[0], HW3[1], ocn)).T.astype(f32)
    kp["lc_w"] = params["last_conv_w"].reshape(oc, d2).T.astype(f32)    # 1x1 conv as (d2, oc)
    kp["head_w"] = params["head_w"].astype(f32)
    kp["head_b"] = params["head_b"].reshape(1, nc).astype(f32)
    return kp


# ----------------------------------------------------------------------------
# Forward
# ----------------------------------------------------------------------------
def svtr_forward(kp, x, cfg):
    B = x.shape[0]
    d0, d1, d2 = cfg["embed_dim"]
    nh = cfg["num_heads"]
    depth = cfg["depth"]
    mixer = cfg["mixer"]
    H, W = cfg["img_size"]
    HW1, HW2, HW3 = (H // 4, W // 4), (H // 8, W // 4), (H // 16, W // 4)

    # ---- PatchEmbed: two fused conv(BN-folded)+GELU matmul kernels; pos add in kernel 2
    x_nhwc = jnp.transpose(x, (0, 2, 3, 1)).astype(jnp.float32)
    cols1, H1, W1 = im2col_nhwc(x_nhwc, 3, 3, 2, 2, 1, 1)
    y1 = conv_matmul_batched(cols1, kp["pe1_w"], kp["pe1_b"], act="gelu")
    y1 = y1.reshape(B, H1, W1, d0 // 2)
    cols2, _, _ = im2col_nhwc(y1, 3, 3, 2, 2, 1, 1)
    xseq = conv_matmul_batched(cols2, kp["pe2_w"], kp["pe2_b"], act="gelu", pos=kp["pos"])

    m1 = mixer[:depth[0]]
    m2 = mixer[depth[0]:depth[0] + depth[1]]
    m3 = mixer[depth[0] + depth[1]:]

    # ---- stage 1: blocks + SubSample conv+LN, one fused kernel
    xseq = run_stage(xseq, kp["blk1"], nh[0],
                     mask=kp.get("mask1"), use_mask=tuple(m == "Local" for m in m1),
                     sub=dict(H=HW1[0], W=HW1[1], **kp["sub1"]))
    # ---- stage 2
    xseq = run_stage(xseq, kp["blk2"], nh[1],
                     mask=kp.get("mask2"), use_mask=tuple(m == "Local" for m in m2),
                     sub=dict(H=HW2[0], W=HW2[1], **kp["sub2"]))
    # ---- stage 3 + AdaptiveAvgPool + 1x1 conv + Hardswish + Im2Seq + CTC head
    logits = run_stage(xseq, kp["blk3"], nh[2],
                       mask=kp.get("mask3"), use_mask=tuple(m == "Local" for m in m3),
                       head=dict(pool=kp["pool_T"], lc_w=kp["lc_w"],
                                 head_w=kp["head_w"], head_b=kp["head_b"]))

    # CTCHead permute(1, 0, 2) -> (T, B, num_classes)
    return jnp.transpose(logits, (1, 0, 2))


if __name__ == "__main__":
    cfg = dict(
        img_size=[16, 32], in_channels=3,
        embed_dim=[16, 32, 64], depth=[1, 1, 1], num_heads=[2, 4, 8],
        mixer=["Local", "Global", "Global"], local_mixer=(7, 11),
        mlp_ratio=4, out_channels=64, out_char_num=4, num_classes=96,
    )
    key = jax.random.PRNGKey(0)
    pkey, xkey = jax.random.split(key)
    params = init_params(pkey, cfg)
    kp = prepare_params(params, cfg)             # one-time weight folding / re-layout
    x = jax.random.normal(xkey, (2, 3, 16, 32), jnp.float32)   # NCHW, like PyTorch
    fwd = jax.jit(lambda p, inp: svtr_forward(p, inp, cfg))
    out = jax.block_until_ready(fwd(kp, x))
    assert out.shape == (cfg["out_char_num"], 2, cfg["num_classes"]), out.shape
    assert bool(jnp.all(jnp.isfinite(out)))
    print("KERNEL_OK")
</pallas_src>

<mosaic_0001>
module attributes {stable_mosaic.version = 11 : i64} {
  func.func @kernel(%arg0: i32, %arg1: memref<1x128x27xf32, #tpu.memory_space<vmem>>, %arg2: memref<27x8xf32, #tpu.memory_space<vmem>>, %arg3: memref<1x8xf32, #tpu.memory_space<vmem>>, %arg4: memref<1x128x8xf32, #tpu.memory_space<vmem>>) attributes {dimension_semantics = [#tpu.dimension_semantics<parallel>], iteration_bounds = array<i64: 2>, scalar_prefetch = 0 : i64, scratch_operands = 0 : i64, tpu.core_type = #tpu.core_type<tc>, window_params = [{transform_indices = @transform_0, window_bounds = array<i64: 1, 128, 27>}, {pipeline_mode = #tpu.pipeline_mode<synchronous>, transform_indices = @transform_1, window_bounds = array<i64: 27, 8>}, {pipeline_mode = #tpu.pipeline_mode<synchronous>, transform_indices = @transform_2, window_bounds = array<i64: 1, 8>}, {transform_indices = @transform_3, window_bounds = array<i64: 1, 128, 8>}]} {
    %c0 = arith.constant 0 : index
    %c0_0 = arith.constant 0 : index
    %c0_1 = arith.constant 0 : index
    %0 = vector.load %arg1[%c0, %c0_0, %c0_1] : memref<1x128x27xf32, #tpu.memory_space<vmem>>, vector<1x128x27xf32>
    %1 = vector.shape_cast %0 : vector<1x128x27xf32> to vector<128x27xf32>
    %c0_2 = arith.constant 0 : index
    %c0_3 = arith.constant 0 : index
    %2 = vector.load %arg2[%c0_2, %c0_3] : memref<27x8xf32, #tpu.memory_space<vmem>>, vector<27x8xf32>
    %cst = arith.constant dense<0.000000e+00> : vector<128x8xf32>
    %3 = tpu.matmul %1, %2, %cst {dimension_numbers = #tpu.dot_dimension_numbers<[1], [0], [0], [1], [0, 0, 1, 1], [], []>} : vector<128x27xf32>, vector<27x8xf32>, vector<128x8xf32> -> vector<128x8xf32>
    %c0_4 = arith.constant 0 : index
    %c0_5 = arith.constant 0 : index
    %4 = vector.load %arg3[%c0_4, %c0_5] : memref<1x8xf32, #tpu.memory_space<vmem>>, vector<1x8xf32>
    %5 = vector.broadcast %4 : vector<1x8xf32> to vector<128x8xf32>
    %6 = arith.addf %3, %5 : vector<128x8xf32>
    %cst_6 = arith.constant 5.000000e-01 : f32
    %7 = vector.broadcast %cst_6 : f32 to vector<128x8xf32>
    %8 = arith.mulf %7, %6 : vector<128x8xf32>
    %cst_7 = arith.constant 0.707106769 : f32
    %9 = vector.broadcast %cst_7 : f32 to vector<128x8xf32>
    %10 = arith.mulf %6, %9 : vector<128x8xf32>
    %cst_8 = arith.constant 0.000000e+00 : f32
    %11 = vector.broadcast %cst_8 : f32 to vector<128x8xf32>
    %12 = arith.cmpf olt, %10, %11 : vector<128x8xf32>
    %cst_9 = arith.constant -1.000000e+00 : f32
    %cst_10 = arith.constant 1.000000e+00 : f32
    %13 = vector.broadcast %cst_9 : f32 to vector<128x8xf32>
    %14 = vector.broadcast %cst_10 : f32 to vector<128x8xf32>
    %15 = arith.select %12, %13, %14 : vector<128x8xi1>, vector<128x8xf32>
    %16 = math.absf %10 : vector<128x8xf32>
    %cst_11 = arith.constant 0.327591091 : f32
    %17 = vector.broadcast %cst_11 : f32 to vector<128x8xf32>
    %18 = arith.mulf %17, %16 : vector<128x8xf32>
    %cst_12 = arith.constant 1.000000e+00 : f32
    %19 = vector.broadcast %cst_12 : f32 to vector<128x8xf32>
    %20 = arith.addf %19, %18 : vector<128x8xf32>
    %cst_13 = arith.constant 1.000000e+00 : f32
    %21 = vector.broadcast %cst_13 : f32 to vector<128x8xf32>
    %22 = arith.divf %21, %20 : vector<128x8xf32>
    %cst_14 = arith.constant 1.06140542 : f32
    %23 = vector.broadcast %cst_14 : f32 to vector<128x8xf32>
    %24 = arith.mulf %23, %22 : vector<128x8xf32>
    %cst_15 = arith.constant -1.45315206 : f32
    %25 = vector.broadcast %cst_15 : f32 to vector<128x8xf32>
    %26 = arith.addf %24, %25 : vector<128x8xf32>
    %27 = arith.mulf %26, %22 : vector<128x8xf32>
    %cst_16 = arith.constant 1.42141378 : f32
    %28 = vector.broadcast %cst_16 : f32 to vector<128x8xf32>
    %29 = arith.addf %27, %28 : vector<128x8xf32>
    %30 = arith.mulf %29, %22 : vector<128x8xf32>
    %cst_17 = arith.constant -0.284496725 : f32
    %31 = vector.broadcast %cst_17 : f32 to vector<128x8xf32>
    %32 = arith.addf %30, %31 : vector<128x8xf32>
    %33 = arith.mulf %32, %22 : vector<128x8xf32>
    %cst_18 = arith.constant 0.254829586 : f32
    %34 = vector.broadcast %cst_18 : f32 to vector<128x8xf32>
    %35 = arith.addf %33, %34 : vector<128x8xf32>
    %36 = arith.mulf %35, %22 : vector<128x8xf32>
    %cst_19 = arith.constant 0.000000e+00 : f32
    %37 = vector.broadcast %cst_19 : f32 to vector<128x8xf32>
    %38 = arith.subf %37, %16 : vector<128x8xf32>
    %39 = arith.mulf %38, %16 : vector<128x8xf32>
    %40 = math.exp %39 : vector<128x8xf32>
    %41 = arith.mulf %36, %40 : vector<128x8xf32>
    %cst_20 = arith.constant 1.000000e+00 : f32
    %42 = vector.broadcast %cst_20 : f32 to vector<128x8xf32>
    %43 = arith.subf %42, %41 : vector<128x8xf32>
    %44 = arith.mulf %15, %43 : vector<128x8xf32>
    %cst_21 = arith.constant 1.000000e+00 : f32
    %45 = vector.broadcast %cst_21 : f32 to vector<128x8xf32>
    %46 = arith.addf %45, %44 : vector<128x8xf32>
    %47 = arith.mulf %8, %46 : vector<128x8xf32>
    %c0_22 = arith.constant 0 : index
    %c0_23 = arith.constant 0 : index
    %c0_24 = arith.constant 0 : index
    %48 = vector.load %arg4[%c0_22, %c0_23, %c0_24] : memref<1x128x8xf32, #tpu.memory_space<vmem>>, vector<1x128x8xf32>
    %49 = vector.shape_cast %48 : vector<1x128x8xf32> to vector<128x8xf32>
    %50 = vector.shape_cast %47 : vector<128x8xf32> to vector<1x128x8xf32>
    tpu.vector_store %arg4[%c0_22, %c0_23, %c0_24], %50 {strides = array<i32>} : memref<1x128x8xf32, #tpu.memory_space<vmem>>, vector<1x128x8xf32>,
    return
  }
  func.func @transform_0(%arg0: i32) -> (i32, i32, i32) {
    %c0_i32 = arith.constant 0 : i32
    %c0_i32_0 = arith.constant 0 : i32
    %c0_i32_1 = arith.constant 0 : i32
    return %arg0, %c0_i32, %c0_i32_0 : i32, i32, i32
  }
  func.func @transform_1(%arg0: i32) -> (i32, i32) {
    %c0_i32 = arith.constant 0 : i32
    %c0_i32_0 = arith.constant 0 : i32
    %c0_i32_1 = arith.constant 0 : i32
    return %c0_i32, %c0_i32_0 : i32, i32
  }
  func.func @transform_2(%arg0: i32) -> (i32, i32) {
    %c0_i32 = arith.constant 0 : i32
    %c0_i32_0 = arith.constant 0 : i32
    %c0_i32_1 = arith.constant 0 : i32
    return %c0_i32, %c0_i32_0 : i32, i32
  }
  func.func @transform_3(%arg0: i32) -> (i32, i32, i32) {
    %c0_i32 = arith.constant 0 : i32
    %c0_i32_0 = arith.constant 0 : i32
    %c0_i32_1 = arith.constant 0 : i32
    return %arg0, %c0_i32, %c0_i32_0 : i32, i32, i32
  }
}

module attributes {stable_mosaic.version = 11 : i64} {
  func.func @kernel(%arg0: i32, %arg1: memref<1x32x72xf32, #tpu.memory_space<vmem>>, %arg2: memref<72x16xf32, #tpu.memory_space<vmem>>, %arg3: memref<1x16xf32, #tpu.memory_space<vmem>>, %arg4: memref<32x16xf32, #tpu.memory_space<vmem>>, %arg5: memref<1x32x16xf32, #tpu.memory_space<vmem>>) attributes {dimension_semantics = [#tpu.dimension_semantics<parallel>], iteration_bounds = array<i64: 2>, scalar_prefetch = 0 : i64, scratch_operands = 0 : i64, tpu.core_type = #tpu.core_type<tc>, window_params = [{transform_indices = @transform_0, window_bounds = array<i64: 1, 32, 72>}, {pipeline_mode = #tpu.pipeline_mode<synchronous>, transform_indices = @transform_1, window_bounds = array<i64: 72, 16>}, {pipeline_mode = #tpu.pipeline_mode<synchronous>, transform_indices = @transform_2, window_bounds = array<i64: 1, 16>}, {pipeline_mode = #tpu.pipeline_mode<synchronous>, transform_indices = @transform_3, window_bounds = array<i64: 32, 16>}, {transform_indices = @transform_4, window_bounds = array<i64: 1, 32, 16>}]} {
    %c0 = arith.constant 0 : index
    %c0_0 = arith.constant 0 : index
    %c0_1 = arith.constant 0 : index
    %0 = vector.load %arg1[%c0, %c0_0, %c0_1] : memref<1x32x72xf32, #tpu.memory_space<vmem>>, vector<1x32x72xf32>
    %1 = vector.shape_cast %0 : vector<1x32x72xf32> to vector<32x72xf32>
    %c0_2 = arith.constant 0 : index
    %c0_3 = arith.constant 0 : index
    %2 = vector.load %arg2[%c0_2, %c0_3] : memref<72x16xf32, #tpu.memory_space<vmem>>, vector<72x16xf32>
    %cst = arith.constant dense<0.000000e+00> : vector<32x16xf32>
    %3 = tpu.matmul %1, %2, %cst {dimension_numbers = #tpu.dot_dimension_numbers<[1], [0], [0], [1], [0, 0, 1, 1], [], []>} : vector<32x72xf32>, vector<72x16xf32>, vector<32x16xf32> -> vector<32x16xf32>
    %c0_4 = arith.constant 0 : index
    %c0_5 = arith.constant 0 : index
    %4 = vector.load %arg3[%c0_4, %c0_5] : memref<1x16xf32, #tpu.memory_space<vmem>>, vector<1x16xf32>
    %5 = vector.broadcast %4 : vector<1x16xf32> to vector<32x16xf32>
    %6 = arith.addf %3, %5 : vector<32x16xf32>
    %cst_6 = arith.constant 5.000000e-01 : f32
    %7 = vector.broadcast %cst_6 : f32 to vector<32x16xf32>
    %8 = arith.mulf %7, %6 : vector<32x16xf32>
    %cst_7 = arith.constant 0.707106769 : f32
    %9 = vector.broadcast %cst_7 : f32 to vector<32x16xf32>
    %10 = arith.mulf %6, %9 : vector<32x16xf32>
    %cst_8 = arith.constant 0.000000e+00 : f32
    %11 = vector.broadcast %cst_8 : f32 to vector<32x16xf32>
    %12 = arith.cmpf olt, %10, %11 : vector<32x16xf32>
    %cst_9 = arith.constant -1.000000e+00 : f32
    %cst_10 = arith.constant 1.000000e+00 : f32
    %13 = vector.broadcast %cst_9 : f32 to vector<32x16xf32>
    %14 = vector.broadcast %cst_10 : f32 to vector<32x16xf32>
    %15 = arith.select %12, %13, %14 : vector<32x16xi1>, vector<32x16xf32>
    %16 = math.absf %10 : vector<32x16xf32>
    %cst_11 = arith.constant 0.327591091 : f32
    %17 = vector.broadcast %cst_11 : f32 to vector<32x16xf32>
    %18 = arith.mulf %17, %16 : vector<32x16xf32>
    %cst_12 = arith.constant 1.000000e+00 : f32
    %19 = vector.broadcast %cst_12 : f32 to vector<32x16xf32>
    %20 = arith.addf %19, %18 : vector<32x16xf32>
    %cst_13 = arith.constant 1.000000e+00 : f32
    %21 = vector.broadcast %cst_13 : f32 to vector<32x16xf32>
    %22 = arith.divf %21, %20 : vector<32x16xf32>
    %cst_14 = arith.constant 1.06140542 : f32
    %23 = vector.broadcast %cst_14 : f32 to vector<32x16xf32>
    %24 = arith.mulf %23, %22 : vector<32x16xf32>
    %cst_15 = arith.constant -1.45315206 : f32
    %25 = vector.broadcast %cst_15 : f32 to vector<32x16xf32>
    %26 = arith.addf %24, %25 : vector<32x16xf32>
    %27 = arith.mulf %26, %22 : vector<32x16xf32>
    %cst_16 = arith.constant 1.42141378 : f32
    %28 = vector.broadcast %cst_16 : f32 to vector<32x16xf32>
    %29 = arith.addf %27, %28 : vector<32x16xf32>
    %30 = arith.mulf %29, %22 : vector<32x16xf32>
    %cst_17 = arith.constant -0.284496725 : f32
    %31 = vector.broadcast %cst_17 : f32 to vector<32x16xf32>
    %32 = arith.addf %30, %31 : vector<32x16xf32>
    %33 = arith.mulf %32, %22 : vector<32x16xf32>
    %cst_18 = arith.constant 0.254829586 : f32
    %34 = vector.broadcast %cst_18 : f32 to vector<32x16xf32>
    %35 = arith.addf %33, %34 : vector<32x16xf32>
    %36 = arith.mulf %35, %22 : vector<32x16xf32>
    %cst_19 = arith.constant 0.000000e+00 : f32
    %37 = vector.broadcast %cst_19 : f32 to vector<32x16xf32>
    %38 = arith.subf %37, %16 : vector<32x16xf32>
    %39 = arith.mulf %38, %16 : vector<32x16xf32>
    %40 = math.exp %39 : vector<32x16xf32>
    %41 = arith.mulf %36, %40 : vector<32x16xf32>
    %cst_20 = arith.constant 1.000000e+00 : f32
    %42 = vector.broadcast %cst_20 : f32 to vector<32x16xf32>
    %43 = arith.subf %42, %41 : vector<32x16xf32>
    %44 = arith.mulf %15, %43 : vector<32x16xf32>
    %cst_21 = arith.constant 1.000000e+00 : f32
    %45 = vector.broadcast %cst_21 : f32 to vector<32x16xf32>
    %46 = arith.addf %45, %44 : vector<32x16xf32>
    %47 = arith.mulf %8, %46 : vector<32x16xf32>
    %c0_22 = arith.constant 0 : index
    %c0_23 = arith.constant 0 : index
    %48 = vector.load %arg4[%c0_22, %c0_23] : memref<32x16xf32, #tpu.memory_space<vmem>>, vector<32x16xf32>
    %49 = arith.addf %47, %48 : vector<32x16xf32>
    %c0_24 = arith.constant 0 : index
    %c0_25 = arith.constant 0 : index
    %c0_26 = arith.constant 0 : index
    %50 = vector.load %arg5[%c0_24, %c0_25, %c0_26] : memref<1x32x16xf32, #tpu.memory_space<vmem>>, vector<1x32x16xf32>
    %51 = vector.shape_cast %50 : vector<1x32x16xf32> to vector<32x16xf32>
    %52 = vector.shape_cast %49 : vector<32x16xf32> to vector<1x32x16xf32>
    tpu.vector_store %arg5[%c0_24, %c0_25, %c0_26], %52 {strides = array<i32>} : memref<1x32x16xf32, #tpu.memory_space<vmem>>, vector<1x32x16xf32>,
    return
  }
  func.func @transform_0(%arg0: i32) -> (i32, i32, i32) {
    %c0_i32 = arith.constant 0 : i32
    %c0_i32_0 = arith.constant 0 : i32
    %c0_i32_1 = arith.constant 0 : i32
    return %arg0, %c0_i32, %c0_i32_0 : i32, i32, i32
  }
  func.func @transform_1(%arg0: i32) -> (i32, i32) {
    %c0_i32 = arith.constant 0 : i32
    %c0_i32_0 = arith.constant 0 : i32
    %c0_i32_1 = arith.constant 0 : i32
    return %c0_i32, %c0_i32_0 : i32, i32
  }
  func.func @transform_2(%arg0: i32) -> (i32, i32) {
    %c0_i32 = arith.constant 0 : i32
    %c0_i32_0 = arith.constant 0 : i32
    %c0_i32_1 = arith.constant 0 : i32
    return %c0_i32, %c0_i32_0 : i32, i32
  }
  func.func @transform_3(%arg0: i32) -> (i32, i32) {
    %c0_i32 = arith.constant 0 : i32
    %c0_i32_0 = arith.constant 0 : i32
    %c0_i32_1 = arith.constant 0 : i32
    return %c0_i32, %c0_i32_0 : i32, i32
  }
  func.func @transform_4(%arg0: i32) -> (i32, i32, i32) {
    %c0_i32 = arith.constant 0 : i32
    %c0_i32_0 = arith.constant 0 : i32
    %c0_i32_1 = arith.constant 0 : i32
    return %arg0, %c0_i32, %c0_i32_0 : i32, i32, i32
  }
}

module attributes {stable_mosaic.version = 11 : i64} {
  func.func @kernel(%arg0: i32, %arg1: memref<1x32x16xf32, #tpu.memory_space<vmem>>, %arg2: memref<1x16x48xf32, #tpu.memory_space<vmem>>, %arg3: memref<1x1x48xf32, #tpu.memory_space<vmem>>, %arg4: memref<1x16x16xf32, #tpu.memory_space<vmem>>, %arg5: memref<1x1x16xf32, #tpu.memory_space<vmem>>, %arg6: memref<1x1x16xf32, #tpu.memory_space<vmem>>, %arg7: memref<1x1x16xf32, #tpu.memory_space<vmem>>, %arg8: memref<1x16x64xf32, #tpu.memory_space<vmem>>, %arg9: memref<1x1x64xf32, #tpu.memory_space<vmem>>, %arg10: memref<1x64x16xf32, #tpu.memory_space<vmem>>, %arg11: memref<1x1x16xf32, #tpu.memory_space<vmem>>, %arg12: memref<1x1x16xf32, #tpu.memory_space<vmem>>, %arg13: memref<1x1x16xf32, #tpu.memory_space<vmem>>, %arg14: memref<32x32xf32, #tpu.memory_space<vmem>>, %arg15: memref<144x32xf32, #tpu.memory_space<vmem>>, %arg16: memref<1x32xf32, #tpu.memory_space<vmem>>, %arg17: memref<1x32xf32, #tpu.memory_space<vmem>>, %arg18: memref<1x32xf32, #tpu.memory_space<vmem>>, %arg19: memref<1x16x32xf32, #tpu.memory_space<vmem>>) attributes {dimension_semantics = [#tpu.dimension_semantics<parallel>], iteration_bounds = array<i64: 2>, scalar_prefetch = 0 : i64, scratch_operands = 0 : i64, tpu.core_type = #tpu.core_type<tc>, window_params = [{transform_indices = @transform_0, window_bounds = array<i64: 1, 32, 16>}, {pipeline_mode = #tpu.pipeline_mode<synchronous>, transform_indices = @transform_1, window_bounds = array<i64: 1, 16, 48>}, {pipeline_mode = #tpu.pipeline_mode<synchronous>, transform_indices = @transform_2, window_bounds = array<i64: 1, 1, 48>}, {pipeline_mode = #tpu.pipeline_mode<synchronous>, transform_indices = @transform_3, window_bounds = array<i64: 1, 16, 16>}, {pipeline_mode = #tpu.pipeline_mode<synchronous>, transform_indices = @transform_4, window_bounds = array<i64: 1, 1, 16>}, {pipeline_mode = #tpu.pipeline_mode<synchronous>, transform_indices = @transform_5, window_bounds = array<i64: 1, 1, 16>}, {pipeline_mode = #tpu.pipeline_mode<synchronous>, transform_indices = @transform_6, window_bounds = array<i64: 1, 1, 16>}, {pipeline_mode = #tpu.pipeline_mode<synchronous>, transform_indices = @transform_7, window_bounds = array<i64: 1, 16, 64>}, {pipeline_mode = #tpu.pipeline_mode<synchronous>, transform_indices = @transform_8, window_bounds = array<i64: 1, 1, 64>}, {pipeline_mode = #tpu.pipeline_mode<synchronous>, transform_indices = @transform_9, window_bounds = array<i64: 1, 64, 16>}, {pipeline_mode = #tpu.pipeline_mode<synchronous>, transform_indices = @transform_10, window_bounds = array<i64: 1, 1, 16>}, {pipeline_mode = #tpu.pipeline_mode<synchronous>, transform_indices = @transform_11, window_bounds = array<i64: 1, 1, 16>}, {pipeline_mode = #tpu.pipeline_mode<synchronous>, transform_indices = @transform_12, window_bounds = array<i64: 1, 1, 16>}, {pipeline_mode = #tpu.pipeline_mode<synchronous>, transform_indices = @transform_13, window_bounds = array<i64: 32, 32>}, {pipeline_mode = #tpu.pipeline_mode<synchronous>, transform_indices = @transform_14, window_bounds = array<i64: 144, 32>}, {pipeline_mode = #tpu.pipeline_mode<synchronous>, transform_indices = @transform_15, window_bounds = array<i64: 1, 32>}, {pipeline_mode = #tpu.pipeline_mode<synchronous>, transform_indices = @transform_16, window_bounds = array<i64: 1, 32>}, {pipeline_mode = #tpu.pipeline_mode<synchronous>, transform_indices = @transform_17, window_bounds = array<i64: 1, 32>}, {transform_indices = @transform_18, window_bounds = array<i64: 1, 16, 32>}]} {
    %c0 = arith.constant 0 : index
    %c0_0 = arith.constant 0 : index
    %c0_1 = arith.constant 0 : index
    %0 = vector.load %arg1[%c0, %c0_0, %c0_1] : memref<1x32x16xf32, #tpu.memory_space<vmem>>, vector<1x32x16xf32>
    %1 = vector.shape_cast %0 : vector<1x32x16xf32> to vector<32x16xf32>
    %c0_2 = arith.constant 0 : index
    %c0_3 = arith.constant 0 : index
    %c0_4 = arith.constant 0 : index
    %2 = vector.load %arg2[%c0_2, %c0_3, %c0_4] : memref<1x16x48xf32, #tpu.memory_space<vmem>>, vector<1x16x48xf32>
    %3 = vector.shape_cast %2 : vector<1x16x48xf32> to vector<16x48xf32>
    %cst = arith.constant dense<0.000000e+00> : vector<32x48xf32>
    %4 = tpu.matmul %1, %3, %cst {dimension_numbers = #tpu.dot_dimension_numbers<[1], [0], [0], [1], [0, 0, 1, 1], [], []>} : vector<32x16xf32>, vector<16x48xf32>, vector<32x48xf32> -> vector<32x48xf32>
    %c0_5 = arith.constant 0 : index
    %c0_6 = arith.constant 0 : index
    %c0_7 = arith.constant 0 : index
    %5 = vector.load %arg3[%c0_5, %c0_6, %c0_7] : memref<1x1x48xf32, #tpu.memory_space<vmem>>, vector<1x1x48xf32>
    %6 = vector.shape_cast %5 : vector<1x1x48xf32> to vector<1x48xf32>
    %7 = vector.broadcast %6 : vector<1x48xf32> to vector<32x48xf32>
    %8 = arith.addf %4, %7 : vector<32x48xf32>
    %9 = vector.extract_strided_slice %8 {offsets = [0, 0], sizes = [32, 8], strides = [1, 1]} : vector<32x48xf32> to vector<32x8xf32>
    %10 = vector.extract_strided_slice %8 {offsets = [0, 8], sizes = [32, 8], strides = [1, 1]} : vector<32x48xf32> to vector<32x8xf32>
    %11 = vector.shape_cast %9 : vector<32x8xf32> to vector<1x32x8xf32>
    %12 = vector.shape_cast %10 : vector<32x8xf32> to vector<1x32x8xf32>
    %13 = tpu.concatenate %11, %12 in 0 : vector<1x32x8xf32>, vector<1x32x8xf32> -> vector<2x32x8xf32>
    %cst_8 = arith.constant 0.353553385 : f32
    %14 = vector.broadcast %cst_8 : f32 to vector<2x32x8xf32>
    %15 = arith.mulf %13, %14 : vector<2x32x8xf32>
    %16 = vector.extract_strided_slice %8 {offsets = [0, 16], sizes = [32, 8], strides = [1, 1]} : vector<32x48xf32> to vector<32x8xf32>
    %17 = vector.extract_strided_slice %8 {offsets = [0, 24], sizes = [32, 8], strides = [1, 1]} : vector<32x48xf32> to vector<32x8xf32>
    %18 = vector.shape_cast %16 : vector<32x8xf32> to vector<1x32x8xf32>
    %19 = vector.shape_cast %17 : vector<32x8xf32> to vector<1x32x8xf32>
    %20 = tpu.concatenate %18, %19 in 0 : vector<1x32x8xf32>, vector<1x32x8xf32> -> vector<2x32x8xf32>
    %21 = vector.extract_strided_slice %8 {offsets = [0, 32], sizes = [32, 8], strides = [1, 1]} : vector<32x48xf32> to vector<32x8xf32>
    %22 = vector.extract_strided_slice %8 {offsets = [0, 40], sizes = [32, 8], strides = [1, 1]} : vector<32x48xf32> to vector<32x8xf32>
    %23 = vector.shape_cast %21 : vector<32x8xf32> to vector<1x32x8xf32>
    %24 = vector.shape_cast %22 : vector<32x8xf32> to vector<1x32x8xf32>
    %25 = tpu.concatenate %23, %24 in 0 : vector<1x32x8xf32>, vector<1x32x8xf32> -> vector<2x32x8xf32>
    "tpu.trace_start"() <{level = 10 : i32, message = "hnd,hmd->hnm"}> : () -> ()
    %cst_9 = arith.constant dense<0.000000e+00> : vector<2x32x32xf32>
    %26 = tpu.matmul %15, %20, %cst_9 {dimension_numbers = #tpu.dot_dimension_numbers<[2], [2], [1], [1], [0, 0, 0, 1, 1, 1], [0], [0]>} : vector<2x32x8xf32>, vector<2x32x8xf32>, vector<2x32x32xf32> -> vector<2x32x32xf32>
    "tpu.trace_stop"() : () -> ()
    %c0_10 = arith.constant 0 : index
    %c0_11 = arith.constant 0 : index
    %27 = vector.load %arg14[%c0_10, %c0_11] : memref<32x32xf32, #tpu.memory_space<vmem>>, vector<32x32xf32>
    %28 = vector.shape_cast %27 : vector<32x32xf32> to vector<1x32x32xf32>
    %29 = vector.broadcast %28 : vector<1x32x32xf32> to vector<2x32x32xf32>
    %30 = arith.addf %26, %29 : vector<2x32x32xf32>
    %cst_12 = arith.constant dense<0xFF800000> : vector<2x32xf32>
    %31 = vector.multi_reduction <maximumf>, %30, %cst_12 [2] : vector<2x32x32xf32> to vector<2x32xf32>
    %32 = vector.shape_cast %31 : vector<2x32xf32> to vector<2x32x1xf32>
    %33 = vector.broadcast %32 : vector<2x32x1xf32> to vector<2x32x32xf32>
    %34 = arith.subf %30, %33 : vector<2x32x32xf32>
    %35 = math.exp %34 : vector<2x32x32xf32>
    %cst_13 = arith.constant dense<0.000000e+00> : vector<2x32xf32>
    %36 = vector.multi_reduction <add>, %35, %cst_13 [2] : vector<2x32x32xf32> to vector<2x32xf32>
    %37 = vector.shape_cast %36 : vector<2x32xf32> to vector<2x32x1xf32>
    %38 = tpu.reciprocal %37 {approx = true} : vector<2x32x1xf32> -> vector<2x32x1xf32>
    %39 = vector.broadcast %38 : vector<2x32x1xf32> to vector<2x32x32xf32>
    %40 = arith.mulf %35, %39 : vector<2x32x32xf32>
    "tpu.trace_start"() <{level = 10 : i32, message = "hnm,hmd->hnd"}> : () -> ()
    %cst_14 = arith.constant dense<0.000000e+00> : vector<2x32x8xf32>
    %41 = tpu.matmul %40, %25, %cst_14 {dimension_numbers = #tpu.dot_dimension_numbers<[2], [1], [1], [2], [0, 0, 0, 1, 1, 2], [0], [0]>} : vector<2x32x32xf32>, vector<2x32x8xf32>, vector<2x32x8xf32> -> vector<2x32x8xf32>
    "tpu.trace_stop"() : () -> ()
    %42 = vector.extract_strided_slice %41 {offsets = [0, 0, 0], sizes = [1, 32, 8], strides = [1, 1, 1]} : vector<2x32x8xf32> to vector<1x32x8xf32>
    %43 = vector.shape_cast %42 : vector<1x32x8xf32> to vector<32x8xf32>
    %44 = vector.extract_strided_slice %41 {offsets = [1, 0, 0], sizes = [1, 32, 8], strides = [1, 1, 1]} : vector<2x32x8xf32> to vector<1x32x8xf32>
    %45 = vector.shape_cast %44 : vector<1x32x8xf32> to vector<32x8xf32>
    %46 = tpu.concatenate %43, %45 in 1 : vector<32x8xf32>, vector<32x8xf32> -> vector<32x16xf32>
    %c0_15 = arith.constant 0 : index
    %c0_16 = arith.constant 0 : index
    %c0_17 = arith.constant 0 : index
    %47 = vector.load %arg4[%c0_15, %c0_16, %c0_17] : memref<1x16x16xf32, #tpu.memory_space<vmem>>, vector<1x16x16xf32>
    %48 = vector.shape_cast %47 : vector<1x16x16xf32> to vector<16x16xf32>
    %cst_18 = arith.constant dense<0.000000e+00> : vector<32x16xf32>
    %49 = tpu.matmul %46, %48, %cst_18 {dimension_numbers = #tpu.dot_dimension_numbers<[1], [0], [0], [1], [0, 0, 1, 1], [], []>} : vector<32x16xf32>, vector<16x16xf32>, vector<32x16xf32> -> vector<32x16xf32>
    %c0_19 = arith.constant 0 : index
    %c0_20 = arith.constant 0 : index
    %c0_21 = arith.constant 0 : index
    %50 = vector.load %arg5[%c0_19, %c0_20, %c0_21] : memref<1x1x16xf32, #tpu.memory_space<vmem>>, vector<1x1x16xf32>
    %51 = vector.shape_cast %50 : vector<1x1x16xf32> to vector<1x16xf32>
    %52 = vector.broadcast %51 : vector<1x16xf32> to vector<32x16xf32>
    %53 = arith.addf %49, %52 : vector<32x16xf32>
    %54 = arith.addf %1, %53 : vector<32x16xf32>
    %c0_22 = arith.constant 0 : index
    %c0_23 = arith.constant 0 : index
    %c0_24 = arith.constant 0 : index
    %55 = vector.load %arg6[%c0_22, %c0_23, %c0_24] : memref<1x1x16xf32, #tpu.memory_space<vmem>>, vector<1x1x16xf32>
    %56 = vector.shape_cast %55 : vector<1x1x16xf32> to vector<1x16xf32>
    %c0_25 = arith.constant 0 : index
    %c0_26 = arith.constant 0 : index
    %c0_27 = arith.constant 0 : index
    %57 = vector.load %arg7[%c0_25, %c0_26, %c0_27] : memref<1x1x16xf32, #tpu.memory_space<vmem>>, vector<1x1x16xf32>
    %58 = vector.shape_cast %57 : vector<1x1x16xf32> to vector<1x16xf32>
    %cst_28 = arith.constant dense<0.000000e+00> : vector<32xf32>
    %59 = vector.multi_reduction <add>, %54, %cst_28 [1] : vector<32x16xf32> to vector<32xf32>
    %60 = vector.shape_cast %59 : vector<32xf32> to vector<32x1xf32>
    %cst_29 = arith.constant 1.600000e+01 : f32
    %61 = vector.broadcast %cst_29 : f32 to vector<32x1xf32>
    %62 = arith.divf %60, %61 : vector<32x1xf32>
    %63 = vector.broadcast %62 : vector<32x1xf32> to vector<32x16xf32>
    %64 = arith.subf %54, %63 : vector<32x16xf32>
    %65 = arith.mulf %64, %64 : vector<32x16xf32>
    %cst_30 = arith.constant dense<0.000000e+00> : vector<32xf32>
    %66 = vector.multi_reduction <add>, %65, %cst_30 [1] : vector<32x16xf32> to vector<32xf32>
    %67 = vector.shape_cast %66 : vector<32xf32> to vector<32x1xf32>
    %cst_31 = arith.constant 1.600000e+01 : f32
    %68 = vector.broadcast %cst_31 : f32 to vector<32x1xf32>
    %69 = arith.divf %67, %68 : vector<32x1xf32>
    %cst_32 = arith.constant 9.99999997E-7 : f32
    %70 = vector.broadcast %cst_32 : f32 to vector<32x1xf32>
    %71 = arith.addf %69, %70 : vector<32x1xf32>
    %72 = math.rsqrt %71 : vector<32x1xf32>
    %73 = vector.broadcast %72 : vector<32x1xf32> to vector<32x16xf32>
    %74 = arith.mulf %64, %73 : vector<32x16xf32>
    %75 = vector.broadcast %56 : vector<1x16xf32> to vector<32x16xf32>
    %76 = arith.mulf %74, %75 : vector<32x16xf32>
    %77 = vector.broadcast %58 : vector<1x16xf32> to vector<32x16xf32>
    %78 = arith.addf %76, %77 : vector<32x16xf32>
    %c0_33 = arith.constant 0 : index
    %c0_34 = arith.constant 0 : index
    %c0_35 = arith.constant 0 : index
    %79 = vector.load %arg8[%c0_33, %c0_34, %c0_35] : memref<1x16x64xf32, #tpu.memory_space<vmem>>, vector<1x16x64xf32>
    %80 = vector.shape_cast %79 : vector<1x16x64xf32> to vector<16x64xf32>
    %cst_36 = arith.constant dense<0.000000e+00> : vector<32x64xf32>
    %81 = tpu.matmul %78, %80, %cst_36 {dimension_numbers = #tpu.dot_dimension_numbers<[1], [0], [0], [1], [0, 0, 1, 1], [], []>} : vector<32x16xf32>, vector<16x64xf32>, vector<32x64xf32> -> vector<32x64xf32>
    %c0_37 = arith.constant 0 : index
    %c0_38 = arith.constant 0 : index
    %c0_39 = arith.constant 0 : index
    %82 = vector.load %arg9[%c0_37, %c0_38, %c0_39] : memref<1x1x64xf32, #tpu.memory_space<vmem>>, vector<1x1x64xf32>
    %83 = vector.shape_cast %82 : vector<1x1x64xf32> to vector<1x64xf32>
    %84 = vector.broadcast %83 : vector<1x64xf32> to vector<32x64xf32>
    %85 = arith.addf %81, %84 : vector<32x64xf32>
    %cst_40 = arith.constant 5.000000e-01 : f32
    %86 = vector.broadcast %cst_40 : f32 to vector<32x64xf32>
    %87 = arith.mulf %86, %85 : vector<32x64xf32>
    %cst_41 = arith.constant 0.707106769 : f32
    %88 = vector.broadcast %cst_41 : f32 to vector<32x64xf32>
    %89 = arith.mulf %85, %88 : vector<32x64xf32>
    %cst_42 = arith.constant 0.000000e+00 : f32
    %90 = vector.broadcast %cst_42 : f32 to vector<32x64xf32>
    %91 = arith.cmpf olt, %89, %90 : vector<32x64xf32>
    %cst_43 = arith.constant -1.000000e+00 : f32
    %cst_44 = arith.constant 1.000000e+00 : f32
    %92 = vector.broadcast %cst_43 : f32 to vector<32x64xf32>
    %93 = vector.broadcast %cst_44 : f32 to vector<32x64xf32>
    %94 = arith.select %91, %92, %93 : vector<32x64xi1>, vector<32x64xf32>
    %95 = math.absf %89 : vector<32x64xf32>
    %cst_45 = arith.constant 0.327591091 : f32
    %96 = vector.broadcast %cst_45 : f32 to vector<32x64xf32>
    %97 = arith.mulf %96, %95 : vector<32x64xf32>
    %cst_46 = arith.constant 1.000000e+00 : f32
    %98 = vector.broadcast %cst_46 : f32 to vector<32x64xf32>
    %99 = arith.addf %98, %97 : vector<32x64xf32>
    %cst_47 = arith.constant 1.000000e+00 : f32
    %100 = vector.broadcast %cst_47 : f32 to vector<32x64xf32>
    %101 = arith.divf %100, %99 : vector<32x64xf32>
    %cst_48 = arith.constant 1.06140542 : f32
    %102 = vector.broadcast %cst_48 : f32 to vector<32x64xf32>
    %103 = arith.mulf %102, %101 : vector<32x64xf32>
    %cst_49 = arith.constant -1.45315206 : f32
    %104 = vector.broadcast %cst_49 : f32 to vector<32x64xf32>
    %105 = arith.addf %103, %104 : vector<32x64xf32>
    %106 = arith.mulf %105, %101 : vector<32x64xf32>
    %cst_50 = arith.constant 1.42141378 : f32
    %107 = vector.broadcast %cst_50 : f32 to vector<32x64xf32>
    %108 = arith.addf %106, %107 : vector<32x64xf32>
    %109 = arith.mulf %108, %101 : vector<32x64xf32>
    %cst_51 = arith.constant -0.284496725 : f32
    %110 = vector.broadcast %cst_51 : f32 to vector<32x64xf32>
    %111 = arith.addf %109, %110 : vector<32x64xf32>
    %112 = arith.mulf %111, %101 : vector<32x64xf32>
    %cst_52 = arith.constant 0.254829586 : f32
    %113 = vector.broadcast %cst_52 : f32 to vector<32x64xf32>
    %114 = arith.addf %112, %113 : vector<32x64xf32>
    %115 = arith.mulf %114, %101 : vector<32x64xf32>
    %cst_53 = arith.constant 0.000000e+00 : f32
    %116 = vector.broadcast %cst_53 : f32 to vector<32x64xf32>
    %117 = arith.subf %116, %95 : vector<32x64xf32>
    %118 = arith.mulf %117, %95 : vector<32x64xf32>
    %119 = math.exp %118 : vector<32x64xf32>
    %120 = arith.mulf %115, %119 : vector<32x64xf32>
    %cst_54 = arith.constant 1.000000e+00 : f32
    %121 = vector.broadcast %cst_54 : f32 to vector<32x64xf32>
    %122 = arith.subf %121, %120 : vector<32x64xf32>
    %123 = arith.mulf %94, %122 : vector<32x64xf32>
    %cst_55 = arith.constant 1.000000e+00 : f32
    %124 = vector.broadcast %cst_55 : f32 to vector<32x64xf32>
    %125 = arith.addf %124, %123 : vector<32x64xf32>
    %126 = arith.mulf %87, %125 : vector<32x64xf32>
    %c0_56 = arith.constant 0 : index
    %c0_57 = arith.constant 0 : index
    %c0_58 = arith.constant 0 : index
    %127 = vector.load %arg10[%c0_56, %c0_57, %c0_58] : memref<1x64x16xf32, #tpu.memory_space<vmem>>, vector<1x64x16xf32>
    %128 = vector.shape_cast %127 : vector<1x64x16xf32> to vector<64x16xf32>
    %cst_59 = arith.constant dense<0.000000e+00> : vector<32x16xf32>
    %129 = tpu.matmul %126, %128, %cst_59 {dimension_numbers = #tpu.dot_dimension_numbers<[1], [0], [0], [1], [0, 0, 1, 1], [], []>} : vector<32x64xf32>, vector<64x16xf32>, vector<32x16xf32> -> vector<32x16xf32>
    %c0_60 = arith.constant 0 : index
    %c0_61 = arith.constant 0 : index
    %c0_62 = arith.constant 0 : index
    %130 = vector.load %arg11[%c0_60, %c0_61, %c0_62] : memref<1x1x16xf32, #tpu.memory_space<vmem>>, vector<1x1x16xf32>
    %131 = vector.shape_cast %130 : vector<1x1x16xf32> to vector<1x16xf32>
    %132 = vector.broadcast %131 : vector<1x16xf32> to vector<32x16xf32>
    %133 = arith.addf %129, %132 : vector<32x16xf32>
    %134 = arith.addf %78, %133 : vector<32x16xf32>
    %c0_63 = arith.constant 0 : index
    %c0_64 = arith.constant 0 : index
    %c0_65 = arith.constant 0 : index
    %135 = vector.load %arg12[%c0_63, %c0_64, %c0_65] : memref<1x1x16xf32, #tpu.memory_space<vmem>>, vector<1x1x16xf32>
    %136 = vector.shape_cast %135 : vector<1x1x16xf32> to vector<1x16xf32>
    %c0_66 = arith.constant 0 : index
    %c0_67 = arith.constant 0 : index
    %c0_68 = arith.constant 0 : index
    %137 = vector.load %arg13[%c0_66, %c0_67, %c0_68] : memref<1x1x16xf32, #tpu.memory_space<vmem>>, vector<1x1x16xf32>
    %138 = vector.shape_cast %137 : vector<1x1x16xf32> to vector<1x16xf32>
    %cst_69 = arith.constant dense<0.000000e+00> : vector<32xf32>
    %139 = vector.multi_reduction <add>, %134, %cst_69 [1] : vector<32x16xf32> to vector<32xf32>
    %140 = vector.shape_cast %139 : vector<32xf32> to vector<32x1xf32>
    %cst_70 = arith.constant 1.600000e+01 : f32
    %141 = vector.broadcast %cst_70 : f32 to vector<32x1xf32>
    %142 = arith.divf %140, %141 : vector<32x1xf32>
    %143 = vector.broadcast %142 : vector<32x1xf32> to vector<32x16xf32>
    %144 = arith.subf %134, %143 : vector<32x16xf32>
    %145 = arith.mulf %144, %144 : vector<32x16xf32>
    %cst_71 = arith.constant dense<0.000000e+00> : vector<32xf32>
    %146 = vector.multi_reduction <add>, %145, %cst_71 [1] : vector<32x16xf32> to vector<32xf32>
    %147 = vector.shape_cast %146 : vector<32xf32> to vector<32x1xf32>
    %cst_72 = arith.constant 1.600000e+01 : f32
    %148 = vector.broadcast %cst_72 : f32 to vector<32x1xf32>
    %149 = arith.divf %147, %148 : vector<32x1xf32>
    %cst_73 = arith.constant 9.99999997E-7 : f32
    %150 = vector.broadcast %cst_73 : f32 to vector<32x1xf32>
    %151 = arith.addf %149, %150 : vector<32x1xf32>
    %152 = math.rsqrt %151 : vector<32x1xf32>
    %153 = vector.broadcast %152 : vector<32x1xf32> to vector<32x16xf32>
    %154 = arith.mulf %144, %153 : vector<32x16xf32>
    %155 = vector.broadcast %136 : vector<1x16xf32> to vector<32x16xf32>
    %156 = arith.mulf %154, %155 : vector<32x16xf32>
    %157 = vector.broadcast %138 : vector<1x16xf32> to vector<32x16xf32>
    %158 = arith.addf %156, %157 : vector<32x16xf32>
    %c0_74 = arith.constant 0 : index
    %c0_75 = arith.constant 0 : index
    %159 = vector.load %arg15[%c0_74, %c0_75] : memref<144x32xf32, #tpu.memory_space<vmem>>, vector<144x32xf32>
    %c0_76 = arith.constant 0 : index
    %c0_77 = arith.constant 0 : index
    %160 = vector.load %arg16[%c0_76, %c0_77] : memref<1x32xf32, #tpu.memory_space<vmem>>, vector<1x32xf32>
    %cst_78 = arith.constant 0.000000e+00 : f32
    %161 = vector.broadcast %cst_78 : f32 to vector<1x16xf32>
    %cst_79 = arith.constant 0.000000e+00 : f32
    %162 = vector.broadcast %cst_79 : f32 to vector<8x16xf32>
    %163 = tpu.concatenate %161, %162, %161 in 0 : vector<1x16xf32>, vector<8x16xf32>, vector<1x16xf32> -> vector<10x16xf32>
    %164 = vector.extract_strided_slice %163 {offsets = [0, 0], sizes = [8, 16], strides = [1, 1]} : vector<10x16xf32> to vector<8x16xf32>
    %165 = vector.extract_strided_slice %163 {offsets = [1, 0], sizes = [8, 16], strides = [1, 1]} : vector<10x16xf32> to vector<8x16xf32>
    %166 = vector.extract_strided_slice %163 {offsets = [2, 0], sizes = [8, 16], strides = [1, 1]} : vector<10x16xf32> to vector<8x16xf32>
    %167 = vector.extract_strided_slice %158 {offsets = [0, 0], sizes = [8, 16], strides = [1, 1]} : vector<32x16xf32> to vector<8x16xf32>
    %168 = tpu.concatenate %161, %167, %161 in 0 : vector<1x16xf32>, vector<8x16xf32>, vector<1x16xf32> -> vector<10x16xf32>
    %169 = vector.extract_strided_slice %168 {offsets = [0, 0], sizes = [8, 16], strides = [1, 1]} : vector<10x16xf32> to vector<8x16xf32>
    %170 = vector.extract_strided_slice %168 {offsets = [1, 0], sizes = [8, 16], strides = [1, 1]} : vector<10x16xf32> to vector<8x16xf32>
    %171 = vector.extract_strided_slice %168 {offsets = [2, 0], sizes = [8, 16], strides = [1, 1]} : vector<10x16xf32> to vector<8x16xf32>
    %172 = vector.extract_strided_slice %158 {offsets = [8, 0], sizes = [8, 16], strides = [1, 1]} : vector<32x16xf32> to vector<8x16xf32>
    %173 = tpu.concatenate %161, %172, %161 in 0 : vector<1x16xf32>, vector<8x16xf32>, vector<1x16xf32> -> vector<10x16xf32>
    %174 = vector.extract_strided_slice %173 {offsets = [0, 0], sizes = [8, 16], strides = [1, 1]} : vector<10x16xf32> to vector<8x16xf32>
    %175 = vector.extract_strided_slice %173 {offsets = [1, 0], sizes = [8, 16], strides = [1, 1]} : vector<10x16xf32> to vector<8x16xf32>
    %176 = vector.extract_strided_slice %173 {offsets = [2, 0], sizes = [8, 16], strides = [1, 1]} : vector<10x16xf32> to vector<8x16xf32>
    %177 = tpu.concatenate %164, %165, %166, %169, %170, %171, %174, %175, %176 in 1 : vector<8x16xf32>, vector<8x16xf32>, vector<8x16xf32>, vector<8x16xf32>, vector<8x16xf32>, vector<8x16xf32>, vector<8x16xf32>, vector<8x16xf32>, vector<8x16xf32> -> vector<8x144xf32>
    %cst_80 = arith.constant dense<0.000000e+00> : vector<8x32xf32>
    %178 = tpu.matmul %177, %159, %cst_80 {dimension_numbers = #tpu.dot_dimension_numbers<[1], [0], [0], [1], [0, 0, 1, 1], [], []>} : vector<8x144xf32>, vector<144x32xf32>, vector<8x32xf32> -> vector<8x32xf32>
    %179 = vector.broadcast %160 : vector<1x32xf32> to vector<8x32xf32>
    %180 = arith.addf %178, %179 : vector<8x32xf32>
    %181 = vector.extract_strided_slice %158 {offsets = [8, 0], sizes = [8, 16], strides = [1, 1]} : vector<32x16xf32> to vector<8x16xf32>
    %182 = tpu.concatenate %161, %181, %161 in 0 : vector<1x16xf32>, vector<8x16xf32>, vector<1x16xf32> -> vector<10x16xf32>
    %183 = vector.extract_strided_slice %182 {offsets = [0, 0], sizes = [8, 16], strides = [1, 1]} : vector<10x16xf32> to vector<8x16xf32>
    %184 = vector.extract_strided_slice %182 {offsets = [1, 0], sizes = [8, 16], strides = [1, 1]} : vector<10x16xf32> to vector<8x16xf32>
    %185 = vector.extract_strided_slice %182 {offsets = [2, 0], sizes = [8, 16], strides = [1, 1]} : vector<10x16xf32> to vector<8x16xf32>
    %186 = vector.extract_strided_slice %158 {offsets = [16, 0], sizes = [8, 16], strides = [1, 1]} : vector<32x16xf32> to vector<8x16xf32>
    %187 = tpu.concatenate %161, %186, %161 in 0 : vector<1x16xf32>, vector<8x16xf32>, vector<1x16xf32> -> vector<10x16xf32>
    %188 = vector.extract_strided_slice %187 {offsets = [0, 0], sizes = [8, 16], strides = [1, 1]} : vector<10x16xf32> to vector<8x16xf32>
    %189 = vector.extract_strided_slice %187 {offsets = [1, 0], sizes = [8, 16], strides = [1, 1]} : vector<10x16xf32> to vector<8x16xf32>
    %190 = vector.extract_strided_slice %187 {offsets = [2, 0], sizes = [8, 16], strides = [1, 1]} : vector<10x16xf32> to vector<8x16xf32>
    %191 = vector.extract_strided_slice %158 {offsets = [24, 0], sizes = [8, 16], strides = [1, 1]} : vector<32x16xf32> to vector<8x16xf32>
    %192 = tpu.concatenate %161, %191, %161 in 0 : vector<1x16xf32>, vector<8x16xf32>, vector<1x16xf32> -> vector<10x16xf32>
    %193 = vector.extract_strided_slice %192 {offsets = [0, 0], sizes = [8, 16], strides = [1, 1]} : vector<10x16xf32> to vector<8x16xf32>
    %194 = vector.extract_strided_slice %192 {offsets = [1, 0], sizes = [8, 16], strides = [1, 1]} : vector<10x16xf32> to vector<8x16xf32>
    %195 = vector.extract_strided_slice %192 {offsets = [2, 0], sizes = [8, 16], strides = [1, 1]} : vector<10x16xf32> to vector<8x16xf32>
    %196 = tpu.concatenate %183, %184, %185, %188, %189, %190, %193, %194, %195 in 1 : vector<8x16xf32>, vector<8x16xf32>, vector<8x16xf32>, vector<8x16xf32>, vector<8x16xf32>, vector<8x16xf32>, vector<8x16xf32>, vector<8x16xf32>, vector<8x16xf32> -> vector<8x144xf32>
    %cst_81 = arith.constant dense<0.000000e+00> : vector<8x32xf32>
    %197 = tpu.matmul %196, %159, %cst_81 {dimension_numbers = #tpu.dot_dimension_numbers<[1], [0], [0], [1], [0, 0, 1, 1], [], []>} : vector<8x144xf32>, vector<144x32xf32>, vector<8x32xf32> -> vector<8x32xf32>
    %198 = vector.broadcast %160 : vector<1x32xf32> to vector<8x32xf32>
    %199 = arith.addf %197, %198 : vector<8x32xf32>
    %200 = tpu.concatenate %180, %199 in 0 : vector<8x32xf32>, vector<8x32xf32> -> vector<16x32xf32>
    %c0_82 = arith.constant 0 : index
    %c0_83 = arith.constant 0 : index
    %201 = vector.load %arg17[%c0_82, %c0_83] : memref<1x32xf32, #tpu.memory_space<vmem>>, vector<1x32xf32>
    %c0_84 = arith.constant 0 : index
    %c0_85 = arith.constant 0 : index
    %202 = vector.load %arg18[%c0_84, %c0_85] : memref<1x32xf32, #tpu.memory_space<vmem>>, vector<1x32xf32>
    %cst_86 = arith.constant dense<0.000000e+00> : vector<16xf32>
    %203 = vector.multi_reduction <add>, %200, %cst_86 [1] : vector<16x32xf32> to vector<16xf32>
    %204 = vector.shape_cast %203 : vector<16xf32> to vector<16x1xf32>
    %cst_87 = arith.constant 3.200000e+01 : f32
    %205 = vector.broadcast %cst_87 : f32 to vector<16x1xf32>
    %206 = arith.divf %204, %205 : vector<16x1xf32>
    %207 = vector.broadcast %206 : vector<16x1xf32> to vector<16x32xf32>
    %208 = arith.subf %200, %207 : vector<16x32xf32>
    %209 = arith.mulf %208, %208 : vector<16x32xf32>
    %cst_88 = arith.constant dense<0.000000e+00> : vector<16xf32>
    %210 = vector.multi_reduction <add>, %209, %cst_88 [1] : vector<16x32xf32> to vector<16xf32>
    %211 = vector.shape_cast %210 : vector<16xf32> to vector<16x1xf32>
    %cst_89 = arith.constant 3.200000e+01 : f32
    %212 = vector.broadcast %cst_89 : f32 to vector<16x1xf32>
    %213 = arith.divf %211, %212 : vector<16x1xf32>
    %cst_90 = arith.constant 9.99999974E-6 : f32
    %214 = vector.broadcast %cst_90 : f32 to vector<16x1xf32>
    %215 = arith.addf %213, %214 : vector<16x1xf32>
    %216 = math.rsqrt %215 : vector<16x1xf32>
    %217 = vector.broadcast %216 : vector<16x1xf32> to vector<16x32xf32>
    %218 = arith.mulf %208, %217 : vector<16x32xf32>
    %219 = vector.broadcast %201 : vector<1x32xf32> to vector<16x32xf32>
    %220 = arith.mulf %218, %219 : vector<16x32xf32>
    %221 = vector.broadcast %202 : vector<1x32xf32> to vector<16x32xf32>
    %222 = arith.addf %220, %221 : vector<16x32xf32>
    %c0_91 = arith.constant 0 : index
    %c0_92 = arith.constant 0 : index
    %c0_93 = arith.constant 0 : index
    %223 = vector.load %arg19[%c0_91, %c0_92, %c0_93] : memref<1x16x32xf32, #tpu.memory_space<vmem>>, vector<1x16x32xf32>
    %224 = vector.shape_cast %223 : vector<1x16x32xf32> to vector<16x32xf32>
    %225 = vector.shape_cast %222 : vector<16x32xf32> to vector<1x16x32xf32>
    tpu.vector_store %arg19[%c0_91, %c0_92, %c0_93], %225 {strides = array<i32>} : memref<1x16x32xf32, #tpu.memory_space<vmem>>, vector<1x16x32xf32>,
    return
  }
  func.func @transform_0(%arg0: i32) -> (i32, i32, i32) {
    %c0_i32 = arith.constant 0 : i32
    %c0_i32_0 = arith.constant 0 : i32
    %c0_i32_1 = arith.constant 0 : i32
    return %arg0, %c0_i32, %c0_i32_0 : i32, i32, i32
  }
  func.func @transform_1(%arg0: i32) -> (i32, i32, i32) {
    %c0_i32 = arith.constant 0 : i32
    %c0_i32_0 = arith.constant 0 : i32
    %c0_i32_1 = arith.constant 0 : i32
    %c0_i32_2 = arith.constant 0 : i32
    return %c0_i32, %c0_i32_0, %c0_i32_1 : i32, i32, i32
  }
  func.func @transform_2(%arg0: i32) -> (i32, i32, i32) {
    %c0_i32 = arith.constant 0 : i32
    %c0_i32_0 = arith.constant 0 : i32
    %c0_i32_1 = arith.constant 0 : i32
    %c0_i32_2 = arith.constant 0 : i32
    return %c0_i32, %c0_i32_0, %c0_i32_1 : i32, i32, i32
  }
  func.func @transform_3(%arg0: i32) -> (i32, i32, i32) {
    %c0_i32 = arith.constant 0 : i32
    %c0_i32_0 = arith.constant 0 : i32
    %c0_i32_1 = arith.constant 0 : i32
    %c0_i32_2 = arith.constant 0 : i32
    return %c0_i32, %c0_i32_0, %c0_i32_1 : i32, i32, i32
  }
  func.func @transform_4(%arg0: i32) -> (i32, i32, i32) {
    %c0_i32 = arith.constant 0 : i32
    %c0_i32_0 = arith.constant 0 : i32
    %c0_i32_1 = arith.constant 0 : i32
    %c0_i32_2 = arith.constant 0 : i32
    return %c0_i32, %c0_i32_0, %c0_i32_1 : i32, i32, i32
  }
  func.func @transform_5(%arg0: i32) -> (i32, i32, i32) {
    %c0_i32 = arith.constant 0 : i32
    %c0_i32_0 = arith.constant 0 : i32
    %c0_i32_1 = arith.constant 0 : i32
    %c0_i32_2 = arith.constant 0 : i32
    return %c0_i32, %c0_i32_0, %c0_i32_1 : i32, i32, i32
  }
  func.func @transform_6(%arg0: i32) -> (i32, i32, i32) {
    %c0_i32 = arith.constant 0 : i32
    %c0_i32_0 = arith.constant 0 : i32
    %c0_i32_1 = arith.constant 0 : i32
    %c0_i32_2 = arith.constant 0 : i32
    return %c0_i32, %c0_i32_0, %c0_i32_1 : i32, i32, i32
  }
  func.func @transform_7(%arg0: i32) -> (i32, i32, i32) {
    %c0_i32 = arith.constant 0 : i32
    %c0_i32_0 = arith.constant 0 : i32
    %c0_i32_1 = arith.constant 0 : i32
    %c0_i32_2 = arith.constant 0 : i32
    return %c0_i32, %c0_i32_0, %c0_i32_1 : i32, i32, i32
  }
  func.func @transform_8(%arg0: i32) -> (i32, i32, i32) {
    %c0_i32 = arith.constant 0 : i32
    %c0_i32_0 = arith.constant 0 : i32
    %c0_i32_1 = arith.constant 0 : i32
    %c0_i32_2 = arith.constant 0 : i32
    return %c0_i32, %c0_i32_0, %c0_i32_1 : i32, i32, i32
  }
  func.func @transform_9(%arg0: i32) -> (i32, i32, i32) {
    %c0_i32 = arith.constant 0 : i32
    %c0_i32_0 = arith.constant 0 : i32
    %c0_i32_1 = arith.constant 0 : i32
    %c0_i32_2 = arith.constant 0 : i32
    return %c0_i32, %c0_i32_0, %c0_i32_1 : i32, i32, i32
  }
  func.func @transform_10(%arg0: i32) -> (i32, i32, i32) {
    %c0_i32 = arith.constant 0 : i32
    %c0_i32_0 = arith.constant 0 : i32
    %c0_i32_1 = arith.constant 0 : i32
    %c0_i32_2 = arith.constant 0 : i32
    return %c0_i32, %c0_i32_0, %c0_i32_1 : i32, i32, i32
  }
  func.func @transform_11(%arg0: i32) -> (i32, i32, i32) {
    %c0_i32 = arith.constant 0 : i32
    %c0_i32_0 = arith.constant 0 : i32
    %c0_i32_1 = arith.constant 0 : i32
    %c0_i32_2 = arith.constant 0 : i32
    return %c0_i32, %c0_i32_0, %c0_i32_1 : i32, i32, i32
  }
  func.func @transform_12(%arg0: i32) -> (i32, i32, i32) {
    %c0_i32 = arith.constant 0 : i32
    %c0_i32_0 = arith.constant 0 : i32
    %c0_i32_1 = arith.constant 0 : i32
    %c0_i32_2 = arith.constant 0 : i32
    return %c0_i32, %c0_i32_0, %c0_i32_1 : i32, i32, i32
  }
  func.func @transform_13(%arg0: i32) -> (i32, i32) {
    %c0_i32 = arith.constant 0 : i32
    %c0_i32_0 = arith.constant 0 : i32
    %c0_i32_1 = arith.constant 0 : i32
    return %c0_i32, %c0_i32_0 : i32, i32
  }
  func.func @transform_14(%arg0: i32) -> (i32, i32) {
    %c0_i32 = arith.constant 0 : i32
    %c0_i32_0 = arith.constant 0 : i32
    %c0_i32_1 = arith.constant 0 : i32
    return %c0_i32, %c0_i32_0 : i32, i32
  }
  func.func @transform_15(%arg0: i32) -> (i32, i32) {
    %c0_i32 = arith.constant 0 : i32
    %c0_i32_0 = arith.constant 0 : i32
    %c0_i32_1 = arith.constant 0 : i32
    return %c0_i32, %c0_i32_0 : i32, i32
  }
  func.func @transform_16(%arg0: i32) -> (i32, i32) {
    %c0_i32 = arith.constant 0 : i32
    %c0_i32_0 = arith.constant 0 : i32
    %c0_i32_1 = arith.constant 0 : i32
    return %c0_i32, %c0_i32_0 : i32, i32
  }
  func.func @transform_17(%arg0: i32) -> (i32, i32) {
    %c0_i32 = arith.constant 0 : i32
    %c0_i32_0 = arith.constant 0 : i32
    %c0_i32_1 = arith.constant 0 : i32
    return %c0_i32, %c0_i32_0 : i32, i32
  }
  func.func @transform_18(%arg0: i32) -> (i32, i32, i32) {
    %c0_i32 = arith.constant 0 : i32
    %c0_i32_0 = arith.constant 0 : i32
    %c0_i32_1 = arith.constant 0 : i32
    return %arg0, %c0_i32, %c0_i32_0 : i32, i32, i32
  }
}

module attributes {stable_mosaic.version = 11 : i64} {
  func.func @kernel(%arg0: i32, %arg1: memref<1x16x32xf32, #tpu.memory_space<vmem>>, %arg2: memref<1x32x96xf32, #tpu.memory_space<vmem>>, %arg3: memref<1x1x96xf32, #tpu.memory_space<vmem>>, %arg4: memref<1x32x32xf32, #tpu.memory_space<vmem>>, %arg5: memref<1x1x32xf32, #tpu.memory_space<vmem>>, %arg6: memref<1x1x32xf32, #tpu.memory_space<vmem>>, %arg7: memref<1x1x32xf32, #tpu.memory_space<vmem>>, %arg8: memref<1x32x128xf32, #tpu.memory_space<vmem>>, %arg9: memref<1x1x128xf32, #tpu.memory_space<vmem>>, %arg10: memref<1x128x32xf32, #tpu.memory_space<vmem>>, %arg11: memref<1x1x32xf32, #tpu.memory_space<vmem>>, %arg12: memref<1x1x32xf32, #tpu.memory_space<vmem>>, %arg13: memref<1x1x32xf32, #tpu.memory_space<vmem>>, %arg14: memref<288x64xf32, #tpu.memory_space<vmem>>, %arg15: memref<1x64xf32, #tpu.memory_space<vmem>>, %arg16: memref<1x64xf32, #tpu.memory_space<vmem>>, %arg17: memref<1x64xf32, #tpu.memory_space<vmem>>, %arg18: memref<1x8x64xf32, #tpu.memory_space<vmem>>) attributes {dimension_semantics = [#tpu.dimension_semantics<parallel>], iteration_bounds = array<i64: 2>, scalar_prefetch = 0 : i64, scratch_operands = 0 : i64, tpu.core_type = #tpu.core_type<tc>, window_params = [{transform_indices = @transform_0, window_bounds = array<i64: 1, 16, 32>}, {pipeline_mode = #tpu.pipeline_mode<synchronous>, transform_indices = @transform_1, window_bounds = array<i64: 1, 32, 96>}, {pipeline_mode = #tpu.pipeline_mode<synchronous>, transform_indices = @transform_2, window_bounds = array<i64: 1, 1, 96>}, {pipeline_mode = #tpu.pipeline_mode<synchronous>, transform_indices = @transform_3, window_bounds = array<i64: 1, 32, 32>}, {pipeline_mode = #tpu.pipeline_mode<synchronous>, transform_indices = @transform_4, window_bounds = array<i64: 1, 1, 32>}, {pipeline_mode = #tpu.pipeline_mode<synchronous>, transform_indices = @transform_5, window_bounds = array<i64: 1, 1, 32>}, {pipeline_mode = #tpu.pipeline_mode<synchronous>, transform_indices = @transform_6, window_bounds = array<i64: 1, 1, 32>}, {pipeline_mode = #tpu.pipeline_mode<synchronous>, transform_indices = @transform_7, window_bounds = array<i64: 1, 32, 128>}, {pipeline_mode = #tpu.pipeline_mode<synchronous>, transform_indices = @transform_8, window_bounds = array<i64: 1, 1, 128>}, {pipeline_mode = #tpu.pipeline_mode<synchronous>, transform_indices = @transform_9, window_bounds = array<i64: 1, 128, 32>}, {pipeline_mode = #tpu.pipeline_mode<synchronous>, transform_indices = @transform_10, window_bounds = array<i64: 1, 1, 32>}, {pipeline_mode = #tpu.pipeline_mode<synchronous>, transform_indices = @transform_11, window_bounds = array<i64: 1, 1, 32>}, {pipeline_mode = #tpu.pipeline_mode<synchronous>, transform_indices = @transform_12, window_bounds = array<i64: 1, 1, 32>}, {pipeline_mode = #tpu.pipeline_mode<synchronous>, transform_indices = @transform_13, window_bounds = array<i64: 288, 64>}, {pipeline_mode = #tpu.pipeline_mode<synchronous>, transform_indices = @transform_14, window_bounds = array<i64: 1, 64>}, {pipeline_mode = #tpu.pipeline_mode<synchronous>, transform_indices = @transform_15, window_bounds = array<i64: 1, 64>}, {pipeline_mode = #tpu.pipeline_mode<synchronous>, transform_indices = @transform_16, window_bounds = array<i64: 1, 64>}, {transform_indices = @transform_17, window_bounds = array<i64: 1, 8, 64>}]} {
    %c0 = arith.constant 0 : index
    %c0_0 = arith.constant 0 : index
    %c0_1 = arith.constant 0 : index
    %0 = vector.load %arg1[%c0, %c0_0, %c0_1] : memref<1x16x32xf32, #tpu.memory_space<vmem>>, vector<1x16x32xf32>
    %1 = vector.shape_cast %0 : vector<1x16x32xf32> to vector<16x32xf32>
    %c0_2 = arith.constant 0 : index
    %c0_3 = arith.constant 0 : index
    %c0_4 = arith.constant 0 : index
    %2 = vector.load %arg2[%c0_2, %c0_3, %c0_4] : memref<1x32x96xf32, #tpu.memory_space<vmem>>, vector<1x32x96xf32>
    %3 = vector.shape_cast %2 : vector<1x32x96xf32> to vector<32x96xf32>
    %cst = arith.constant dense<0.000000e+00> : vector<16x96xf32>
    %4 = tpu.matmul %1, %3, %cst {dimension_numbers = #tpu.dot_dimension_numbers<[1], [0], [0], [1], [0, 0, 1, 1], [], []>} : vector<16x32xf32>, vector<32x96xf32>, vector<16x96xf32> -> vector<16x96xf32>
    %c0_5 = arith.constant 0 : index
    %c0_6 = arith.constant 0 : index
    %c0_7 = arith.constant 0 : index
    %5 = vector.load %arg3[%c0_5, %c0_6, %c0_7] : memref<1x1x96xf32, #tpu.memory_space<vmem>>, vector<1x1x96xf32>
    %6 = vector.shape_cast %5 : vector<1x1x96xf32> to vector<1x96xf32>
    %7 = vector.broadcast %6 : vector<1x96xf32> to vector<16x96xf32>
    %8 = arith.addf %4, %7 : vector<16x96xf32>
    %9 = vector.extract_strided_slice %8 {offsets = [0, 0], sizes = [16, 8], strides = [1, 1]} : vector<16x96xf32> to vector<16x8xf32>
    %10 = vector.extract_strided_slice %8 {offsets = [0, 8], sizes = [16, 8], strides = [1, 1]} : vector<16x96xf32> to vector<16x8xf32>
    %11 = vector.extract_strided_slice %8 {offsets = [0, 16], sizes = [16, 8], strides = [1, 1]} : vector<16x96xf32> to vector<16x8xf32>
    %12 = vector.extract_strided_slice %8 {offsets = [0, 24], sizes = [16, 8], strides = [1, 1]} : vector<16x96xf32> to vector<16x8xf32>
    %13 = vector.shape_cast %9 : vector<16x8xf32> to vector<1x16x8xf32>
    %14 = vector.shape_cast %10 : vector<16x8xf32> to vector<1x16x8xf32>
    %15 = vector.shape_cast %11 : vector<16x8xf32> to vector<1x16x8xf32>
    %16 = vector.shape_cast %12 : vector<16x8xf32> to vector<1x16x8xf32>
    %17 = tpu.concatenate %13, %14, %15, %16 in 0 : vector<1x16x8xf32>, vector<1x16x8xf32>, vector<1x16x8xf32>, vector<1x16x8xf32> -> vector<4x16x8xf32>
    %cst_8 = arith.constant 0.353553385 : f32
    %18 = vector.broadcast %cst_8 : f32 to vector<4x16x8xf32>
    %19 = arith.mulf %17, %18 : vector<4x16x8xf32>
    %20 = vector.extract_strided_slice %8 {offsets = [0, 32], sizes = [16, 8], strides = [1, 1]} : vector<16x96xf32> to vector<16x8xf32>
    %21 = vector.extract_strided_slice %8 {offsets = [0, 40], sizes = [16, 8], strides = [1, 1]} : vector<16x96xf32> to vector<16x8xf32>
    %22 = vector.extract_strided_slice %8 {offsets = [0, 48], sizes = [16, 8], strides = [1, 1]} : vector<16x96xf32> to vector<16x8xf32>
    %23 = vector.extract_strided_slice %8 {offsets = [0, 56], sizes = [16, 8], strides = [1, 1]} : vector<16x96xf32> to vector<16x8xf32>
    %24 = vector.shape_cast %20 : vector<16x8xf32> to vector<1x16x8xf32>
    %25 = vector.shape_cast %21 : vector<16x8xf32> to vector<1x16x8xf32>
    %26 = vector.shape_cast %22 : vector<16x8xf32> to vector<1x16x8xf32>
    %27 = vector.shape_cast %23 : vector<16x8xf32> to vector<1x16x8xf32>
    %28 = tpu.concatenate %24, %25, %26, %27 in 0 : vector<1x16x8xf32>, vector<1x16x8xf32>, vector<1x16x8xf32>, vector<1x16x8xf32> -> vector<4x16x8xf32>
    %29 = vector.extract_strided_slice %8 {offsets = [0, 64], sizes = [16, 8], strides = [1, 1]} : vector<16x96xf32> to vector<16x8xf32>
    %30 = vector.extract_strided_slice %8 {offsets = [0, 72], sizes = [16, 8], strides = [1, 1]} : vector<16x96xf32> to vector<16x8xf32>
    %31 = vector.extract_strided_slice %8 {offsets = [0, 80], sizes = [16, 8], strides = [1, 1]} : vector<16x96xf32> to vector<16x8xf32>
    %32 = vector.extract_strided_slice %8 {offsets = [0, 88], sizes = [16, 8], strides = [1, 1]} : vector<16x96xf32> to vector<16x8xf32>
    %33 = vector.shape_cast %29 : vector<16x8xf32> to vector<1x16x8xf32>
    %34 = vector.shape_cast %30 : vector<16x8xf32> to vector<1x16x8xf32>
    %35 = vector.shape_cast %31 : vector<16x8xf32> to vector<1x16x8xf32>
    %36 = vector.shape_cast %32 : vector<16x8xf32> to vector<1x16x8xf32>
    %37 = tpu.concatenate %33, %34, %35, %36 in 0 : vector<1x16x8xf32>, vector<1x16x8xf32>, vector<1x16x8xf32>, vector<1x16x8xf32> -> vector<4x16x8xf32>
    "tpu.trace_start"() <{level = 10 : i32, message = "hnd,hmd->hnm"}> : () -> ()
    %cst_9 = arith.constant dense<0.000000e+00> : vector<4x16x16xf32>
    %38 = tpu.matmul %19, %28, %cst_9 {dimension_numbers = #tpu.dot_dimension_numbers<[2], [2], [1], [1], [0, 0, 0, 1, 1, 1], [0], [0]>} : vector<4x16x8xf32>, vector<4x16x8xf32>, vector<4x16x16xf32> -> vector<4x16x16xf32>
    "tpu.trace_stop"() : () -> ()
    %cst_10 = arith.constant dense<0xFF800000> : vector<4x16xf32>
    %39 = vector.multi_reduction <maximumf>, %38, %cst_10 [2] : vector<4x16x16xf32> to vector<4x16xf32>
    %40 = vector.shape_cast %39 : vector<4x16xf32> to vector<4x16x1xf32>
    %41 = vector.broadcast %40 : vector<4x16x1xf32> to vector<4x16x16xf32>
    %42 = arith.subf %38, %41 : vector<4x16x16xf32>
    %43 = math.exp %42 : vector<4x16x16xf32>
    %cst_11 = arith.constant dense<0.000000e+00> : vector<4x16xf32>
    %44 = vector.multi_reduction <add>, %43, %cst_11 [2] : vector<4x16x16xf32> to vector<4x16xf32>
    %45 = vector.shape_cast %44 : vector<4x16xf32> to vector<4x16x1xf32>
    %46 = tpu.reciprocal %45 {approx = true} : vector<4x16x1xf32> -> vector<4x16x1xf32>
    %47 = vector.broadcast %46 : vector<4x16x1xf32> to vector<4x16x16xf32>
    %48 = arith.mulf %43, %47 : vector<4x16x16xf32>
    "tpu.trace_start"() <{level = 10 : i32, message = "hnm,hmd->hnd"}> : () -> ()
    %cst_12 = arith.constant dense<0.000000e+00> : vector<4x16x8xf32>
    %49 = tpu.matmul %48, %37, %cst_12 {dimension_numbers = #tpu.dot_dimension_numbers<[2], [1], [1], [2], [0, 0, 0, 1, 1, 2], [0], [0]>} : vector<4x16x16xf32>, vector<4x16x8xf32>, vector<4x16x8xf32> -> vector<4x16x8xf32>
    "tpu.trace_stop"() : () -> ()
    %50 = vector.extract_strided_slice %49 {offsets = [0, 0, 0], sizes = [1, 16, 8], strides = [1, 1, 1]} : vector<4x16x8xf32> to vector<1x16x8xf32>
    %51 = vector.shape_cast %50 : vector<1x16x8xf32> to vector<16x8xf32>
    %52 = vector.extract_strided_slice %49 {offsets = [1, 0, 0], sizes = [1, 16, 8], strides = [1, 1, 1]} : vector<4x16x8xf32> to vector<1x16x8xf32>
    %53 = vector.shape_cast %52 : vector<1x16x8xf32> to vector<16x8xf32>
    %54 = vector.extract_strided_slice %49 {offsets = [2, 0, 0], sizes = [1, 16, 8], strides = [1, 1, 1]} : vector<4x16x8xf32> to vector<1x16x8xf32>
    %55 = vector.shape_cast %54 : vector<1x16x8xf32> to vector<16x8xf32>
    %56 = vector.extract_strided_slice %49 {offsets = [3, 0, 0], sizes = [1, 16, 8], strides = [1, 1, 1]} : vector<4x16x8xf32> to vector<1x16x8xf32>
    %57 = vector.shape_cast %56 : vector<1x16x8xf32> to vector<16x8xf32>
    %58 = tpu.concatenate %51, %53, %55, %57 in 1 : vector<16x8xf32>, vector<16x8xf32>, vector<16x8xf32>, vector<16x8xf32> -> vector<16x32xf32>
    %c0_13 = arith.constant 0 : index
    %c0_14 = arith.constant 0 : index
    %c0_15 = arith.constant 0 : index
    %59 = vector.load %arg4[%c0_13, %c0_14, %c0_15] : memref<1x32x32xf32, #tpu.memory_space<vmem>>, vector<1x32x32xf32>
    %60 = vector.shape_cast %59 : vector<1x32x32xf32> to vector<32x32xf32>
    %cst_16 = arith.constant dense<0.000000e+00> : vector<16x32xf32>
    %61 = tpu.matmul %58, %60, %cst_16 {dimension_numbers = #tpu.dot_dimension_numbers<[1], [0], [0], [1], [0, 0, 1, 1], [], []>} : vector<16x32xf32>, vector<32x32xf32>, vector<16x32xf32> -> vector<16x32xf32>
    %c0_17 = arith.constant 0 : index
    %c0_18 = arith.constant 0 : index
    %c0_19 = arith.constant 0 : index
    %62 = vector.load %arg5[%c0_17, %c0_18, %c0_19] : memref<1x1x32xf32, #tpu.memory_space<vmem>>, vector<1x1x32xf32>
    %63 = vector.shape_cast %62 : vector<1x1x32xf32> to vector<1x32xf32>
    %64 = vector.broadcast %63 : vector<1x32xf32> to vector<16x32xf32>
    %65 = arith.addf %61, %64 : vector<16x32xf32>
    %66 = arith.addf %1, %65 : vector<16x32xf32>
    %c0_20 = arith.constant 0 : index
    %c0_21 = arith.constant 0 : index
    %c0_22 = arith.constant 0 : index
    %67 = vector.load %arg6[%c0_20, %c0_21, %c0_22] : memref<1x1x32xf32, #tpu.memory_space<vmem>>, vector<1x1x32xf32>
    %68 = vector.shape_cast %67 : vector<1x1x32xf32> to vector<1x32xf32>
    %c0_23 = arith.constant 0 : index
    %c0_24 = arith.constant 0 : index
    %c0_25 = arith.constant 0 : index
    %69 = vector.load %arg7[%c0_23, %c0_24, %c0_25] : memref<1x1x32xf32, #tpu.memory_space<vmem>>, vector<1x1x32xf32>
    %70 = vector.shape_cast %69 : vector<1x1x32xf32> to vector<1x32xf32>
    %cst_26 = arith.constant dense<0.000000e+00> : vector<16xf32>
    %71 = vector.multi_reduction <add>, %66, %cst_26 [1] : vector<16x32xf32> to vector<16xf32>
    %72 = vector.shape_cast %71 : vector<16xf32> to vector<16x1xf32>
    %cst_27 = arith.constant 3.200000e+01 : f32
    %73 = vector.broadcast %cst_27 : f32 to vector<16x1xf32>
    %74 = arith.divf %72, %73 : vector<16x1xf32>
    %75 = vector.broadcast %74 : vector<16x1xf32> to vector<16x32xf32>
    %76 = arith.subf %66, %75 : vector<16x32xf32>
    %77 = arith.mulf %76, %76 : vector<16x32xf32>
    %cst_28 = arith.constant dense<0.000000e+00> : vector<16xf32>
    %78 = vector.multi_reduction <add>, %77, %cst_28 [1] : vector<16x32xf32> to vector<16xf32>
    %79 = vector.shape_cast %78 : vector<16xf32> to vector<16x1xf32>
    %cst_29 = arith.constant 3.200000e+01 : f32
    %80 = vector.broadcast %cst_29 : f32 to vector<16x1xf32>
    %81 = arith.divf %79, %80 : vector<16x1xf32>
    %cst_30 = arith.constant 9.99999997E-7 : f32
    %82 = vector.broadcast %cst_30 : f32 to vector<16x1xf32>
    %83 = arith.addf %81, %82 : vector<16x1xf32>
    %84 = math.rsqrt %83 : vector<16x1xf32>
    %85 = vector.broadcast %84 : vector<16x1xf32> to vector<16x32xf32>
    %86 = arith.mulf %76, %85 : vector<16x32xf32>
    %87 = vector.broadcast %68 : vector<1x32xf32> to vector<16x32xf32>
    %88 = arith.mulf %86, %87 : vector<16x32xf32>
    %89 = vector.broadcast %70 : vector<1x32xf32> to vector<16x32xf32>
    %90 = arith.addf %88, %89 : vector<16x32xf32>
    %c0_31 = arith.constant 0 : index
    %c0_32 = arith.constant 0 : index
    %c0_33 = arith.constant 0 : index
    %91 = vector.load %arg8[%c0_31, %c0_32, %c0_33] : memref<1x32x128xf32, #tpu.memory_space<vmem>>, vector<1x32x128xf32>
    %92 = vector.shape_cast %91 : vector<1x32x128xf32> to vector<32x128xf32>
    %cst_34 = arith.constant dense<0.000000e+00> : vector<16x128xf32>
    %93 = tpu.matmul %90, %92, %cst_34 {dimension_numbers = #tpu.dot_dimension_numbers<[1], [0], [0], [1], [0, 0, 1, 1], [], []>} : vector<16x32xf32>, vector<32x128xf32>, vector<16x128xf32> -> vector<16x128xf32>
    %c0_35 = arith.constant 0 : index
    %c0_36 = arith.constant 0 : index
    %c0_37 = arith.constant 0 : index
    %94 = vector.load %arg9[%c0_35, %c0_36, %c0_37] : memref<1x1x128xf32, #tpu.memory_space<vmem>>, vector<1x1x128xf32>
    %95 = vector.shape_cast %94 : vector<1x1x128xf32> to vector<1x128xf32>
    %96 = vector.broadcast %95 : vector<1x128xf32> to vector<16x128xf32>
    %97 = arith.addf %93, %96 : vector<16x128xf32>
    %cst_38 = arith.constant 5.000000e-01 : f32
    %98 = vector.broadcast %cst_38 : f32 to vector<16x128xf32>
    %99 = arith.mulf %98, %97 : vector<16x128xf32>
    %cst_39 = arith.constant 0.707106769 : f32
    %100 = vector.broadcast %cst_39 : f32 to vector<16x128xf32>
    %101 = arith.mulf %97, %100 : vector<16x128xf32>
    %cst_40 = arith.constant 0.000000e+00 : f32
    %102 = vector.broadcast %cst_40 : f32 to vector<16x128xf32>
    %103 = arith.cmpf olt, %101, %102 : vector<16x128xf32>
    %cst_41 = arith.constant -1.000000e+00 : f32
    %cst_42 = arith.constant 1.000000e+00 : f32
    %104 = vector.broadcast %cst_41 : f32 to vector<16x128xf32>
    %105 = vector.broadcast %cst_42 : f32 to vector<16x128xf32>
    %106 = arith.select %103, %104, %105 : vector<16x128xi1>, vector<16x128xf32>
    %107 = math.absf %101 : vector<16x128xf32>
    %cst_43 = arith.constant 0.327591091 : f32
    %108 = vector.broadcast %cst_43 : f32 to vector<16x128xf32>
    %109 = arith.mulf %108, %107 : vector<16x128xf32>
    %cst_44 = arith.constant 1.000000e+00 : f32
    %110 = vector.broadcast %cst_44 : f32 to vector<16x128xf32>
    %111 = arith.addf %110, %109 : vector<16x128xf32>
    %cst_45 = arith.constant 1.000000e+00 : f32
    %112 = vector.broadcast %cst_45 : f32 to vector<16x128xf32>
    %113 = arith.divf %112, %111 : vector<16x128xf32>
    %cst_46 = arith.constant 1.06140542 : f32
    %114 = vector.broadcast %cst_46 : f32 to vector<16x128xf32>
    %115 = arith.mulf %114, %113 : vector<16x128xf32>
    %cst_47 = arith.constant -1.45315206 : f32
    %116 = vector.broadcast %cst_47 : f32 to vector<16x128xf32>
    %117 = arith.addf %115, %116 : vector<16x128xf32>
    %118 = arith.mulf %117, %113 : vector<16x128xf32>
    %cst_48 = arith.constant 1.42141378 : f32
    %119 = vector.broadcast %cst_48 : f32 to vector<16x128xf32>
    %120 = arith.addf %118, %119 : vector<16x128xf32>
    %121 = arith.mulf %120, %113 : vector<16x128xf32>
    %cst_49 = arith.constant -0.284496725 : f32
    %122 = vector.broadcast %cst_49 : f32 to vector<16x128xf32>
    %123 = arith.addf %121, %122 : vector<16x128xf32>
    %124 = arith.mulf %123, %113 : vector<16x128xf32>
    %cst_50 = arith.constant 0.254829586 : f32
    %125 = vector.broadcast %cst_50 : f32 to vector<16x128xf32>
    %126 = arith.addf %124, %125 : vector<16x128xf32>
    %127 = arith.mulf %126, %113 : vector<16x128xf32>
    %cst_51 = arith.constant 0.000000e+00 : f32
    %128 = vector.broadcast %cst_51 : f32 to vector<16x128xf32>
    %129 = arith.subf %128, %107 : vector<16x128xf32>
    %130 = arith.mulf %129, %107 : vector<16x128xf32>
    %131 = math.exp %130 : vector<16x128xf32>
    %132 = arith.mulf %127, %131 : vector<16x128xf32>
    %cst_52 = arith.constant 1.000000e+00 : f32
    %133 = vector.broadcast %cst_52 : f32 to vector<16x128xf32>
    %134 = arith.subf %133, %132 : vector<16x128xf32>
    %135 = arith.mulf %106, %134 : vector<16x128xf32>
    %cst_53 = arith.constant 1.000000e+00 : f32
    %136 = vector.broadcast %cst_53 : f32 to vector<16x128xf32>
    %137 = arith.addf %136, %135 : vector<16x128xf32>
    %138 = arith.mulf %99, %137 : vector<16x128xf32>
    %c0_54 = arith.constant 0 : index
    %c0_55 = arith.constant 0 : index
    %c0_56 = arith.constant 0 : index
    %139 = vector.load %arg10[%c0_54, %c0_55, %c0_56] : memref<1x128x32xf32, #tpu.memory_space<vmem>>, vector<1x128x32xf32>
    %140 = vector.shape_cast %139 : vector<1x128x32xf32> to vector<128x32xf32>
    %cst_57 = arith.constant dense<0.000000e+00> : vector<16x32xf32>
    %141 = tpu.matmul %138, %140, %cst_57 {dimension_numbers = #tpu.dot_dimension_numbers<[1], [0], [0], [1], [0, 0, 1, 1], [], []>} : vector<16x128xf32>, vector<128x32xf32>, vector<16x32xf32> -> vector<16x32xf32>
    %c0_58 = arith.constant 0 : index
    %c0_59 = arith.constant 0 : index
    %c0_60 = arith.constant 0 : index
    %142 = vector.load %arg11[%c0_58, %c0_59, %c0_60] : memref<1x1x32xf32, #tpu.memory_space<vmem>>, vector<1x1x32xf32>
    %143 = vector.shape_cast %142 : vector<1x1x32xf32> to vector<1x32xf32>
    %144 = vector.broadcast %143 : vector<1x32xf32> to vector<16x32xf32>
    %145 = arith.addf %141, %144 : vector<16x32xf32>
    %146 = arith.addf %90, %145 : vector<16x32xf32>
    %c0_61 = arith.constant 0 : index
    %c0_62 = arith.constant 0 : index
    %c0_63 = arith.constant 0 : index
    %147 = vector.load %arg12[%c0_61, %c0_62, %c0_63] : memref<1x1x32xf32, #tpu.memory_space<vmem>>, vector<1x1x32xf32>
    %148 = vector.shape_cast %147 : vector<1x1x32xf32> to vector<1x32xf32>
    %c0_64 = arith.constant 0 : index
    %c0_65 = arith.constant 0 : index
    %c0_66 = arith.constant 0 : index
    %149 = vector.load %arg13[%c0_64, %c0_65, %c0_66] : memref<1x1x32xf32, #tpu.memory_space<vmem>>, vector<1x1x32xf32>
    %150 = vector.shape_cast %149 : vector<1x1x32xf32> to vector<1x32xf32>
    %cst_67 = arith.constant dense<0.000000e+00> : vector<16xf32>
    %151 = vector.multi_reduction <add>, %146, %cst_67 [1] : vector<16x32xf32> to vector<16xf32>
    %152 = vector.shape_cast %151 : vector<16xf32> to vector<16x1xf32>
    %cst_68 = arith.constant 3.200000e+01 : f32
    %153 = vector.broadcast %cst_68 : f32 to vector<16x1xf32>
    %154 = arith.divf %152, %153 : vector<16x1xf32>
    %155 = vector.broadcast %154 : vector<16x1xf32> to vector<16x32xf32>
    %156 = arith.subf %146, %155 : vector<16x32xf32>
    %157 = arith.mulf %156, %156 : vector<16x32xf32>
    %cst_69 = arith.constant dense<0.000000e+00> : vector<16xf32>
    %158 = vector.multi_reduction <add>, %157, %cst_69 [1] : vector<16x32xf32> to vector<16xf32>
    %159 = vector.shape_cast %158 : vector<16xf32> to vector<16x1xf32>
    %cst_70 = arith.constant 3.200000e+01 : f32
    %160 = vector.broadcast %cst_70 : f32 to vector<16x1xf32>
    %161 = arith.divf %159, %160 : vector<16x1xf32>
    %cst_71 = arith.constant 9.99999997E-7 : f32
    %162 = vector.broadcast %cst_71 : f32 to vector<16x1xf32>
    %163 = arith.addf %161, %162 : vector<16x1xf32>
    %164 = math.rsqrt %163 : vector<16x1xf32>
    %165 = vector.broadcast %164 : vector<16x1xf32> to vector<16x32xf32>
    %166 = arith.mulf %156, %165 : vector<16x32xf32>
    %167 = vector.broadcast %148 : vector<1x32xf32> to vector<16x32xf32>
    %168 = arith.mulf %166, %167 : vector<16x32xf32>
    %169 = vector.broadcast %150 : vector<1x32xf32> to vector<16x32xf32>
    %170 = arith.addf %168, %169 : vector<16x32xf32>
    %c0_72 = arith.constant 0 : index
    %c0_73 = arith.constant 0 : index
    %171 = vector.load %arg14[%c0_72, %c0_73] : memref<288x64xf32, #tpu.memory_space<vmem>>, vector<288x64xf32>
    %c0_74 = arith.constant 0 : index
    %c0_75 = arith.constant 0 : index
    %172 = vector.load %arg15[%c0_74, %c0_75] : memref<1x64xf32, #tpu.memory_space<vmem>>, vector<1x64xf32>
    %cst_76 = arith.constant 0.000000e+00 : f32
    %173 = vector.broadcast %cst_76 : f32 to vector<1x32xf32>
    %cst_77 = arith.constant 0.000000e+00 : f32
    %174 = vector.broadcast %cst_77 : f32 to vector<8x32xf32>
    %175 = tpu.concatenate %173, %174, %173 in 0 : vector<1x32xf32>, vector<8x32xf32>, vector<1x32xf32> -> vector<10x32xf32>
    %176 = vector.extract_strided_slice %175 {offsets = [0, 0], sizes = [8, 32], strides = [1, 1]} : vector<10x32xf32> to vector<8x32xf32>
    %177 = vector.extract_strided_slice %175 {offsets = [1, 0], sizes = [8, 32], strides = [1, 1]} : vector<10x32xf32> to vector<8x32xf32>
    %178 = vector.extract_strided_slice %175 {offsets = [2, 0], sizes = [8, 32], strides = [1, 1]} : vector<10x32xf32> to vector<8x32xf32>
    %179 = vector.extract_strided_slice %170 {offsets = [0, 0], sizes = [8, 32], strides = [1, 1]} : vector<16x32xf32> to vector<8x32xf32>
    %180 = tpu.concatenate %173, %179, %173 in 0 : vector<1x32xf32>, vector<8x32xf32>, vector<1x32xf32> -> vector<10x32xf32>
    %181 = vector.extract_strided_slice %180 {offsets = [0, 0], sizes = [8, 32], strides = [1, 1]} : vector<10x32xf32> to vector<8x32xf32>
    %182 = vector.extract_strided_slice %180 {offsets = [1, 0], sizes = [8, 32], strides = [1, 1]} : vector<10x32xf32> to vector<8x32xf32>
    %183 = vector.extract_strided_slice %180 {offsets = [2, 0], sizes = [8, 32], strides = [1, 1]} : vector<10x32xf32> to vector<8x32xf32>
    %184 = vector.extract_strided_slice %170 {offsets = [8, 0], sizes = [8, 32], strides = [1, 1]} : vector<16x32xf32> to vector<8x32xf32>
    %185 = tpu.concatenate %173, %184, %173 in 0 : vector<1x32xf32>, vector<8x32xf32>, vector<1x32xf32> -> vector<10x32xf32>
    %186 = vector.extract_strided_slice %185 {offsets = [0, 0], sizes = [8, 32], strides = [1, 1]} : vector<10x32xf32> to vector<8x32xf32>
    %187 = vector.extract_strided_slice %185 {offsets = [1, 0], sizes = [8, 32], strides = [1, 1]} : vector<10x32xf32> to vector<8x32xf32>
    %188 = vector.extract_strided_slice %185 {offsets = [2, 0], sizes = [8, 32], strides = [1, 1]} : vector<10x32xf32> to vector<8x32xf32>
    %189 = tpu.concatenate %176, %177, %178, %181, %182, %183, %186, %187, %188 in 1 : vector<8x32xf32>, vector<8x32xf32>, vector<8x32xf32>, vector<8x32xf32>, vector<8x32xf32>, vector<8x32xf32>, vector<8x32xf32>, vector<8x32xf32>, vector<8x32xf32> -> vector<8x288xf32>
    %cst_78 = arith.constant dense<0.000000e+00> : vector<8x64xf32>
    %190 = tpu.matmul %189, %171, %cst_78 {dimension_numbers = #tpu.dot_dimension_numbers<[1], [0], [0], [1], [0, 0, 1, 1], [], []>} : vector<8x288xf32>, vector<288x64xf32>, vector<8x64xf32> -> vector<8x64xf32>
    %191 = vector.broadcast %172 : vector<1x64xf32> to vector<8x64xf32>
    %192 = arith.addf %190, %191 : vector<8x64xf32>
    %c0_79 = arith.constant 0 : index
    %c0_80 = arith.constant 0 : index
    %193 = vector.load %arg16[%c0_79, %c0_80] : memref<1x64xf32, #tpu.memory_space<vmem>>, vector<1x64xf32>
    %c0_81 = arith.constant 0 : index
    %c0_82 = arith.constant 0 : index
    %194 = vector.load %arg17[%c0_81, %c0_82] : memref<1x64xf32, #tpu.memory_space<vmem>>, vector<1x64xf32>
    %cst_83 = arith.constant dense<0.000000e+00> : vector<8xf32>
    %195 = vector.multi_reduction <add>, %192, %cst_83 [1] : vector<8x64xf32> to vector<8xf32>
    %196 = vector.shape_cast %195 : vector<8xf32> to vector<8x1xf32>
    %cst_84 = arith.constant 6.400000e+01 : f32
    %197 = vector.broadcast %cst_84 : f32 to vector<8x1xf32>
    %198 = arith.divf %196, %197 : vector<8x1xf32>
    %199 = vector.broadcast %198 : vector<8x1xf32> to vector<8x64xf32>
    %200 = arith.subf %192, %199 : vector<8x64xf32>
    %201 = arith.mulf %200, %200 : vector<8x64xf32>
    %cst_85 = arith.constant dense<0.000000e+00> : vector<8xf32>
    %202 = vector.multi_reduction <add>, %201, %cst_85 [1] : vector<8x64xf32> to vector<8xf32>
    %203 = vector.shape_cast %202 : vector<8xf32> to vector<8x1xf32>
    %cst_86 = arith.constant 6.400000e+01 : f32
    %204 = vector.broadcast %cst_86 : f32 to vector<8x1xf32>
    %205 = arith.divf %203, %204 : vector<8x1xf32>
    %cst_87 = arith.constant 9.99999974E-6 : f32
    %206 = vector.broadcast %cst_87 : f32 to vector<8x1xf32>
    %207 = arith.addf %205, %206 : vector<8x1xf32>
    %208 = math.rsqrt %207 : vector<8x1xf32>
    %209 = vector.broadcast %208 : vector<8x1xf32> to vector<8x64xf32>
    %210 = arith.mulf %200, %209 : vector<8x64xf32>
    %211 = vector.broadcast %193 : vector<1x64xf32> to vector<8x64xf32>
    %212 = arith.mulf %210, %211 : vector<8x64xf32>
    %213 = vector.broadcast %194 : vector<1x64xf32> to vector<8x64xf32>
    %214 = arith.addf %212, %213 : vector<8x64xf32>
    %c0_88 = arith.constant 0 : index
    %c0_89 = arith.constant 0 : index
    %c0_90 = arith.constant 0 : index
    %215 = vector.load %arg18[%c0_88, %c0_89, %c0_90] : memref<1x8x64xf32, #tpu.memory_space<vmem>>, vector<1x8x64xf32>
    %216 = vector.shape_cast %215 : vector<1x8x64xf32> to vector<8x64xf32>
    %217 = vector.shape_cast %214 : vector<8x64xf32> to vector<1x8x64xf32>
    tpu.vector_store %arg18[%c0_88, %c0_89, %c0_90], %217 {strides = array<i32>} : memref<1x8x64xf32, #tpu.memory_space<vmem>>, vector<1x8x64xf32>,
    return
  }
  func.func @transform_0(%arg0: i32) -> (i32, i32, i32) {
    %c0_i32 = arith.constant 0 : i32
    %c0_i32_0 = arith.constant 0 : i32
    %c0_i32_1 = arith.constant 0 : i32
    return %arg0, %c0_i32, %c0_i32_0 : i32, i32, i32
  }
  func.func @transform_1(%arg0: i32) -> (i32, i32, i32) {
    %c0_i32 = arith.constant 0 : i32
    %c0_i32_0 = arith.constant 0 : i32
    %c0_i32_1 = arith.constant 0 : i32
    %c0_i32_2 = arith.constant 0 : i32
    return %c0_i32, %c0_i32_0, %c0_i32_1 : i32, i32, i32
  }
  func.func @transform_2(%arg0: i32) -> (i32, i32, i32) {
    %c0_i32 = arith.constant 0 : i32
    %c0_i32_0 = arith.constant 0 : i32
    %c0_i32_1 = arith.constant 0 : i32
    %c0_i32_2 = arith.constant 0 : i32
    return %c0_i32, %c0_i32_0, %c0_i32_1 : i32, i32, i32
  }
  func.func @transform_3(%arg0: i32) -> (i32, i32, i32) {
    %c0_i32 = arith.constant 0 : i32
    %c0_i32_0 = arith.constant 0 : i32
    %c0_i32_1 = arith.constant 0 : i32
    %c0_i32_2 = arith.constant 0 : i32
    return %c0_i32, %c0_i32_0, %c0_i32_1 : i32, i32, i32
  }
  func.func @transform_4(%arg0: i32) -> (i32, i32, i32) {
    %c0_i32 = arith.constant 0 : i32
    %c0_i32_0 = arith.constant 0 : i32
    %c0_i32_1 = arith.constant 0 : i32
    %c0_i32_2 = arith.constant 0 : i32
    return %c0_i32, %c0_i32_0, %c0_i32_1 : i32, i32, i32
  }
  func.func @transform_5(%arg0: i32) -> (i32, i32, i32) {
    %c0_i32 = arith.constant 0 : i32
    %c0_i32_0 = arith.constant 0 : i32
    %c0_i32_1 = arith.constant 0 : i32
    %c0_i32_2 = arith.constant 0 : i32
    return %c0_i32, %c0_i32_0, %c0_i32_1 : i32, i32, i32
  }
  func.func @transform_6(%arg0: i32) -> (i32, i32, i32) {
    %c0_i32 = arith.constant 0 : i32
    %c0_i32_0 = arith.constant 0 : i32
    %c0_i32_1 = arith.constant 0 : i32
    %c0_i32_2 = arith.constant 0 : i32
    return %c0_i32, %c0_i32_0, %c0_i32_1 : i32, i32, i32
  }
  func.func @transform_7(%arg0: i32) -> (i32, i32, i32) {
    %c0_i32 = arith.constant 0 : i32
    %c0_i32_0 = arith.constant 0 : i32
    %c0_i32_1 = arith.constant 0 : i32
    %c0_i32_2 = arith.constant 0 : i32
    return %c0_i32, %c0_i32_0, %c0_i32_1 : i32, i32, i32
  }
  func.func @transform_8(%arg0: i32) -> (i32, i32, i32) {
    %c0_i32 = arith.constant 0 : i32
    %c0_i32_0 = arith.constant 0 : i32
    %c0_i32_1 = arith.constant 0 : i32
    %c0_i32_2 = arith.constant 0 : i32
    return %c0_i32, %c0_i32_0, %c0_i32_1 : i32, i32, i32
  }
  func.func @transform_9(%arg0: i32) -> (i32, i32, i32) {
    %c0_i32 = arith.constant 0 : i32
    %c0_i32_0 = arith.constant 0 : i32
    %c0_i32_1 = arith.constant 0 : i32
    %c0_i32_2 = arith.constant 0 : i32
    return %c0_i32, %c0_i32_0, %c0_i32_1 : i32, i32, i32
  }
  func.func @transform_10(%arg0: i32) -> (i32, i32, i32) {
    %c0_i32 = arith.constant 0 : i32
    %c0_i32_0 = arith.constant 0 : i32
    %c0_i32_1 = arith.constant 0 : i32
    %c0_i32_2 = arith.constant 0 : i32
    return %c0_i32, %c0_i32_0, %c0_i32_1 : i32, i32, i32
  }
  func.func @transform_11(%arg0: i32) -> (i32, i32, i32) {
    %c0_i32 = arith.constant 0 : i32
    %c0_i32_0 = arith.constant 0 : i32
    %c0_i32_1 = arith.constant 0 : i32
    %c0_i32_2 = arith.constant 0 : i32
    return %c0_i32, %c0_i32_0, %c0_i32_1 : i32, i32, i32
  }
  func.func @transform_12(%arg0: i32) -> (i32, i32, i32) {
    %c0_i32 = arith.constant 0 : i32
    %c0_i32_0 = arith.constant 0 : i32
    %c0_i32_1 = arith.constant 0 : i32
    %c0_i32_2 = arith.constant 0 : i32
    return %c0_i32, %c0_i32_0, %c0_i32_1 : i32, i32, i32
  }
  func.func @transform_13(%arg0: i32) -> (i32, i32) {
    %c0_i32 = arith.constant 0 : i32
    %c0_i32_0 = arith.constant 0 : i32
    %c0_i32_1 = arith.constant 0 : i32
    return %c0_i32, %c0_i32_0 : i32, i32
  }
  func.func @transform_14(%arg0: i32) -> (i32, i32) {
    %c0_i32 = arith.constant 0 : i32
    %c0_i32_0 = arith.constant 0 : i32
    %c0_i32_1 = arith.constant 0 : i32
    return %c0_i32, %c0_i32_0 : i32, i32
  }
  func.func @transform_15(%arg0: i32) -> (i32, i32) {
    %c0_i32 = arith.constant 0 : i32
    %c0_i32_0 = arith.constant 0 : i32
    %c0_i32_1 = arith.constant 0 : i32
    return %c0_i32, %c0_i32_0 : i32, i32
  }
  func.func @transform_16(%arg0: i32) -> (i32, i32) {
    %c0_i32 = arith.constant 0 : i32
    %c0_i32_0 = arith.constant 0 : i32
    %c0_i32_1 = arith.constant 0 : i32
    return %c0_i32, %c0_i32_0 : i32, i32
  }
  func.func @transform_17(%arg0: i32) -> (i32, i32, i32) {
    %c0_i32 = arith.constant 0 : i32
    %c0_i32_0 = arith.constant 0 : i32
    %c0_i32_1 = arith.constant 0 : i32
    return %arg0, %c0_i32, %c0_i32_0 : i32, i32, i32
  }
}

module attributes {stable_mosaic.version = 11 : i64} {
  func.func @kernel(%arg0: i32, %arg1: memref<1x8x64xf32, #tpu.memory_space<vmem>>, %arg2: memref<1x64x192xf32, #tpu.memory_space<vmem>>, %arg3: memref<1x1x192xf32, #tpu.memory_space<vmem>>, %arg4: memref<1x64x64xf32, #tpu.memory_space<vmem>>, %arg5: memref<1x1x64xf32, #tpu.memory_space<vmem>>, %arg6: memref<1x1x64xf32, #tpu.memory_space<vmem>>, %arg7: memref<1x1x64xf32, #tpu.memory_space<vmem>>, %arg8: memref<1x64x256xf32, #tpu.memory_space<vmem>>, %arg9: memref<1x1x256xf32, #tpu.memory_space<vmem>>, %arg10: memref<1x256x64xf32, #tpu.memory_space<vmem>>, %arg11: memref<1x1x64xf32, #tpu.memory_space<vmem>>, %arg12: memref<1x1x64xf32, #tpu.memory_space<vmem>>, %arg13: memref<1x1x64xf32, #tpu.memory_space<vmem>>, %arg14: memref<4x8xf32, #tpu.memory_space<vmem>>, %arg15: memref<64x64xf32, #tpu.memory_space<vmem>>, %arg16: memref<64x96xf32, #tpu.memory_space<vmem>>, %arg17: memref<1x96xf32, #tpu.memory_space<vmem>>, %arg18: memref<1x4x96xf32, #tpu.memory_space<vmem>>) attributes {dimension_semantics = [#tpu.dimension_semantics<parallel>], iteration_bounds = array<i64: 2>, scalar_prefetch = 0 : i64, scratch_operands = 0 : i64, tpu.core_type = #tpu.core_type<tc>, window_params = [{transform_indices = @transform_0, window_bounds = array<i64: 1, 8, 64>}, {pipeline_mode = #tpu.pipeline_mode<synchronous>, transform_indices = @transform_1, window_bounds = array<i64: 1, 64, 192>}, {pipeline_mode = #tpu.pipeline_mode<synchronous>, transform_indices = @transform_2, window_bounds = array<i64: 1, 1, 192>}, {pipeline_mode = #tpu.pipeline_mode<synchronous>, transform_indices = @transform_3, window_bounds = array<i64: 1, 64, 64>}, {pipeline_mode = #tpu.pipeline_mode<synchronous>, transform_indices = @transform_4, window_bounds = array<i64: 1, 1, 64>}, {pipeline_mode = #tpu.pipeline_mode<synchronous>, transform_indices = @transform_5, window_bounds = array<i64: 1, 1, 64>}, {pipeline_mode = #tpu.pipeline_mode<synchronous>, transform_indices = @transform_6, window_bounds = array<i64: 1, 1, 64>}, {pipeline_mode = #tpu.pipeline_mode<synchronous>, transform_indices = @transform_7, window_bounds = array<i64: 1, 64, 256>}, {pipeline_mode = #tpu.pipeline_mode<synchronous>, transform_indices = @transform_8, window_bounds = array<i64: 1, 1, 256>}, {pipeline_mode = #tpu.pipeline_mode<synchronous>, transform_indices = @transform_9, window_bounds = array<i64: 1, 256, 64>}, {pipeline_mode = #tpu.pipeline_mode<synchronous>, transform_indices = @transform_10, window_bounds = array<i64: 1, 1, 64>}, {pipeline_mode = #tpu.pipeline_mode<synchronous>, transform_indices = @transform_11, window_bounds = array<i64: 1, 1, 64>}, {pipeline_mode = #tpu.pipeline_mode<synchronous>, transform_indices = @transform_12, window_bounds = array<i64: 1, 1, 64>}, {pipeline_mode = #tpu.pipeline_mode<synchronous>, transform_indices = @transform_13, window_bounds = array<i64: 4, 8>}, {pipeline_mode = #tpu.pipeline_mode<synchronous>, transform_indices = @transform_14, window_bounds = array<i64: 64, 64>}, {pipeline_mode = #tpu.pipeline_mode<synchronous>, transform_indices = @transform_15, window_bounds = array<i64: 64, 96>}, {pipeline_mode = #tpu.pipeline_mode<synchronous>, transform_indices = @transform_16, window_bounds = array<i64: 1, 96>}, {transform_indices = @transform_17, window_bounds = array<i64: 1, 4, 96>}]} {
    %c0 = arith.constant 0 : index
    %c0_0 = arith.constant 0 : index
    %c0_1 = arith.constant 0 : index
    %0 = vector.load %arg1[%c0, %c0_0, %c0_1] : memref<1x8x64xf32, #tpu.memory_space<vmem>>, vector<1x8x64xf32>
    %1 = vector.shape_cast %0 : vector<1x8x64xf32> to vector<8x64xf32>
    %c0_2 = arith.constant 0 : index
    %c0_3 = arith.constant 0 : index
    %c0_4 = arith.constant 0 : index
    %2 = vector.load %arg2[%c0_2, %c0_3, %c0_4] : memref<1x64x192xf32, #tpu.memory_space<vmem>>, vector<1x64x192xf32>
    %3 = vector.shape_cast %2 : vector<1x64x192xf32> to vector<64x192xf32>
    %cst = arith.constant dense<0.000000e+00> : vector<8x192xf32>
    %4 = tpu.matmul %1, %3, %cst {dimension_numbers = #tpu.dot_dimension_numbers<[1], [0], [0], [1], [0, 0, 1, 1], [], []>} : vector<8x64xf32>, vector<64x192xf32>, vector<8x192xf32> -> vector<8x192xf32>
    %c0_5 = arith.constant 0 : index
    %c0_6 = arith.constant 0 : index
    %c0_7 = arith.constant 0 : index
    %5 = vector.load %arg3[%c0_5, %c0_6, %c0_7] : memref<1x1x192xf32, #tpu.memory_space<vmem>>, vector<1x1x192xf32>
    %6 = vector.shape_cast %5 : vector<1x1x192xf32> to vector<1x192xf32>
    %7 = vector.broadcast %6 : vector<1x192xf32> to vector<8x192xf32>
    %8 = arith.addf %4, %7 : vector<8x192xf32>
    %9 = vector.extract_strided_slice %8 {offsets = [0, 0], sizes = [8, 8], strides = [1, 1]} : vector<8x192xf32> to vector<8x8xf32>
    %10 = vector.extract_strided_slice %8 {offsets = [0, 8], sizes = [8, 8], strides = [1, 1]} : vector<8x192xf32> to vector<8x8xf32>
    %11 = vector.extract_strided_slice %8 {offsets = [0, 16], sizes = [8, 8], strides = [1, 1]} : vector<8x192xf32> to vector<8x8xf32>
    %12 = vector.extract_strided_slice %8 {offsets = [0, 24], sizes = [8, 8], strides = [1, 1]} : vector<8x192xf32> to vector<8x8xf32>
    %13 = vector.extract_strided_slice %8 {offsets = [0, 32], sizes = [8, 8], strides = [1, 1]} : vector<8x192xf32> to vector<8x8xf32>
    %14 = vector.extract_strided_slice %8 {offsets = [0, 40], sizes = [8, 8], strides = [1, 1]} : vector<8x192xf32> to vector<8x8xf32>
    %15 = vector.extract_strided_slice %8 {offsets = [0, 48], sizes = [8, 8], strides = [1, 1]} : vector<8x192xf32> to vector<8x8xf32>
    %16 = vector.extract_strided_slice %8 {offsets = [0, 56], sizes = [8, 8], strides = [1, 1]} : vector<8x192xf32> to vector<8x8xf32>
    %17 = vector.shape_cast %9 : vector<8x8xf32> to vector<1x8x8xf32>
    %18 = vector.shape_cast %10 : vector<8x8xf32> to vector<1x8x8xf32>
    %19 = vector.shape_cast %11 : vector<8x8xf32> to vector<1x8x8xf32>
    %20 = vector.shape_cast %12 : vector<8x8xf32> to vector<1x8x8xf32>
    %21 = vector.shape_cast %13 : vector<8x8xf32> to vector<1x8x8xf32>
    %22 = vector.shape_cast %14 : vector<8x8xf32> to vector<1x8x8xf32>
    %23 = vector.shape_cast %15 : vector<8x8xf32> to vector<1x8x8xf32>
    %24 = vector.shape_cast %16 : vector<8x8xf32> to vector<1x8x8xf32>
    %25 = tpu.concatenate %17, %18, %19, %20, %21, %22, %23, %24 in 0 : vector<1x8x8xf32>, vector<1x8x8xf32>, vector<1x8x8xf32>, vector<1x8x8xf32>, vector<1x8x8xf32>, vector<1x8x8xf32>, vector<1x8x8xf32>, vector<1x8x8xf32> -> vector<8x8x8xf32>
    %cst_8 = arith.constant 0.353553385 : f32
    %26 = vector.broadcast %cst_8 : f32 to vector<8x8x8xf32>
    %27 = arith.mulf %25, %26 : vector<8x8x8xf32>
    %28 = vector.extract_strided_slice %8 {offsets = [0, 64], sizes = [8, 8], strides = [1, 1]} : vector<8x192xf32> to vector<8x8xf32>
    %29 = vector.extract_strided_slice %8 {offsets = [0, 72], sizes = [8, 8], strides = [1, 1]} : vector<8x192xf32> to vector<8x8xf32>
    %30 = vector.extract_strided_slice %8 {offsets = [0, 80], sizes = [8, 8], strides = [1, 1]} : vector<8x192xf32> to vector<8x8xf32>
    %31 = vector.extract_strided_slice %8 {offsets = [0, 88], sizes = [8, 8], strides = [1, 1]} : vector<8x192xf32> to vector<8x8xf32>
    %32 = vector.extract_strided_slice %8 {offsets = [0, 96], sizes = [8, 8], strides = [1, 1]} : vector<8x192xf32> to vector<8x8xf32>
    %33 = vector.extract_strided_slice %8 {offsets = [0, 104], sizes = [8, 8], strides = [1, 1]} : vector<8x192xf32> to vector<8x8xf32>
    %34 = vector.extract_strided_slice %8 {offsets = [0, 112], sizes = [8, 8], strides = [1, 1]} : vector<8x192xf32> to vector<8x8xf32>
    %35 = vector.extract_strided_slice %8 {offsets = [0, 120], sizes = [8, 8], strides = [1, 1]} : vector<8x192xf32> to vector<8x8xf32>
    %36 = vector.shape_cast %28 : vector<8x8xf32> to vector<1x8x8xf32>
    %37 = vector.shape_cast %29 : vector<8x8xf32> to vector<1x8x8xf32>
    %38 = vector.shape_cast %30 : vector<8x8xf32> to vector<1x8x8xf32>
    %39 = vector.shape_cast %31 : vector<8x8xf32> to vector<1x8x8xf32>
    %40 = vector.shape_cast %32 : vector<8x8xf32> to vector<1x8x8xf32>
    %41 = vector.shape_cast %33 : vector<8x8xf32> to vector<1x8x8xf32>
    %42 = vector.shape_cast %34 : vector<8x8xf32> to vector<1x8x8xf32>
    %43 = vector.shape_cast %35 : vector<8x8xf32> to vector<1x8x8xf32>
    %44 = tpu.concatenate %36, %37, %38, %39, %40, %41, %42, %43 in 0 : vector<1x8x8xf32>, vector<1x8x8xf32>, vector<1x8x8xf32>, vector<1x8x8xf32>, vector<1x8x8xf32>, vector<1x8x8xf32>, vector<1x8x8xf32>, vector<1x8x8xf32> -> vector<8x8x8xf32>
    %45 = vector.extract_strided_slice %8 {offsets = [0, 128], sizes = [8, 8], strides = [1, 1]} : vector<8x192xf32> to vector<8x8xf32>
    %46 = vector.extract_strided_slice %8 {offsets = [0, 136], sizes = [8, 8], strides = [1, 1]} : vector<8x192xf32> to vector<8x8xf32>
    %47 = vector.extract_strided_slice %8 {offsets = [0, 144], sizes = [8, 8], strides = [1, 1]} : vector<8x192xf32> to vector<8x8xf32>
    %48 = vector.extract_strided_slice %8 {offsets = [0, 152], sizes = [8, 8], strides = [1, 1]} : vector<8x192xf32> to vector<8x8xf32>
    %49 = vector.extract_strided_slice %8 {offsets = [0, 160], sizes = [8, 8], strides = [1, 1]} : vector<8x192xf32> to vector<8x8xf32>
    %50 = vector.extract_strided_slice %8 {offsets = [0, 168], sizes = [8, 8], strides = [1, 1]} : vector<8x192xf32> to vector<8x8xf32>
    %51 = vector.extract_strided_slice %8 {offsets = [0, 176], sizes = [8, 8], strides = [1, 1]} : vector<8x192xf32> to vector<8x8xf32>
    %52 = vector.extract_strided_slice %8 {offsets = [0, 184], sizes = [8, 8], strides = [1, 1]} : vector<8x192xf32> to vector<8x8xf32>
    %53 = vector.shape_cast %45 : vector<8x8xf32> to vector<1x8x8xf32>
    %54 = vector.shape_cast %46 : vector<8x8xf32> to vector<1x8x8xf32>
    %55 = vector.shape_cast %47 : vector<8x8xf32> to vector<1x8x8xf32>
    %56 = vector.shape_cast %48 : vector<8x8xf32> to vector<1x8x8xf32>
    %57 = vector.shape_cast %49 : vector<8x8xf32> to vector<1x8x8xf32>
    %58 = vector.shape_cast %50 : vector<8x8xf32> to vector<1x8x8xf32>
    %59 = vector.shape_cast %51 : vector<8x8xf32> to vector<1x8x8xf32>
    %60 = vector.shape_cast %52 : vector<8x8xf32> to vector<1x8x8xf32>
    %61 = tpu.concatenate %53, %54, %55, %56, %57, %58, %59, %60 in 0 : vector<1x8x8xf32>, vector<1x8x8xf32>, vector<1x8x8xf32>, vector<1x8x8xf32>, vector<1x8x8xf32>, vector<1x8x8xf32>, vector<1x8x8xf32>, vector<1x8x8xf32> -> vector<8x8x8xf32>
    "tpu.trace_start"() <{level = 10 : i32, message = "hnd,hmd->hnm"}> : () -> ()
    %cst_9 = arith.constant dense<0.000000e+00> : vector<8x8x8xf32>
    %62 = tpu.matmul %27, %44, %cst_9 {dimension_numbers = #tpu.dot_dimension_numbers<[2], [2], [1], [1], [0, 0, 0, 1, 1, 1], [0], [0]>} : vector<8x8x8xf32>, vector<8x8x8xf32>, vector<8x8x8xf32> -> vector<8x8x8xf32>
    "tpu.trace_stop"() : () -> ()
    %cst_10 = arith.constant dense<0xFF800000> : vector<8x8xf32>
    %63 = vector.multi_reduction <maximumf>, %62, %cst_10 [2] : vector<8x8x8xf32> to vector<8x8xf32>
    %64 = vector.shape_cast %63 : vector<8x8xf32> to vector<8x8x1xf32>
    %65 = vector.broadcast %64 : vector<8x8x1xf32> to vector<8x8x8xf32>
    %66 = arith.subf %62, %65 : vector<8x8x8xf32>
    %67 = math.exp %66 : vector<8x8x8xf32>
    %cst_11 = arith.constant dense<0.000000e+00> : vector<8x8xf32>
    %68 = vector.multi_reduction <add>, %67, %cst_11 [2] : vector<8x8x8xf32> to vector<8x8xf32>
    %69 = vector.shape_cast %68 : vector<8x8xf32> to vector<8x8x1xf32>
    %70 = tpu.reciprocal %69 {approx = true} : vector<8x8x1xf32> -> vector<8x8x1xf32>
    %71 = vector.broadcast %70 : vector<8x8x1xf32> to vector<8x8x8xf32>
    %72 = arith.mulf %67, %71 : vector<8x8x8xf32>
    "tpu.trace_start"() <{level = 10 : i32, message = "hnm,hmd->hnd"}> : () -> ()
    %cst_12 = arith.constant dense<0.000000e+00> : vector<8x8x8xf32>
    %73 = tpu.matmul %72, %61, %cst_12 {dimension_numbers = #tpu.dot_dimension_numbers<[2], [1], [1], [2], [0, 0, 0, 1, 1, 2], [0], [0]>} : vector<8x8x8xf32>, vector<8x8x8xf32>, vector<8x8x8xf32> -> vector<8x8x8xf32>
    "tpu.trace_stop"() : () -> ()
    %74 = vector.extract_strided_slice %73 {offsets = [0, 0, 0], sizes = [1, 8, 8], strides = [1, 1, 1]} : vector<8x8x8xf32> to vector<1x8x8xf32>
    %75 = vector.shape_cast %74 : vector<1x8x8xf32> to vector<8x8xf32>
    %76 = vector.extract_strided_slice %73 {offsets = [1, 0, 0], sizes = [1, 8, 8], strides = [1, 1, 1]} : vector<8x8x8xf32> to vector<1x8x8xf32>
    %77 = vector.shape_cast %76 : vector<1x8x8xf32> to vector<8x8xf32>
    %78 = vector.extract_strided_slice %73 {offsets = [2, 0, 0], sizes = [1, 8, 8], strides = [1, 1, 1]} : vector<8x8x8xf32> to vector<1x8x8xf32>
    %79 = vector.shape_cast %78 : vector<1x8x8xf32> to vector<8x8xf32>
    %80 = vector.extract_strided_slice %73 {offsets = [3, 0, 0], sizes = [1, 8, 8], strides = [1, 1, 1]} : vector<8x8x8xf32> to vector<1x8x8xf32>
    %81 = vector.shape_cast %80 : vector<1x8x8xf32> to vector<8x8xf32>
    %82 = vector.extract_strided_slice %73 {offsets = [4, 0, 0], sizes = [1, 8, 8], strides = [1, 1, 1]} : vector<8x8x8xf32> to vector<1x8x8xf32>
    %83 = vector.shape_cast %82 : vector<1x8x8xf32> to vector<8x8xf32>
    %84 = vector.extract_strided_slice %73 {offsets = [5, 0, 0], sizes = [1, 8, 8], strides = [1, 1, 1]} : vector<8x8x8xf32> to vector<1x8x8xf32>
    %85 = vector.shape_cast %84 : vector<1x8x8xf32> to vector<8x8xf32>
    %86 = vector.extract_strided_slice %73 {offsets = [6, 0, 0], sizes = [1, 8, 8], strides = [1, 1, 1]} : vector<8x8x8xf32> to vector<1x8x8xf32>
    %87 = vector.shape_cast %86 : vector<1x8x8xf32> to vector<8x8xf32>
    %88 = vector.extract_strided_slice %73 {offsets = [7, 0, 0], sizes = [1, 8, 8], strides = [1, 1, 1]} : vector<8x8x8xf32> to vector<1x8x8xf32>
    %89 = vector.shape_cast %88 : vector<1x8x8xf32> to vector<8x8xf32>
    %90 = tpu.concatenate %75, %77, %79, %81, %83, %85, %87, %89 in 1 : vector<8x8xf32>, vector<8x8xf32>, vector<8x8xf32>, vector<8x8xf32>, vector<8x8xf32>, vector<8x8xf32>, vector<8x8xf32>, vector<8x8xf32> -> vector<8x64xf32>
    %c0_13 = arith.constant 0 : index
    %c0_14 = arith.constant 0 : index
    %c0_15 = arith.constant 0 : index
    %91 = vector.load %arg4[%c0_13, %c0_14, %c0_15] : memref<1x64x64xf32, #tpu.memory_space<vmem>>, vector<1x64x64xf32>
    %92 = vector.shape_cast %91 : vector<1x64x64xf32> to vector<64x64xf32>
    %cst_16 = arith.constant dense<0.000000e+00> : vector<8x64xf32>
    %93 = tpu.matmul %90, %92, %cst_16 {dimension_numbers = #tpu.dot_dimension_numbers<[1], [0], [0], [1], [0, 0, 1, 1], [], []>} : vector<8x64xf32>, vector<64x64xf32>, vector<8x64xf32> -> vector<8x64xf32>
    %c0_17 = arith.constant 0 : index
    %c0_18 = arith.constant 0 : index
    %c0_19 = arith.constant 0 : index
    %94 = vector.load %arg5[%c0_17, %c0_18, %c0_19] : memref<1x1x64xf32, #tpu.memory_space<vmem>>, vector<1x1x64xf32>
    %95 = vector.shape_cast %94 : vector<1x1x64xf32> to vector<1x64xf32>
    %96 = vector.broadcast %95 : vector<1x64xf32> to vector<8x64xf32>
    %97 = arith.addf %93, %96 : vector<8x64xf32>
    %98 = arith.addf %1, %97 : vector<8x64xf32>
    %c0_20 = arith.constant 0 : index
    %c0_21 = arith.constant 0 : index
    %c0_22 = arith.constant 0 : index
    %99 = vector.load %arg6[%c0_20, %c0_21, %c0_22] : memref<1x1x64xf32, #tpu.memory_space<vmem>>, vector<1x1x64xf32>
    %100 = vector.shape_cast %99 : vector<1x1x64xf32> to vector<1x64xf32>
    %c0_23 = arith.constant 0 : index
    %c0_24 = arith.constant 0 : index
    %c0_25 = arith.constant 0 : index
    %101 = vector.load %arg7[%c0_23, %c0_24, %c0_25] : memref<1x1x64xf32, #tpu.memory_space<vmem>>, vector<1x1x64xf32>
    %102 = vector.shape_cast %101 : vector<1x1x64xf32> to vector<1x64xf32>
    %cst_26 = arith.constant dense<0.000000e+00> : vector<8xf32>
    %103 = vector.multi_reduction <add>, %98, %cst_26 [1] : vector<8x64xf32> to vector<8xf32>
    %104 = vector.shape_cast %103 : vector<8xf32> to vector<8x1xf32>
    %cst_27 = arith.constant 6.400000e+01 : f32
    %105 = vector.broadcast %cst_27 : f32 to vector<8x1xf32>
    %106 = arith.divf %104, %105 : vector<8x1xf32>
    %107 = vector.broadcast %106 : vector<8x1xf32> to vector<8x64xf32>
    %108 = arith.subf %98, %107 : vector<8x64xf32>
    %109 = arith.mulf %108, %108 : vector<8x64xf32>
    %cst_28 = arith.constant dense<0.000000e+00> : vector<8xf32>
    %110 = vector.multi_reduction <add>, %109, %cst_28 [1] : vector<8x64xf32> to vector<8xf32>
    %111 = vector.shape_cast %110 : vector<8xf32> to vector<8x1xf32>
    %cst_29 = arith.constant 6.400000e+01 : f32
    %112 = vector.broadcast %cst_29 : f32 to vector<8x1xf32>
    %113 = arith.divf %111, %112 : vector<8x1xf32>
    %cst_30 = arith.constant 9.99999997E-7 : f32
    %114 = vector.broadcast %cst_30 : f32 to vector<8x1xf32>
    %115 = arith.addf %113, %114 : vector<8x1xf32>
    %116 = math.rsqrt %115 : vector<8x1xf32>
    %117 = vector.broadcast %116 : vector<8x1xf32> to vector<8x64xf32>
    %118 = arith.mulf %108, %117 : vector<8x64xf32>
    %119 = vector.broadcast %100 : vector<1x64xf32> to vector<8x64xf32>
    %120 = arith.mulf %118, %119 : vector<8x64xf32>
    %121 = vector.broadcast %102 : vector<1x64xf32> to vector<8x64xf32>
    %122 = arith.addf %120, %121 : vector<8x64xf32>
    %c0_31 = arith.constant 0 : index
    %c0_32 = arith.constant 0 : index
    %c0_33 = arith.constant 0 : index
    %123 = vector.load %arg8[%c0_31, %c0_32, %c0_33] : memref<1x64x256xf32, #tpu.memory_space<vmem>>, vector<1x64x256xf32>
    %124 = vector.shape_cast %123 : vector<1x64x256xf32> to vector<64x256xf32>
    %cst_34 = arith.constant dense<0.000000e+00> : vector<8x256xf32>
    %125 = tpu.matmul %122, %124, %cst_34 {dimension_numbers = #tpu.dot_dimension_numbers<[1], [0], [0], [1], [0, 0, 1, 1], [], []>} : vector<8x64xf32>, vector<64x256xf32>, vector<8x256xf32> -> vector<8x256xf32>
    %c0_35 = arith.constant 0 : index
    %c0_36 = arith.constant 0 : index
    %c0_37 = arith.constant 0 : index
    %126 = vector.load %arg9[%c0_35, %c0_36, %c0_37] : memref<1x1x256xf32, #tpu.memory_space<vmem>>, vector<1x1x256xf32>
    %127 = vector.shape_cast %126 : vector<1x1x256xf32> to vector<1x256xf32>
    %128 = vector.broadcast %127 : vector<1x256xf32> to vector<8x256xf32>
    %129 = arith.addf %125, %128 : vector<8x256xf32>
    %cst_38 = arith.constant 5.000000e-01 : f32
    %130 = vector.broadcast %cst_38 : f32 to vector<8x256xf32>
    %131 = arith.mulf %130, %129 : vector<8x256xf32>
    %cst_39 = arith.constant 0.707106769 : f32
    %132 = vector.broadcast %cst_39 : f32 to vector<8x256xf32>
    %133 = arith.mulf %129, %132 : vector<8x256xf32>
    %cst_40 = arith.constant 0.000000e+00 : f32
    %134 = vector.broadcast %cst_40 : f32 to vector<8x256xf32>
    %135 = arith.cmpf olt, %133, %134 : vector<8x256xf32>
    %cst_41 = arith.constant -1.000000e+00 : f32
    %cst_42 = arith.constant 1.000000e+00 : f32
    %136 = vector.broadcast %cst_41 : f32 to vector<8x256xf32>
    %137 = vector.broadcast %cst_42 : f32 to vector<8x256xf32>
    %138 = arith.select %135, %136, %137 : vector<8x256xi1>, vector<8x256xf32>
    %139 = math.absf %133 : vector<8x256xf32>
    %cst_43 = arith.constant 0.327591091 : f32
    %140 = vector.broadcast %cst_43 : f32 to vector<8x256xf32>
    %141 = arith.mulf %140, %139 : vector<8x256xf32>
    %cst_44 = arith.constant 1.000000e+00 : f32
    %142 = vector.broadcast %cst_44 : f32 to vector<8x256xf32>
    %143 = arith.addf %142, %141 : vector<8x256xf32>
    %cst_45 = arith.constant 1.000000e+00 : f32
    %144 = vector.broadcast %cst_45 : f32 to vector<8x256xf32>
    %145 = arith.divf %144, %143 : vector<8x256xf32>
    %cst_46 = arith.constant 1.06140542 : f32
    %146 = vector.broadcast %cst_46 : f32 to vector<8x256xf32>
    %147 = arith.mulf %146, %145 : vector<8x256xf32>
    %cst_47 = arith.constant -1.45315206 : f32
    %148 = vector.broadcast %cst_47 : f32 to vector<8x256xf32>
    %149 = arith.addf %147, %148 : vector<8x256xf32>
    %150 = arith.mulf %149, %145 : vector<8x256xf32>
    %cst_48 = arith.constant 1.42141378 : f32
    %151 = vector.broadcast %cst_48 : f32 to vector<8x256xf32>
    %152 = arith.addf %150, %151 : vector<8x256xf32>
    %153 = arith.mulf %152, %145 : vector<8x256xf32>
    %cst_49 = arith.constant -0.284496725 : f32
    %154 = vector.broadcast %cst_49 : f32 to vector<8x256xf32>
    %155 = arith.addf %153, %154 : vector<8x256xf32>
    %156 = arith.mulf %155, %145 : vector<8x256xf32>
    %cst_50 = arith.constant 0.254829586 : f32
    %157 = vector.broadcast %cst_50 : f32 to vector<8x256xf32>
    %158 = arith.addf %156, %157 : vector<8x256xf32>
    %159 = arith.mulf %158, %145 : vector<8x256xf32>
    %cst_51 = arith.constant 0.000000e+00 : f32
    %160 = vector.broadcast %cst_51 : f32 to vector<8x256xf32>
    %161 = arith.subf %160, %139 : vector<8x256xf32>
    %162 = arith.mulf %161, %139 : vector<8x256xf32>
    %163 = math.exp %162 : vector<8x256xf32>
    %164 = arith.mulf %159, %163 : vector<8x256xf32>
    %cst_52 = arith.constant 1.000000e+00 : f32
    %165 = vector.broadcast %cst_52 : f32 to vector<8x256xf32>
    %166 = arith.subf %165, %164 : vector<8x256xf32>
    %167 = arith.mulf %138, %166 : vector<8x256xf32>
    %cst_53 = arith.constant 1.000000e+00 : f32
    %168 = vector.broadcast %cst_53 : f32 to vector<8x256xf32>
    %169 = arith.addf %168, %167 : vector<8x256xf32>
    %170 = arith.mulf %131, %169 : vector<8x256xf32>
    %c0_54 = arith.constant 0 : index
    %c0_55 = arith.constant 0 : index
    %c0_56 = arith.constant 0 : index
    %171 = vector.load %arg10[%c0_54, %c0_55, %c0_56] : memref<1x256x64xf32, #tpu.memory_space<vmem>>, vector<1x256x64xf32>
    %172 = vector.shape_cast %171 : vector<1x256x64xf32> to vector<256x64xf32>
    %cst_57 = arith.constant dense<0.000000e+00> : vector<8x64xf32>
    %173 = tpu.matmul %170, %172, %cst_57 {dimension_numbers = #tpu.dot_dimension_numbers<[1], [0], [0], [1], [0, 0, 1, 1], [], []>} : vector<8x256xf32>, vector<256x64xf32>, vector<8x64xf32> -> vector<8x64xf32>
    %c0_58 = arith.constant 0 : index
    %c0_59 = arith.constant 0 : index
    %c0_60 = arith.constant 0 : index
    %174 = vector.load %arg11[%c0_58, %c0_59, %c0_60] : memref<1x1x64xf32, #tpu.memory_space<vmem>>, vector<1x1x64xf32>
    %175 = vector.shape_cast %174 : vector<1x1x64xf32> to vector<1x64xf32>
    %176 = vector.broadcast %175 : vector<1x64xf32> to vector<8x64xf32>
    %177 = arith.addf %173, %176 : vector<8x64xf32>
    %178 = arith.addf %122, %177 : vector<8x64xf32>
    %c0_61 = arith.constant 0 : index
    %c0_62 = arith.constant 0 : index
    %c0_63 = arith.constant 0 : index
    %179 = vector.load %arg12[%c0_61, %c0_62, %c0_63] : memref<1x1x64xf32, #tpu.memory_space<vmem>>, vector<1x1x64xf32>
    %180 = vector.shape_cast %179 : vector<1x1x64xf32> to vector<1x64xf32>
    %c0_64 = arith.constant 0 : index
    %c0_65 = arith.constant 0 : index
    %c0_66 = arith.constant 0 : index
    %181 = vector.load %arg13[%c0_64, %c0_65, %c0_66] : memref<1x1x64xf32, #tpu.memory_space<vmem>>, vector<1x1x64xf32>
    %182 = vector.shape_cast %181 : vector<1x1x64xf32> to vector<1x64xf32>
    %cst_67 = arith.constant dense<0.000000e+00> : vector<8xf32>
    %183 = vector.multi_reduction <add>, %178, %cst_67 [1] : vector<8x64xf32> to vector<8xf32>
    %184 = vector.shape_cast %183 : vector<8xf32> to vector<8x1xf32>
    %cst_68 = arith.constant 6.400000e+01 : f32
    %185 = vector.broadcast %cst_68 : f32 to vector<8x1xf32>
    %186 = arith.divf %184, %185 : vector<8x1xf32>
    %187 = vector.broadcast %186 : vector<8x1xf32> to vector<8x64xf32>
    %188 = arith.subf %178, %187 : vector<8x64xf32>
    %189 = arith.mulf %188, %188 : vector<8x64xf32>
    %cst_69 = arith.constant dense<0.000000e+00> : vector<8xf32>
    %190 = vector.multi_reduction <add>, %189, %cst_69 [1] : vector<8x64xf32> to vector<8xf32>
    %191 = vector.shape_cast %190 : vector<8xf32> to vector<8x1xf32>
    %cst_70 = arith.constant 6.400000e+01 : f32
    %192 = vector.broadcast %cst_70 : f32 to vector<8x1xf32>
    %193 = arith.divf %191, %192 : vector<8x1xf32>
    %cst_71 = arith.constant 9.99999997E-7 : f32
    %194 = vector.broadcast %cst_71 : f32 to vector<8x1xf32>
    %195 = arith.addf %193, %194 : vector<8x1xf32>
    %196 = math.rsqrt %195 : vector<8x1xf32>
    %197 = vector.broadcast %196 : vector<8x1xf32> to vector<8x64xf32>
    %198 = arith.mulf %188, %197 : vector<8x64xf32>
    %199 = vector.broadcast %180 : vector<1x64xf32> to vector<8x64xf32>
    %200 = arith.mulf %198, %199 : vector<8x64xf32>
    %201 = vector.broadcast %182 : vector<1x64xf32> to vector<8x64xf32>
    %202 = arith.addf %200, %201 : vector<8x64xf32>
    %c0_72 = arith.constant 0 : index
    %c0_73 = arith.constant 0 : index
    %203 = vector.load %arg14[%c0_72, %c0_73] : memref<4x8xf32, #tpu.memory_space<vmem>>, vector<4x8xf32>
    %cst_74 = arith.constant dense<0.000000e+00> : vector<4x64xf32>
    %204 = tpu.matmul %203, %202, %cst_74 {dimension_numbers = #tpu.dot_dimension_numbers<[1], [0], [0], [1], [0, 0, 1, 1], [], []>} : vector<4x8xf32>, vector<8x64xf32>, vector<4x64xf32> -> vector<4x64xf32>
    %c0_75 = arith.constant 0 : index
    %c0_76 = arith.constant 0 : index
    %205 = vector.load %arg15[%c0_75, %c0_76] : memref<64x64xf32, #tpu.memory_space<vmem>>, vector<64x64xf32>
    %cst_77 = arith.constant dense<0.000000e+00> : vector<4x64xf32>
    %206 = tpu.matmul %204, %205, %cst_77 {dimension_numbers = #tpu.dot_dimension_numbers<[1], [0], [0], [1], [0, 0, 1, 1], [], []>} : vector<4x64xf32>, vector<64x64xf32>, vector<4x64xf32> -> vector<4x64xf32>
    %cst_78 = arith.constant 3.000000e+00 : f32
    %207 = vector.broadcast %cst_78 : f32 to vector<4x64xf32>
    %208 = arith.addf %206, %207 : vector<4x64xf32>
    %cst_79 = arith.constant 0.000000e+00 : f32
    %cst_80 = arith.constant 6.000000e+00 : f32
    %209 = vector.broadcast %cst_79 : f32 to vector<4x64xf32>
    %210 = arith.maximumf %209, %208 : vector<4x64xf32>
    %211 = vector.broadcast %cst_80 : f32 to vector<4x64xf32>
    %212 = arith.minimumf %211, %210 : vector<4x64xf32>
    %213 = arith.mulf %206, %212 : vector<4x64xf32>
    %cst_81 = arith.constant 0.166666672 : f32
    %214 = vector.broadcast %cst_81 : f32 to vector<4x64xf32>
    %215 = arith.mulf %213, %214 : vector<4x64xf32>
    %c0_82 = arith.constant 0 : index
    %c0_83 = arith.constant 0 : index
    %216 = vector.load %arg16[%c0_82, %c0_83] : memref<64x96xf32, #tpu.memory_space<vmem>>, vector<64x96xf32>
    %cst_84 = arith.constant dense<0.000000e+00> : vector<4x96xf32>
    %217 = tpu.matmul %215, %216, %cst_84 {dimension_numbers = #tpu.dot_dimension_numbers<[1], [0], [0], [1], [0, 0, 1, 1], [], []>} : vector<4x64xf32>, vector<64x96xf32>, vector<4x96xf32> -> vector<4x96xf32>
    %c0_85 = arith.constant 0 : index
    %c0_86 = arith.constant 0 : index
    %218 = vector.load %arg17[%c0_85, %c0_86] : memref<1x96xf32, #tpu.memory_space<vmem>>, vector<1x96xf32>
    %219 = vector.broadcast %218 : vector<1x96xf32> to vector<4x96xf32>
    %220 = arith.addf %217, %219 : vector<4x96xf32>
    %c0_87 = arith.constant 0 : index
    %c0_88 = arith.constant 0 : index
    %c0_89 = arith.constant 0 : index
    %221 = vector.load %arg18[%c0_87, %c0_88, %c0_89] : memref<1x4x96xf32, #tpu.memory_space<vmem>>, vector<1x4x96xf32>
    %222 = vector.shape_cast %221 : vector<1x4x96xf32> to vector<4x96xf32>
    %223 = vector.shape_cast %220 : vector<4x96xf32> to vector<1x4x96xf32>
    tpu.vector_store %arg18[%c0_87, %c0_88, %c0_89], %223 {strides = array<i32>} : memref<1x4x96xf32, #tpu.memory_space<vmem>>, vector<1x4x96xf32>,
    return
  }
  func.func @transform_0(%arg0: i32) -> (i32, i32, i32) {
    %c0_i32 = arith.constant 0 : i32
    %c0_i32_0 = arith.constant 0 : i32
    %c0_i32_1 = arith.constant 0 : i32
    return %arg0, %c0_i32, %c0_i32_0 : i32, i32, i32
  }
  func.func @transform_1(%arg0: i32) -> (i32, i32, i32) {
    %c0_i32 = arith.constant 0 : i32
    %c0_i32_0 = arith.constant 0 : i32
    %c0_i32_1 = arith.constant 0 : i32
    %c0_i32_2 = arith.constant 0 : i32
    return %c0_i32, %c0_i32_0, %c0_i32_1 : i32, i32, i32
  }
  func.func @transform_2(%arg0: i32) -> (i32, i32, i32) {
    %c0_i32 = arith.constant 0 : i32
    %c0_i32_0 = arith.constant 0 : i32
    %c0_i32_1 = arith.constant 0 : i32
    %c0_i32_2 = arith.constant 0 : i32
    return %c0_i32, %c0_i32_0, %c0_i32_1 : i32, i32, i32
  }
  func.func @transform_3(%arg0: i32) -> (i32, i32, i32) {
    %c0_i32 = arith.constant 0 : i32
    %c0_i32_0 = arith.constant 0 : i32
    %c0_i32_1 = arith.constant 0 : i32
    %c0_i32_2 = arith.constant 0 : i32
    return %c0_i32, %c0_i32_0, %c0_i32_1 : i32, i32, i32
  }
  func.func @transform_4(%arg0: i32) -> (i32, i32, i32) {
    %c0_i32 = arith.constant 0 : i32
    %c0_i32_0 = arith.constant 0 : i32
    %c0_i32_1 = arith.constant 0 : i32
    %c0_i32_2 = arith.constant 0 : i32
    return %c0_i32, %c0_i32_0, %c0_i32_1 : i32, i32, i32
  }
  func.func @transform_5(%arg0: i32) -> (i32, i32, i32) {
    %c0_i32 = arith.constant 0 : i32
    %c0_i32_0 = arith.constant 0 : i32
    %c0_i32_1 = arith.constant 0 : i32
    %c0_i32_2 = arith.constant 0 : i32
    return %c0_i32, %c0_i32_0, %c0_i32_1 : i32, i32, i32
  }
  func.func @transform_6(%arg0: i32) -> (i32, i32, i32) {
    %c0_i32 = arith.constant 0 : i32
    %c0_i32_0 = arith.constant 0 : i32
    %c0_i32_1 = arith.constant 0 : i32
    %c0_i32_2 = arith.constant 0 : i32
    return %c0_i32, %c0_i32_0, %c0_i32_1 : i32, i32, i32
  }
  func.func @transform_7(%arg0: i32) -> (i32, i32, i32) {
    %c0_i32 = arith.constant 0 : i32
    %c0_i32_0 = arith.constant 0 : i32
    %c0_i32_1 = arith.constant 0 : i32
    %c0_i32_2 = arith.constant 0 : i32
    return %c0_i32, %c0_i32_0, %c0_i32_1 : i32, i32, i32
  }
  func.func @transform_8(%arg0: i32) -> (i32, i32, i32) {
    %c0_i32 = arith.constant 0 : i32
    %c0_i32_0 = arith.constant 0 : i32
    %c0_i32_1 = arith.constant 0 : i32
    %c0_i32_2 = arith.constant 0 : i32
    return %c0_i32, %c0_i32_0, %c0_i32_1 : i32, i32, i32
  }
  func.func @transform_9(%arg0: i32) -> (i32, i32, i32) {
    %c0_i32 = arith.constant 0 : i32
    %c0_i32_0 = arith.constant 0 : i32
    %c0_i32_1 = arith.constant 0 : i32
    %c0_i32_2 = arith.constant 0 : i32
    return %c0_i32, %c0_i32_0, %c0_i32_1 : i32, i32, i32
  }
  func.func @transform_10(%arg0: i32) -> (i32, i32, i32) {
    %c0_i32 = arith.constant 0 : i32
    %c0_i32_0 = arith.constant 0 : i32
    %c0_i32_1 = arith.constant 0 : i32
    %c0_i32_2 = arith.constant 0 : i32
    return %c0_i32, %c0_i32_0, %c0_i32_1 : i32, i32, i32
  }
  func.func @transform_11(%arg0: i32) -> (i32, i32, i32) {
    %c0_i32 = arith.constant 0 : i32
    %c0_i32_0 = arith.constant 0 : i32
    %c0_i32_1 = arith.constant 0 : i32
    %c0_i32_2 = arith.constant 0 : i32
    return %c0_i32, %c0_i32_0, %c0_i32_1 : i32, i32, i32
  }
  func.func @transform_12(%arg0: i32) -> (i32, i32, i32) {
    %c0_i32 = arith.constant 0 : i32
    %c0_i32_0 = arith.constant 0 : i32
    %c0_i32_1 = arith.constant 0 : i32
    %c0_i32_2 = arith.constant 0 : i32
    return %c0_i32, %c0_i32_0, %c0_i32_1 : i32, i32, i32
  }
  func.func @transform_13(%arg0: i32) -> (i32, i32) {
    %c0_i32 = arith.constant 0 : i32
    %c0_i32_0 = arith.constant 0 : i32
    %c0_i32_1 = arith.constant 0 : i32
    return %c0_i32, %c0_i32_0 : i32, i32
  }
  func.func @transform_14(%arg0: i32) -> (i32, i32) {
    %c0_i32 = arith.constant 0 : i32
    %c0_i32_0 = arith.constant 0 : i32
    %c0_i32_1 = arith.constant 0 : i32
    return %c0_i32, %c0_i32_0 : i32, i32
  }
  func.func @transform_15(%arg0: i32) -> (i32, i32) {
    %c0_i32 = arith.constant 0 : i32
    %c0_i32_0 = arith.constant 0 : i32
    %c0_i32_1 = arith.constant 0 : i32
    return %c0_i32, %c0_i32_0 : i32, i32
  }
  func.func @transform_16(%arg0: i32) -> (i32, i32) {
    %c0_i32 = arith.constant 0 : i32
    %c0_i32_0 = arith.constant 0 : i32
    %c0_i32_1 = arith.constant 0 : i32
    return %c0_i32, %c0_i32_0 : i32, i32
  }
  func.func @transform_17(%arg0: i32) -> (i32, i32, i32) {
    %c0_i32 = arith.constant 0 : i32
    %c0_i32_0 = arith.constant 0 : i32
    %c0_i32_1 = arith.constant 0 : i32
    return %arg0, %c0_i32, %c0_i32_0 : i32, i32, i32
  }
}

</mosaic_0001>

<bundles_post_ra>
// kernel: _lambda_.6
= control target key start
LH: loop header
LB: loop body
LE: loop exit
PB: predicated region body
PF: predicated region fallthrough
CT: control target
= control target key end

     0   :  { %s589_s15 = smov 0   ;;  %s716_s0 = inlined_call_operand.vmem [shape: f32[2,32,72], index: 0, kind: input, shape index: {}]   ;;  %s717_s1 = inlined_call_operand.vmem [shape: f32[72,16], index: 1, kind: input, shape index: {}]   ;;  %s718_s2 = inlined_call_operand.vmem [shape: f32[1,16], index: 2, kind: input, shape index: {}]   ;;  %s719_s3 = inlined_call_operand.vmem [shape: f32[32,16], index: 3, kind: input, shape index: {}]   ;;  %s720_s4 = inlined_call_operand.vmem [shape: f32[2,32,16], index: 4, kind: output, shape index: {}]  }
   0x1 LB: > { %s485_s16 = sadd.s32 4294967295, %s561_s15   ;;  %p489_p0 = scmp.ge.s32.totalorder %s561_s15, 1  ;;  %s561_s15 = sphi %s589_s15, %s14_s15  }
   0x2   : > { %p162_p1 = scmp.lt.s32.totalorder %s561_s15, 3 }
   0x4   : > { %p163_p2 = pnand %p489_p0, %p162_p1 }
   0x5   : > { %p188_p3 = scmp.lt.s32.totalorder (!%p163_p2), %s485_s16, 1 }
   0x6   : > { %166 = sbr.rel (%p163_p2) target bundleno = 222 (0xde), region = 36 }
   0xb   : > { %v210_v0 = vld [vmem:[%s717_s1 + $0x40] sm:$0xff]  ;;  %v209_v1 = vld [vmem:[%s717_s1 + $0x38] sm:$0xff]  ;;  %v208_v2 = vld [vmem:[%s717_s1 + $0x30] sm:$0xff]  ;;  %s722_s16 = smov (!%p188_p3, %s485_s16), 1  ;;  %vm215_vm0 = vcmask 588800  }
   0xc   : > { %235 = vmatpush.msra.mxu0 %v210_v0  ;;  %502 = vmatpush.msra.mxu1 %v210_v0  ;;  %v207_v3 = vld [vmem:[%s717_s1 + $0x28] sm:$0xff]  ;;  %v206_v4 = vld [vmem:[%s717_s1 + $0x20] sm:$0xff]  ;;  %v205_v5 = vld [vmem:[%s717_s1 + $0x18] sm:$0xff]  ;;  %s500_s5 = sshll.u32 %s722_s16, 5 }
   0xd   : > { %503 = vmatpush.msra.mxu2 %v210_v0  ;;  %504 = vmatpush.msra.mxu3 %v210_v0  ;;  %v204_v6 = vld [vmem:[%s717_s1 + $0x10] sm:$0xff]  ;;  %v203_v7 = vld [vmem:[%s717_s1 + $0x8] sm:$0xff]  ;;  %s192_s10 = scalar_lea.vmem %s716_s0, %s500_s5  ;;  %v202_v8 = vld [vmem:[%s717_s1] sm:$0xff]  ;;  %s197_s23 = scalar_lea.vmem %s720_s4, %s500_s5 }
   0xe   : > { %236 = vmatpush.msra.mxu0 %v209_v1  ;;  %505 = vmatpush.msra.mxu1 %v209_v1  ;;  %v198_v9 = vld [vmem:[%s192_s10] sm:$0xff]  ;;  %v199_v10 = vld [vmem:[%s192_s10 + $0x8] sm:$0xff]  ;;  %v200_v11 = vld [vmem:[%s192_s10 + $0x10] sm:$0xff] }
   0xf   : > { %506 = vmatpush.msra.mxu2 %v209_v1  ;;  %507 = vmatpush.msra.mxu3 %v209_v1  ;;  %v201_v12 = vld [vmem:[%s192_s10 + $0x18] sm:$0xff]  ;;  %v538_v13 = vld [vmem:[%s718_s2] ss:$0 sm:$0xff] }
  0x10   : > { %237 = vmatpush.msra.mxu0 %v208_v2  ;;  %508 = vmatpush.msra.mxu1 %v208_v2 }
  0x11   : > { %509 = vmatpush.msra.mxu2 %v208_v2  ;;  %510 = vmatpush.msra.mxu3 %v208_v2 }
  0x12   : > { %238 = vmatpush.msra.mxu0 %v207_v3  ;;  %511 = vmatpush.msra.mxu1 %v207_v3 }
  0x13   : > { %512 = vmatpush.msra.mxu2 %v207_v3  ;;  %513 = vmatpush.msra.mxu3 %v207_v3 }
  0x14   : > { %239 = vmatpush.msra.mxu0 %v206_v4  ;;  %514 = vmatpush.msra.mxu1 %v206_v4 }
  0x15   : > { %515 = vmatpush.msra.mxu2 %v206_v4  ;;  %516 = vmatpush.msra.mxu3 %v206_v4 }
  0x16   : > { %240 = vmatpush.msra.mxu0 %v205_v5  ;;  %517 = vmatpush.msra.mxu1 %v205_v5 }
  0x17   : > { %518 = vmatpush.msra.mxu2 %v205_v5  ;;  %519 = vmatpush.msra.mxu3 %v205_v5 }
  0x18   : > { %241 = vmatpush.msra.mxu0 %v204_v6  ;;  %520 = vmatpush.msra.mxu1 %v204_v6 }
  0x19   : > { %521 = vmatpush.msra.mxu2 %v204_v6  ;;  %522 = vmatpush.msra.mxu3 %v204_v6 }
  0x1a   : > { %242 = vmatpush.msra.mxu0 %v203_v7  ;;  %523 = vmatpush.msra.mxu1 %v203_v7 }
  0x1b   : > { %524 = vmatpush.msra.mxu2 %v203_v7  ;;  %525 = vmatpush.msra.mxu3 %v203_v7 }
  0x1c   : > { %243 = vmatpush.msra.mxu0 %v202_v8  ;;  %526 = vmatpush.msra.mxu1 %v202_v8 }
  0x1d   : > { %527 = vmatpush.msra.mxu2 %v202_v8  ;;  %528 = vmatpush.msra.mxu3 %v202_v8 }
  0x1e   : > { %494 = vmatmul.msk.f32.vlgmr.msra.gmra.mxu0 %vm215_vm0, %v198_v9  ;;  %495 = vmatmul.msk.f32.vlgmr.msra.gmra.mxu1 %vm215_vm0, %v199_v10 }
  0x1f   : > { %496 = vmatmul.msk.f32.vlgmr.msra.gmra.mxu2 %vm215_vm0, %v200_v11  ;;  %497 = vmatmul.msk.f32.vlgmr.msra.gmra.mxu3 %vm215_vm0, %v201_v12 }
  0x9b   : > { %v245_v14 = vpop.f32.mrf.mxu0  ;;  %v248_v15 = vpop.f32.mrf.mxu1 }
  0x9c   : > { %v635_v16 = vadd.f32 %v538_v13, %v245_v14  ;;  %v637_v17 = vadd.f32 %v538_v13, %v248_v15 }
  0x9e   : > { %v640_v18 = vmul.f32 0.70710677, %v635_v16  ;;  %v643_v19 = vmul.f32 0.70710677, %v637_v17 }
  0xa0   : > { %v273_v20 = vand.u32 2147483647, %v640_v18  ;;  %v274_v21 = vand.u32 2147483647, %v643_v19 }
  0xa2   : > { %v277_v22 = vmul.f32 0.3275911, %v273_v20  ;;  %v278_v23 = vmul.f32 0.3275911, %v274_v21  ;;  %v251_v24 = vpop.f32.mrf.mxu2  ;;  %v254_v25 = vpop.f32.mrf.mxu3  ;;  %v381_v51 = vsub.f32 0.0, %v273_v20  ;;  %v382_v52 = vsub.f32 0.0, %v274_v21 }
  0xa3   : > { %v647_v26 = vadd.f32 %v538_v13, %v251_v24  ;;  %v649_v27 = vadd.f32 %v538_v13, %v254_v25 }
  0xa4   : > { %v281_v28 = vadd.f32 1.0, %v277_v22  ;;  %v282_v29 = vadd.f32 1.0, %v278_v23  ;;  %v385_v62 = vmul.f32 %v381_v51, %v273_v20  ;;  %v386_v0 = vmul.f32 %v382_v52, %v274_v21 }
  0xa5   : > { %v652_v30 = vmul.f32 0.70710677, %v647_v26  ;;  %v655_v31 = vmul.f32 0.70710677, %v649_v27 }
  0xa6   : > { %539 = vrcp.f32 %v281_v28  ;;  %vm290_vm1 = vweird.f32 %v281_v28  ;;  %v296_v42 = vand.u32 2147483648, %v281_v28  ;;  %v294_v46 = vand.u32 2147483647, %v281_v28 }
  0xa7   : > { %541 = vrcp.f32 %v282_v29  ;;  %v658_v32 = vand.u32 2147483647, %v652_v30  ;;  %v662_v34 = vand.u32 2147483647, %v655_v31  ;;  %v311_v47 = vand.u32 2147483648, %v282_v29 }
  0xa8   : > { %vm305_vm3 = vweird.f32 %v282_v29  ;;  %v309_v49 = vand.u32 2147483647, %v282_v29  ;;  %v297_v53 = vor.u32 1.1754944e-38, %v296_v42  ;;  %vm295_vm6 = vcmp.eq.f32.partialorder %v294_v46, 8.507059e+37 }
  0xa9   : > { %v279_v33 = vmul.f32 0.3275911, %v658_v32  ;;  %v280_v40 = vmul.f32 0.3275911, %v662_v34  ;;  %v312_v57 = vor.u32 1.1754944e-38, %v311_v47 }
  0xaa   : > { %vm310_vm8 = vcmp.eq.f32.partialorder %v309_v49, 8.507059e+37  ;;  %v389_v11 = vmul.f32 1.442695, %v385_v62  ;;  %v391_v12 = vmul.f32 1.442695, %v386_v0 }
  0xab   : > { %v283_v38 = vadd.f32 1.0, %v279_v33  ;;  %v665_v44 = vadd.f32 1.0, %v280_v40 }
  0xac   : > { %v540_v35 = vpop.eup %539 }
  0xad   : > { %v542_v36 = vpop.eup %541  ;;  %v286_v37 = vmul.f32 %v540_v35, %v281_v28  ;;  %543 = vrcp.f32 %v283_v38  ;;  %vm291_vm2 = vweird.f32 %v540_v35  ;;  %v324_v3 = vand.u32 2147483647, %v283_v38 }
  0xae   : > { %v301_v39 = vmul.f32 %v542_v36, %v282_v29  ;;  %vm306_vm4 = vweird.f32 %v542_v36  ;;  %545 = vrcp.f32 %v665_v44  ;;  %vm292_vm5 = vmor %vm290_vm1, %vm291_vm2  ;;  %v326_v6 = vand.u32 2147483648, %v283_v38 }
  0xaf   : > { %v287_v41 = vsub.f32 1.0, %v286_v37  ;;  %vm307_vm7 = vmor %vm305_vm3, %vm306_vm4  ;;  %vm320_vm10 = vweird.f32 %v283_v38  ;;  %vm325_vm11 = vcmp.eq.f32.partialorder %v324_v3, 8.507059e+37  ;;  %v339_v22 = vand.u32 2147483647, %v665_v44 }
  0xb0   : > { %v302_v43 = vsub.f32 1.0, %v301_v39  ;;  %v327_v21 = vor.u32 1.1754944e-38, %v326_v6  ;;  %v341_v23 = vand.u32 2147483648, %v665_v44  ;;  %547 = vpow2.f32 %v389_v11 }
  0xb1   : > { %v288_v45 = vmul.f32 %v540_v35, %v287_v41  ;;  %vm335_vm14 = vweird.f32 %v665_v44  ;;  %549 = vpow2.f32 %v391_v12  ;;  %vm340_vm0 = vcmp.eq.f32.partialorder %v339_v22, 8.507059e+37 }
  0xb2   : > { %v303_v48 = vmul.f32 %v542_v36, %v302_v43  ;;  %v342_v40 = vor.u32 1.1754944e-38, %v341_v23  ;;  %vm265_vm1 = vcmp.lt.f32.partialorder %v640_v18, 0.0  ;;  %vm266_vm2 = vcmp.lt.f32.partialorder %v643_v19, 0.0 }
  0xb3   : > { %v289_v50 = vadd.f32 %v540_v35, %v288_v45  ;;  %v544_v55 = vpop.eup %543  ;;  %v563_v6 = vmov 1.0   ;;  %v257_v12 = vmul.f32 0.5, %v635_v16  ;;  %vm267_vm3 = vcmp.lt.f32.partialorder %v652_v30, 0.0 }
  0xb4   : > { %v304_v54 = vadd.f32 %v542_v36, %v303_v48  ;;  %v316_v60 = vmul.f32 %v544_v55, %v283_v38  ;;  %v546_v4 = vpop.eup %545  ;;  %vm321_vm9 = vweird.f32 %v544_v55  ;;  %v384_v48 = vsub.f32 0.0, %v662_v34 }
  0xb5   : > { %v293_v56 = vsel %vm292_vm5, %v540_v35, %v289_v50  ;;  %v331_v9 = vmul.f32 %v546_v4, %v665_v44  ;;  %vm322_vm12 = vmor %vm320_vm10, %vm321_vm9  ;;  %vm336_vm13 = vweird.f32 %v546_v4  ;;  %v383_v35 = vsub.f32 0.0, %v658_v32 }
  0xb6   : > { %v669_v58 = vsel %vm295_vm6, %v297_v53, %v293_v56  ;;  %v308_v59 = vsel %vm307_vm7, %v542_v36, %v304_v54  ;;  %v317_v2 = vsub.f32 1.0, %v316_v60  ;;  %vm337_vm15 = vmor %vm335_vm14, %vm336_vm13  ;;  %v548_v52 = vpop.eup %547  ;;  %v388_v60 = vmul.f32 %v384_v48, %v662_v34 }
  0xb7   : > { %v345_v61 = vmul.f32 1.0614054, %v669_v58  ;;  %v313_v63 = vsel %vm310_vm8, %v312_v57, %v308_v59  ;;  %v332_v15 = vsub.f32 1.0, %v331_v9  ;;  %v387_v46 = vmul.f32 %v383_v35, %v658_v32  ;;  %v550_v56 = vpop.eup %549 }
  0xb8   : > { %v346_v1 = vmul.f32 1.0614054, %v313_v63  ;;  %v318_v8 = vmul.f32 %v544_v55, %v317_v2  ;;  %vm425_vm4 = vcmask 130048   ;;  %vm268_vm5 = vcmp.lt.f32.partialorder %v655_v31, 0.0  ;;  %v420_v31 = vld [vmem:[%s719_s3 + $0x18] sm:$0xff] }
  0xb9   : > { %v349_v5 = vadd.f32 -1.4531521, %v345_v61  ;;  %v333_v28 = vmul.f32 %v546_v4, %v332_v15  ;;  %v393_v59 = vmul.f32 1.442695, %v387_v46  ;;  %v260_v48 = vmul.f32 0.5, %v649_v27 }
  0xba   : > { %v350_v7 = vadd.f32 -1.4531521, %v346_v1  ;;  %v319_v14 = vadd.f32 %v544_v55, %v318_v8 }
  0xbb   : > { %v353_v10 = vmul.f32 %v349_v5, %v669_v58  ;;  %v334_v38 = vadd.f32 %v546_v4, %v333_v28  ;;  %551 = vpow2.f32 %v393_v59  ;;  %v395_v5 = vmul.f32 1.442695, %v388_v60 }
  0xbc   : > { %v354_v13 = vmul.f32 %v350_v7, %v313_v63  ;;  %v323_v25 = vsel %vm322_vm12, %v544_v55, %v319_v14  ;;  %v269_v7 = vsel %vm265_vm1, -1.0, %v563_v6  ;;  %v258_v14 = vmul.f32 0.5, %v637_v17 }
  0xbd   : > { %v357_v20 = vadd.f32 1.4214138, %v353_v10  ;;  %v328_v33 = vsel %vm325_vm11, %v327_v21, %v323_v25  ;;  %v338_v43 = vsel %vm337_vm15, %v546_v4, %v334_v38  ;;  %553 = vpow2.f32 %v395_v5 }
  0xbe   : > { %v358_v24 = vadd.f32 1.4214138, %v354_v13  ;;  %v347_v37 = vmul.f32 1.0614054, %v328_v33  ;;  %v343_v47 = vsel %vm340_vm0, %v342_v40, %v338_v43  ;;  %v417_v13 = vld [vmem:[%s719_s3] sm:$0xff]  ;;  %v272_v43 = vsel %vm268_vm5, -1.0, %v563_v6 }
  0xbf   : > { %v361_v29 = vmul.f32 %v357_v20, %v669_v58  ;;  %v348_v51 = vmul.f32 1.0614054, %v343_v47 }
  0xc0   : > { %v362_v36 = vmul.f32 %v358_v24, %v313_v63  ;;  %v351_v42 = vadd.f32 -1.4531521, %v347_v37  ;;  %v418_v24 = vld [vmem:[%s719_s3 + $0x8] sm:$0xff]  ;;  %v271_v37 = vsel %vm267_vm3, -1.0, %v563_v6 }
  0xc1   : > { %v365_v39 = vadd.f32 -0.28449672, %v361_v29  ;;  %v352_v55 = vadd.f32 -1.4531521, %v348_v51  ;;  %v552_v22 = vpop.eup %551 }
  0xc2   : > { %v366_v41 = vadd.f32 -0.28449672, %v362_v36  ;;  %v355_v50 = vmul.f32 %v351_v42, %v328_v33  ;;  %v419_v42 = vld [vmem:[%s719_s3 + $0x10] sm:$0xff] }
  0xc3   : > { %v369_v45 = vmul.f32 %v365_v39, %v669_v58  ;;  %v356_v32 = vmul.f32 %v352_v55, %v343_v47  ;;  %v554_v36 = vpop.eup %553  ;;  %v259_v39 = vmul.f32 0.5, %v647_v26 }
  0xc4   : > { %v370_v49 = vmul.f32 %v366_v41, %v313_v63  ;;  %v359_v54 = vadd.f32 1.4214138, %v355_v50 }
  0xc5   : > { %v373_v44 = vadd.f32 0.2548296, %v369_v45  ;;  %v360_v3 = vadd.f32 1.4214138, %v356_v32 }
  0xc6   : > { %v374_v53 = vadd.f32 0.2548296, %v370_v49  ;;  %v363_v62 = vmul.f32 %v359_v54, %v328_v33 }
  0xc7   : > { %v377_v57 = vmul.f32 %v373_v44, %v669_v58  ;;  %v364_v9 = vmul.f32 %v360_v3, %v343_v47 }
  0xc8   : > { %v378_v61 = vmul.f32 %v374_v53, %v313_v63  ;;  %v367_v2 = vadd.f32 -0.28449672, %v363_v62  ;;  %v270_v63 = vsel %vm266_vm2, -1.0, %v563_v6 }
  0xc9   : > { %v397_v0 = vmul.f32 %v548_v52, %v377_v57  ;;  %v368_v18 = vadd.f32 -0.28449672, %v364_v9 }
  0xca   : > { %v398_v1 = vmul.f32 %v550_v56, %v378_v61  ;;  %v371_v8 = vmul.f32 %v367_v2, %v328_v33 }
  0xcb   : > { %v401_v4 = vsub.f32 1.0, %v397_v0  ;;  %v372_v21 = vmul.f32 %v368_v18, %v343_v47 }
  0xcc   : > { %v402_v58 = vsub.f32 1.0, %v398_v1  ;;  %v375_v11 = vadd.f32 0.2548296, %v371_v8 }
  0xcd   : > { %v405_v34 = vmul.f32 %v401_v4, %v269_v7  ;;  %v376_v17 = vadd.f32 0.2548296, %v372_v21 }
  0xce   : > { %v406_v10 = vmul.f32 %v402_v58, %v270_v63  ;;  %v379_v20 = vmul.f32 %v375_v11, %v328_v33 }
  0xcf   : > { %v409_v19 = vadd.f32 1.0, %v405_v34  ;;  %v380_v35 = vmul.f32 %v376_v17, %v343_v47 }
  0xd0   : > { %v410_v15 = vadd.f32 1.0, %v406_v10  ;;  %v399_v25 = vmul.f32 %v552_v22, %v379_v20 }
  0xd1   : > { %v413_v23 = vmul.f32 %v409_v19, %v257_v12  ;;  %v400_v38 = vmul.f32 %v554_v36, %v380_v35 }
  0xd2   : > { %v414_v16 = vmul.f32 %v410_v15, %v258_v14  ;;  %v403_v33 = vsub.f32 1.0, %v399_v25 }
  0xd3   : > { %v421_v28 = vadd.f32 %v417_v13, %v413_v23  ;;  %v404_v41 = vsub.f32 1.0, %v400_v38 }
  0xd4   : > { %v422_v29 = vadd.f32 %v418_v24, %v414_v16  ;;  %v407_v30 = vmul.f32 %v403_v33, %v271_v37 }
  0xd5   : > { %426 = vst.msk [vmem:[%s197_s23] sm:$0xff] %vm425_vm4, %v421_v28  ;;  %v408_v46 = vmul.f32 %v404_v41, %v272_v43 }
  0xd6   : > { %427 = vst.msk [vmem:[%s197_s23 + $0x8] sm:$0xff] %vm425_vm4, %v422_v29  ;;  %v411_v40 = vadd.f32 1.0, %v407_v30 }
  0xd7   : > { %v412_v49 = vadd.f32 1.0, %v408_v46 }
  0xd8   : > { %v415_v45 = vmul.f32 %v411_v40, %v259_v39 }
  0xd9   : > { %v416_v26 = vmul.f32 %v412_v49, %v260_v48 }
  0xda   : > { %v423_v47 = vadd.f32 %v419_v42, %v415_v45 }
  0xdb   : > { %v424_v50 = vadd.f32 %v420_v31, %v416_v26 }
  0xdc   : > { %428 = vst.msk [vmem:[%s197_s23 + $0x10] sm:$0xff] %vm425_vm4, %v423_v47 }
  0xdd   : > { %429 = vst.msk [vmem:[%s197_s23 + $0x18] sm:$0xff] %vm425_vm4, %v424_v50 }
  0xde PF: > { %s14_s15 = sadd.s32 1, %s561_s15  }
  0xdf   : > { %p11_p4 = scmp.ge.s32.totalorder %s14_s15, 4  }
  0xe1   :  { %13 = sbr.rel (!%p11_p4) target bundleno = 1 (0x1), region = 66 }

// kernel: _lambda_.5
= control target key start
LH: loop header
LB: loop body
LE: loop exit
PB: predicated region body
PF: predicated region fallthrough
CT: control target
= control target key end

     0   :  { %s1171_s12 = smov 0   ;;  %s1766_s0 = inlined_call_operand.vmem [shape: f32[2,128,27], index: 0, kind: input, shape index: {}]   ;;  %s1767_s1 = inlined_call_operand.vmem [shape: f32[27,8], index: 1, kind: input, shape index: {}]   ;;  %s1768_s2 = inlined_call_operand.vmem [shape: f32[1,8], index: 2, kind: input, shape index: {}]   ;;  %s1769_s3 = inlined_call_operand.vmem [shape: f32[2,128,8], index: 3, kind: output, shape index: {}]  }
   0x1 LB: > { %s1025_s13 = sadd.s32 4294967295, %s1148_s12   ;;  %p1029_p0 = scmp.ge.s32.totalorder %s1148_s12, 1  ;;  %s1148_s12 = sphi %s1171_s12, %s13_s12  }
   0x2   : > { %p137_p1 = scmp.lt.s32.totalorder %s1148_s12, 3 }
   0x4   : > { %p138_p2 = pnand %p1029_p0, %p137_p1 }
   0x5   : > { %p161_p3 = scmp.lt.s32.totalorder (!%p138_p2), %s1025_s13, 1 }
   0x6   : > { %141 = sbr.rel (%p138_p2) target bundleno = 330 (0x14a), region = 32 }
   0xb   : > { %v190_v0 = vld [vmem:[%s1767_s1 + $0x18] sm:$0x7]  ;;  %vm244_vm0 = vcmask 1042432   ;;  %v189_v1 = vld [vmem:[%s1767_s1 + $0x10] sm:$0xff]  ;;  %v188_v2 = vld [vmem:[%s1767_s1 + $0x8] sm:$0xff]  ;;  %s1777_s13 = smov (!%p161_p3, %s1025_s13), 1 }
   0xc   : > { %1034 = vmatpush.msk.msra.mxu0 %vm244_vm0, %v190_v0  ;;  %1055 = vmatpush.msk.msra.mxu1 %vm244_vm0, %v190_v0  ;;  %v187_v3 = vld [vmem:[%s1767_s1] sm:$0xff]  ;;  %s1053_s22 = sshll.u32 %s1777_s13, 7  ;;  %vm195_vm1 = vcmask 220160   ;;  %v1150_v46 = vmov 1.0  }
   0xd   : > { %1056 = vmatpush.msk.msra.mxu2 %vm244_vm0, %v190_v0  ;;  %1057 = vmatpush.msk.msra.mxu3 %vm244_vm0, %v190_v0  ;;  %s1199_s25 = scalar_lea.vmem %s1766_s0, %s1053_s22  ;;  %v1236_v20 = vld [vmem:[%s1768_s2] ss:$0 sm:$0xff]  ;;  %s1389_s30 = scalar_lea.vmem %s1769_s3, %s1053_s22 }
   0xe   : > { %261 = vmatpush.msra.mxu0 %v189_v1  ;;  %1058 = vmatpush.msra.mxu1 %v189_v1  ;;  %v171_v4 = vld [vmem:[%s1199_s25] sm:$0xff]  ;;  %v172_v8 = vld [vmem:[%s1199_s25 + $0x8] sm:$0xff]  ;;  %v173_v12 = vld [vmem:[%s1199_s25 + $0x10] sm:$0xff] }
   0xf   : > { %1059 = vmatpush.msra.mxu2 %v189_v1  ;;  %1060 = vmatpush.msra.mxu3 %v189_v1  ;;  %v175_v5 = vld [vmem:[%s1199_s25 + $0x20] sm:$0xff]  ;;  %v176_v9 = vld [vmem:[%s1199_s25 + $0x28] sm:$0xff]  ;;  %v177_v13 = vld [vmem:[%s1199_s25 + $0x30] sm:$0xff] }
  0x10   : > { %262 = vmatpush.msra.mxu0 %v188_v2  ;;  %1061 = vmatpush.msra.mxu1 %v188_v2  ;;  %v179_v6 = vld [vmem:[%s1199_s25 + $0x40] sm:$0xff]  ;;  %v180_v10 = vld [vmem:[%s1199_s25 + $0x48] sm:$0xff]  ;;  %v181_v14 = vld [vmem:[%s1199_s25 + $0x50] sm:$0xff] }
  0x11   : > { %1062 = vmatpush.msra.mxu2 %v188_v2  ;;  %1063 = vmatpush.msra.mxu3 %v188_v2  ;;  %v183_v7 = vld [vmem:[%s1199_s25 + $0x60] sm:$0xff]  ;;  %v184_v11 = vld [vmem:[%s1199_s25 + $0x68] sm:$0xff]  ;;  %v185_v15 = vld [vmem:[%s1199_s25 + $0x70] sm:$0xff] }
  0x12   : > { %263 = vmatpush.msra.mxu0 %v187_v3  ;;  %1064 = vmatpush.msra.mxu1 %v187_v3  ;;  %v174_v16 = vld [vmem:[%s1199_s25 + $0x18] sm:$0xff] }
  0x13   : > { %1065 = vmatpush.msra.mxu2 %v187_v3  ;;  %1066 = vmatpush.msra.mxu3 %v187_v3  ;;  %v178_v17 = vld [vmem:[%s1199_s25 + $0x38] sm:$0xff] }
  0x14   : > { %1035 = vmatmul.msk.f32.vlgmr.msra.gmra.mxu0 %vm195_vm1, %v171_v4  ;;  %1039 = vmatmul.msk.f32.vlgmr.msra.gmra.mxu1 %vm195_vm1, %v175_v5  ;;  %v182_v18 = vld [vmem:[%s1199_s25 + $0x58] sm:$0xff] }
  0x15   : > { %1043 = vmatmul.msk.f32.vlgmr.msra.gmra.mxu2 %vm195_vm1, %v179_v6  ;;  %1047 = vmatmul.msk.f32.vlgmr.msra.gmra.mxu3 %vm195_vm1, %v183_v7  ;;  %v186_v19 = vld [vmem:[%s1199_s25 + $0x78] sm:$0xff] }
  0x1c   : > { %1036 = vmatmul.msk.f32.gmra.mxu0 %vm195_vm1, %v172_v8  ;;  %1040 = vmatmul.msk.f32.gmra.mxu1 %vm195_vm1, %v176_v9 }
  0x1d   : > { %1044 = vmatmul.msk.f32.gmra.mxu2 %vm195_vm1, %v180_v10  ;;  %1048 = vmatmul.msk.f32.gmra.mxu3 %vm195_vm1, %v184_v11 }
  0x24   : > { %1037 = vmatmul.msk.f32.gmra.mxu0 %vm195_vm1, %v173_v12  ;;  %1041 = vmatmul.msk.f32.gmra.mxu1 %vm195_vm1, %v177_v13 }
  0x25   : > { %1045 = vmatmul.msk.f32.gmra.mxu2 %vm195_vm1, %v181_v14  ;;  %1049 = vmatmul.msk.f32.gmra.mxu3 %vm195_vm1, %v185_v15 }
  0x2c   : > { %1038 = vmatmul.msk.f32.gmra.mxu0 %vm195_vm1, %v174_v16  ;;  %1042 = vmatmul.msk.f32.gmra.mxu1 %vm195_vm1, %v178_v17 }
  0x2d   : > { %1046 = vmatmul.msk.f32.gmra.mxu2 %vm195_vm1, %v182_v18  ;;  %1050 = vmatmul.msk.f32.gmra.mxu3 %vm195_vm1, %v186_v19 }
  0x91   : > { %v265_v21 = vpop.f32.mrf.mxu0  ;;  %v277_v22 = vpop.f32.mrf.mxu1 }
  0x92   : > { %v266_v23 = vadd.f32 %v1236_v20, %v265_v21  ;;  %v278_v24 = vadd.f32 %v1236_v20, %v277_v22 }
  0x94   : > { %v329_v25 = vmul.f32 0.70710677, %v266_v23  ;;  %v333_v26 = vmul.f32 0.70710677, %v278_v24  ;;  %v1253_v45 = vmul.f32 0.5, %v266_v23  ;;  %v1258_v49 = vmul.f32 0.5, %v278_v24 }
  0x96   : > { %v377_v27 = vand.u32 2147483647, %v329_v25  ;;  %v381_v28 = vand.u32 2147483647, %v333_v26  ;;  %vm345_vm2 = vcmp.lt.f32.partialorder %v329_v25, 0.0  ;;  %vm349_vm3 = vcmp.lt.f32.partialorder %v333_v26, 0.0 }
  0x97   : > { %v1256_v47 = vsel %vm345_vm2, -1.0, %v1150_v46  ;;  %v1261_v52 = vsel %vm349_vm3, -1.0, %v1150_v46 }
  0x98   : > { %v393_v29 = vmul.f32 0.3275911, %v377_v27  ;;  %v397_v30 = vmul.f32 0.3275911, %v381_v28  ;;  %v289_v31 = vpop.f32.mrf.mxu2  ;;  %v301_v32 = vpop.f32.mrf.mxu3  ;;  %v809_v39 = vsub.f32 0.0, %v377_v27  ;;  %v813_v40 = vsub.f32 0.0, %v381_v28 }
  0x99   : > { %v290_v33 = vadd.f32 %v1236_v20, %v289_v31  ;;  %v302_v34 = vadd.f32 %v1236_v20, %v301_v32  ;;  %v268_v55 = vpop.f32.mrf.mxu0  ;;  %v280_v16 = vpop.f32.mrf.mxu1 }
  0x9a   : > { %v409_v35 = vadd.f32 1.0, %v393_v29  ;;  %v413_v36 = vadd.f32 1.0, %v397_v30  ;;  %v825_v48 = vmul.f32 %v809_v39, %v377_v27  ;;  %v829_v53 = vmul.f32 %v813_v40, %v381_v28 }
  0x9b   : > { %v1242_v37 = vmul.f32 0.70710677, %v290_v33  ;;  %v1244_v38 = vmul.f32 0.70710677, %v302_v34  ;;  %v1265_v57 = vmul.f32 0.5, %v290_v33  ;;  %v1272_v1 = vadd.f32 %v1236_v20, %v268_v55 }
  0x9c   : > { %1077 = vrcp.f32 %v409_v35  ;;  %vm430_vm4 = vweird.f32 %v409_v35  ;;  %v434_v60 = vand.u32 2147483647, %v409_v35  ;;  %v436_v61 = vand.u32 2147483648, %v409_v35 }
  0x9d   : > { %1079 = vrcp.f32 %v413_v36  ;;  %v1247_v41 = vand.u32 2147483647, %v1242_v37  ;;  %v1251_v43 = vand.u32 2147483647, %v1244_v38  ;;  %v841_v62 = vmul.f32 1.442695, %v825_v48 }
  0x9e   : > { %v494_v3 = vand.u32 2147483647, %v413_v36  ;;  %v496_v4 = vand.u32 2147483648, %v413_v36  ;;  %vm490_vm6 = vweird.f32 %v413_v36  ;;  %v849_v6 = vmul.f32 1.442695, %v829_v53 }
  0x9f   : > { %v401_v42 = vmul.f32 0.3275911, %v1247_v41  ;;  %v405_v58 = vmul.f32 0.3275911, %v1251_v43  ;;  %vm435_vm8 = vcmp.eq.f32.partialorder %v434_v60, 8.507059e+37  ;;  %v1274_v8 = vmul.f32 0.5, %v302_v34 }
  0xa0   : > { %v437_v9 = vor.u32 1.1754944e-38, %v436_v61  ;;  %v1279_v11 = vmul.f32 0.70710677, %v1272_v1  ;;  %vm495_vm11 = vcmp.eq.f32.partialorder %v494_v3, 8.507059e+37  ;;  %v497_v14 = vor.u32 1.1754944e-38, %v496_v4 }
  0xa1   : > { %v1263_v54 = vadd.f32 1.0, %v401_v42  ;;  %v1269_v0 = vadd.f32 1.0, %v405_v58  ;;  %v817_v15 = vsub.f32 0.0, %v1247_v41  ;;  %vm353_vm12 = vcmp.lt.f32.partialorder %v1242_v37, 0.0 }
  0xa2   : > { %v1078_v44 = vpop.eup %1077  ;;  %v1293_v27 = vand.u32 2147483647, %v1279_v11  ;;  %v1296_v28 = vadd.f32 %v1236_v20, %v280_v16  ;;  %v821_v32 = vsub.f32 0.0, %v1251_v43 }
  0xa3   : > { %v1080_v50 = vpop.eup %1079  ;;  %v426_v51 = vmul.f32 %v1078_v44, %v409_v35  ;;  %1081 = vrcp.f32 %v1263_v54  ;;  %vm431_vm5 = vweird.f32 %v1078_v44  ;;  %v554_v23 = vand.u32 2147483647, %v1263_v54 }
  0xa4   : > { %v486_v56 = vmul.f32 %v1080_v50, %v413_v36  ;;  %vm491_vm7 = vweird.f32 %v1080_v50  ;;  %1083 = vrcp.f32 %v1269_v0  ;;  %vm432_vm9 = vmor %vm430_vm4, %vm431_vm5  ;;  %v556_v24 = vand.u32 2147483648, %v1263_v54 }
  0xa5   : > { %v427_v59 = vsub.f32 1.0, %v426_v51  ;;  %1085 = vpow2.f32 %v841_v62  ;;  %vm492_vm10 = vmor %vm490_vm6, %vm491_vm7  ;;  %vm550_vm13 = vweird.f32 %v1263_v54  ;;  %v833_v31 = vmul.f32 %v817_v15, %v1247_v41 }
  0xa6   : > { %v487_v63 = vsub.f32 1.0, %v486_v56  ;;  %1087 = vpow2.f32 %v849_v6  ;;  %vm1305_vm15 = vcmp.eq.f32.partialorder %v554_v23, 8.507059e+37  ;;  %v557_v42 = vor.u32 1.1754944e-38, %v556_v24 }
  0xa7   : > { %v428_v2 = vmul.f32 %v1078_v44, %v427_v59  ;;  %v1314_v53 = vmul.f32 0.70710677, %v1296_v28  ;;  %v614_v56 = vand.u32 2147483647, %v1269_v0  ;;  %v616_v58 = vand.u32 2147483648, %v1269_v0 }
  0xa8   : > { %v488_v5 = vmul.f32 %v1080_v50, %v487_v63  ;;  %v292_v63 = vpop.f32.mrf.mxu2  ;;  %vm610_vm2 = vweird.f32 %v1269_v0  ;;  %v857_v16 = vmul.f32 1.442695, %v833_v31  ;;  %vm953_vm6 = vcmask 64512  }
  0xa9   : > { %v429_v7 = vadd.f32 %v1078_v44, %v428_v2  ;;  %v1082_v12 = vpop.eup %1081  ;;  %v1332_v6 = vand.u32 2147483647, %v1314_v53  ;;  %vm615_vm4 = vcmp.eq.f32.partialorder %v614_v56, 8.507059e+37  ;;  %vm357_vm7 = vcmp.lt.f32.partialorder %v1244_v38, 0.0 }
  0xaa   : > { %v489_v10 = vadd.f32 %v1080_v50, %v488_v5  ;;  %v546_v19 = vmul.f32 %v1082_v12, %v1263_v54  ;;  %v1084_v29 = vpop.eup %1083  ;;  %vm551_vm14 = vweird.f32 %v1082_v12 }
  0xab   : > { %v433_v13 = vsel %vm432_vm9, %v1078_v44, %v429_v7  ;;  %v1301_v33 = vpop.eup %1085  ;;  %v606_v36 = vmul.f32 %v1084_v29, %v1269_v0  ;;  %v394_v44 = vmul.f32 0.3275911, %v1293_v27  ;;  %vm552_vm0 = vmor %vm550_vm13, %vm551_vm14  ;;  %vm611_vm1 = vweird.f32 %v1084_v29 }
  0xac   : > { %v1282_v17 = vsel %vm435_vm8, %v437_v9, %v433_v13  ;;  %v493_v18 = vsel %vm492_vm10, %v1080_v50, %v489_v10  ;;  %v547_v26 = vsub.f32 1.0, %v546_v19  ;;  %v1310_v48 = vpop.eup %1087  ;;  %v1337_v9 = vsel %vm353_vm12, -1.0, %v1150_v46  ;;  %vm612_vm3 = vmor %vm610_vm2, %vm611_vm1 }
  0xad   : > { %v665_v21 = vmul.f32 1.0614054, %v1282_v17  ;;  %v1287_v22 = vsel %vm495_vm11, %v497_v14, %v493_v18  ;;  %v607_v51 = vsub.f32 1.0, %v606_v36  ;;  %v1320_v59 = vadd.f32 1.0, %v394_v44 }
  0xae   : > { %v669_v25 = vmul.f32 1.0614054, %v1287_v22  ;;  %v548_v35 = vmul.f32 %v1082_v12, %v547_v26  ;;  %v617_v10 = vor.u32 1.1754944e-38, %v616_v58  ;;  %v1340_v0 = vadd.f32 %v1236_v20, %v292_v63 }
  0xaf   : > { %v681_v30 = vadd.f32 -1.4531521, %v665_v21  ;;  %v608_v62 = vmul.f32 %v1084_v29, %v607_v51  ;;  %1089 = vrcp.f32 %v1320_v59  ;;  %v837_v19 = vmul.f32 %v821_v32, %v1251_v43 }
  0xb0   : > { %v685_v34 = vadd.f32 -1.4531521, %v669_v25  ;;  %v549_v50 = vadd.f32 %v1082_v12, %v548_v35  ;;  %v398_v24 = vmul.f32 0.3275911, %v1332_v6  ;;  %vm445_vm5 = vweird.f32 %v1320_v59 }
  0xb1   : > { %v697_v39 = vmul.f32 %v681_v30, %v1282_v17  ;;  %v609_v5 = vadd.f32 %v1084_v29, %v608_v62  ;;  %v1353_v30 = vmul.f32 0.70710677, %v1340_v0  ;;  %v449_v36 = vand.u32 2147483647, %v1320_v59 }
  0xb2   : > { %v701_v41 = vmul.f32 %v685_v34, %v1287_v22  ;;  %v553_v61 = vsel %vm552_vm0, %v1082_v12, %v549_v50  ;;  %v1359_v40 = vadd.f32 1.0, %v398_v24  ;;  %vm346_vm14 = vcmp.lt.f32.partialorder %v1279_v11, 0.0 }
  0xb3   : > { %v713_v55 = vadd.f32 1.4214138, %v697_v39  ;;  %v1325_v3 = vsel %vm1305_vm15, %v557_v42, %v553_v61  ;;  %v613_v14 = vsel %vm612_vm3, %v1084_v29, %v609_v5  ;;  %v810_v29 = vsub.f32 0.0, %v1293_v27 }
  0xb4   : > { %v717_v60 = vadd.f32 1.4214138, %v701_v41  ;;  %v673_v4 = vmul.f32 1.0614054, %v1325_v3  ;;  %v1343_v18 = vsel %vm615_vm4, %v617_v10, %v613_v14  ;;  %v451_v39 = vand.u32 2147483648, %v1320_v59 }
  0xb5   : > { %v729_v2 = vmul.f32 %v713_v55, %v1282_v17  ;;  %v677_v23 = vmul.f32 1.0614054, %v1343_v18  ;;  %v1090_v25 = vpop.eup %1089  ;;  %1091 = vrcp.f32 %v1359_v40  ;;  %v865_v61 = vmul.f32 1.442695, %v837_v19 }
  0xb6   : > { %v733_v54 = vmul.f32 %v717_v60, %v1287_v22  ;;  %v689_v13 = vadd.f32 -1.4531521, %v673_v4  ;;  %v441_v32 = vmul.f32 %v1090_v25, %v1320_v59  ;;  %vm446_vm8 = vweird.f32 %v1090_v25 }
  0xb7   : > { %v745_v7 = vadd.f32 -0.28449672, %v729_v2  ;;  %v693_v43 = vadd.f32 -1.4531521, %v677_v23  ;;  %1093 = vpow2.f32 %v857_v16  ;;  %v826_v62 = vmul.f32 %v810_v29, %v1293_v27  ;;  %vm447_vm9 = vmor %vm445_vm5, %vm446_vm8 }
  0xb8   : > { %v749_v12 = vadd.f32 -0.28449672, %v733_v54  ;;  %v705_v21 = vmul.f32 %v689_v13, %v1325_v3  ;;  %v442_v50 = vsub.f32 1.0, %v441_v32  ;;  %vm450_vm10 = vcmp.eq.f32.partialorder %v449_v36, 8.507059e+37 }
  0xb9   : > { %v761_v15 = vmul.f32 %v745_v7, %v1282_v17  ;;  %v709_v41 = vmul.f32 %v693_v43, %v1343_v18  ;;  %1095 = vpow2.f32 %v865_v61  ;;  %v843_v24 = vmul.f32 1.442695, %v826_v62 }
  0xba   : > { %v765_v37 = vmul.f32 %v749_v12, %v1287_v22  ;;  %v721_v34 = vadd.f32 1.4214138, %v705_v21  ;;  %v511_v32 = vand.u32 2147483648, %v1359_v40  ;;  %vm505_vm11 = vweird.f32 %v1359_v40 }
  0xbb   : > { %v777_v26 = vadd.f32 0.2548296, %v761_v15  ;;  %v725_v58 = vadd.f32 1.4214138, %v709_v41  ;;  %v1092_v13 = vpop.eup %1091  ;;  %v509_v38 = vand.u32 2147483647, %v1359_v40 }
  0xbc   : > { %v781_v31 = vadd.f32 0.2548296, %v765_v37  ;;  %v737_v44 = vmul.f32 %v721_v34, %v1325_v3  ;;  %v304_v37 = vpop.f32.mrf.mxu3  ;;  %vm506_vm12 = vweird.f32 %v1092_v13  ;;  %vm350_vm4 = vcmp.lt.f32.partialorder %v1314_v53, 0.0 }
  0xbd   : > { %v793_v35 = vmul.f32 %v777_v26, %v1282_v17  ;;  %v1368_v17 = vand.u32 2147483647, %v1353_v30  ;;  %v1094_v21 = vpop.eup %1093  ;;  %vm507_vm13 = vmor %vm505_vm11, %vm506_vm12  ;;  %vm510_vm15 = vcmp.eq.f32.partialorder %v509_v38, 8.507059e+37  ;;  %v1471_v11 = vmul.f32 0.5, %v1296_v28 }
  0xbe   : > { %v797_v42 = vmul.f32 %v781_v31, %v1287_v22  ;;  %v753_v56 = vadd.f32 -0.28449672, %v737_v44  ;;  %v443_v22 = vmul.f32 %v1090_v25, %v442_v50  ;;  %vm354_vm12 = vcmp.lt.f32.partialorder %v1353_v30, 0.0 }
  0xbf   : > { %v873_v51 = vmul.f32 %v1301_v33, %v793_v35  ;;  %v741_v33 = vmul.f32 %v725_v58, %v1343_v18  ;;  %v402_v5 = vmul.f32 0.3275911, %v1368_v17  ;;  %v1096_v44 = vpop.eup %1095 }
  0xc0   : > { %v877_v55 = vmul.f32 %v1310_v48, %v797_v42  ;;  %v769_v2 = vmul.f32 %v753_v56, %v1325_v3  ;;  %v444_v54 = vadd.f32 %v1090_v25, %v443_v22  ;;  %v452_v48 = vor.u32 1.1754944e-38, %v451_v39  ;;  %v271_v42 = vpop.f32.mrf.mxu0 }
  0xc1   : > { %v889_v60 = vsub.f32 1.0, %v873_v51  ;;  %v757_v10 = vadd.f32 -0.28449672, %v741_v33  ;;  %v1382_v16 = vadd.f32 1.0, %v402_v5  ;;  %v814_v39 = vsub.f32 0.0, %v1332_v6 }
  0xc2   : > { %v893_v63 = vsub.f32 1.0, %v877_v55  ;;  %v785_v27 = vadd.f32 0.2548296, %v769_v2  ;;  %v448_v12 = vsel %vm447_vm9, %v1090_v25, %v444_v54  ;;  %v501_v25 = vmul.f32 %v1092_v13, %v1359_v40 }
  0xc3   : > { %v905_v4 = vmul.f32 %v889_v60, %v1256_v47  ;;  %v1380_v15 = vsel %vm450_vm10, %v452_v48, %v448_v12  ;;  %v773_v59 = vmul.f32 %v757_v10, %v1343_v18  ;;  %1097 = vrcp.f32 %v1382_v16 }
  0xc4   : > { %v909_v7 = vmul.f32 %v893_v63, %v1261_v52  ;;  %v801_v52 = vmul.f32 %v785_v27, %v1325_v3  ;;  %v666_v19 = vmul.f32 1.0614054, %v1380_v15  ;;  %v373_v3 = vsel %vm357_vm7, -1.0, %v1150_v46 }
  0xc5   : > { %v921_v14 = vadd.f32 1.0, %v905_v4  ;;  %v789_v31 = vadd.f32 0.2548296, %v773_v59  ;;  %v502_v43 = vsub.f32 1.0, %v501_v25  ;;  %1099 = vpow2.f32 %v843_v24 }
  0xc6   : > { %v925_v47 = vadd.f32 1.0, %v909_v7  ;;  %v881_v29 = vmul.f32 %v1094_v21, %v801_v52  ;;  %v682_v34 = vadd.f32 -1.4531521, %v666_v19  ;;  %v1419_v60 = vadd.f32 %v1236_v20, %v271_v42 }
  0xc7   : > { %v937_v23 = vmul.f32 %v921_v14, %v1253_v45  ;;  %v1405_v45 = vadd.f32 %v1236_v20, %v304_v37  ;;  %v503_v41 = vmul.f32 %v1092_v13, %v502_v43  ;;  %v830_v33 = vmul.f32 %v814_v39, %v1332_v6 }
  0xc8   : > { %v941_v26 = vmul.f32 %v925_v47, %v1258_v49  ;;  %v897_v35 = vsub.f32 1.0, %v881_v29  ;;  %v805_v49 = vmul.f32 %v789_v31, %v1343_v18  ;;  %v698_v36 = vmul.f32 %v682_v34, %v1380_v15 }
  0xc9   : > { %954 = vst.msk [vmem:[%s1389_s30] sm:$0xff] %vm953_vm6, %v937_v23  ;;  %v1098_v56 = vpop.eup %1097  ;;  %v504_v58 = vadd.f32 %v1092_v13, %v503_v41  ;;  %v512_v18 = vor.u32 1.1754944e-38, %v511_v32  ;;  %v1416_v22 = vmul.f32 0.70710677, %v1405_v45  ;;  %v569_v54 = vand.u32 2147483647, %v1382_v16 }
  0xca   : > { %958 = vst.msk [vmem:[%s1389_s30 + $0x20] sm:$0xff] %vm953_vm6, %v941_v26  ;;  %v913_v50 = vmul.f32 %v897_v35, %v1337_v9  ;;  %v885_v51 = vmul.f32 %v1096_v44, %v805_v49  ;;  %v714_v55 = vadd.f32 1.4214138, %v698_v36  ;;  %v561_v9 = vmul.f32 %v1098_v56, %v1382_v16 }
  0xcb   : > { %v508_v2 = vsel %vm507_vm13, %v1092_v13, %v504_v58  ;;  %v818_v10 = vsub.f32 0.0, %v1368_v17  ;;  %v390_v12 = vand.u32 2147483647, %v1416_v22  ;;  %v1100_v14 = vpop.eup %1099  ;;  %v1439_v47 = vmul.f32 0.70710677, %v1419_v60 }
  0xcc   : > { %v929_v61 = vadd.f32 1.0, %v913_v50  ;;  %v901_v62 = vsub.f32 1.0, %v885_v51  ;;  %v730_v63 = vmul.f32 %v714_v55, %v1380_v15  ;;  %v1429_v7 = vsel %vm510_vm15, %v512_v18, %v508_v2 }
  0xcd   : > { %v670_v40 = vmul.f32 1.0614054, %v1429_v7  ;;  %v562_v27 = vsub.f32 1.0, %v561_v9  ;;  %vm566_vm0 = vweird.f32 %v1098_v56  ;;  %v406_v19 = vmul.f32 0.3275911, %v390_v12 }
  0xce   : > { %v945_v4 = vmul.f32 %v929_v61, %v1265_v57  ;;  %v917_v48 = vmul.f32 %v901_v62, %v373_v3  ;;  %v746_v5 = vadd.f32 -0.28449672, %v730_v63  ;;  %v571_v57 = vand.u32 2147483648, %v1382_v16 }
  0xcf   : > { %v686_v52 = vadd.f32 -1.4531521, %v670_v40  ;;  %v563_v59 = vmul.f32 %v1098_v56, %v562_v27  ;;  %v851_v23 = vmul.f32 1.442695, %v830_v33  ;;  %v1443_v24 = vand.u32 2147483647, %v1439_v47 }
  0xd0   : > { %962 = vst.msk [vmem:[%s1389_s30 + $0x40] sm:$0xff] %vm953_vm6, %v945_v4  ;;  %v933_v13 = vadd.f32 1.0, %v917_v48  ;;  %v762_v6 = vmul.f32 %v746_v5, %v1380_v15  ;;  %vm565_vm1 = vweird.f32 %v1382_v16  ;;  %v1447_v29 = vadd.f32 1.0, %v406_v19 }
  0xd1   : > { %v702_v25 = vmul.f32 %v686_v52, %v1429_v7  ;;  %v564_v26 = vadd.f32 %v1098_v56, %v563_v59  ;;  %vm567_vm2 = vmor %vm565_vm1, %vm566_vm0  ;;  %v572_v34 = vor.u32 1.1754944e-38, %v571_v57  ;;  %v395_v3 = vmul.f32 0.3275911, %v1443_v24  ;;  %v295_v57 = vpop.f32.mrf.mxu2 }
  0xd2   : > { %v949_v37 = vmul.f32 %v933_v13, %v1274_v8  ;;  %v778_v21 = vadd.f32 0.2548296, %v762_v6  ;;  %v834_v8 = vmul.f32 %v818_v10, %v1368_v17  ;;  %vm570_vm3 = vcmp.eq.f32.partialorder %v569_v54, 8.507059e+37 }
  0xd3   : > { %v718_v43 = vadd.f32 1.4214138, %v702_v25  ;;  %v568_v32 = vsel %vm567_vm2, %v1098_v56, %v564_v26  ;;  %1101 = vrcp.f32 %v1447_v29  ;;  %v1459_v39 = vadd.f32 1.0, %v395_v3 }
  0xd4   : > { %966 = vst.msk [vmem:[%s1389_s30 + $0x60] sm:$0xff] %vm953_vm6, %v949_v37  ;;  %v794_v31 = vmul.f32 %v778_v21, %v1380_v15  ;;  %v1455_v49 = vsel %vm570_vm3, %v572_v34, %v568_v32  ;;  %v283_v15 = vpop.f32.mrf.mxu1  ;;  %v362_v17 = vsel %vm346_vm14, -1.0, %v1150_v46  ;;  %1103 = vpow2.f32 %v851_v23 }
  0xd5   : > { %v734_v16 = vmul.f32 %v718_v43, %v1429_v7  ;;  %v674_v36 = vmul.f32 1.0614054, %v1455_v49  ;;  %v859_v38 = vmul.f32 1.442695, %v834_v8  ;;  %v822_v51 = vsub.f32 0.0, %v390_v12 }
  0xd6   : > { %v874_v35 = vmul.f32 %v1100_v14, %v794_v31  ;;  %1105 = vrcp.f32 %v1459_v39  ;;  %v1467_v55 = vadd.f32 %v1236_v20, %v283_v15  ;;  %v314_v58 = vmul.f32 0.5, %v1272_v1 }
  0xd7   : > { %v750_v44 = vadd.f32 -0.28449672, %v734_v16  ;;  %v690_v41 = vadd.f32 -1.4531521, %v674_v36  ;;  %v366_v62 = vsel %vm350_vm4, -1.0, %v1150_v46  ;;  %1107 = vpow2.f32 %v859_v38 }
  0xd8   : > { %v890_v42 = vsub.f32 1.0, %v874_v35  ;;  %v629_v9 = vand.u32 2147483647, %v1447_v29  ;;  %v631_v1 = vand.u32 2147483648, %v1447_v29  ;;  %v838_v4 = vmul.f32 %v822_v51, %v390_v12 }
  0xd9   : > { %v1102_v56 = vpop.eup %1101  ;;  %v766_v18 = vmul.f32 %v750_v44, %v1429_v7  ;;  %v706_v53 = vmul.f32 %v690_v41, %v1455_v49  ;;  %v1480_v48 = vmul.f32 0.70710677, %v1467_v55  ;;  %vm625_vm5 = vweird.f32 %v1447_v29 }
  0xda   : > { %v906_v50 = vmul.f32 %v890_v42, %v362_v17  ;;  %v621_v63 = vmul.f32 %v1102_v56, %v1447_v29  ;;  %v1104_v5 = vpop.eup %1103  ;;  %v811_v10 = vsub.f32 0.0, %v1443_v24  ;;  %vm626_vm7 = vweird.f32 %v1102_v56  ;;  %v307_v17 = vpop.f32.mrf.mxu3 }
  0xdb   : > { %v782_v2 = vadd.f32 0.2548296, %v766_v18  ;;  %v722_v33 = vadd.f32 1.4214138, %v706_v53  ;;  %vm1488_vm8 = vcmp.eq.f32.partialorder %v629_v9, 8.507059e+37  ;;  %v632_v59 = vor.u32 1.1754944e-38, %v631_v1  ;;  %vm627_vm10 = vmor %vm625_vm5, %vm626_vm7 }
  0xdc   : > { %v922_v61 = vadd.f32 1.0, %v906_v50  ;;  %v622_v28 = vsub.f32 1.0, %v621_v63  ;;  %v1106_v14 = vpop.eup %1105  ;;  %v1493_v12 = vand.u32 2147483647, %v1480_v48  ;;  %vm460_vm9 = vweird.f32 %v1459_v39 }
  0xdd   : > { %v798_v40 = vmul.f32 %v782_v2, %v1429_v7  ;;  %v738_v27 = vmul.f32 %v722_v33, %v1455_v49  ;;  %v456_v19 = vmul.f32 %v1106_v14, %v1459_v39  ;;  %v464_v21 = vand.u32 2147483647, %v1459_v39  ;;  %v1108_v25 = vpop.eup %1107  ;;  %v274_v2 = vpop.f32.mrf.mxu0 }
  0xde   : > { %v938_v54 = vmul.f32 %v922_v61, %v314_v58  ;;  %v623_v13 = vmul.f32 %v1102_v56, %v622_v28  ;;  %v399_v23 = vmul.f32 0.3275911, %v1493_v12  ;;  %v1504_v8 = vadd.f32 %v1236_v20, %v295_v57 }
  0xdf   : > { %v878_v7 = vmul.f32 %v1104_v5, %v798_v40  ;;  %v754_v52 = vadd.f32 -0.28449672, %v738_v27  ;;  %v457_v34 = vsub.f32 1.0, %v456_v19  ;;  %vm461_vm11 = vweird.f32 %v1106_v14 }
  0xe0   : > { %955 = vst.msk [vmem:[%s1389_s30 + $0x8] sm:$0xff] %vm953_vm6, %v938_v54  ;;  %v624_v37 = vadd.f32 %v1102_v56, %v623_v13  ;;  %v466_v43 = vand.u32 2147483648, %v1459_v39  ;;  %v1507_v32 = vadd.f32 1.0, %v399_v23  ;;  %v867_v42 = vmul.f32 1.442695, %v838_v4  ;;  %vm462_vm13 = vmor %vm460_vm9, %vm461_vm11 }
  0xe1   : > { %v894_v26 = vsub.f32 1.0, %v878_v7  ;;  %v770_v31 = vmul.f32 %v754_v52, %v1455_v49  ;;  %v458_v15 = vmul.f32 %v1106_v14, %v457_v34  ;;  %v1518_v50 = vmul.f32 0.70710677, %v1504_v8 }
  0xe2   : > { %v628_v3 = vsel %vm627_vm10, %v1102_v56, %v624_v37  ;;  %1109 = vrcp.f32 %v1507_v32  ;;  %v467_v56 = vor.u32 1.1754944e-38, %v466_v43  ;;  %v827_v58 = vmul.f32 %v811_v10, %v1443_v24 }
  0xe3   : > { %v910_v35 = vmul.f32 %v894_v26, %v366_v62  ;;  %v786_v16 = vadd.f32 0.2548296, %v770_v31  ;;  %v1511_v36 = vsel %vm1488_vm8, %v632_v59, %v628_v3  ;;  %v459_v38 = vadd.f32 %v1106_v14, %v458_v15 }
  0xe4   : > { %v678_v29 = vmul.f32 1.0614054, %v1511_v36  ;;  %v1525_v18 = vadd.f32 %v1236_v20, %v307_v17  ;;  %vm465_vm14 = vcmp.eq.f32.partialorder %v464_v21, 8.507059e+37  ;;  %v322_v62 = vmul.f32 0.5, %v1340_v0 }
  0xe5   : > { %v926_v44 = vadd.f32 1.0, %v910_v35  ;;  %v802_v41 = vmul.f32 %v786_v16, %v1455_v49  ;;  %v463_v49 = vsel %vm462_vm13, %v1106_v14, %v459_v38  ;;  %v370_v63 = vsel %vm354_vm12, -1.0, %v1150_v46 }
  0xe6   : > { %v694_v51 = vadd.f32 -1.4531521, %v678_v29  ;;  %v1533_v9 = vsel %vm465_vm14, %v467_v56, %v463_v49  ;;  %1111 = vpow2.f32 %v867_v42  ;;  %v845_v0 = vmul.f32 1.442695, %v827_v58  ;;  %v286_v49 = vpop.f32.mrf.mxu1 }
  0xe7   : > { %v942_v53 = vmul.f32 %v926_v44, %v1471_v11  ;;  %v882_v61 = vmul.f32 %v1108_v25, %v802_v41  ;;  %v667_v33 = vmul.f32 1.0614054, %v1533_v9  ;;  %v1539_v11 = vand.u32 2147483647, %v1518_v50 }
  0xe8   : > { %v710_v39 = vmul.f32 %v694_v51, %v1511_v36  ;;  %v1110_v1 = vpop.eup %1109  ;;  %v1542_v30 = vmul.f32 0.70710677, %v1525_v18  ;;  %v1546_v40 = vadd.f32 %v1236_v20, %v274_v2  ;;  %v524_v10 = vand.u32 2147483647, %v1507_v32 }
  0xe9   : > { %959 = vst.msk [vmem:[%s1389_s30 + $0x28] sm:$0xff] %vm953_vm6, %v942_v53  ;;  %v898_v24 = vsub.f32 1.0, %v882_v61  ;;  %v683_v4 = vadd.f32 -1.4531521, %v667_v33  ;;  %v516_v5 = vmul.f32 %v1110_v1, %v1507_v32  ;;  %v815_v14 = vsub.f32 0.0, %v1493_v12 }
  0xea   : > { %v726_v54 = vadd.f32 1.4214138, %v710_v39  ;;  %v403_v13 = vmul.f32 0.3275911, %v1539_v11  ;;  %v526_v52 = vand.u32 2147483648, %v1507_v32  ;;  %vm520_vm15 = vweird.f32 %v1507_v32 }
  0xeb   : > { %v914_v28 = vmul.f32 %v898_v24, %v370_v63  ;;  %v699_v57 = vmul.f32 %v683_v4, %v1533_v9  ;;  %v517_v7 = vsub.f32 1.0, %v516_v5  ;;  %v1558_v37 = vand.u32 2147483647, %v1542_v30 }
  0xec   : > { %v742_v27 = vmul.f32 %v726_v54, %v1511_v36  ;;  %v1555_v19 = vadd.f32 1.0, %v403_v13  ;;  %vm521_vm0 = vweird.f32 %v1110_v1  ;;  %v1112_v26 = vpop.eup %1111  ;;  %v326_v31 = vmul.f32 0.5, %v1405_v45 }
  0xed   : > { %v930_v6 = vadd.f32 1.0, %v914_v28  ;;  %v715_v23 = vadd.f32 1.4214138, %v699_v57  ;;  %v518_v25 = vmul.f32 %v1110_v1, %v517_v7  ;;  %v831_v3 = vmul.f32 %v815_v14, %v1493_v12  ;;  %vm522_vm2 = vmor %vm520_vm15, %vm521_vm0 }
  0xee   : > { %v758_v59 = vadd.f32 -0.28449672, %v742_v27  ;;  %1113 = vrcp.f32 %v1555_v19  ;;  %vm358_vm1 = vcmp.lt.f32.partialorder %v1416_v22, 0.0  ;;  %v527_v16 = vor.u32 1.1754944e-38, %v526_v52 }
  0xef   : > { %v946_v21 = vmul.f32 %v930_v6, %v322_v62  ;;  %v731_v43 = vmul.f32 %v715_v23, %v1533_v9  ;;  %v519_v35 = vadd.f32 %v1110_v1, %v518_v25  ;;  %v407_v45 = vmul.f32 0.3275911, %v1558_v37 }
  0xf0   : > { %v774_v34 = vmul.f32 %v758_v59, %v1511_v36  ;;  %v1572_v17 = vmul.f32 0.70710677, %v1546_v40  ;;  %1115 = vpow2.f32 %v845_v0  ;;  %vm525_vm3 = vcmp.eq.f32.partialorder %v524_v10, 8.507059e+37 }
  0xf1   : > { %963 = vst.msk [vmem:[%s1389_s30 + $0x48] sm:$0xff] %vm953_vm6, %v946_v21  ;;  %v747_v12 = vadd.f32 -0.28449672, %v731_v43  ;;  %v523_v29 = vsel %vm522_vm2, %v1110_v1, %v519_v35  ;;  %v853_v41 = vmul.f32 1.442695, %v831_v3  ;;  %v1577_v38 = vadd.f32 1.0, %v407_v45 }
  0xf2   : > { %v790_v15 = vadd.f32 0.2548296, %v774_v34  ;;  %v1575_v44 = vsel %vm525_vm3, %v527_v16, %v523_v29  ;;  %v374_v32 = vsel %vm358_vm1, -1.0, %v1150_v46  ;;  %vm347_vm4 = vcmp.lt.f32.partialorder %v1439_v47, 0.0  ;;  %v298_v16 = vpop.f32.mrf.mxu2 }
  0xf3   : > { %v763_v51 = vmul.f32 %v747_v12, %v1533_v9  ;;  %v671_v56 = vmul.f32 1.0614054, %v1575_v44  ;;  %v819_v61 = vsub.f32 0.0, %v1539_v11  ;;  %1117 = vrcp.f32 %v1577_v38 }
  0xf4   : > { %v806_v42 = vmul.f32 %v790_v15, %v1511_v36  ;;  %v1114_v58 = vpop.eup %1113  ;;  %v1588_v36 = vand.u32 2147483647, %v1572_v17  ;;  %v315_v62 = vmul.f32 0.5, %v1419_v60  ;;  %v363_v2 = vsel %vm347_vm4, -1.0, %v1150_v46 }
  0xf5   : > { %v779_v22 = vadd.f32 0.2548296, %v763_v51  ;;  %v687_v63 = vadd.f32 -1.4531521, %v671_v56  ;;  %v576_v47 = vmul.f32 %v1114_v58, %v1555_v19  ;;  %1119 = vpow2.f32 %v853_v41 }
  0xf6   : > { %v886_v53 = vmul.f32 %v1112_v26, %v806_v42  ;;  %v584_v24 = vand.u32 2147483647, %v1555_v19  ;;  %v1116_v33 = vpop.eup %1115  ;;  %v1597_v28 = vadd.f32 %v1236_v20, %v286_v49  ;;  %v586_v4 = vand.u32 2147483648, %v1555_v19 }
  0xf7   : > { %v795_v1 = vmul.f32 %v779_v22, %v1533_v9  ;;  %v703_v54 = vmul.f32 %v687_v63, %v1575_v44  ;;  %v577_v0 = vsub.f32 1.0, %v576_v47  ;;  %v835_v5 = vmul.f32 %v819_v61, %v1539_v11 }
  0xf8   : > { %v902_v39 = vsub.f32 1.0, %v886_v53  ;;  %v396_v27 = vmul.f32 0.3275911, %v1588_v36  ;;  %vm581_vm5 = vweird.f32 %v1114_v58  ;;  %vm580_vm7 = vweird.f32 %v1555_v19 }
  0xf9   : > { %v875_v10 = vmul.f32 %v1116_v33, %v795_v1  ;;  %v719_v14 = vadd.f32 1.4214138, %v703_v54  ;;  %v578_v13 = vmul.f32 %v1114_v58, %v577_v0  ;;  %v1118_v6 = vpop.eup %1117  ;;  %vm1603_vm8 = vcmp.eq.f32.partialorder %v584_v24, 8.507059e+37  ;;  %vm582_vm9 = vmor %vm580_vm7, %vm581_vm5 }
  0xfa   : > { %v918_v60 = vmul.f32 %v902_v39, %v374_v32  ;;  %v1607_v7 = vadd.f32 1.0, %v396_v27  ;;  %v636_v21 = vmul.f32 %v1118_v6, %v1577_v38  ;;  %v587_v26 = vor.u32 1.1754944e-38, %v586_v4 }
  0xfb   : > { %v891_v52 = vsub.f32 1.0, %v875_v10  ;;  %v735_v11 = vmul.f32 %v719_v14, %v1575_v44  ;;  %v579_v59 = vadd.f32 %v1114_v58, %v578_v13  ;;  %v1120_v23 = vpop.eup %1119  ;;  %v644_v34 = vand.u32 2147483647, %v1577_v38 }
  0xfc   : > { %v934_v57 = vadd.f32 1.0, %v918_v60  ;;  %1121 = vrcp.f32 %v1607_v7  ;;  %v637_v35 = vsub.f32 1.0, %v636_v21  ;;  %vm641_vm10 = vweird.f32 %v1118_v6 }
  0xfd   : > { %v907_v19 = vmul.f32 %v891_v52, %v363_v2  ;;  %v751_v3 = vadd.f32 -0.28449672, %v735_v11  ;;  %v583_v43 = vsel %vm582_vm9, %v1114_v58, %v579_v59  ;;  %v1621_v45 = vmul.f32 0.70710677, %v1597_v28 }
  0xfe   : > { %v950_v25 = vmul.f32 %v934_v57, %v326_v31  ;;  %v1617_v15 = vsel %vm1603_vm8, %v587_v26, %v583_v43  ;;  %v646_v31 = vand.u32 2147483648, %v1577_v38  ;;  %v638_v41 = vmul.f32 %v1118_v6, %v637_v35 }
  0xff   : > { %v923_v12 = vadd.f32 1.0, %v907_v19  ;;  %v767_v29 = vmul.f32 %v751_v3, %v1575_v44  ;;  %v675_v42 = vmul.f32 1.0614054, %v1617_v15  ;;  %vm351_vm11 = vcmp.lt.f32.partialorder %v1480_v48, 0.0 }
 0x100   : > { %967 = vst.msk [vmem:[%s1389_s30 + $0x68] sm:$0xff] %vm953_vm6, %v950_v25  ;;  %vm640_vm12 = vweird.f32 %v1577_v38  ;;  %v823_v32 = vsub.f32 0.0, %v1558_v37  ;;  %v1629_v51 = vadd.f32 %v1236_v20, %v298_v16  ;;  %v639_v61 = vadd.f32 %v1118_v6, %v638_v41 }
 0x101   : > { %v939_v56 = vmul.f32 %v923_v12, %v315_v62  ;;  %v783_v58 = vadd.f32 0.2548296, %v767_v29  ;;  %v691_v53 = vadd.f32 -1.4531521, %v675_v42  ;;  %v861_v22 = vmul.f32 1.442695, %v835_v5  ;;  %vm642_vm13 = vmor %vm640_vm12, %vm641_vm10 }
 0x102   : > { %v1122_v49 = vpop.eup %1121  ;;  %vm645_vm14 = vcmp.eq.f32.partialorder %v644_v34, 8.507059e+37  ;;  %v647_v63 = vor.u32 1.1754944e-38, %v646_v31  ;;  %v1633_v47 = vand.u32 2147483647, %v1621_v45  ;;  %v643_v39 = vsel %vm642_vm13, %v1118_v6, %v639_v61  ;;  %v310_v34 = vpop.f32.mrf.mxu3  ;;  %v1141_v42 = vld [vmem:[%s1768_s2] ss:$0 sm:$0xff] }
 0x103   : > { %956 = vst.msk [vmem:[%s1389_s30 + $0x10] sm:$0xff] %vm953_vm6, %v939_v56  ;;  %v799_v38 = vmul.f32 %v783_v58, %v1575_v44  ;;  %v707_v20 = vmul.f32 %v691_v53, %v1617_v15  ;;  %v471_v62 = vmul.f32 %v1122_v49, %v1607_v7  ;;  %v839_v24 = vmul.f32 %v823_v32, %v1558_v37 }
 0x104   : > { %v1640_v2 = vsel %vm645_vm14, %v647_v63, %v643_v39  ;;  %vm475_vm15 = vweird.f32 %v1607_v7  ;;  %v400_v33 = vmul.f32 0.3275911, %v1633_v47  ;;  %vm476_vm0 = vweird.f32 %v1122_v49 }
 0x105   : > { %v879_v1 = vmul.f32 %v1120_v23, %v799_v38  ;;  %v723_v54 = vadd.f32 1.4214138, %v707_v20  ;;  %v679_v0 = vmul.f32 1.0614054, %v1640_v2  ;;  %v472_v60 = vsub.f32 1.0, %v471_v62  ;;  %vm477_vm1 = vmor %vm475_vm15, %vm476_vm0 }
 0x106   : > { %v479_v44 = vand.u32 2147483647, %v1607_v7  ;;  %v481_v4 = vand.u32 2147483648, %v1607_v7  ;;  %v1648_v5 = vadd.f32 1.0, %v400_v33  ;;  %v319_v13 = vmul.f32 0.5, %v1467_v55 }
 0x107   : > { %v895_v27 = vsub.f32 1.0, %v879_v1  ;;  %v739_v10 = vmul.f32 %v723_v54, %v1617_v15  ;;  %v695_v37 = vadd.f32 -1.4531521, %v679_v0  ;;  %v473_v14 = vmul.f32 %v1122_v49, %v472_v60 }
 0x108   : > { %v367_v6 = vsel %vm351_vm11, -1.0, %v1150_v46  ;;  %1123 = vrcp.f32 %v1648_v5  ;;  %v1657_v57 = vmul.f32 0.70710677, %v1629_v51  ;;  %v869_v21 = vmul.f32 1.442695, %v839_v24 }
 0x109   : > { %v911_v9 = vmul.f32 %v895_v27, %v367_v6  ;;  %v755_v52 = vadd.f32 -0.28449672, %v739_v10  ;;  %v711_v11 = vmul.f32 %v695_v37, %v1640_v2  ;;  %v474_v59 = vadd.f32 %v1122_v49, %v473_v14 }
 0x10a   : > { %1125 = vpow2.f32 %v861_v22  ;;  %vm480_vm2 = vcmp.eq.f32.partialorder %v479_v44, 8.507059e+37  ;;  %v482_v55 = vor.u32 1.1754944e-38, %v481_v4  ;;  %v812_v3 = vsub.f32 0.0, %v1588_v36 }
 0x10b   : > { %v927_v48 = vadd.f32 1.0, %v911_v9  ;;  %v771_v23 = vmul.f32 %v755_v52, %v1617_v15  ;;  %v727_v25 = vadd.f32 1.4214138, %v711_v11  ;;  %v478_v26 = vsel %vm477_vm1, %v1122_v49, %v474_v59 }
 0x10c   : > { %v1664_v19 = vsel %vm480_vm2, %v482_v55, %v478_v26  ;;  %v1668_v43 = vand.u32 2147483647, %v1657_v57  ;;  %vm355_vm3 = vcmp.lt.f32.partialorder %v1518_v50, 0.0  ;;  %1127 = vpow2.f32 %v869_v21 }
 0x10d   : > { %v943_v35 = vmul.f32 %v927_v48, %v319_v13  ;;  %v787_v16 = vadd.f32 0.2548296, %v771_v23  ;;  %v743_v7 = vmul.f32 %v727_v25, %v1640_v2  ;;  %v668_v31 = vmul.f32 1.0614054, %v1664_v19 }
 0x10e   : > { %v1124_v12 = vpop.eup %1123  ;;  %v404_v29 = vmul.f32 0.3275911, %v1668_v43  ;;  %v1677_v41 = vadd.f32 %v1141_v42, %v310_v34  ;;  %v828_v49 = vmul.f32 %v812_v3, %v1588_v36  ;;  %vm535_vm4 = vweird.f32 %v1648_v5 }
 0x10f   : > { %960 = vst.msk [vmem:[%s1389_s30 + $0x30] sm:$0xff] %vm953_vm6, %v943_v35  ;;  %v803_v32 = vmul.f32 %v787_v16, %v1617_v15  ;;  %v759_v56 = vadd.f32 -0.28449672, %v743_v7  ;;  %v684_v58 = vadd.f32 -1.4531521, %v668_v31  ;;  %v531_v53 = vmul.f32 %v1124_v12, %v1648_v5 }
 0x110   : > { %v1126_v61 = vpop.eup %1125  ;;  %v539_v22 = vand.u32 2147483647, %v1648_v5  ;;  %v1686_v63 = vadd.f32 1.0, %v404_v29  ;;  %vm536_vm5 = vweird.f32 %v1124_v12  ;;  %v541_v15 = vand.u32 2147483648, %v1648_v5 }
 0x111   : > { %v883_v38 = vmul.f32 %v1126_v61, %v803_v32  ;;  %v775_v20 = vmul.f32 %v759_v56, %v1640_v2  ;;  %v700_v39 = vmul.f32 %v684_v58, %v1664_v19  ;;  %v532_v62 = vsub.f32 1.0, %v531_v53  ;;  %vm537_vm8 = vmor %vm535_vm4, %vm536_vm5 }
 0x112   : > { %1129 = vrcp.f32 %v1686_v63  ;;  %v1693_v24 = vmul.f32 0.70710677, %v1677_v41  ;;  %v1128_v0 = vpop.eup %1127  ;;  %v323_v60 = vmul.f32 0.5, %v1504_v8  ;;  %v371_v44 = vsel %vm355_vm3, -1.0, %v1150_v46 }
 0x113   : > { %v899_v36 = vsub.f32 1.0, %v883_v38  ;;  %v791_v33 = vadd.f32 0.2548296, %v775_v20  ;;  %v716_v1 = vadd.f32 1.4214138, %v700_v39  ;;  %v533_v54 = vmul.f32 %v1124_v12, %v532_v62 }
 0x114   : > { %v847_v4 = vmul.f32 1.442695, %v828_v49  ;;  %vm359_vm7 = vcmp.lt.f32.partialorder %v1542_v30, 0.0  ;;  %vm540_vm9 = vcmp.eq.f32.partialorder %v539_v22, 8.507059e+37  ;;  %v542_v13 = vor.u32 1.1754944e-38, %v541_v15 }
 0x115   : > { %v915_v27 = vmul.f32 %v899_v36, %v371_v44  ;;  %v807_v10 = vmul.f32 %v791_v33, %v1640_v2  ;;  %v732_v37 = vmul.f32 %v716_v1, %v1664_v19  ;;  %v534_v14 = vadd.f32 %v1124_v12, %v533_v54 }
 0x116   : > { %v1706_v8 = vand.u32 2147483647, %v1693_v24  ;;  %1131 = vpow2.f32 %v847_v4  ;;  %v816_v59 = vsub.f32 0.0, %v1633_v47  ;;  %v375_v25 = vsel %vm359_vm7, -1.0, %v1150_v46 }
 0x117   : > { %v931_v50 = vadd.f32 1.0, %v915_v27  ;;  %v887_v6 = vmul.f32 %v1128_v0, %v807_v10  ;;  %v748_v9 = vadd.f32 -0.28449672, %v732_v37  ;;  %v538_v52 = vsel %vm537_vm8, %v1124_v12, %v534_v14 }
 0x118   : > { %v1130_v2 = vpop.eup %1129  ;;  %v1708_v11 = vsel %vm540_vm9, %v542_v13, %v538_v52  ;;  %v408_v21 = vmul.f32 0.3275911, %v1706_v8  ;;  %v327_v7 = vmul.f32 0.5, %v1525_v18  ;;  %v832_v31 = vmul.f32 %v816_v59, %v1633_v47 }
 0x119   : > { %v947_v5 = vmul.f32 %v931_v50, %v323_v60  ;;  %v903_v55 = vsub.f32 1.0, %v887_v6  ;;  %v764_v48 = vmul.f32 %v748_v9, %v1664_v19  ;;  %v672_v23 = vmul.f32 1.0614054, %v1708_v11 }
 0x11a   : > { %v591_v26 = vmul.f32 %v1130_v2, %v1686_v63  ;;  %v1718_v34 = vadd.f32 1.0, %v408_v21  ;;  %v601_v32 = vand.u32 2147483648, %v1686_v63  ;;  %vm596_vm10 = vweird.f32 %v1130_v2 }
 0x11b   : > { %964 = vst.msk [vmem:[%s1389_s30 + $0x50] sm:$0xff] %vm953_vm6, %v947_v5  ;;  %v919_v3 = vmul.f32 %v903_v55, %v375_v25  ;;  %v780_v35 = vadd.f32 0.2548296, %v764_v48  ;;  %v688_v16 = vadd.f32 -1.4531521, %v672_v23  ;;  %vm348_vm11 = vcmp.lt.f32.partialorder %v1572_v17, 0.0 }
 0x11c   : > { %v592_v12 = vsub.f32 1.0, %v591_v26  ;;  %1133 = vrcp.f32 %v1718_v34  ;;  %v1132_v56 = vpop.eup %1131  ;;  %v599_v53 = vand.u32 2147483647, %v1686_v63  ;;  %v855_v49 = vmul.f32 1.442695, %v832_v31 }
 0x11d   : > { %v935_v29 = vadd.f32 1.0, %v919_v3  ;;  %v796_v30 = vmul.f32 %v780_v35, %v1664_v19  ;;  %v704_v42 = vmul.f32 %v688_v16, %v1708_v11  ;;  %vm595_vm12 = vweird.f32 %v1686_v63 }
 0x11e   : > { %v593_v58 = vmul.f32 %v1130_v2, %v592_v12  ;;  %vm597_vm13 = vmor %vm595_vm12, %vm596_vm10  ;;  %v602_v20 = vor.u32 1.1754944e-38, %v601_v32  ;;  %v364_v62 = vsel %vm348_vm11, -1.0, %v1150_v46  ;;  %vm600_vm14 = vcmp.eq.f32.partialorder %v599_v53, 8.507059e+37 }
 0x11f   : > { %v951_v61 = vmul.f32 %v935_v29, %v327_v7  ;;  %v876_v18 = vmul.f32 %v1132_v56, %v796_v30  ;;  %v720_v47 = vadd.f32 1.4214138, %v704_v42  ;;  %v820_v17 = vsub.f32 0.0, %v1668_v43 }
 0x120   : > { %v594_v22 = vadd.f32 %v1130_v2, %v593_v58  ;;  %1135 = vpow2.f32 %v855_v49  ;;  %v316_v0 = vmul.f32 0.5, %v1546_v40  ;;  %v659_v37 = vand.u32 2147483647, %v1718_v34 }
 0x121   : > { %968 = vst.msk [vmem:[%s1389_s30 + $0x70] sm:$0xff] %vm953_vm6, %v951_v61  ;;  %v892_v19 = vsub.f32 1.0, %v876_v18  ;;  %v736_v38 = vmul.f32 %v720_v47, %v1708_v11  ;;  %v836_v10 = vmul.f32 %v820_v17, %v1668_v43  ;;  %v661_v14 = vand.u32 2147483648, %v1718_v34 }
 0x122   : > { %v1134_v39 = vpop.eup %1133  ;;  %v598_v15 = vsel %vm597_vm13, %v1130_v2, %v594_v22  ;;  %vm655_vm0 = vweird.f32 %v1718_v34  ;;  %vm352_vm1 = vcmp.lt.f32.partialorder %v1621_v45, 0.0  ;;  %vm660_vm3 = vcmp.eq.f32.partialorder %v659_v37, 8.507059e+37 }
 0x123   : > { %v908_v36 = vmul.f32 %v892_v19, %v364_v62  ;;  %v752_v33 = vadd.f32 -0.28449672, %v736_v38  ;;  %v603_v1 = vsel %vm600_vm14, %v602_v20, %v598_v15  ;;  %v651_v54 = vmul.f32 %v1134_v39, %v1718_v34 }
 0x124   : > { %v676_v63 = vmul.f32 1.0614054, %v603_v1  ;;  %vm656_vm15 = vweird.f32 %v1134_v39  ;;  %v662_v59 = vor.u32 1.1754944e-38, %v661_v14  ;;  %v863_v5 = vmul.f32 1.442695, %v836_v10 }
 0x125   : > { %v924_v60 = vadd.f32 1.0, %v908_v36  ;;  %v768_v44 = vmul.f32 %v752_v33, %v1708_v11  ;;  %v652_v4 = vsub.f32 1.0, %v651_v54  ;;  %vm657_vm2 = vmor %vm655_vm0, %vm656_vm15  ;;  %v824_v25 = vsub.f32 0.0, %v1706_v8 }
 0x126   : > { %v692_v27 = vadd.f32 -1.4531521, %v676_v63  ;;  %v1136_v2 = vpop.eup %1135  ;;  %1137 = vpow2.f32 %v863_v5  ;;  %v320_v31 = vmul.f32 0.5, %v1597_v28  ;;  %vm356_vm4 = vcmp.lt.f32.partialorder %v1657_v57, 0.0 }
 0x127   : > { %v940_v13 = vmul.f32 %v924_v60, %v316_v0  ;;  %v784_v50 = vadd.f32 0.2548296, %v768_v44  ;;  %v653_v6 = vmul.f32 %v1134_v39, %v652_v4  ;;  %v840_v7 = vmul.f32 %v824_v25, %v1706_v8 }
 0x128   : > { %v708_v9 = vmul.f32 %v692_v27, %v603_v1  ;;  %v372_v28 = vsel %vm356_vm4, -1.0, %v1150_v46  ;;  %v324_v38 = vmul.f32 0.5, %v1629_v51  ;;  %vm360_vm5 = vcmp.lt.f32.partialorder %v1693_v24, 0.0 }
 0x129   : > { %957 = vst.msk [vmem:[%s1389_s30 + $0x18] sm:$0xff] %vm953_vm6, %v940_v13  ;;  %v800_v40 = vmul.f32 %v784_v50, %v1708_v11  ;;  %v654_v52 = vadd.f32 %v1134_v39, %v653_v6  ;;  %v368_v11 = vsel %vm352_vm1, -1.0, %v1150_v46  ;;  %v871_v58 = vmul.f32 1.442695, %v840_v7 }
 0x12a   : > { %v724_v43 = vadd.f32 1.4214138, %v708_v9  ;;  %v376_v36 = vsel %vm360_vm5, -1.0, %v1150_v46 }
 0x12b   : > { %v880_v21 = vmul.f32 %v1136_v2, %v800_v40  ;;  %v658_v55 = vsel %vm657_vm2, %v1134_v39, %v654_v52  ;;  %1139 = vpow2.f32 %v871_v58 }
 0x12c   : > { %v740_v48 = vmul.f32 %v724_v43, %v603_v1  ;;  %v663_v23 = vsel %vm660_vm3, %v662_v59, %v658_v55  ;;  %v1138_v53 = vpop.eup %1137 }
 0x12d   : > { %v896_v26 = vsub.f32 1.0, %v880_v21  ;;  %v680_v3 = vmul.f32 1.0614054, %v663_v23 }
 0x12e   : > { %v756_v34 = vadd.f32 -0.28449672, %v740_v48 }
 0x12f   : > { %v912_v35 = vmul.f32 %v896_v26, %v368_v11  ;;  %v696_v45 = vadd.f32 -1.4531521, %v680_v3 }
 0x130   : > { %v772_v16 = vmul.f32 %v756_v34, %v603_v1 }
 0x131   : > { %v928_v12 = vadd.f32 1.0, %v912_v35  ;;  %v712_v29 = vmul.f32 %v696_v45, %v663_v23  ;;  %v1140_v62 = vpop.eup %1139 }
 0x132   : > { %v788_v30 = vadd.f32 0.2548296, %v772_v16 }
 0x133   : > { %v944_v42 = vmul.f32 %v928_v12, %v320_v31  ;;  %v728_v32 = vadd.f32 1.4214138, %v712_v29 }
 0x134   : > { %v804_v56 = vmul.f32 %v788_v30, %v603_v1  ;;  %v328_v1 = vmul.f32 0.5, %v1677_v41 }
 0x135   : > { %961 = vst.msk [vmem:[%s1389_s30 + $0x38] sm:$0xff] %vm953_vm6, %v944_v42  ;;  %v744_v61 = vmul.f32 %v728_v32, %v663_v23 }
 0x136   : > { %v884_v18 = vmul.f32 %v1138_v53, %v804_v56 }
 0x137   : > { %v760_v47 = vadd.f32 -0.28449672, %v744_v61 }
 0x138   : > { %v900_v49 = vsub.f32 1.0, %v884_v18 }
 0x139   : > { %v776_v8 = vmul.f32 %v760_v47, %v663_v23 }
 0x13a   : > { %v916_v22 = vmul.f32 %v900_v49, %v372_v28 }
 0x13b   : > { %v792_v19 = vadd.f32 0.2548296, %v776_v8 }
 0x13c   : > { %v932_v20 = vadd.f32 1.0, %v916_v22 }
 0x13d   : > { %v808_v39 = vmul.f32 %v792_v19, %v663_v23 }
 0x13e   : > { %v948_v15 = vmul.f32 %v932_v20, %v324_v38 }
 0x13f   : > { %v888_v57 = vmul.f32 %v1140_v62, %v808_v39 }
 0x140   : > { %965 = vst.msk [vmem:[%s1389_s30 + $0x58] sm:$0xff] %vm953_vm6, %v948_v15 }
 0x141   : > { %v904_v17 = vsub.f32 1.0, %v888_v57 }
 0x143   : > { %v920_v33 = vmul.f32 %v904_v17, %v376_v36 }
 0x145   : > { %v936_v54 = vadd.f32 1.0, %v920_v33 }
 0x147   : > { %v952_v63 = vmul.f32 %v936_v54, %v328_v1 }
 0x149   : > { %969 = vst.msk [vmem:[%s1389_s30 + $0x78] sm:$0xff] %vm953_vm6, %v952_v63 }
 0x14a PF: > { %s13_s12 = sadd.s32 1, %s1148_s12  }
 0x14b   : > { %p10_p4 = scmp.ge.s32.totalorder %s13_s12, 4  }
 0x14d   :  { %12 = sbr.rel (!%p10_p4) target bundleno = 1 (0x1), region = 62 }

// kernel: _lambda_.7
= control target key start
LH: loop header
LB: loop body
LE: loop exit
PB: predicated region body
PF: predicated region fallthrough
CT: control target
= control target key end

     0   :  { %s2183_s27 = smov 0   ;;  %s2697_s0 = inlined_call_operand.vmem [shape: f32[2,32,16], index: 0, kind: input, shape index: {}]   ;;  %s2698_s1 = inlined_call_operand.vmem [shape: f32[1,16,48], index: 1, kind: input, shape index: {}]   ;;  %s2699_s2 = inlined_call_operand.vmem [shape: f32[1,1,48], index: 2, kind: input, shape index: {}]   ;;  %s2700_s3 = inlined_call_operand.vmem [shape: f32[1,16,16], index: 3, kind: input, shape index: {}]   ;;  %s2701_s4 = inlined_call_operand.vmem [shape: f32[1,1,16], index: 4, kind: input, shape index: {}]   ;;  %s2702_s5 = inlined_call_operand.vmem [shape: f32[1,1,16], index: 5, kind: input, shape index: {}]   ;;  %s2703_s6 = inlined_call_operand.vmem [shape: f32[1,1,16], index: 6, kind: input, shape index: {}]   ;;  %s2704_s7 = inlined_call_operand.vmem [shape: f32[1,16,64], index: 7, kind: input, shape index: {}]   ;;  %s2705_s8 = inlined_call_operand.vmem [shape: f32[1,1,64], index: 8, kind: input, shape index: {}]   ;;  %s2706_s9 = inlined_call_operand.vmem [shape: f32[1,64,16], index: 9, kind: input, shape index: {}]   ;;  %s2707_s10 = inlined_call_operand.vmem [shape: f32[1,1,16], index: 10, kind: input, shape index: {}]   ;;  %s2708_s11 = inlined_call_operand.vmem [shape: f32[1,1,16], index: 11, kind: input, shape index: {}]   ;;  %s2709_s12 = inlined_call_operand.vmem [shape: f32[1,1,16], index: 12, kind: input, shape index: {}]   ;;  %s2710_s13 = inlined_call_operand.vmem [shape: f32[32,32], index: 13, kind: input, shape index: {}]   ;;  %s2711_s14 = inlined_call_operand.vmem [shape: f32[144,32], index: 14, kind: input, shape index: {}]   ;;  %s2712_s15 = inlined_call_operand.vmem [shape: f32[1,32], index: 15, kind: input, shape index: {}]   ;;  %s2713_s16 = inlined_call_operand.vmem [shape: f32[1,32], index: 16, kind: input, shape index: {}]   ;;  %s2714_s17 = inlined_call_operand.vmem [shape: f32[1,32], index: 17, kind: input, shape index: {}]   ;;  %s2715_s18 = inlined_call_operand.vmem [shape: f32[2,16,32], index: 18, kind: output, shape index: {}]  }
   0x1   :  { %2717 = sst [smem:[#allocation2_spill]] %s2697_s0 }
   0x2   :  { %2718 = sst [smem:[#allocation3_spill]] %s2698_s1 }
   0x3   :  { %2719 = sst [smem:[#allocation4_spill]] %s2699_s2 }
   0x4 LB: > { %s1863_s28 = sadd.s32 4294967295, %s2073_s27   ;;  %p1867_p0 = scmp.ge.s32.totalorder %s2073_s27, 1  ;;  %s2073_s27 = sphi %s2183_s27, %s28_s27  }
   0x5   : > { %p512_p1 = scmp.lt.s32.totalorder %s2073_s27, 3 }
   0x7   : > { %p513_p2 = pnand %p1867_p0, %p512_p1 }
   0x8   : > { %s2720_s0 = sld [smem:[#allocation3_spill]] (!%p513_p2)  ;;  %p566_p3 = scmp.lt.s32.totalorder (!%p513_p2), %s1863_s28, 1 }
   0x9   : > { %516 = sbr.rel (%p513_p2) target bundleno = 2590 (0xa1e), region = 92  ;;  %s2721_s2 = sld [smem:[#allocation2_spill]] (!%p513_p2) }
   0xa   : > { %s2722_s26 = sld [smem:[#allocation4_spill]] (!%p513_p2)  ;;  %s2075_s29 = smov (!%p513_p2), 120  }
   0xb   : > { %s2076_s30 = smov (!%p513_p2), 112   ;;  %s2077_s25 = smov (!%p513_p2), 96  }
   0xc   : > { %s2082_s1 = smov (!%p513_p2), 32   ;;  %s2084_s21 = smov (!%p513_p2), 48  }
   0xd   : > { %s2085_s22 = smov (!%p513_p2), 80  }
   0xe   : > { %v581_v0 = vld [vmem:[%s2720_s0 + $0x8] sm:$0xff]  ;;  %v580_v1 = vld [vmem:[%s2720_s0] sm:$0xff]  ;;  %s2724_s28 = smov (!%p566_p3, %s1863_s28), 1  ;;  %vm586_vm0 = vcmask 130048   ;;  %vm664_vm1 = vcmask 64512   ;;  %vm771_vm2 = vcmask 261120  }
   0xf   : > { %613 = vmatpush.msra.mxu0 %v581_v0  ;;  %s1916_s20 = sshll.u32 %s2724_s28, 5  ;;  %v652_v35 = vld [vmem:[%s2710_s13] sm:$0xff]  ;;  %v653_v40 = vld [vmem:[%s2710_s13 + $0x8] sm:$0xff]  ;;  %v654_v49 = vld [vmem:[%s2710_s13 + $0x10] sm:$0xff] }
  0x10   : > { %s570_s23 = scalar_lea.vmem %s2721_s2, %s1916_s20  ;;  %v1984_v7 = vld [vmem:[%s2722_s26] ss:$0 sm:$0xff]  ;;  %v655_v53 = vld [vmem:[%s2710_s13 + $0x18] sm:$0xff]  ;;  %s2078_s26 = smov 8  }
  0x11   : > { %614 = vmatpush.msra.mxu0 %v580_v1  ;;  %v2203_v2 = vld [vmem:[%s570_s23] sm:$0xff]  ;;  %v2207_v3 = vld [vmem:[%s570_s23 + $0x8] sm:$0xff]  ;;  %v2211_v4 = vld [vmem:[%s570_s23 + $0x10] sm:$0xff]  ;;  %s2083_s20 = smov 16   ;;  %s2086_s2 = smov 64  }
  0x12   : > { %1872 = vmatmul.msk.f32.vlgmr.msra.gmra.mxu0 %vm586_vm0, %v2203_v2  ;;  %v2215_v5 = vld [vmem:[%s570_s23 + $0x18] sm:$0xff]  ;;  %s1917_s23 = sshll.u32 %s2724_s28, 4 }
  0x1a   : > { %1873 = vmatmul.msk.f32.gmra.mxu0 %vm586_vm0, %v2207_v3 }
  0x22   : > { %1874 = vmatmul.msk.f32.gmra.mxu0 %vm586_vm0, %v2211_v4 }
  0x2a   : > { %1875 = vmatmul.msk.f32.gmra.mxu0 %vm586_vm0, %v2215_v5 }
  0x8f   : > { %v616_v6 = vpop.f32.mrf.mxu0 }
  0x90   : > { %v2225_v11 = vadd.f32 %v1984_v7, %v616_v6 }
  0x92   : > { %v644_v29 = vmul.f32 0.35355338, %v2225_v11 }
  0x97   : > { %v619_v8 = vpop.f32.mrf.mxu0 }
  0x98   : > { %v2222_v9 = vadd.f32 %v1984_v7, %v619_v8 }
  0x9a   : > { %634 = vrot.lane.b32.xlu1 %v2222_v9, %s2075_s29  ;;  %v645_v31 = vmul.f32 0.35355338, %v2222_v9 }
  0x9f   : > { %v622_v10 = vpop.f32.mrf.mxu0 }
  0xa0   : > { %v2231_v14 = vadd.f32 %v1984_v7, %v622_v10 }
  0xa2   : > { %632 = vrot.lane.b32.xlu1 %v2225_v11, %s2075_s29  ;;  %v646_v33 = vmul.f32 0.35355338, %v2231_v14 }
  0xa7   : > { %v625_v12 = vpop.f32.mrf.mxu0 }
  0xa8   : > { %v2228_v13 = vadd.f32 %v1984_v7, %v625_v12 }
  0xaa   : > { %638 = vrot.lane.b32.xlu0 %v2228_v13, %s2075_s29  ;;  %v647_v34 = vmul.f32 0.35355338, %v2228_v13 }
  0xb2   : > { %636 = vrot.lane.b32.xlu0 %v2231_v14, %s2075_s29 }
 0x10c   : > { %v2234_v15 = vpop.permute.xlu1 %634 }
 0x10d   : > { %716 = vrot.lane.b32.xlu0 %v2234_v15, %s2076_s30  ;;  %v649_v27 = vmul.f32 0.35355338, %v2234_v15 }
 0x114   : > { %v2238_v16 = vpop.permute.xlu1 %632 }
 0x115   : > { %660 = vrot.lane.b32.xlu0 %v2231_v14, %s2076_s30  ;;  %714 = vrot.lane.b32.xlu1 %v2238_v16, %s2076_s30  ;;  %v648_v24 = vmul.f32 0.35355338, %v2238_v16 }
 0x11c   : > { %v2244_v17 = vpop.permute.xlu0 %638 }
 0x11d   : > { %720 = vrot.lane.b32.xlu2 %v2244_v17, %s2076_s30  ;;  %658 = vrot.lane.b32.xlu1 %v2222_v9, %s2076_s30  ;;  %v651_v32 = vmul.f32 0.35355338, %v2244_v17 }
 0x124   : > { %v2250_v18 = vpop.permute.xlu0 %636 }
 0x125   : > { %718 = vrot.lane.b32.xlu2 %v2250_v18, %s2076_s30  ;;  %v650_v30 = vmul.f32 0.35355338, %v2250_v18  ;;  %v1939_v61 = vpack.i.bf16 %v2250_v18, %v2244_v17 }
 0x12d   : > { %662 = vrot.lane.b32.xlu2 %v2228_v13, %s2076_s30 }
 0x135   : > { %656 = vrot.lane.b32.xlu2 %v2225_v11, %s2076_s30 }
 0x177   : > { %v721_v19 = vpop.permute.xlu2 %720 }
 0x178   : > { %1884 = vmatpush.xpose.msk.msra.mxu2 %vm664_vm1, %v721_v19 }
 0x17f   : > { %v719_v20 = vpop.permute.xlu2 %718  ;;  %v717_v21 = vpop.permute.xlu0 %716 }
 0x180   : > { %1885 = vmatpush.xpose.msk.msra.mxu2 %vm664_vm1, %v719_v20 }
 0x184   : > { %1886 = vmatpush.xpose.msk.msra.mxu2 %vm664_vm1, %v717_v21 }
 0x187   : > { %v663_v22 = vpop.permute.xlu2 %662  ;;  %v715_v23 = vpop.permute.xlu1 %714 }
 0x188   : > { %1876 = vmatpush.xpose.msk.msra.mxu1 %vm664_vm1, %v663_v22  ;;  %1887 = vmatpush.xpose.msk.msra.mxu2 %vm664_vm1, %v715_v23  ;;  %v661_v25 = vpop.permute.xlu0 %660  ;;  %v1944_v22 = vpack.i.bf16 %v2238_v16, %v2234_v15 }
 0x18b   : > { %1888 = vmatmul.msk.f32.vlgmr.msra.gmra.mxu2 %vm664_vm1, %v648_v24 }
 0x18c   : > { %1877 = vmatpush.xpose.msk.msra.mxu1 %vm664_vm1, %v661_v25 }
 0x18f   : > { %v659_v26 = vpop.permute.xlu1 %658  ;;  %v657_v28 = vpop.permute.xlu2 %656 }
 0x190   : > { %1878 = vmatpush.xpose.msk.msra.mxu1 %vm664_vm1, %v659_v26 }
 0x193   : > { %1889 = vmatmul.msk.f32.gmra.mxu2 %vm664_vm1, %v649_v27 }
 0x194   : > { %1879 = vmatpush.xpose.msk.msra.mxu1 %vm664_vm1, %v657_v28 }
 0x197   : > { %1880 = vmatmul.msk.f32.vlgmr.msra.gmra.mxu1 %vm664_vm1, %v644_v29 }
 0x19b   : > { %1890 = vmatmul.msk.f32.gmra.mxu2 %vm664_vm1, %v650_v30 }
 0x19f   : > { %1881 = vmatmul.msk.f32.gmra.mxu1 %vm664_vm1, %v645_v31 }
 0x1a3   : > { %1891 = vmatmul.msk.f32.gmra.mxu2 %vm664_vm1, %v651_v32 }
 0x1a7   : > { %1882 = vmatmul.msk.f32.gmra.mxu1 %vm664_vm1, %v646_v33 }
 0x1af   : > { %1883 = vmatmul.msk.f32.gmra.mxu1 %vm664_vm1, %v647_v34 }
 0x20e   : > { %v759_v36 = vpop.f32.mrf.mxu2 }
 0x20f   : > { %v760_v37 = vadd.f32 %v759_v36, %v652_v35 }
 0x211   : > { %v784_v38 = vsel %vm771_vm2, %v760_v37, -inf }
 0x212   : > { %785 = vmax.xlane.f32.xlu0 %v784_v38 }
 0x214   : > { %v702_v39 = vpop.f32.mrf.mxu1 }
 0x215   : > { %v2289_v41 = vadd.f32 %v702_v39, %v652_v35 }
 0x216   : > { %v762_v42 = vpop.f32.mrf.mxu2 }
 0x217   : > { %v763_v43 = vadd.f32 %v762_v42, %v653_v40  ;;  %v772_v45 = vsel %vm771_vm2, %v2289_v41, -inf }
 0x219   : > { %v787_v44 = vsel %vm771_vm2, %v763_v43, -inf }
 0x21a   : > { %788 = vmax.xlane.f32.xlu1 %v787_v44  ;;  %773 = vmax.xlane.f32.xlu0 %v772_v45 }
 0x21c   : > { %v705_v46 = vpop.f32.mrf.mxu1 }
 0x21d   : > { %v2294_v47 = vadd.f32 %v705_v46, %v653_v40 }
 0x21e   : > { %v765_v56 = vpop.f32.mrf.mxu2 }
 0x21f   : > { %v775_v48 = vsel %vm771_vm2, %v2294_v47, -inf  ;;  %v766_v58 = vadd.f32 %v765_v56, %v654_v49 }
 0x221   : > { %v790_v59 = vsel %vm771_vm2, %v766_v58, -inf }
 0x222   : > { %776 = vmax.xlane.f32.xlu1 %v775_v48 }
 0x224   : > { %v708_v50 = vpop.f32.mrf.mxu1 }
 0x225   : > { %v709_v51 = vadd.f32 %v708_v50, %v654_v49  ;;  %v1954_v49 = vpack.i.bf16 %v2225_v11, %v2222_v9 }
 0x226   : > { %v768_v60 = vpop.f32.mrf.mxu2 }
 0x227   : > { %v778_v52 = vsel %vm771_vm2, %v709_v51, -inf  ;;  %v769_v62 = vadd.f32 %v768_v60, %v655_v53 }
 0x228   : > { %779 = vmax.xlane.f32.xlu2 %v778_v52 }
 0x229   : > { %v793_v63 = vsel %vm771_vm2, %v769_v62, -inf }
 0x22c   : > { %v711_v54 = vpop.f32.mrf.mxu1 }
 0x22d   : > { %v2305_v55 = vadd.f32 %v711_v54, %v655_v53 }
 0x22f   : > { %v781_v57 = vsel %vm771_vm2, %v2305_v55, -inf }
 0x230   : > { %782 = vmax.xlane.f32.xlu2 %v781_v57 }
 0x238   : > { %791 = vmax.xlane.f32.xlu2 %v790_v59 }
 0x23b   : > { %1940 = vrot.lane.b32.xlu1 %v1939_v61, %s2077_s25 }
 0x240   : > { %794 = vmax.xlane.f32.xlu2 %v793_v63 }
 0x285   : > { %v786_v0 = vpop.xlane.xlu0 %785 }
 0x286   : > { %v800_v1 = vsub.f32 %v760_v37, %v786_v0 }
 0x288   : > { %v812_v6 = vmul.f32 1.442695, %v800_v1 }
 0x28a   : > { %1995 = vpow2.f32 %v812_v6 }
 0x28d   : > { %v789_v7 = vpop.xlane.xlu1 %788  ;;  %v774_v16 = vpop.xlane.xlu0 %773 }
 0x28e   : > { %v801_v8 = vsub.f32 %v763_v43, %v789_v7  ;;  %v796_v37 = vsub.f32 %v2289_v41, %v774_v16  ;;  %v1949_v41 = vpack.i.bf16 %v2231_v14, %v2228_v13 }
 0x290   : > { %v2314_v10 = vpop.eup %1995  ;;  %v814_v12 = vmul.f32 1.442695, %v801_v8  ;;  %v804_v39 = vmul.f32 1.442695, %v796_v37 }
 0x291   : > { %v832_v19 = vsel %vm771_vm2, %v2314_v10, 0.0 }
 0x292   : > { %1997 = vpow2.f32 %v814_v12  ;;  %833 = vadd.xlane.f32.xlu0 %v832_v19 }
 0x295   : > { %v777_v23 = vpop.xlane.xlu1 %776 }
 0x298   : > { %v2318_v17 = vpop.eup %1997 }
 0x299   : > { %v835_v18 = vsel %vm771_vm2, %v2318_v17, 0.0 }
 0x29a   : > { %836 = vadd.xlane.f32.xlu2 %v835_v18 }
 0x29b   : > { %v780_v20 = vpop.xlane.xlu2 %779 }
 0x29c   : > { %v798_v33 = vsub.f32 %v709_v51, %v780_v20  ;;  %v797_v51 = vsub.f32 %v2294_v47, %v777_v23 }
 0x29e   : > { %v808_v15 = vmul.f32 1.442695, %v798_v33  ;;  %v806_v52 = vmul.f32 1.442695, %v797_v51 }
 0x2a3   : > { %v783_v21 = vpop.xlane.xlu2 %782 }
 0x2a4   : > { %v799_v42 = vsub.f32 %v2305_v55, %v783_v21 }
 0x2a6   : > { %1945 = vrot.lane.b32.xlu0 %v1944_v22, %s2077_s25  ;;  %v810_v44 = vmul.f32 1.442695, %v799_v42 }
 0x2ab   : > { %v792_v24 = vpop.xlane.xlu2 %791 }
 0x2ac   : > { %v802_v25 = vsub.f32 %v766_v58, %v792_v24 }
 0x2ad   : > { %v1941_v26 = vpop.permute.xlu1 %1940 }
 0x2ae   : > { %v816_v27 = vmul.f32 1.442695, %v802_v25  ;;  %v1942_v28 = vunpack.i.l.bf16 %v1941_v26  ;;  %v1943_v29 = vunpack.i.h.bf16 %v1941_v26 }
 0x2b0   : > { %1999 = vpow2.f32 %v816_v27  ;;  %949 = vmatpush.msrb.mxu0 %v1942_v28 }
 0x2b2   : > { %950 = vmatpush.msrb.mxu0 %v1943_v29 }
 0x2b3   : > { %v795_v30 = vpop.xlane.xlu2 %794 }
 0x2b4   : > { %v803_v31 = vsub.f32 %v769_v62, %v795_v30 }
 0x2b6   : > { %v2000_v32 = vpop.eup %1999  ;;  %v818_v34 = vmul.f32 1.442695, %v803_v31  ;;  %v987_v31 = vld [vmem:[%s2700_s3 + $0x8] sm:$0xff] }
 0x2b7   : > { %v838_v35 = vsel %vm771_vm2, %v2000_v32, 0.0 }
 0x2b8   : > { %2001 = vpow2.f32 %v818_v34  ;;  %839 = vadd.xlane.f32.xlu2 %v838_v35  ;;  %v986_v34 = vld [vmem:[%s2700_s3] sm:$0xff] }
 0x2b9   : > { %2003 = vpow2.f32 %v808_v15 }
 0x2ba   : > { %2005 = vpow2.f32 %v804_v39 }
 0x2bb   : > { %2007 = vpow2.f32 %v810_v44 }
 0x2bc   : > { %2009 = vpow2.f32 %v806_v52 }
 0x2be   : > { %v2002_v36 = vpop.eup %2001 }
 0x2bf   : > { %v841_v38 = vsel %vm771_vm2, %v2002_v36, 0.0  ;;  %v2328_v40 = vpop.eup %2003 }
 0x2c0   : > { %842 = vadd.xlane.f32.xlu1 %v841_v38  ;;  %v826_v43 = vsel %vm771_vm2, %v2328_v40, 0.0  ;;  %v2006_v45 = vpop.eup %2005 }
 0x2c1   : > { %v820_v46 = vsel %vm771_vm2, %v2006_v45, 0.0  ;;  %v2337_v48 = vpop.eup %2007 }
 0x2c2   : > { %v829_v50 = vsel %vm771_vm2, %v2337_v48, 0.0  ;;  %v2010_v13 = vpop.eup %2009 }
 0x2c3   : > { %v823_v14 = vsel %vm771_vm2, %v2010_v13, 0.0 }
 0x2c8   : > { %827 = vadd.xlane.f32.xlu1 %v826_v43 }
 0x2d0   : > { %1950 = vrot.lane.b32.xlu2 %v1949_v41, %s2077_s25  ;;  %821 = vadd.xlane.f32.xlu0 %v820_v46  ;;  %v1985_v41 = vld [vmem:[%s2701_s4] ss:$0 sm:$0xff] }
 0x2d8   : > { %1955 = vrot.lane.b32.xlu2 %v1954_v49, %s2077_s25  ;;  %830 = vadd.xlane.f32.xlu0 %v829_v50 }
 0x301   : > { %824 = vadd.xlane.f32.xlu2 %v823_v14 }
 0x305   : > { %v834_v53 = vpop.xlane.xlu0 %833 }
 0x306   : > { %2011 = vrcp.f32 %v834_v53 }
 0x30c   : > { %v2012_v56 = vpop.eup %2011 }
 0x30d   : > { %v837_v54 = vpop.xlane.xlu2 %836  ;;  %v856_v57 = vmul.f32 %v2012_v56, %v2314_v10 }
 0x30e   : > { %2013 = vrcp.f32 %v837_v54 }
 0x314   : > { %v2014_v47 = vpop.eup %2013 }
 0x315   : > { %v857_v58 = vmul.f32 %v2014_v47, %v2318_v17  ;;  %v2079_v47 = vmov 16.0  }
 0x318   : > { %v1946_v55 = vpop.permute.xlu0 %1945 }
 0x319   : > { %v1947_v9 = vunpack.i.l.bf16 %v1946_v55  ;;  %v1948_v11 = vunpack.i.h.bf16 %v1946_v55 }
 0x31b   : > { %951 = vmatpush.msrb.mxu0 %v1947_v9 }
 0x31d   : > { %952 = vmatpush.msrb.mxu0 %v1948_v11 }
 0x31e   : > { %1896 = vmatmul.msk.f32.vlgmr.msrb.gmra.mxu0 %vm771_vm2, %v856_v57 }
 0x326   : > { %1897 = vmatmul.msk.f32.gmra.mxu0 %vm771_vm2, %v857_v58 }
 0x32b   : > { %v840_v59 = vpop.xlane.xlu2 %839 }
 0x32c   : > { %2015 = vrcp.f32 %v840_v59 }
 0x332   : > { %v2016_v60 = vpop.eup %2015 }
 0x333   : > { %v1951_v61 = vpop.permute.xlu2 %1950  ;;  %v843_v62 = vpop.xlane.xlu1 %842  ;;  %v858_v63 = vmul.f32 %v2016_v60, %v2000_v32 }
 0x334   : > { %2017 = vrcp.f32 %v843_v62  ;;  %v1952_v0 = vunpack.i.l.bf16 %v1951_v61  ;;  %v1953_v1 = vunpack.i.h.bf16 %v1951_v61 }
 0x335   : > { %1898 = vmatmul.msk.f32.gmra.mxu0 %vm771_vm2, %v858_v63 }
 0x336   : > { %896 = vmatpush.msra.mxu3 %v1952_v0 }
 0x338   : > { %897 = vmatpush.msra.mxu3 %v1953_v1 }
 0x33a   : > { %v2018_v6 = vpop.eup %2017 }
 0x33b   : > { %v1956_v7 = vpop.permute.xlu2 %1955  ;;  %v859_v8 = vmul.f32 %v2018_v6, %v2002_v36  ;;  %v828_v21 = vpop.xlane.xlu1 %827 }
 0x33c   : > { %v1957_v10 = vunpack.i.l.bf16 %v1956_v7  ;;  %v1958_v12 = vunpack.i.h.bf16 %v1956_v7 }
 0x33d   : > { %1899 = vmatmul.msk.f32.gmra.mxu0 %vm771_vm2, %v859_v8 }
 0x33e   : > { %898 = vmatpush.msra.mxu3 %v1957_v10 }
 0x340   : > { %899 = vmatpush.msra.mxu3 %v1958_v12 }
 0x342   : > { %1018 = vmatpush.msrb.mxu3 %v987_v31 }
 0x343   : > { %v822_v19 = vpop.xlane.xlu0 %821 }
 0x344   : > { %2019 = vrcp.f32 %v822_v19  ;;  %1019 = vmatpush.msrb.mxu3 %v986_v34 }
 0x34a   : > { %v2020_v17 = vpop.eup %2019 }
 0x34b   : > { %v852_v18 = vmul.f32 %v2020_v17, %v2006_v45  ;;  %v831_v24 = vpop.xlane.xlu0 %830 }
 0x34d   : > { %1892 = vmatmul.msk.f32.vlgmr.msra.gmra.mxu3 %vm771_vm2, %v852_v18 }
 0x374   : > { %v825_v20 = vpop.xlane.xlu2 %824 }
 0x375   : > { %2021 = vrcp.f32 %v825_v20 }
 0x376   : > { %2023 = vrcp.f32 %v828_v21 }
 0x377   : > { %2025 = vrcp.f32 %v831_v24 }
 0x378   : > { %2027 = vrcp.f32 %v2079_v47 }
 0x37b   : > { %v2022_v22 = vpop.eup %2021 }
 0x37c   : > { %v853_v23 = vmul.f32 %v2022_v22, %v2010_v13  ;;  %v2024_v25 = vpop.eup %2023 }
 0x37d   : > { %v854_v26 = vmul.f32 %v2024_v25, %v2328_v40  ;;  %v2026_v27 = vpop.eup %2025 }
 0x37e   : > { %1893 = vmatmul.msk.f32.gmra.mxu3 %vm771_vm2, %v853_v23  ;;  %v855_v28 = vmul.f32 %v2026_v27, %v2337_v48  ;;  %v1149_v27 = vld [vmem:[%s2704_s7 + $0x8] sm:$0xff] }
 0x37f   : > { %1180 = vmatpush.msrb.mxu1 %v1149_v27 }
 0x386   : > { %1894 = vmatmul.msk.f32.gmra.mxu3 %vm771_vm2, %v854_v26 }
 0x38e   : > { %1895 = vmatmul.msk.f32.gmra.mxu3 %vm771_vm2, %v855_v28  ;;  %v1148_v28 = vld [vmem:[%s2704_s7] sm:$0xff] }
 0x38f   : > { %1181 = vmatpush.msrb.mxu1 %v1148_v28 }
 0x39b   : > { %v954_v29 = vpop.f32.mrf.mxu0 }
 0x39c   : > { %970 = vrot.lane.b32.xlu1 %v954_v29, %s2078_s26 }
 0x3a3   : > { %v957_v30 = vpop.f32.mrf.mxu0 }
 0x3a4   : > { %972 = vrot.lane.b32.xlu0 %v957_v30, %s2078_s26 }
 0x3b2   : > { %v960_v32 = vpop.f32.mrf.mxu0 }
 0x3b3   : > { %974 = vrot.lane.b32.xlu0 %v960_v32, %s2078_s26 }
 0x3ba   : > { %v963_v33 = vpop.f32.mrf.mxu0 }
 0x3bb   : > { %976 = vrot.lane.b32.xlu1 %v963_v33, %s2078_s26 }
 0x3d0   : > { %v901_v35 = vpop.f32.mrf.mxu3 }
 0x401   : > { %v904_v36 = vpop.f32.mrf.mxu3 }
 0x409   : > { %v907_v39 = vpop.f32.mrf.mxu3 }
 0x40e   : > { %v971_v15 = vpop.permute.xlu1 %970 }
 0x40f   : > { %v982_v16 = vsel %vm664_vm1, %v901_v35, %v971_v15 }
 0x410   : > { %1900 = vmatmul.msk.f32.vlgmr.msrb.gmra.mxu3 %vm586_vm0, %v982_v16 }
 0x411   : > { %v910_v43 = vpop.f32.mrf.mxu3 }
 0x416   : > { %v973_v37 = vpop.permute.xlu0 %972 }
 0x417   : > { %v983_v38 = vsel %vm664_vm1, %v904_v36, %v973_v37 }
 0x418   : > { %1901 = vmatmul.msk.f32.gmra.mxu3 %vm586_vm0, %v983_v38 }
 0x425   : > { %v975_v40 = vpop.permute.xlu0 %974 }
 0x426   : > { %v984_v42 = vsel %vm664_vm1, %v907_v39, %v975_v40 }
 0x427   : > { %1902 = vmatmul.msk.f32.gmra.mxu3 %vm586_vm0, %v984_v42  ;;  %v1986_v42 = vld [vmem:[%s2702_s5] ss:$0 sm:$0xff] }
 0x42d   : > { %v977_v44 = vpop.permute.xlu1 %976 }
 0x42e   : > { %v985_v45 = vsel %vm664_vm1, %v910_v43, %v977_v44 }
 0x42f   : > { %1903 = vmatmul.msk.f32.gmra.mxu3 %vm586_vm0, %v985_v45 }
 0x493   : > { %v1021_v46 = vpop.f32.mrf.mxu3 }
 0x494   : > { %v1022_v48 = vadd.f32 %v1985_v41, %v1021_v46  ;;  %v1987_v46 = vld [vmem:[%s2703_s6] ss:$0 sm:$0xff] }
 0x496   : > { %v1033_v49 = vadd.f32 %v1022_v48, %v2203_v2 }
 0x498   : > { %v1039_v50 = vsel %vm586_vm0, %v1033_v49, 0.0 }
 0x499   : > { %1040 = vadd.xlane.f32.xlu2 %v1039_v50 }
 0x49b   : > { %v1024_v51 = vpop.f32.mrf.mxu3 }
 0x49c   : > { %v1025_v52 = vadd.f32 %v1985_v41, %v1024_v51 }
 0x49e   : > { %v1034_v13 = vadd.f32 %v1025_v52, %v2207_v3  ;;  %v2028_v3 = vpop.eup %2027 }
 0x49f   : > { %v1052_v58 = vmul.f32 16.0, %v2028_v3  ;;  %vm1056_vm3 = vweird.f32 %v2028_v3 }
 0x4a0   : > { %v1042_v14 = vsel %vm586_vm0, %v1034_v13, 0.0 }
 0x4a1   : > { %1043 = vadd.xlane.f32.xlu0 %v1042_v14  ;;  %v1053_v59 = vsub.f32 1.0, %v1052_v58 }
 0x4a3   : > { %v1054_v60 = vmul.f32 %v2028_v3, %v1053_v59 }
 0x4a5   : > { %v1055_v61 = vadd.f32 %v2028_v3, %v1054_v60 }
 0x4a7   : > { %v2383_v62 = vsel %vm1056_vm3, %v2028_v3, %v1055_v61 }
 0x4aa   : > { %v1027_v53 = vpop.f32.mrf.mxu3 }
 0x4ab   : > { %v1028_v54 = vadd.f32 %v1985_v41, %v1027_v53 }
 0x4ad   : > { %v1035_v55 = vadd.f32 %v1028_v54, %v2211_v4 }
 0x4af   : > { %v1045_v56 = vsel %vm586_vm0, %v1035_v55, 0.0 }
 0x4b0   : > { %1046 = vadd.xlane.f32.xlu1 %v1045_v56 }
 0x4b2   : > { %v1030_v9 = vpop.f32.mrf.mxu3 }
 0x4b3   : > { %v1031_v11 = vadd.f32 %v1985_v41, %v1030_v9 }
 0x4b5   : > { %v1036_v2 = vadd.f32 %v1031_v11, %v2215_v5 }
 0x4b7   : > { %v1048_v57 = vsel %vm586_vm0, %v1036_v2, 0.0 }
 0x4b8   : > { %1049 = vadd.xlane.f32.xlu2 %v1048_v57 }
 0x50c   : > { %v1041_v4 = vpop.xlane.xlu2 %1040 }
 0x50d   : > { %v1058_v63 = vmul.f32 %v2383_v62, %v1041_v4 }
 0x50f   : > { %v1062_v0 = vsub.f32 %v1033_v49, %v1058_v63 }
 0x511   : > { %v1066_v1 = vmul.f32 %v1062_v0, %v1062_v0 }
 0x513   : > { %v1070_v5 = vsel %vm586_vm0, %v1066_v1, 0.0 }
 0x514   : > { %v1044_v6 = vpop.xlane.xlu0 %1043  ;;  %1071 = vadd.xlane.f32.xlu2 %v1070_v5 }
 0x515   : > { %v1059_v7 = vmul.f32 %v2383_v62, %v1044_v6 }
 0x517   : > { %v1063_v8 = vsub.f32 %v1034_v13, %v1059_v7 }
 0x519   : > { %v1067_v10 = vmul.f32 %v1063_v8, %v1063_v8 }
 0x51b   : > { %v1073_v12 = vsel %vm586_vm0, %v1067_v10, 0.0 }
 0x51c   : > { %1074 = vadd.xlane.f32.xlu2 %v1073_v12 }
 0x523   : > { %v1047_v19 = vpop.xlane.xlu1 %1046 }
 0x524   : > { %v1060_v17 = vmul.f32 %v2383_v62, %v1047_v19 }
 0x526   : > { %v2390_v18 = vsub.f32 %v1035_v55, %v1060_v17 }
 0x528   : > { %v1068_v20 = vmul.f32 %v2390_v18, %v2390_v18 }
 0x52a   : > { %v1076_v21 = vsel %vm586_vm0, %v1068_v20, 0.0 }
 0x52b   : > { %v1050_v22 = vpop.xlane.xlu2 %1049  ;;  %1077 = vadd.xlane.f32.xlu2 %v1076_v21 }
 0x52c   : > { %v1061_v23 = vmul.f32 %v2383_v62, %v1050_v22 }
 0x52e   : > { %v2396_v24 = vsub.f32 %v1036_v2, %v1061_v23 }
 0x530   : > { %v1069_v25 = vmul.f32 %v2396_v24, %v2396_v24 }
 0x532   : > { %v1079_v26 = vsel %vm586_vm0, %v1069_v25, 0.0 }
 0x533   : > { %1080 = vadd.xlane.f32.xlu2 %v1079_v26 }
 0x587   : > { %v1072_v29 = vpop.xlane.xlu2 %1071 }
 0x588   : > { %v1082_v30 = vmul.f32 %v1072_v29, %v2383_v62  ;;  %v1362_v29 = vld [vmem:[%s2706_s9 + $0x38] sm:$0xff] }
 0x589   : > { %1388 = vmatpush.msrb.mxu2 %v1362_v29 }
 0x58a   : > { %v1086_v31 = vadd.f32 1e-06, %v1082_v30 }
 0x58c   : > { %2029 = vrsqrt.f32 %v1086_v31  ;;  %vm1096_vm5 = vweird.f32 %v1086_v31 }
 0x58f   : > { %v1075_v32 = vpop.xlane.xlu2 %1074 }
 0x590   : > { %v1083_v33 = vmul.f32 %v1075_v32, %v2383_v62 }
 0x592   : > { %v2030_v34 = vpop.eup %2029  ;;  %v1087_v35 = vadd.f32 1e-06, %v1083_v33  ;;  %v1360_v33 = vld [vmem:[%s2706_s9 + $0x28] sm:$0xff] }
 0x593   : > { %v1091_v15 = vmul.f32 %v2030_v34, %v1086_v31  ;;  %vm1097_vm4 = vweird.f32 %v2030_v34  ;;  %v1361_v31 = vld [vmem:[%s2706_s9 + $0x30] sm:$0xff] }
 0x594   : > { %2031 = vrsqrt.f32 %v1087_v35  ;;  %vm1098_vm6 = vmor %vm1096_vm5, %vm1097_vm4  ;;  %vm1106_vm8 = vweird.f32 %v1087_v35  ;;  %1389 = vmatpush.msrb.mxu2 %v1361_v31 }
 0x595   : > { %v1092_v16 = vmul.f32 %v2030_v34, %v1091_v15 }
 0x596   : > { %1390 = vmatpush.msrb.mxu2 %v1360_v33 }
 0x597   : > { %v1093_v36 = vmul.f32 0.5, %v1092_v16 }
 0x599   : > { %v1094_v37 = vsub.f32 1.5, %v1093_v36 }
 0x59a   : > { %v2032_v38 = vpop.eup %2031 }
 0x59b   : > { %v1095_v39 = vmul.f32 %v2030_v34, %v1094_v37  ;;  %v1101_v40 = vmul.f32 %v2032_v38, %v1087_v35  ;;  %vm1107_vm7 = vweird.f32 %v2032_v38  ;;  %v1359_v35 = vld [vmem:[%s2706_s9 + $0x20] sm:$0xff]  ;;  %v1358_v37 = vld [vmem:[%s2706_s9 + $0x18] sm:$0xff] }
 0x59c   : > { %vm1108_vm9 = vmor %vm1106_vm8, %vm1107_vm7  ;;  %1391 = vmatpush.msrb.mxu2 %v1359_v35 }
 0x59d   : > { %v1099_v43 = vsel %vm1098_vm6, %v2030_v34, %v1095_v39  ;;  %v1102_v44 = vmul.f32 %v2032_v38, %v1101_v40  ;;  %v1357_v39 = vld [vmem:[%s2706_s9 + $0x10] sm:$0xff] }
 0x59e   : > { %v1130_v45 = vmul.f32 %v1099_v43, %v1062_v0  ;;  %v1078_v41 = vpop.xlane.xlu2 %1077  ;;  %1392 = vmatpush.msrb.mxu2 %v1358_v37 }
 0x59f   : > { %v1103_v48 = vmul.f32 0.5, %v1102_v44  ;;  %v1084_v49 = vmul.f32 %v1078_v41, %v2383_v62  ;;  %v1356_v44 = vld [vmem:[%s2706_s9 + $0x8] sm:$0xff] }
 0x5a0   : > { %v1137_v50 = vmul.f32 %v1986_v42, %v1130_v45  ;;  %1393 = vmatpush.msrb.mxu2 %v1357_v39  ;;  %v1355_v45 = vld [vmem:[%s2706_s9] sm:$0xff] }
 0x5a1   : > { %v1104_v51 = vsub.f32 1.5, %v1103_v48  ;;  %v1088_v52 = vadd.f32 1e-06, %v1084_v49 }
 0x5a2   : > { %v2416_v13 = vadd.f32 %v1987_v46, %v1137_v50  ;;  %1394 = vmatpush.msrb.mxu2 %v1356_v44 }
 0x5a3   : > { %v1105_v14 = vmul.f32 %v2032_v38, %v1104_v51  ;;  %2033 = vrsqrt.f32 %v1088_v52  ;;  %vm1116_vm11 = vweird.f32 %v1088_v52 }
 0x5a4   : > { %1904 = vmatmul.msk.f32.vlgmr.msrb.gmra.mxu1 %vm586_vm0, %v2416_v13  ;;  %1395 = vmatpush.msrb.mxu2 %v1355_v45 }
 0x5a5   : > { %v1109_v53 = vsel %vm1108_vm9, %v2032_v38, %v1105_v14 }
 0x5a6   : > { %v1081_v54 = vpop.xlane.xlu2 %1080  ;;  %v1131_v55 = vmul.f32 %v1109_v53, %v1063_v8 }
 0x5a7   : > { %v1085_v56 = vmul.f32 %v1081_v54, %v2383_v62 }
 0x5a8   : > { %v1138_v9 = vmul.f32 %v1986_v42, %v1131_v55 }
 0x5a9   : > { %v2034_v11 = vpop.eup %2033  ;;  %v1089_v2 = vadd.f32 1e-06, %v1085_v56 }
 0x5aa   : > { %v1111_v57 = vmul.f32 %v2034_v11, %v1088_v52  ;;  %v2421_v47 = vadd.f32 %v1987_v46, %v1138_v9  ;;  %vm1117_vm10 = vweird.f32 %v2034_v11 }
 0x5ab   : > { %2035 = vrsqrt.f32 %v1089_v2  ;;  %vm1118_vm12 = vmor %vm1116_vm11, %vm1117_vm10  ;;  %vm1126_vm14 = vweird.f32 %v1089_v2 }
 0x5ac   : > { %v1112_v3 = vmul.f32 %v2034_v11, %v1111_v57  ;;  %1905 = vmatmul.msk.f32.gmra.mxu1 %vm586_vm0, %v2421_v47 }
 0x5ae   : > { %v1113_v58 = vmul.f32 0.5, %v1112_v3 }
 0x5b0   : > { %v1114_v59 = vsub.f32 1.5, %v1113_v58 }
 0x5b1   : > { %v2036_v60 = vpop.eup %2035 }
 0x5b2   : > { %v1115_v61 = vmul.f32 %v2034_v11, %v1114_v59  ;;  %v1121_v4 = vmul.f32 %v2036_v60, %v1089_v2  ;;  %vm1127_vm13 = vweird.f32 %v2036_v60 }
 0x5b3   : > { %vm1128_vm15 = vmor %vm1126_vm14, %vm1127_vm13 }
 0x5b4   : > { %v1119_v63 = vsel %vm1118_vm12, %v2034_v11, %v1115_v61  ;;  %v1122_v0 = vmul.f32 %v2036_v60, %v1121_v4 }
 0x5b5   : > { %v1132_v1 = vmul.f32 %v1119_v63, %v2390_v18  ;;  %v2438_v18 = vld [vmem:[%s2705_s8] ss:$0 sm:$0xff] }
 0x5b6   : > { %v1123_v5 = vmul.f32 0.5, %v1122_v0 }
 0x5b7   : > { %v1139_v6 = vmul.f32 %v1986_v42, %v1132_v1 }
 0x5b8   : > { %v1124_v7 = vsub.f32 1.5, %v1123_v5 }
 0x5b9   : > { %v2426_v8 = vadd.f32 %v1987_v46, %v1139_v6 }
 0x5ba   : > { %v1125_v10 = vmul.f32 %v2036_v60, %v1124_v7 }
 0x5bb   : > { %1906 = vmatmul.msk.f32.gmra.mxu1 %vm586_vm0, %v2426_v8 }
 0x5bc   : > { %v1129_v12 = vsel %vm1128_vm15, %v2036_v60, %v1125_v10  ;;  %vm1367_vm15 = vcmask 523264  }
 0x5bd   : > { %v1133_v19 = vmul.f32 %v1129_v12, %v2396_v24 }
 0x5bf   : > { %v1140_v17 = vmul.f32 %v1986_v42, %v1133_v19 }
 0x5c1   : > { %v2431_v20 = vadd.f32 %v1987_v46, %v1140_v17 }
 0x5c3   : > { %1907 = vmatmul.msk.f32.gmra.mxu1 %vm586_vm0, %v2431_v20 }
 0x621   : > { %v1183_v21 = vpop.f32.mrf.mxu1 }
 0x622   : > { %v2441_v22 = vadd.f32 %v2438_v18, %v1183_v21 }
 0x624   : > { %v2444_v23 = vmul.f32 0.70710677, %v2441_v22 }
 0x626   : > { %v1211_v24 = vand.u32 2147483647, %v2444_v23  ;;  %vm1203_vm10 = vcmp.lt.f32.partialorder %v2444_v23, 0.0 }
 0x628   : > { %v1215_v25 = vmul.f32 0.3275911, %v1211_v24  ;;  %v1319_v53 = vsub.f32 0.0, %v1211_v24 }
 0x629   : > { %v1186_v26 = vpop.f32.mrf.mxu1 }
 0x62a   : > { %v1219_v27 = vadd.f32 1.0, %v1215_v25  ;;  %v2448_v28 = vadd.f32 %v2438_v18, %v1186_v26  ;;  %v1323_v3 = vmul.f32 %v1319_v53, %v1211_v24 }
 0x62c   : > { %2037 = vrcp.f32 %v1219_v27  ;;  %v2454_v30 = vmul.f32 0.70710677, %v2448_v28  ;;  %v1234_v40 = vand.u32 2147483648, %v1219_v27  ;;  %v1232_v43 = vand.u32 2147483647, %v1219_v27 }
 0x62d   : > { %vm1228_vm3 = vweird.f32 %v1219_v27  ;;  %v1327_v6 = vmul.f32 1.442695, %v1323_v3 }
 0x62e   : > { %v2460_v32 = vand.u32 2147483647, %v2454_v30  ;;  %v1235_v49 = vor.u32 1.1754944e-38, %v1234_v40  ;;  %vm1233_vm5 = vcmp.eq.f32.partialorder %v1232_v43, 8.507059e+37 }
 0x630   : > { %v1216_v34 = vmul.f32 0.3275911, %v2460_v32  ;;  %v1320_v17 = vsub.f32 0.0, %v2460_v32 }
 0x632   : > { %v2038_v15 = vpop.eup %2037  ;;  %v1220_v36 = vadd.f32 1.0, %v1216_v34  ;;  %v1324_v31 = vmul.f32 %v1320_v17, %v2460_v32 }
 0x633   : > { %v1224_v16 = vmul.f32 %v2038_v15, %v1219_v27  ;;  %vm1229_vm1 = vweird.f32 %v2038_v15 }
 0x634   : > { %2039 = vrcp.f32 %v1220_v36  ;;  %vm1230_vm4 = vmor %vm1228_vm3, %vm1229_vm1  ;;  %v1249_v2 = vand.u32 2147483648, %v1220_v36  ;;  %v1247_v60 = vand.u32 2147483647, %v1220_v36  ;;  %vm1243_vm7 = vweird.f32 %v1220_v36 }
 0x635   : > { %v1225_v38 = vsub.f32 1.0, %v1224_v16  ;;  %v1329_v40 = vmul.f32 1.442695, %v1324_v31  ;;  %vm1204_vm3 = vcmp.lt.f32.partialorder %v2454_v30, 0.0 }
 0x636   : > { %v1250_v5 = vor.u32 1.1754944e-38, %v1249_v2  ;;  %vm1248_vm9 = vcmp.eq.f32.partialorder %v1247_v60, 8.507059e+37  ;;  %v1195_v2 = vmul.f32 0.5, %v2441_v22 }
 0x637   : > { %v1226_v42 = vmul.f32 %v2038_v15, %v1225_v38 }
 0x638   : > { %v1189_v41 = vpop.f32.mrf.mxu1 }
 0x639   : > { %v1227_v46 = vadd.f32 %v2038_v15, %v1226_v42  ;;  %v2482_v48 = vadd.f32 %v2438_v18, %v1189_v41  ;;  %v2080_v41 = vmov 1.0  }
 0x63a   : > { %v2040_v50 = vpop.eup %2039 }
 0x63b   : > { %v1231_v51 = vsel %vm1230_vm4, %v2038_v15, %v1227_v46  ;;  %v2485_v52 = vmul.f32 0.70710677, %v2482_v48  ;;  %v1239_v54 = vmul.f32 %v2040_v50, %v1220_v36  ;;  %vm1244_vm6 = vweird.f32 %v2040_v50 }
 0x63c   : > { %v1236_v14 = vsel %vm1233_vm5, %v1235_v49, %v1231_v51  ;;  %vm1245_vm8 = vmor %vm1243_vm7, %vm1244_vm6  ;;  %v1207_v46 = vsel %vm1203_vm10, -1.0, %v2080_v41 }
 0x63d   : > { %v1283_v55 = vmul.f32 1.0614054, %v1236_v14  ;;  %v2488_v56 = vand.u32 2147483647, %v2485_v52  ;;  %v1240_v9 = vsub.f32 1.0, %v1239_v54  ;;  %vm1205_vm7 = vcmp.lt.f32.partialorder %v2485_v52, 0.0 }
 0x63f   : > { %v1287_v11 = vadd.f32 -1.4531521, %v1283_v55  ;;  %v1217_v57 = vmul.f32 0.3275911, %v2488_v56  ;;  %v1241_v58 = vmul.f32 %v2040_v50, %v1240_v9 }
 0x640   : > { %v1192_v59 = vpop.f32.mrf.mxu1 }
 0x641   : > { %v1291_v61 = vmul.f32 %v1287_v11, %v1236_v14  ;;  %v1221_v4 = vadd.f32 1.0, %v1217_v57  ;;  %v2492_v63 = vadd.f32 %v2438_v18, %v1192_v59  ;;  %v1242_v0 = vadd.f32 %v2040_v50, %v1241_v58 }
 0x643   : > { %v1295_v1 = vadd.f32 1.4214138, %v1291_v61  ;;  %2041 = vrcp.f32 %v1221_v4  ;;  %v2495_v7 = vmul.f32 0.70710677, %v2492_v63  ;;  %v1246_v10 = vsel %vm1245_vm8, %v2040_v50, %v1242_v0 }
 0x644   : > { %v1251_v19 = vsel %vm1248_vm9, %v1250_v5, %v1246_v10  ;;  %2043 = vpow2.f32 %v1327_v6  ;;  %v1264_v37 = vand.u32 2147483648, %v1221_v4  ;;  %v1262_v43 = vand.u32 2147483647, %v1221_v4 }
 0x645   : > { %v1299_v12 = vmul.f32 %v1295_v1, %v1236_v14  ;;  %v2499_v21 = vand.u32 2147483647, %v2495_v7  ;;  %v1284_v18 = vmul.f32 1.0614054, %v1251_v19  ;;  %vm1258_vm12 = vweird.f32 %v1221_v4 }
 0x646   : > { %v1265_v51 = vor.u32 1.1754944e-38, %v1264_v37  ;;  %vm1263_vm14 = vcmp.eq.f32.partialorder %v1262_v43, 8.507059e+37  ;;  %vm1206_vm8 = vcmp.lt.f32.partialorder %v2495_v7, 0.0 }
 0x647   : > { %v1303_v24 = vadd.f32 -0.28449672, %v1299_v12  ;;  %v1218_v25 = vmul.f32 0.3275911, %v2499_v21  ;;  %v1288_v26 = vadd.f32 -1.4531521, %v1284_v18 }
 0x649   : > { %v2042_v27 = vpop.eup %2041  ;;  %v1307_v29 = vmul.f32 %v1303_v24, %v1236_v14  ;;  %v1222_v34 = vadd.f32 1.0, %v1218_v25  ;;  %v1292_v35 = vmul.f32 %v1288_v26, %v1251_v19 }
 0x64a   : > { %v1254_v33 = vmul.f32 %v2042_v27, %v1221_v4  ;;  %v2044_v39 = vpop.eup %2043  ;;  %vm1259_vm11 = vweird.f32 %v2042_v27 }
 0x64b   : > { %v1311_v15 = vadd.f32 0.2548296, %v1307_v29  ;;  %2045 = vrcp.f32 %v1222_v34  ;;  %v1296_v38 = vadd.f32 1.4214138, %v1292_v35  ;;  %vm1260_vm13 = vmor %vm1258_vm12, %vm1259_vm11  ;;  %v1279_v61 = vand.u32 2147483648, %v1222_v34 }
 0x64c   : > { %v1255_v16 = vsub.f32 1.0, %v1254_v33  ;;  %2047 = vpow2.f32 %v1329_v40  ;;  %v1277_v0 = vand.u32 2147483647, %v1222_v34  ;;  %vm1273_vm4 = vweird.f32 %v1222_v34 }
 0x64d   : > { %v1315_v36 = vmul.f32 %v1311_v15, %v1236_v14  ;;  %v1300_v45 = vmul.f32 %v1296_v38, %v1251_v19  ;;  %v1321_v14 = vsub.f32 0.0, %v2488_v56  ;;  %v1280_v24 = vor.u32 1.1754944e-38, %v1279_v61 }
 0x64e   : > { %v1256_v42 = vmul.f32 %v2042_v27, %v1255_v16  ;;  %vm1278_vm6 = vcmp.eq.f32.partialorder %v1277_v0, 8.507059e+37  ;;  %v1196_v35 = vmul.f32 0.5, %v2448_v28 }
 0x64f   : > { %v1335_v44 = vmul.f32 %v2044_v39, %v1315_v36  ;;  %v1304_v50 = vadd.f32 -0.28449672, %v1300_v45  ;;  %v1325_v60 = vmul.f32 %v1321_v14, %v2488_v56  ;;  %v1197_v14 = vmul.f32 0.5, %v2482_v48  ;;  %v1989_v48 = vld [vmem:[%s2707_s10] ss:$0 sm:$0xff] }
 0x650   : > { %v1257_v32 = vadd.f32 %v2042_v27, %v1256_v42 }
 0x651   : > { %v1339_v49 = vsub.f32 1.0, %v1335_v44  ;;  %v2046_v23 = vpop.eup %2045  ;;  %v1308_v9 = vmul.f32 %v1304_v50, %v1251_v19  ;;  %v1331_v56 = vmul.f32 1.442695, %v1325_v60  ;;  %v1209_v50 = vsel %vm1205_vm7, -1.0, %v2080_v41 }
 0x652   : > { %v1261_v53 = vsel %vm1260_vm13, %v2042_v27, %v1257_v32  ;;  %v1269_v55 = vmul.f32 %v2046_v23, %v1222_v34  ;;  %vm1274_vm1 = vweird.f32 %v2046_v23  ;;  %v2048_v10 = vpop.eup %2047  ;;  %v1208_v27 = vsel %vm1204_vm3, -1.0, %v2080_v41 }
 0x653   : > { %v1343_v54 = vmul.f32 %v1339_v49, %v1207_v46  ;;  %v1266_v11 = vsel %vm1263_vm14, %v1265_v51, %v1261_v53  ;;  %v1312_v59 = vadd.f32 0.2548296, %v1308_v9  ;;  %vm1275_vm5 = vmor %vm1273_vm4, %vm1274_vm1  ;;  %2049 = vpow2.f32 %v1331_v56 }
 0x654   : > { %v1285_v57 = vmul.f32 1.0614054, %v1266_v11  ;;  %v1270_v58 = vsub.f32 1.0, %v1269_v55  ;;  %vm1539_vm1 = vcmask 1040384  }
 0x655   : > { %v1347_v3 = vadd.f32 1.0, %v1343_v54  ;;  %v1316_v6 = vmul.f32 %v1312_v59, %v1251_v19  ;;  %v1322_v19 = vsub.f32 0.0, %v2499_v21 }
 0x656   : > { %v1289_v4 = vadd.f32 -1.4531521, %v1285_v57  ;;  %v1271_v5 = vmul.f32 %v2046_v23, %v1270_v58 }
 0x657   : > { %v1351_v1 = vmul.f32 %v1347_v3, %v1195_v2  ;;  %v1336_v22 = vmul.f32 %v2048_v10, %v1316_v6  ;;  %v1326_v36 = vmul.f32 %v1322_v19, %v2499_v21  ;;  %v1210_v2 = vsel %vm1206_vm8, -1.0, %v2080_v41 }
 0x658   : > { %v1293_v12 = vmul.f32 %v1289_v4, %v1266_v11  ;;  %v1272_v17 = vadd.f32 %v2046_v23, %v1271_v5  ;;  %v1198_v3 = vmul.f32 0.5, %v2492_v63 }
 0x659   : > { %1908 = vmatmul.msk.f32.vlgmr.msrb.gmra.mxu2 %vm1367_vm15, %v1351_v1  ;;  %v1340_v25 = vsub.f32 1.0, %v1336_v22  ;;  %v1333_v43 = vmul.f32 1.442695, %v1326_v36  ;;  %v2050_v45 = vpop.eup %2049 }
 0x65a   : > { %v1297_v18 = vadd.f32 1.4214138, %v1293_v12  ;;  %v1276_v26 = vsel %vm1275_vm5, %v2046_v23, %v1272_v17  ;;  %vm1554_vm5 = vcmask 1045504  }
 0x65b   : > { %v1281_v31 = vsel %vm1278_vm6, %v1280_v24, %v1276_v26  ;;  %v1344_v33 = vmul.f32 %v1340_v25, %v1208_v27  ;;  %2051 = vpow2.f32 %v1333_v43  ;;  %v2554_v43 = vld [vmem:[%s2711_s14 + $0x88] sm:$0xff]  ;;  %vm1548_vm6 = vcmask 1046528  }
 0x65c   : > { %v1301_v29 = vmul.f32 %v1297_v18, %v1266_v11  ;;  %v1286_v30 = vmul.f32 1.0614054, %v1281_v31  ;;  %1641 = vmatpush.msra.mxu3 %v2554_v43 }
 0x65d   : > { %v1348_v15 = vadd.f32 1.0, %v1344_v33 }
 0x65e   : > { %v1305_v34 = vadd.f32 -0.28449672, %v1301_v29  ;;  %v1290_v16 = vadd.f32 -1.4531521, %v1286_v30 }
 0x65f   : > { %v1352_v38 = vmul.f32 %v1348_v15, %v1196_v35 }
 0x660   : > { %v1309_v37 = vmul.f32 %v1305_v34, %v1266_v11  ;;  %v1294_v39 = vmul.f32 %v1290_v16, %v1281_v31 }
 0x661   : > { %1909 = vmatmul.msk.f32.gmra.mxu2 %vm1367_vm15, %v1352_v38  ;;  %v2052_v55 = vpop.eup %2051 }
 0x662   : > { %v1313_v40 = vadd.f32 0.2548296, %v1309_v37  ;;  %v1298_v42 = vadd.f32 1.4214138, %v1294_v39 }
 0x664   : > { %v1317_v44 = vmul.f32 %v1313_v40, %v1266_v11  ;;  %v1302_v32 = vmul.f32 %v1298_v42, %v1281_v31 }
 0x666   : > { %v1337_v46 = vmul.f32 %v2050_v45, %v1317_v44  ;;  %v1306_v28 = vadd.f32 -0.28449672, %v1302_v32 }
 0x668   : > { %v1341_v49 = vsub.f32 1.0, %v1337_v46  ;;  %v1310_v21 = vmul.f32 %v1306_v28, %v1281_v31  ;;  %v2561_v46 = vld [vmem:[%s2711_s14 + $0x80] sm:$0xff] }
 0x669   : > { %1642 = vmatpush.msra.mxu3 %v2561_v46 }
 0x66a   : > { %v1345_v51 = vmul.f32 %v1341_v49, %v1209_v50  ;;  %v1314_v23 = vadd.f32 0.2548296, %v1310_v21 }
 0x66c   : > { %v1349_v53 = vadd.f32 1.0, %v1345_v51  ;;  %v1318_v54 = vmul.f32 %v1314_v23, %v1281_v31 }
 0x66e   : > { %v1353_v9 = vmul.f32 %v1349_v53, %v1197_v14  ;;  %v1338_v11 = vmul.f32 %v2052_v55, %v1318_v54 }
 0x670   : > { %1910 = vmatmul.msk.f32.gmra.mxu2 %vm1367_vm15, %v1353_v9  ;;  %v1342_v52 = vsub.f32 1.0, %v1338_v11 }
 0x672   : > { %v1346_v57 = vmul.f32 %v1342_v52, %v1210_v2 }
 0x674   : > { %v1350_v58 = vadd.f32 1.0, %v1346_v57 }
 0x676   : > { %v1354_v59 = vmul.f32 %v1350_v58, %v1198_v3 }
 0x678   : > { %1911 = vmatmul.msk.f32.gmra.mxu2 %vm1367_vm15, %v1354_v59  ;;  %v2568_v59 = vld [vmem:[%s2708_s11] ss:$0 sm:$0xff] }
 0x6dc   : > { %v1397_v60 = vpop.f32.mrf.mxu2 }
 0x6dd   : > { %v1398_v61 = vadd.f32 %v1989_v48, %v1397_v60 }
 0x6df   : > { %v1409_v7 = vadd.f32 %v1398_v61, %v2416_v13 }
 0x6e1   : > { %v1415_v4 = vsel %vm586_vm0, %v1409_v7, 0.0 }
 0x6e2   : > { %1416 = vadd.xlane.f32.xlu0 %v1415_v4 }
 0x6e4   : > { %v1400_v0 = vpop.f32.mrf.mxu2 }
 0x6e5   : > { %v1401_v41 = vadd.f32 %v1989_v48, %v1400_v0 }
 0x6e7   : > { %v1410_v1 = vadd.f32 %v1401_v41, %v2421_v47 }
 0x6e9   : > { %v1418_v63 = vsel %vm586_vm0, %v1410_v1, 0.0 }
 0x6ea   : > { %1419 = vadd.xlane.f32.xlu1 %v1418_v63  ;;  %v2575_v63 = vld [vmem:[%s2709_s12] ss:$0 sm:$0xff] }
 0x6f3   : > { %v1403_v5 = vpop.f32.mrf.mxu2 }
 0x6f4   : > { %v1404_v6 = vadd.f32 %v1989_v48, %v1403_v5 }
 0x6f6   : > { %v1411_v10 = vadd.f32 %v1404_v6, %v2426_v8 }
 0x6f8   : > { %v1421_v12 = vsel %vm586_vm0, %v1411_v10, 0.0 }
 0x6f9   : > { %1422 = vadd.xlane.f32.xlu2 %v1421_v12 }
 0x6fb   : > { %v1406_v22 = vpop.f32.mrf.mxu2 }
 0x6fc   : > { %v1407_v17 = vadd.f32 %v1989_v48, %v1406_v22 }
 0x6fe   : > { %v1412_v13 = vadd.f32 %v1407_v17, %v2431_v20 }
 0x700   : > { %v1424_v18 = vsel %vm586_vm0, %v1412_v13, 0.0 }
 0x701   : > { %1425 = vadd.xlane.f32.xlu0 %v1424_v18 }
 0x755   : > { %v1417_v24 = vpop.xlane.xlu0 %1416 }
 0x756   : > { %v1427_v47 = vmul.f32 %v1417_v24, %v2383_v62 }
 0x758   : > { %v1431_v56 = vsub.f32 %v1409_v7, %v1427_v47 }
 0x75a   : > { %v1435_v25 = vmul.f32 %v1431_v56, %v1431_v56 }
 0x75c   : > { %v1439_v26 = vsel %vm586_vm0, %v1435_v25, 0.0 }
 0x75d   : > { %1440 = vadd.xlane.f32.xlu1 %v1439_v26  ;;  %v1420_v27 = vpop.xlane.xlu1 %1419 }
 0x75e   : > { %v1428_v8 = vmul.f32 %v1420_v27, %v2383_v62 }
 0x760   : > { %v1432_v19 = vsub.f32 %v1410_v1, %v1428_v8 }
 0x762   : > { %v1436_v29 = vmul.f32 %v1432_v19, %v1432_v19 }
 0x764   : > { %v1442_v31 = vsel %vm586_vm0, %v1436_v29, 0.0 }
 0x765   : > { %1443 = vadd.xlane.f32.xlu2 %v1442_v31 }
 0x76c   : > { %v1423_v20 = vpop.xlane.xlu2 %1422 }
 0x76d   : > { %v1429_v33 = vmul.f32 %v1423_v20, %v2383_v62 }
 0x76f   : > { %v2539_v30 = vsub.f32 %v1411_v10, %v1429_v33 }
 0x771   : > { %v1437_v34 = vmul.f32 %v2539_v30, %v2539_v30 }
 0x773   : > { %v1445_v35 = vsel %vm586_vm0, %v1437_v34, 0.0 }
 0x774   : > { %1446 = vadd.xlane.f32.xlu0 %v1445_v35  ;;  %v1426_v15 = vpop.xlane.xlu0 %1425 }
 0x775   : > { %v1430_v16 = vmul.f32 %v1426_v15, %v2383_v62 }
 0x777   : > { %v2545_v36 = vsub.f32 %v1412_v13, %v1430_v16 }
 0x779   : > { %v1438_v37 = vmul.f32 %v2545_v36, %v2545_v36 }
 0x77b   : > { %v1448_v38 = vsel %vm586_vm0, %v1438_v37, 0.0 }
 0x77c   : > { %1449 = vadd.xlane.f32.xlu1 %v1448_v38 }
 0x7d0   : > { %v1441_v39 = vpop.xlane.xlu1 %1440 }
 0x7d1   : > { %v1451_v40 = vmul.f32 %v1441_v39, %v2383_v62 }
 0x7d3   : > { %v1455_v42 = vadd.f32 1e-06, %v1451_v40 }
 0x7d5   : > { %2053 = vrsqrt.f32 %v1455_v42  ;;  %vm1465_vm10 = vweird.f32 %v1455_v42 }
 0x7d8   : > { %v1444_v44 = vpop.xlane.xlu2 %1443 }
 0x7d9   : > { %v1452_v32 = vmul.f32 %v1444_v44, %v2383_v62 }
 0x7db   : > { %v2054_v45 = vpop.eup %2053  ;;  %v1456_v49 = vadd.f32 1e-06, %v1452_v32 }
 0x7dc   : > { %v1460_v28 = vmul.f32 %v2054_v45, %v1455_v42  ;;  %vm1466_vm9 = vweird.f32 %v2054_v45 }
 0x7dd   : > { %2055 = vrsqrt.f32 %v1456_v49  ;;  %vm1467_vm11 = vmor %vm1465_vm10, %vm1466_vm9  ;;  %vm1475_vm13 = vweird.f32 %v1456_v49 }
 0x7de   : > { %v1461_v50 = vmul.f32 %v2054_v45, %v1460_v28 }
 0x7e0   : > { %v1462_v21 = vmul.f32 0.5, %v1461_v50 }
 0x7e2   : > { %v1463_v23 = vsub.f32 1.5, %v1462_v21 }
 0x7e3   : > { %v2056_v51 = vpop.eup %2055 }
 0x7e4   : > { %v1470_v14 = vmul.f32 %v2056_v51, %v1456_v49  ;;  %v1464_v9 = vmul.f32 %v2054_v45, %v1463_v23  ;;  %vm1476_vm12 = vweird.f32 %v2056_v51 }
 0x7e5   : > { %vm1477_vm14 = vmor %vm1475_vm13, %vm1476_vm12  ;;  %vm1596_vm12 = vcmask 654336   ;;  %vm1598_vm13 = vcmask 785408  }
 0x7e6   : > { %v1471_v54 = vmul.f32 %v2056_v51, %v1470_v14  ;;  %v1468_v57 = vsel %vm1467_vm11, %v2054_v45, %v1464_v9  ;;  %vm1593_vm11 = vcmask 392192  }
 0x7e7   : > { %v1447_v53 = vpop.xlane.xlu0 %1446  ;;  %v1499_v58 = vmul.f32 %v1468_v57, %v1431_v56 }
 0x7e8   : > { %v1453_v55 = vmul.f32 %v1447_v53, %v2383_v62  ;;  %v1472_v11 = vmul.f32 0.5, %v1471_v54 }
 0x7e9   : > { %v1506_v5 = vmul.f32 %v2568_v59, %v1499_v58 }
 0x7ea   : > { %v1457_v52 = vadd.f32 1e-06, %v1453_v55  ;;  %v1473_v2 = vsub.f32 1.5, %v1472_v11 }
 0x7eb   : > { %v1513_v18 = vadd.f32 %v2575_v63, %v1506_v5 }
 0x7ec   : > { %2057 = vrsqrt.f32 %v1457_v52  ;;  %v1474_v3 = vmul.f32 %v2056_v51, %v1473_v2  ;;  %vm1485_vm4 = vweird.f32 %v1457_v52 }
 0x7ed   : > { %v1537_v16 = vrot.slane %v1513_v18, 7  ;;  %v1527_v18 = vld [vmem:[%s2711_s14 + $0x50] sm:$0xff] }
 0x7ee   : > { %v1478_v48 = vsel %vm1477_vm14, %v2056_v51, %v1474_v3  ;;  %vm1600_vm14 = vcmask 916480  }
 0x7ef   : > { %v1450_v60 = vpop.xlane.xlu1 %1449  ;;  %v1500_v61 = vmul.f32 %v1478_v48, %v1432_v19  ;;  %v1540_v42 = vsel %vm1539_vm1, 0.0, %v1537_v16  ;;  %v1541_v32 = vsel %vm1539_vm1, %v1537_v16, 0.0 }
 0x7f0   : > { %v1454_v7 = vmul.f32 %v1450_v60, %v2383_v62  ;;  %v2081_v62 = vmov 0.0   ;;  %v1571_v50 = vrot.slane %v1540_v42, 2  ;;  %v1572_v21 = vrot.slane %v1541_v32, 2 }
 0x7f1   : > { %v1507_v0 = vmul.f32 %v2568_v59, %v1500_v61  ;;  %v1555_v17 = vrot.slane %v2081_v62, 2  ;;  %v1549_v13 = vrot.slane %v2081_v62, 1  ;;  %v1566_v53 = vrot.slane %v1541_v32, 1  ;;  %v1530_v62 = vld [vmem:[%s2711_s14 + $0x68] sm:$0xff] }
 0x7f2   : > { %v2058_v4 = vpop.eup %2057  ;;  %v1458_v1 = vadd.f32 1e-06, %v1454_v7  ;;  %v1573_v57 = vsel %vm1554_vm5, %v1571_v50, %v1572_v21 }
 0x7f3   : > { %v1480_v41 = vmul.f32 %v2058_v4, %v1457_v52  ;;  %v1514_v10 = vadd.f32 %v2575_v63, %v1507_v0  ;;  %vm1486_vm3 = vweird.f32 %v2058_v4 }
 0x7f4   : > { %2059 = vrsqrt.f32 %v1458_v1  ;;  %vm1487_vm7 = vmor %vm1485_vm4, %vm1486_vm3  ;;  %vm1495_vm9 = vweird.f32 %v1458_v1 }
 0x7f5   : > { %v1481_v6 = vmul.f32 %v2058_v4, %v1480_v41  ;;  %v1543_v22 = vrot.slane %v1514_v10, 7 }
 0x7f7   : > { %v1482_v12 = vmul.f32 0.5, %v1481_v6  ;;  %v2581_v47 = vsel %vm1539_vm1, 0.0, %v1543_v22  ;;  %v1546_v56 = vsel %vm1539_vm1, %v1543_v22, 0.0  ;;  %v1531_v22 = vld [vmem:[%s2711_s14 + $0x70] sm:$0xff] }
 0x7f8   : > { %v1588_v25 = vrot.slane %v2581_v47, 2  ;;  %v1589_v26 = vrot.slane %v1546_v56, 2  ;;  %v1582_v27 = vrot.slane %v2581_v47, 1  ;;  %v1583_v8 = vrot.slane %v1546_v56, 1  ;;  %v1525_v56 = vld [vmem:[%s2711_s14 + $0x40] sm:$0xff] }
 0x7f9   : > { %v1483_v24 = vsub.f32 1.5, %v1482_v12  ;;  %v1532_v12 = vld [vmem:[%s2711_s14 + $0x78] sm:$0xff] }
 0x7fa   : > { %v2060_v19 = vpop.eup %2059  ;;  %v1590_v20 = vsel %vm1554_vm5, %v1588_v25, %v1589_v26  ;;  %v1584_v33 = vsel %vm1548_vm6, %v1582_v27, %v1583_v8  ;;  %1607 = vmatpush.msra.mxu0 %v1532_v12  ;;  %1703 = vmatpush.msra.mxu1 %v1532_v12  ;;  %v1524_v25 = vld [vmem:[%s2711_s14 + $0x38] sm:$0xff]  ;;  %v1523_v26 = vld [vmem:[%s2711_s14 + $0x30] sm:$0xff]  ;;  %v1522_v27 = vld [vmem:[%s2711_s14 + $0x28] sm:$0xff] }
 0x7fb   : > { %v1484_v29 = vmul.f32 %v2058_v4, %v1483_v24  ;;  %v1490_v31 = vmul.f32 %v2060_v19, %v1458_v1  ;;  %1912 = vmatmul.msk.f32.vlgmr.msra.gmra.mxu3 %vm586_vm0, %v1590_v20  ;;  %v1964_v35 = vpack.i.bf16 %v1590_v20, %v1555_v17  ;;  %v1959_v15 = vpack.i.bf16 %v1584_v33, %v1549_v13  ;;  %v1529_v17 = vld [vmem:[%s2711_s14 + $0x60] sm:$0xff]  ;;  %v1528_v13 = vld [vmem:[%s2711_s14 + $0x58] sm:$0xff]  ;;  %v1526_v24 = vld [vmem:[%s2711_s14 + $0x48] sm:$0xff] }
 0x7fc   : > { %vm1496_vm8 = vweird.f32 %v2060_v19  ;;  %1608 = vmatpush.msra.mxu0 %v1531_v22  ;;  %1704 = vmatpush.msra.mxu1 %v1531_v22  ;;  %v1521_v8 = vld [vmem:[%s2711_s14 + $0x20] sm:$0xff] }
 0x7fd   : > { %v1488_v34 = vsel %vm1487_vm7, %v2058_v4, %v1484_v29  ;;  %v1491_v38 = vmul.f32 %v2060_v19, %v1490_v31  ;;  %1965 = vrot.lane.b32.xlu0 %v1964_v35, %s2082_s1  ;;  %1960 = vrot.lane.b32.xlu2 %v1959_v15, %s2083_s20  ;;  %vm1497_vm10 = vmor %vm1495_vm9, %vm1496_vm8  ;;  %v1519_v29 = vld [vmem:[%s2711_s14 + $0x10] sm:$0xff]  ;;  %v1518_v31 = vld [vmem:[%s2711_s14 + $0x8] sm:$0xff] }
 0x7fe   : > { %v1501_v37 = vmul.f32 %v1488_v34, %v2539_v30  ;;  %v1565_v30 = vrot.slane %v1540_v42, 1  ;;  %1609 = vmatpush.msra.mxu0 %v1530_v62  ;;  %1705 = vmatpush.msra.mxu1 %v1530_v62  ;;  %v1517_v20 = vld [vmem:[%s2711_s14] sm:$0xff] }
 0x7ff   : > { %v1492_v39 = vmul.f32 0.5, %v1491_v38 }
 0x800   : > { %v1508_v40 = vmul.f32 %v2568_v59, %v1501_v37  ;;  %v1567_v48 = vsel %vm1548_vm6, %v1565_v30, %v1566_v53  ;;  %1610 = vmatpush.msra.mxu0 %v1529_v17  ;;  %1706 = vmatpush.msra.mxu1 %v1529_v17 }
 0x801   : > { %v1493_v44 = vsub.f32 1.5, %v1492_v39 }
 0x802   : > { %v1515_v45 = vadd.f32 %v2575_v63, %v1508_v40  ;;  %1611 = vmatpush.msra.mxu0 %v1528_v13  ;;  %1707 = vmatpush.msra.mxu1 %v1528_v13 }
 0x803   : > { %v1494_v28 = vmul.f32 %v2060_v19, %v1493_v44 }
 0x804   : > { %v1648_v49 = vrot.slane %v1515_v45, 7  ;;  %1612 = vmatpush.msra.mxu0 %v1527_v18  ;;  %1708 = vmatpush.msra.mxu1 %v1527_v18 }
 0x805   : > { %v1498_v51 = vsel %vm1497_vm10, %v2060_v19, %v1494_v28  ;;  %v1520_v19 = vld [vmem:[%s2711_s14 + $0x18] sm:$0xff] }
 0x806   : > { %v1650_v23 = vsel %vm1539_vm1, 0.0, %v1648_v49  ;;  %v1651_v14 = vsel %vm1539_vm1, %v1648_v49, 0.0  ;;  %v1502_v2 = vmul.f32 %v1498_v51, %v2545_v36  ;;  %1613 = vmatpush.msra.mxu0 %v1526_v24  ;;  %1709 = vmatpush.msra.mxu1 %v1526_v24 }
 0x807   : > { %v1668_v54 = vrot.slane %v1650_v23, 1  ;;  %v1674_v55 = vrot.slane %v1650_v23, 2  ;;  %v1969_v9 = vpack.i.bf16 %v1650_v23, %v1540_v42  ;;  %v1675_v11 = vrot.slane %v1651_v14, 2 }
 0x808   : > { %v1669_v52 = vrot.slane %v1651_v14, 1  ;;  %v1509_v61 = vmul.f32 %v2568_v59, %v1502_v2  ;;  %1614 = vmatpush.msra.mxu0 %v1525_v56  ;;  %1710 = vmatpush.msra.mxu1 %v1525_v56 }
 0x809   : > { %1970 = vrot.lane.b32.xlu1 %v1969_v9, %s2084_s21  ;;  %v1676_v3 = vsel %vm1554_vm5, %v1674_v55, %v1675_v11 }
 0x80a   : > { %v1979_v58 = vpack.i.bf16 %v1676_v3, %v1573_v57  ;;  %v1670_v60 = vsel %vm1548_vm6, %v1668_v54, %v1669_v52  ;;  %v1516_v4 = vadd.f32 %v2575_v63, %v1509_v61  ;;  %1615 = vmatpush.msra.mxu0 %v1524_v25  ;;  %1711 = vmatpush.msra.mxu1 %v1524_v25 }
 0x80b   : > { %v1974_v7 = vpack.i.bf16 %v1670_v60, %v1567_v48 }
 0x80c   : > { %1980 = vrot.lane.b32.xlu2 %v1979_v58, %s2085_s22  ;;  %v1653_v36 = vrot.slane %v1516_v4, 7  ;;  %1616 = vmatpush.msra.mxu0 %v1523_v26  ;;  %v1992_v58 = vld [vmem:[%s2712_s15] ss:$0 sm:$0xff] }
 0x80d   : > { %1975 = vrot.lane.b32.xlu0 %v1974_v7, %s2086_s2  ;;  %1712 = vmatpush.msra.mxu1 %v1523_v26 }
 0x80e   : > { %v1655_v0 = vsel %vm1539_vm1, 0.0, %v1653_v36  ;;  %v1656_v41 = vsel %vm1539_vm1, %v1653_v36, 0.0  ;;  %1617 = vmatpush.msra.mxu0 %v1522_v27 }
 0x80f   : > { %v1692_v1 = vrot.slane %v1656_v41, 2  ;;  %v1691_v5 = vrot.slane %v1655_v0, 2  ;;  %v1685_v59 = vrot.slane %v1655_v0, 1  ;;  %v1686_v10 = vrot.slane %v1656_v41, 1  ;;  %1713 = vmatpush.msra.mxu1 %v1522_v27 }
 0x810   : > { %1618 = vmatpush.msra.mxu0 %v1521_v8 }
 0x811   : > { %1578 = vrot.lane.b32.xlu1 %v2581_v47, %s2077_s25  ;;  %v2608_v6 = vsel %vm1554_vm5, %v1691_v5, %v1692_v1  ;;  %v1687_v63 = vsel %vm1548_vm6, %v1685_v59, %v1686_v10  ;;  %1714 = vmatpush.msra.mxu1 %v1521_v8  ;;  %v2087_v59 = vmov 32.0  }
 0x812   : > { %1619 = vmatpush.msra.mxu0 %v1520_v19  ;;  %2061 = vrcp.f32 %v2087_v59 }
 0x813   : > { %1715 = vmatpush.msra.mxu1 %v1520_v19 }
 0x814   : > { %1681 = vrot.lane.b32.xlu2 %v1655_v0, %s2077_s25  ;;  %1620 = vmatpush.msra.mxu0 %v1519_v29  ;;  %s575_s25 = scalar_lea.vmem %s2715_s18, %s1917_s23 }
 0x815   : > { %1585 = vrot.lane.b32.xlu0 %v1584_v33, %s2076_s30  ;;  %1716 = vmatpush.msra.mxu1 %v1519_v29 }
 0x816   : > { %1621 = vmatpush.msra.mxu0 %v1518_v31 }
 0x817   : > { %1717 = vmatpush.msra.mxu1 %v1518_v31 }
 0x818   : > { %1622 = vmatpush.msra.mxu0 %v1517_v20 }
 0x819   : > { %1688 = vrot.lane.b32.xlu1 %v1687_v63, %s2076_s30  ;;  %1718 = vmatpush.msra.mxu1 %v1517_v20 }
 0x81a   : > { %1737 = vmatpush.msrb.mxu0 %v2554_v43 }
 0x81c   : > { %1738 = vmatpush.msrb.mxu0 %v2561_v46 }
 0x857   : > { %v1961_v33 = vpop.permute.xlu2 %1960 }
 0x858   : > { %v1962_v35 = vunpack.i.l.bf16 %v1961_v33  ;;  %v1963_v38 = vunpack.i.h.bf16 %v1961_v33 }
 0x85a   : > { %v1591_v39 = vsel %vm586_vm0, 0.0, %v1962_v35  ;;  %v1694_v49 = vsel %vm586_vm0, %v2581_v47, %v1963_v38 }
 0x866   : > { %v1981_v40 = vpop.permute.xlu2 %1980 }
 0x867   : > { %v1982_v30 = vunpack.i.l.bf16 %v1981_v40  ;;  %v1983_v54 = vunpack.i.h.bf16 %v1981_v40 }
 0x86e   : > { %v1682_v47 = vpop.permute.xlu2 %1681 }
 0x86f   : > { %v1966_v34 = vpop.permute.xlu0 %1965 }
 0x870   : > { %v1967_v16 = vunpack.i.l.bf16 %v1966_v34  ;;  %v1968_v42 = vunpack.i.h.bf16 %v1966_v34 }
 0x872   : > { %v1592_v45 = vsel %vm771_vm2, %v1591_v39, %v1967_v16  ;;  %v1695_v21 = vsel %vm771_vm2, %v1694_v49, %v1968_v42 }
 0x87b   : > { %v1971_v15 = vpop.permute.xlu1 %1970 }
 0x87c   : > { %v1972_v37 = vunpack.i.l.bf16 %v1971_v15  ;;  %v1973_v32 = vunpack.i.h.bf16 %v1971_v15 }
 0x87e   : > { %v1594_v43 = vsel %vm1593_vm11, %v1592_v45, %v1972_v37  ;;  %v1696_v23 = vsel %vm1593_vm11, %v1695_v21, %v1973_v32  ;;  %v1644_v61 = vpop.f32.mrf.mxu3  ;;  %v1993_v32 = vld [vmem:[%s2713_s16] ss:$0 sm:$0xff] }
 0x87f   : > { %v1976_v44 = vpop.permute.xlu0 %1975 }
 0x880   : > { %v1977_v28 = vunpack.i.l.bf16 %v1976_v44  ;;  %v1978_v46 = vunpack.i.h.bf16 %v1976_v44 }
 0x882   : > { %v1595_v50 = vsel %vm1367_vm15, %v1594_v43, %v1977_v28  ;;  %v1697_v53 = vsel %vm1367_vm15, %v1696_v23, %v1978_v46  ;;  %v1994_v46 = vld [vmem:[%s2714_s17] ss:$0 sm:$0xff] }
 0x883   : > { %v1579_v51 = vpop.permute.xlu1 %1578  ;;  %v1597_v14 = vsel %vm1596_vm12, %v1595_v50, %v1982_v30  ;;  %v1698_v52 = vsel %vm1596_vm12, %v1697_v53, %v1983_v54 }
 0x884   : > { %v1599_v55 = vsel %vm1598_vm13, %v1597_v14, %v1579_v51  ;;  %v1699_v57 = vsel %vm1598_vm13, %v1698_v52, %v1682_v47 }
 0x887   : > { %v1586_v9 = vpop.permute.xlu0 %1585 }
 0x888   : > { %v1601_v11 = vsel %vm1600_vm14, %v1599_v55, %v1586_v9 }
 0x889   : > { %1623 = vmatmul.f32.vlgmr.msra.gmra.mxu0 %v1601_v11 }
 0x88b   : > { %v1689_v2 = vpop.permute.xlu1 %1688 }
 0x88c   : > { %v1700_v3 = vsel %vm1600_vm14, %v1699_v57, %v1689_v2 }
 0x88d   : > { %1719 = vmatmul.f32.vlgmr.msra.gmra.mxu1 %v1700_v3 }
 0x891   : > { %1913 = vmatmul.msk.f32.vlgmr.msrb.gmra.mxu0 %vm586_vm0, %v2608_v6  ;;  %v2062_v6 = vpop.eup %2061 }
 0x892   : > { %v1752_v10 = vmul.f32 32.0, %v2062_v6  ;;  %vm1756_vm0 = vweird.f32 %v2062_v6 }
 0x894   : > { %v1753_v63 = vsub.f32 1.0, %v1752_v10 }
 0x896   : > { %v1754_v12 = vmul.f32 %v2062_v6, %v1753_v63 }
 0x898   : > { %v1755_v22 = vadd.f32 %v2062_v6, %v1754_v12 }
 0x89a   : > { %v1757_v62 = vsel %vm1756_vm0, %v2062_v6, %v1755_v22 }
 0x906   : > { %v1624_v48 = vpop.f32.mrf.mxu0 }
 0x907   : > { %v1625_v60 = vadd.f32 %v1992_v58, %v1624_v48 }
 0x909   : > { %v1645_v7 = vadd.f32 %v1644_v61, %v1625_v60 }
 0x90a   : > { %v1720_v4 = vpop.f32.mrf.mxu1 }
 0x90b   : > { %v1721_v36 = vadd.f32 %v1992_v58, %v1720_v4  ;;  %v1745_v0 = vsel %vm771_vm2, %v1645_v7, 0.0 }
 0x90c   : > { %1746 = vadd.xlane.f32.xlu0 %v1745_v0 }
 0x90e   : > { %v1740_v41 = vpop.f32.mrf.mxu0 }
 0x90f   : > { %v1741_v1 = vadd.f32 %v1740_v41, %v1721_v36 }
 0x911   : > { %v1748_v5 = vsel %vm771_vm2, %v1741_v1, 0.0 }
 0x912   : > { %1749 = vadd.xlane.f32.xlu2 %v1748_v5 }
 0x97f   : > { %v1747_v17 = vpop.xlane.xlu0 %1746 }
 0x980   : > { %v1758_v13 = vmul.f32 %v1757_v62, %v1747_v17 }
 0x982   : > { %v1760_v18 = vsub.f32 %v1645_v7, %v1758_v13 }
 0x984   : > { %v1762_v24 = vmul.f32 %v1760_v18, %v1760_v18 }
 0x985   : > { %v1750_v56 = vpop.xlane.xlu2 %1749 }
 0x986   : > { %v1759_v25 = vmul.f32 %v1757_v62, %v1750_v56  ;;  %v1764_v26 = vsel %vm771_vm2, %v1762_v24, 0.0 }
 0x987   : > { %1765 = vadd.xlane.f32.xlu1 %v1764_v26 }
 0x988   : > { %v1761_v27 = vsub.f32 %v1741_v1, %v1759_v25 }
 0x98a   : > { %v1763_v8 = vmul.f32 %v1761_v27, %v1761_v27 }
 0x98c   : > { %v1767_v19 = vsel %vm771_vm2, %v1763_v8, 0.0 }
 0x98d   : > { %1768 = vadd.xlane.f32.xlu2 %v1767_v19 }
 0x9fa   : > { %v1766_v29 = vpop.xlane.xlu1 %1765 }
 0x9fb   : > { %v1770_v31 = vmul.f32 %v1766_v29, %v1757_v62 }
 0x9fd   : > { %v1772_v20 = vadd.f32 1e-05, %v1770_v31 }
 0x9ff   : > { %2063 = vrsqrt.f32 %v1772_v20  ;;  %vm1780_vm1 = vweird.f32 %v1772_v20 }
 0xa00   : > { %v1769_v33 = vpop.xlane.xlu2 %1768 }
 0xa01   : > { %v1771_v34 = vmul.f32 %v1769_v33, %v1757_v62 }
 0xa03   : > { %v1773_v35 = vadd.f32 1e-05, %v1771_v34 }
 0xa05   : > { %v2064_v15 = vpop.eup %2063  ;;  %2065 = vrsqrt.f32 %v1773_v35  ;;  %vm1790_vm5 = vweird.f32 %v1773_v35 }
 0xa06   : > { %v1775_v16 = vmul.f32 %v2064_v15, %v1772_v20  ;;  %vm1781_vm15 = vweird.f32 %v2064_v15 }
 0xa07   : > { %vm1782_vm3 = vmor %vm1780_vm1, %vm1781_vm15 }
 0xa08   : > { %v1776_v37 = vmul.f32 %v2064_v15, %v1775_v16 }
 0xa0a   : > { %v1777_v38 = vmul.f32 0.5, %v1776_v37 }
 0xa0b   : > { %v2066_v39 = vpop.eup %2065 }
 0xa0c   : > { %v1778_v40 = vsub.f32 1.5, %v1777_v38  ;;  %v1785_v42 = vmul.f32 %v2066_v39, %v1773_v35  ;;  %vm1791_vm4 = vweird.f32 %v2066_v39 }
 0xa0d   : > { %vm1792_vm6 = vmor %vm1790_vm5, %vm1791_vm4 }
 0xa0e   : > { %v1779_v44 = vmul.f32 %v2064_v15, %v1778_v40  ;;  %v1786_v45 = vmul.f32 %v2066_v39, %v1785_v42 }
 0xa10   : > { %v1783_v28 = vsel %vm1782_vm3, %v2064_v15, %v1779_v44  ;;  %v1787_v43 = vmul.f32 0.5, %v1786_v45 }
 0xa11   : > { %v1794_v49 = vmul.f32 %v1783_v28, %v1760_v18 }
 0xa12   : > { %v1788_v30 = vsub.f32 1.5, %v1787_v43 }
 0xa13   : > { %v1799_v50 = vmul.f32 %v1993_v32, %v1794_v49 }
 0xa14   : > { %v1789_v21 = vmul.f32 %v2066_v39, %v1788_v30 }
 0xa15   : > { %v1804_v51 = vadd.f32 %v1994_v46, %v1799_v50 }
 0xa16   : > { %v1793_v23 = vsel %vm1792_vm6, %v2066_v39, %v1789_v21 }
 0xa17   : > { %1806 = vst.msk [vmem:[%s575_s25] sm:$0xff] %vm771_vm2, %v1804_v51  ;;  %v1795_v14 = vmul.f32 %v1793_v23, %v1761_v27 }
 0xa19   : > { %v1800_v53 = vmul.f32 %v1993_v32, %v1795_v14 }
 0xa1b   : > { %v1805_v54 = vadd.f32 %v1994_v46, %v1800_v53 }
 0xa1d   : > { %1807 = vst.msk [vmem:[%s575_s25 + $0x8] sm:$0xff] %vm771_vm2, %v1805_v54 }
 0xa1e PF: > { %s28_s27 = sadd.s32 1, %s2073_s27  }
 0xa1f   : > { %p25_p4 = scmp.ge.s32.totalorder %s28_s27, 4  }
 0xa21   :  { %27 = sbr.rel (!%p25_p4) target bundleno = 4 (0x4), region = 122 }

// kernel: _lambda_.8
= control target key start
LH: loop header
LB: loop body
LE: loop exit
PB: predicated region body
PF: predicated region fallthrough
CT: control target
= control target key end

     0   :  { %s1878_s24 = smov 0   ;;  %s2328_s0 = inlined_call_operand.vmem [shape: f32[2,16,32], index: 0, kind: input, shape index: {}]   ;;  %s2329_s1 = inlined_call_operand.vmem [shape: f32[1,32,96], index: 1, kind: input, shape index: {}]   ;;  %s2330_s2 = inlined_call_operand.vmem [shape: f32[1,1,96], index: 2, kind: input, shape index: {}]   ;;  %s2331_s3 = inlined_call_operand.vmem [shape: f32[1,32,32], index: 3, kind: input, shape index: {}]   ;;  %s2332_s4 = inlined_call_operand.vmem [shape: f32[1,1,32], index: 4, kind: input, shape index: {}]   ;;  %s2333_s5 = inlined_call_operand.vmem [shape: f32[1,1,32], index: 5, kind: input, shape index: {}]   ;;  %s2334_s6 = inlined_call_operand.vmem [shape: f32[1,1,32], index: 6, kind: input, shape index: {}]   ;;  %s2335_s7 = inlined_call_operand.vmem [shape: f32[1,32,128], index: 7, kind: input, shape index: {}]   ;;  %s2336_s8 = inlined_call_operand.vmem [shape: f32[1,1,128], index: 8, kind: input, shape index: {}]   ;;  %s2337_s9 = inlined_call_operand.vmem [shape: f32[1,128,32], index: 9, kind: input, shape index: {}]   ;;  %s2338_s10 = inlined_call_operand.vmem [shape: f32[1,1,32], index: 10, kind: input, shape index: {}]   ;;  %s2339_s11 = inlined_call_operand.vmem [shape: f32[1,1,32], index: 11, kind: input, shape index: {}]   ;;  %s2340_s12 = inlined_call_operand.vmem [shape: f32[1,1,32], index: 12, kind: input, shape index: {}]   ;;  %s2341_s13 = inlined_call_operand.vmem [shape: f32[288,64], index: 13, kind: input, shape index: {}]   ;;  %s2342_s14 = inlined_call_operand.vmem [shape: f32[1,64], index: 14, kind: input, shape index: {}]   ;;  %s2343_s15 = inlined_call_operand.vmem [shape: f32[1,64], index: 15, kind: input, shape index: {}]   ;;  %s2344_s16 = inlined_call_operand.vmem [shape: f32[1,64], index: 16, kind: input, shape index: {}]   ;;  %s2345_s17 = inlined_call_operand.vmem [shape: f32[2,8,64], index: 17, kind: output, shape index: {}]  }
   0x1   :  { %2347 = sst [smem:[#allocation2_spill]] %s2328_s0 }
   0x2   :  { %2348 = sst [smem:[#allocation3_spill]] %s2329_s1 }
   0x3 LB: > { %s1600_s25 = sadd.s32 4294967295, %s1773_s24   ;;  %p1604_p0 = scmp.ge.s32.totalorder %s1773_s24, 1  ;;  %s1773_s24 = sphi %s1878_s24, %s27_s24  }
   0x4   : > { %p487_p1 = scmp.lt.s32.totalorder %s1773_s24, 3 }
   0x6   : > { %p488_p2 = pnand %p1604_p0, %p487_p1 }
   0x7   : > { %s2349_s28 = sld [smem:[#allocation3_spill]] (!%p488_p2)  ;;  %p538_p3 = scmp.lt.s32.totalorder (!%p488_p2), %s1600_s25, 1 }
   0x8   : > { %491 = sbr.rel (%p488_p2) target bundleno = 2620 (0xa3c), region = 88  ;;  %s2350_s23 = sld [smem:[#allocation2_spill]] (!%p488_p2) }
   0x9   : > { %s1775_s0 = smov (!%p488_p2), 120   ;;  %s1776_s30 = smov (!%p488_p2), 104  }
   0xa   : > { %s1777_s18 = smov (!%p488_p2), 112   ;;  %s1778_s19 = smov (!%p488_p2), 96  }
   0xb   : > { %s1779_s1 = smov (!%p488_p2), 64   ;;  %s1781_s21 = smov (!%p488_p2), 16  }
   0xc   : > { %s1782_s22 = smov (!%p488_p2), 8  }
   0xd   : > { %v552_v0 = vld [vmem:[%s2349_s28 + $0x18] sm:$0xff]  ;;  %v551_v1 = vld [vmem:[%s2349_s28 + $0x10] sm:$0xff]  ;;  %v550_v2 = vld [vmem:[%s2349_s28 + $0x8] sm:$0xff]  ;;  %s2352_s25 = smov (!%p538_p3, %s1600_s25), 1  ;;  %vm557_vm0 = vcmask 261120   ;;  %vm619_vm1 = vcmask 64512  }
   0xe   : > { %576 = vmatpush.msra.mxu0 %v552_v0  ;;  %1642 = vmatpush.msra.mxu2 %v552_v0  ;;  %v549_v3 = vld [vmem:[%s2349_s28] sm:$0xff]  ;;  %s1641_s20 = sshll.u32 %s2352_s25, 4  ;;  %vm764_vm2 = vcmask 130048   ;;  %vm1021_vm3 = vcmask 195584  }
   0xf   : > { %s542_s26 = scalar_lea.vmem %s2350_s23, %s1641_s20  ;;  %v1702_v6 = vld [vmem:[%s2330_s2] ss:$0 sm:$0xff]  ;;  %s1780_s20 = smov 24  }
  0x10   : > { %577 = vmatpush.msra.mxu0 %v551_v1  ;;  %1643 = vmatpush.msra.mxu2 %v551_v1  ;;  %v1904_v4 = vld [vmem:[%s542_s26] sm:$0xff]  ;;  %v1906_v5 = vld [vmem:[%s542_s26 + $0x8] sm:$0xff]  ;;  %s1786_s23 = smov 32  }
  0x12   : > { %578 = vmatpush.msra.mxu0 %v550_v2  ;;  %1644 = vmatpush.msra.mxu2 %v550_v2 }
  0x14   : > { %579 = vmatpush.msra.mxu0 %v549_v3  ;;  %1645 = vmatpush.msra.mxu2 %v549_v3 }
  0x15   : > { %1608 = vmatmul.msk.f32.vlgmr.msra.gmra.mxu0 %vm557_vm0, %v1904_v4  ;;  %1609 = vmatmul.msk.f32.vlgmr.msra.gmra.mxu2 %vm557_vm0, %v1906_v5 }
  0x92   : > { %v581_v7 = vpop.f32.mrf.mxu0 }
  0x93   : > { %v1915_v8 = vadd.f32 %v1702_v6, %v581_v7 }
  0x95   : > { %589 = vrot.lane.b32.xlu1 %v1915_v8, %s1775_s0  ;;  %v607_v30 = vmul.f32 0.35355338, %v1915_v8 }
  0x98   : > { %v584_v9 = vpop.f32.mrf.mxu2 }
  0x99   : > { %v1918_v10 = vadd.f32 %v1702_v6, %v584_v9 }
  0x9b   : > { %603 = vrot.lane.b32.xlu2 %v1918_v10, %s1776_s30  ;;  %591 = vrot.lane.b32.xlu0 %v1918_v10, %s1775_s0  ;;  %v608_v32 = vmul.f32 0.35355338, %v1918_v10 }
  0x9d   : > { %595 = vrot.lane.b32.xlu1 %v1915_v8, %s1777_s18 }
  0xa3   : > { %597 = vrot.lane.b32.xlu0 %v1918_v10, %s1777_s18  ;;  %601 = vrot.lane.b32.xlu2 %v1915_v8, %s1776_s30 }
  0xf5   : > { %v1925_v11 = vpop.permute.xlu2 %603 }
  0xf6   : > { %v614_v31 = vmul.f32 0.35355338, %v1925_v11 }
  0xfd   : > { %v1935_v14 = vpop.permute.xlu2 %601 }
  0xfe   : > { %v613_v27 = vmul.f32 0.35355338, %v1935_v14  ;;  %v1677_v49 = vpack.i.bf16 %v1935_v14, %v1925_v11 }
 0x107   : > { %v1927_v12 = vpop.permute.xlu1 %589 }
 0x108   : > { %653 = vrot.lane.b32.xlu2 %v1927_v12, %s1778_s19  ;;  %v609_v19 = vmul.f32 0.35355338, %v1927_v12 }
 0x10d   : > { %v1931_v13 = vpop.permute.xlu0 %591 }
 0x10e   : > { %655 = vrot.lane.b32.xlu0 %v1931_v13, %s1778_s19  ;;  %v610_v22 = vmul.f32 0.35355338, %v1931_v13 }
 0x10f   : > { %v1939_v15 = vpop.permute.xlu1 %595 }
 0x110   : > { %727 = vrot.lane.b32.xlu2 %v1935_v14, %s1778_s19  ;;  %v611_v23 = vmul.f32 0.35355338, %v1939_v15 }
 0x115   : > { %v1941_v16 = vpop.permute.xlu0 %597 }
 0x116   : > { %692 = vrot.lane.b32.xlu1 %v1941_v16, %s1778_s19  ;;  %690 = vrot.lane.b32.xlu0 %v1939_v15, %s1778_s19  ;;  %v612_v28 = vmul.f32 0.35355338, %v1941_v16 }
 0x11e   : > { %729 = vrot.lane.b32.xlu1 %v1925_v11, %s1778_s19  ;;  %617 = vrot.lane.b32.xlu0 %v1918_v10, %s1778_s19 }
 0x126   : > { %615 = vrot.lane.b32.xlu1 %v1915_v8, %s1778_s19 }
 0x162   : > { %v654_v18 = vpop.permute.xlu2 %653 }
 0x16a   : > { %v728_v26 = vpop.permute.xlu2 %727 }
 0x180   : > { %v656_v17 = vpop.permute.xlu0 %655 }
 0x181   : > { %1614 = vmatpush.xpose.msk.msrb.mxu2 %vm619_vm1, %v656_v17 }
 0x185   : > { %1615 = vmatpush.xpose.msk.msrb.mxu2 %vm619_vm1, %v654_v18 }
 0x188   : > { %1616 = vmatmul.msk.f32.vlgmr.msrb.gmra.mxu2 %vm619_vm1, %v609_v19  ;;  %v691_v20 = vpop.permute.xlu0 %690  ;;  %v693_v21 = vpop.permute.xlu1 %692 }
 0x189   : > { %1618 = vmatpush.xpose.msk.msra.mxu3 %vm619_vm1, %v693_v21 }
 0x18d   : > { %1619 = vmatpush.xpose.msk.msra.mxu3 %vm619_vm1, %v691_v20 }
 0x190   : > { %1617 = vmatmul.msk.f32.gmra.mxu2 %vm619_vm1, %v610_v22  ;;  %v618_v24 = vpop.permute.xlu0 %617  ;;  %1620 = vmatmul.msk.f32.vlgmr.msra.gmra.mxu3 %vm619_vm1, %v611_v23  ;;  %v730_v25 = vpop.permute.xlu1 %729  ;;  %v1667_v22 = vpack.i.bf16 %v1941_v16, %v1931_v13 }
 0x191   : > { %1610 = vmatpush.xpose.msk.msra.mxu1 %vm619_vm1, %v618_v24  ;;  %1622 = vmatpush.xpose.msk.msrb.mxu0 %vm619_vm1, %v730_v25 }
 0x195   : > { %1623 = vmatpush.xpose.msk.msrb.mxu0 %vm619_vm1, %v728_v26  ;;  %v1682_v26 = vpack.i.bf16 %v1915_v8, %v1918_v10 }
 0x198   : > { %1621 = vmatmul.msk.f32.gmra.mxu3 %vm619_vm1, %v612_v28  ;;  %1624 = vmatmul.msk.f32.vlgmr.msrb.gmra.mxu0 %vm619_vm1, %v613_v27  ;;  %v616_v29 = vpop.permute.xlu1 %615  ;;  %v1672_v27 = vpack.i.bf16 %v1939_v15, %v1927_v12 }
 0x199   : > { %1611 = vmatpush.xpose.msk.msra.mxu1 %vm619_vm1, %v616_v29 }
 0x19c   : > { %1612 = vmatmul.msk.f32.vlgmr.msra.gmra.mxu1 %vm619_vm1, %v607_v30 }
 0x1a0   : > { %1625 = vmatmul.msk.f32.gmra.mxu0 %vm619_vm1, %v614_v31 }
 0x1a4   : > { %1613 = vmatmul.msk.f32.gmra.mxu1 %vm619_vm1, %v608_v32 }
 0x20b   : > { %v684_v33 = vpop.f32.mrf.mxu2 }
 0x20c   : > { %v771_v39 = vsel %vm764_vm2, %v684_v33, -inf }
 0x213   : > { %v721_v36 = vpop.f32.mrf.mxu3  ;;  %v687_v40 = vpop.f32.mrf.mxu2 }
 0x214   : > { %v774_v42 = vsel %vm764_vm2, %v687_v40, -inf  ;;  %v777_v46 = vsel %vm764_vm2, %v721_v36, -inf }
 0x215   : > { %v758_v34 = vpop.f32.mrf.mxu0 }
 0x216   : > { %v783_v35 = vsel %vm764_vm2, %v758_v34, -inf }
 0x217   : > { %784 = vmax.xlane.f32.xlu2 %v783_v35 }
 0x219   : > { %v1978_v37 = vpop.f32.mrf.mxu1 }
 0x21a   : > { %v765_v38 = vsel %vm764_vm2, %v1978_v37, -inf }
 0x21b   : > { %766 = vmax.xlane.f32.xlu1 %v765_v38  ;;  %v724_v44 = vpop.f32.mrf.mxu3 }
 0x21c   : > { %v780_v45 = vsel %vm764_vm2, %v724_v44, -inf }
 0x21d   : > { %v761_v47 = vpop.f32.mrf.mxu0 }
 0x21e   : > { %v786_v48 = vsel %vm764_vm2, %v761_v47, -inf }
 0x21f   : > { %772 = vmax.xlane.f32.xlu2 %v771_v39 }
 0x221   : > { %v1983_v41 = vpop.f32.mrf.mxu1 }
 0x222   : > { %v768_v43 = vsel %vm764_vm2, %v1983_v41, -inf }
 0x223   : > { %775 = vmax.xlane.f32.xlu1 %v774_v42  ;;  %769 = vmax.xlane.f32.xlu0 %v768_v43 }
 0x227   : > { %781 = vmax.xlane.f32.xlu2 %v780_v45 }
 0x22b   : > { %778 = vmax.xlane.f32.xlu0 %v777_v46 }
 0x233   : > { %787 = vmax.xlane.f32.xlu0 %v786_v48 }
 0x247   : > { %1678 = vrot.lane.b32.xlu0 %v1677_v49, %s1779_s1 }
 0x28a   : > { %v785_v50 = vpop.xlane.xlu2 %784 }
 0x28b   : > { %v795_v51 = vsub.f32 %v758_v34, %v785_v50 }
 0x28d   : > { %v809_v52 = vmul.f32 1.442695, %v795_v51 }
 0x28e   : > { %v767_v53 = vpop.xlane.xlu1 %766 }
 0x28f   : > { %1713 = vpow2.f32 %v809_v52  ;;  %v789_v31 = vsub.f32 %v1978_v37, %v767_v53 }
 0x291   : > { %v797_v10 = vmul.f32 1.442695, %v789_v31 }
 0x292   : > { %v773_v54 = vpop.xlane.xlu2 %772 }
 0x293   : > { %v791_v55 = vsub.f32 %v684_v33, %v773_v54 }
 0x295   : > { %v1994_v56 = vpop.eup %1713  ;;  %v801_v57 = vmul.f32 1.442695, %v791_v55 }
 0x296   : > { %v776_v58 = vpop.xlane.xlu1 %775  ;;  %v770_v59 = vpop.xlane.xlu0 %769  ;;  %v831_v60 = vsel %vm764_vm2, %v1994_v56, 0.0 }
 0x297   : > { %1715 = vpow2.f32 %v801_v57  ;;  %v792_v61 = vsub.f32 %v687_v40, %v776_v58  ;;  %832 = vadd.xlane.f32.xlu1 %v831_v60  ;;  %v790_v13 = vsub.f32 %v1983_v41, %v770_v59 }
 0x299   : > { %v803_v62 = vmul.f32 1.442695, %v792_v61  ;;  %v799_v16 = vmul.f32 1.442695, %v790_v13 }
 0x29a   : > { %v782_v63 = vpop.xlane.xlu2 %781 }
 0x29b   : > { %1717 = vpow2.f32 %v803_v62  ;;  %v794_v0 = vsub.f32 %v724_v44, %v782_v63 }
 0x29d   : > { %v1998_v1 = vpop.eup %1715  ;;  %v807_v2 = vmul.f32 1.442695, %v794_v0 }
 0x29e   : > { %v779_v3 = vpop.xlane.xlu0 %778  ;;  %v819_v6 = vsel %vm764_vm2, %v1998_v1, 0.0 }
 0x29f   : > { %v793_v7 = vsub.f32 %v721_v36, %v779_v3  ;;  %820 = vadd.xlane.f32.xlu2 %v819_v6  ;;  %1719 = vpow2.f32 %v807_v2 }
 0x2a1   : > { %v2002_v9 = vpop.eup %1717  ;;  %v805_v11 = vmul.f32 1.442695, %v793_v7 }
 0x2a2   : > { %v822_v14 = vsel %vm764_vm2, %v2002_v9, 0.0 }
 0x2a3   : > { %1721 = vpow2.f32 %v805_v11  ;;  %823 = vadd.xlane.f32.xlu0 %v822_v14 }
 0x2a5   : > { %v2006_v17 = vpop.eup %1719 }
 0x2a6   : > { %v828_v19 = vsel %vm764_vm2, %v2006_v17, 0.0  ;;  %v788_v21 = vpop.xlane.xlu0 %787 }
 0x2a7   : > { %v796_v28 = vsub.f32 %v761_v47, %v788_v21 }
 0x2a9   : > { %v2008_v18 = vpop.eup %1721  ;;  %v811_v29 = vmul.f32 1.442695, %v796_v28 }
 0x2aa   : > { %v825_v20 = vsel %vm764_vm2, %v2008_v18, 0.0 }
 0x2ab   : > { %829 = vadd.xlane.f32.xlu0 %v828_v19  ;;  %826 = vadd.xlane.f32.xlu1 %v825_v20  ;;  %1723 = vpow2.f32 %v811_v29  ;;  %v1025_v19 = vld [vmem:[%s2331_s3 + $0x8] sm:$0xff]  ;;  %v1024_v20 = vld [vmem:[%s2331_s3] sm:$0xff] }
 0x2ac   : > { %1725 = vpow2.f32 %v799_v16 }
 0x2ad   : > { %1727 = vpow2.f32 %v797_v10  ;;  %v1703_v10 = vld [vmem:[%s2332_s4] ss:$0 sm:$0xff] }
 0x2b1   : > { %v1724_v30 = vpop.eup %1723 }
 0x2b2   : > { %v834_v8 = vsel %vm764_vm2, %v1724_v30, 0.0  ;;  %v1726_v32 = vpop.eup %1725 }
 0x2b3   : > { %v816_v12 = vsel %vm764_vm2, %v1726_v32, 0.0  ;;  %v1728_v15 = vpop.eup %1727 }
 0x2b4   : > { %v813_v33 = vsel %vm764_vm2, %v1728_v15, 0.0 }
 0x2b7   : > { %1668 = vrot.lane.b32.xlu2 %v1667_v22, %s1779_s1 }
 0x2b9   : > { %v1679_v23 = vpop.permute.xlu0 %1678 }
 0x2ba   : > { %v1680_v24 = vunpack.i.l.bf16 %v1679_v23  ;;  %v1681_v25 = vunpack.i.h.bf16 %v1679_v23 }
 0x2bc   : > { %984 = vmatpush.msra.mxu0 %v1680_v24 }
 0x2be   : > { %985 = vmatpush.msra.mxu0 %v1681_v25 }
 0x2bf   : > { %1683 = vrot.lane.b32.xlu0 %v1682_v26, %s1779_s1 }
 0x2c4   : > { %1673 = vrot.lane.b32.xlu1 %v1672_v27, %s1779_s1 }
 0x2e0   : > { %835 = vadd.xlane.f32.xlu2 %v834_v8 }
 0x2e9   : > { %817 = vadd.xlane.f32.xlu0 %v816_v12 }
 0x2ee   : > { %814 = vadd.xlane.f32.xlu1 %v813_v33 }
 0x30a   : > { %v833_v34 = vpop.xlane.xlu1 %832 }
 0x30b   : > { %1729 = vrcp.f32 %v833_v34 }
 0x311   : > { %v1730_v35 = vpop.eup %1729 }
 0x312   : > { %v851_v36 = vmul.f32 %v1730_v35, %v1994_v56  ;;  %v821_v37 = vpop.xlane.xlu2 %820 }
 0x313   : > { %1731 = vrcp.f32 %v821_v37 }
 0x314   : > { %1632 = vmatmul.msk.f32.vlgmr.msra.gmra.mxu0 %vm764_vm2, %v851_v36 }
 0x316   : > { %v824_v41 = vpop.xlane.xlu0 %823 }
 0x319   : > { %v1732_v46 = vpop.eup %1731 }
 0x31a   : > { %v1669_v38 = vpop.permute.xlu2 %1668  ;;  %v847_v52 = vmul.f32 %v1732_v46, %v1998_v1 }
 0x31b   : > { %v1670_v39 = vunpack.i.l.bf16 %v1669_v38  ;;  %v1671_v40 = vunpack.i.h.bf16 %v1669_v38  ;;  %v1783_v38 = vmov 32.0  }
 0x31d   : > { %914 = vmatpush.msra.mxu2 %v1670_v39  ;;  %949 = vmatpush.msrb.mxu3 %v1671_v40 }
 0x31e   : > { %v830_v42 = vpop.xlane.xlu0 %829  ;;  %v827_v43 = vpop.xlane.xlu1 %826 }
 0x31f   : > { %1733 = vrcp.f32 %v827_v43 }
 0x320   : > { %1735 = vrcp.f32 %v824_v41 }
 0x321   : > { %1737 = vrcp.f32 %v830_v42 }
 0x325   : > { %v1734_v48 = vpop.eup %1733 }
 0x326   : > { %v849_v53 = vmul.f32 %v1734_v48, %v2008_v18  ;;  %v1736_v54 = vpop.eup %1735  ;;  %v1026_v18 = vld [vmem:[%s2331_s3 + $0x10] sm:$0xff] }
 0x327   : > { %v1738_v55 = vpop.eup %1737  ;;  %v848_v56 = vmul.f32 %v1736_v54, %v2002_v9  ;;  %v1128_v54 = vld [vmem:[%s2335_s7 + $0x10] sm:$0xff] }
 0x328   : > { %v850_v57 = vmul.f32 %v1738_v55, %v2006_v17  ;;  %v1027_v17 = vld [vmem:[%s2331_s3 + $0x18] sm:$0xff]  ;;  %v1127_v55 = vld [vmem:[%s2335_s7 + $0x8] sm:$0xff] }
 0x331   : > { %v1684_v44 = vpop.permute.xlu0 %1683 }
 0x332   : > { %v1685_v45 = vunpack.i.l.bf16 %v1684_v44  ;;  %v1686_v47 = vunpack.i.h.bf16 %v1684_v44 }
 0x334   : > { %879 = vmatpush.msrb.mxu1 %v1685_v45 }
 0x336   : > { %v1674_v49 = vpop.permute.xlu1 %1673  ;;  %880 = vmatpush.msrb.mxu1 %v1686_v47 }
 0x337   : > { %v1675_v50 = vunpack.i.l.bf16 %v1674_v49  ;;  %v1676_v51 = vunpack.i.h.bf16 %v1674_v49 }
 0x338   : > { %1050 = vmatpush.msra.mxu1 %v1027_v17 }
 0x339   : > { %915 = vmatpush.msra.mxu2 %v1675_v50  ;;  %950 = vmatpush.msrb.mxu3 %v1676_v51 }
 0x33a   : > { %1628 = vmatmul.msk.f32.vlgmr.msra.gmra.mxu2 %vm764_vm2, %v847_v52  ;;  %1630 = vmatmul.msk.f32.vlgmr.msrb.gmra.mxu3 %vm764_vm2, %v849_v53  ;;  %v1129_v53 = vld [vmem:[%s2335_s7 + $0x18] sm:$0xff] }
 0x33b   : > { %1051 = vmatpush.msra.mxu1 %v1026_v18  ;;  %1152 = vmatpush.msrb.mxu2 %v1129_v53 }
 0x33d   : > { %1052 = vmatpush.msra.mxu1 %v1025_v19  ;;  %1153 = vmatpush.msrb.mxu2 %v1128_v54 }
 0x33f   : > { %1053 = vmatpush.msra.mxu1 %v1024_v20  ;;  %1154 = vmatpush.msrb.mxu2 %v1127_v55 }
 0x342   : > { %1629 = vmatmul.msk.f32.gmra.mxu2 %vm764_vm2, %v848_v56  ;;  %1631 = vmatmul.msk.f32.gmra.mxu3 %vm764_vm2, %v850_v57  ;;  %v1126_v56 = vld [vmem:[%s2335_s7] sm:$0xff] }
 0x343   : > { %1155 = vmatpush.msrb.mxu2 %v1126_v56 }
 0x353   : > { %v836_v58 = vpop.xlane.xlu2 %835 }
 0x354   : > { %1739 = vrcp.f32 %v836_v58 }
 0x35a   : > { %v1740_v59 = vpop.eup %1739 }
 0x35b   : > { %v852_v60 = vmul.f32 %v1740_v59, %v1724_v30 }
 0x35c   : > { %v818_v62 = vpop.xlane.xlu0 %817 }
 0x35d   : > { %1633 = vmatmul.msk.f32.gmra.mxu0 %vm764_vm2, %v852_v60 }
 0x361   : > { %v815_v61 = vpop.xlane.xlu1 %814 }
 0x362   : > { %1741 = vrcp.f32 %v815_v61 }
 0x363   : > { %1743 = vrcp.f32 %v818_v62 }
 0x364   : > { %1745 = vrcp.f32 %v1783_v38  ;;  %v1250_v38 = vld [vmem:[%s2337_s9 + $0x38] sm:$0xff] }
 0x368   : > { %v1742_v63 = vpop.eup %1741 }
 0x369   : > { %v845_v0 = vmul.f32 %v1742_v63, %v1728_v15  ;;  %v1744_v1 = vpop.eup %1743 }
 0x36a   : > { %v846_v2 = vmul.f32 %v1744_v1, %v1726_v32  ;;  %v1746_v39 = vpop.eup %1745 }
 0x36b   : > { %1626 = vmatmul.msk.f32.vlgmr.msrb.gmra.mxu1 %vm764_vm2, %v845_v0  ;;  %v1072_v40 = vmul.f32 32.0, %v1746_v39  ;;  %vm1076_vm4 = vweird.f32 %v1746_v39 }
 0x36d   : > { %v1073_v41 = vsub.f32 1.0, %v1072_v40  ;;  %v1248_v40 = vld [vmem:[%s2337_s9 + $0x28] sm:$0xff] }
 0x36f   : > { %v1074_v42 = vmul.f32 %v1746_v39, %v1073_v41  ;;  %v1247_v41 = vld [vmem:[%s2337_s9 + $0x20] sm:$0xff] }
 0x371   : > { %v1075_v43 = vadd.f32 %v1746_v39, %v1074_v42 }
 0x373   : > { %1627 = vmatmul.msk.f32.gmra.mxu1 %vm764_vm2, %v846_v2  ;;  %v2066_v44 = vsel %vm1076_vm4, %v1746_v39, %v1075_v43  ;;  %v1704_v2 = vld [vmem:[%s2333_s5] ss:$0 sm:$0xff]  ;;  %v1249_v39 = vld [vmem:[%s2337_s9 + $0x30] sm:$0xff]  ;;  %v1246_v43 = vld [vmem:[%s2337_s9 + $0x18] sm:$0xff] }
 0x391   : > { %v987_v3 = vpop.f32.mrf.mxu0 }
 0x392   : > { %1011 = vrot.lane.b32.xlu0 %v987_v3, %s1780_s20 }
 0x3bd   : > { %v917_v6 = vpop.f32.mrf.mxu2  ;;  %v952_v7 = vpop.f32.mrf.mxu3 }
 0x3be   : > { %1003 = vrot.lane.b32.xlu1 %v952_v7, %s1781_s21  ;;  %995 = vrot.lane.b32.xlu2 %v917_v6, %s1782_s22  ;;  %v1705_v7 = vld [vmem:[%s2334_s6] ss:$0 sm:$0xff] }
 0x3c5   : > { %v920_v9 = vpop.f32.mrf.mxu2  ;;  %v955_v11 = vpop.f32.mrf.mxu3 }
 0x3c6   : > { %997 = vrot.lane.b32.xlu2 %v920_v9, %s1782_s22 }
 0x3ce   : > { %1005 = vrot.lane.b32.xlu2 %v955_v11, %s1781_s21 }
 0x3da   : > { %v990_v14 = vpop.f32.mrf.mxu0 }
 0x3db   : > { %1013 = vrot.lane.b32.xlu1 %v990_v14, %s1780_s20 }
 0x3e8   : > { %v882_v22 = vpop.f32.mrf.mxu1 }
 0x3f0   : > { %v885_v13 = vpop.f32.mrf.mxu1 }
 0x404   : > { %v1012_v25 = vpop.permute.xlu0 %1011 }
 0x418   : > { %v996_v21 = vpop.permute.xlu2 %995 }
 0x419   : > { %v1017_v23 = vsel %vm619_vm1, %v882_v22, %v996_v21 }
 0x420   : > { %v998_v28 = vpop.permute.xlu2 %997 }
 0x421   : > { %v1018_v16 = vsel %vm619_vm1, %v885_v13, %v998_v28  ;;  %v1257_v13 = vld [vmem:[%s2337_s9 + $0x70] sm:$0xff] }
 0x428   : > { %v1006_v29 = vpop.permute.xlu2 %1005 }
 0x429   : > { %v1020_v30 = vsel %vm764_vm2, %v1018_v16, %v1006_v29  ;;  %v1258_v29 = vld [vmem:[%s2337_s9 + $0x78] sm:$0xff]  ;;  %v1706_v16 = vld [vmem:[%s2336_s8] ss:$0 sm:$0xff] }
 0x42a   : > { %1263 = vmatpush.msra.mxu3 %v1258_v29 }
 0x42c   : > { %1264 = vmatpush.msra.mxu3 %v1257_v13 }
 0x430   : > { %v1004_v24 = vpop.permute.xlu1 %1003 }
 0x431   : > { %v1019_v26 = vsel %vm764_vm2, %v1017_v23, %v1004_v24 }
 0x432   : > { %v1022_v27 = vsel %vm1021_vm3, %v1019_v26, %v1012_v25 }
 0x433   : > { %1634 = vmatmul.msk.f32.vlgmr.msra.gmra.mxu1 %vm557_vm0, %v1022_v27 }
 0x44d   : > { %v1014_v31 = vpop.permute.xlu1 %1013 }
 0x44e   : > { %v1023_v8 = vsel %vm1021_vm3, %v1020_v30, %v1014_v31  ;;  %v1256_v30 = vld [vmem:[%s2337_s9 + $0x68] sm:$0xff]  ;;  %v1255_v31 = vld [vmem:[%s2337_s9 + $0x60] sm:$0xff] }
 0x44f   : > { %1635 = vmatmul.msk.f32.gmra.mxu1 %vm557_vm0, %v1023_v8  ;;  %1265 = vmatpush.msra.mxu3 %v1256_v30 }
 0x451   : > { %1266 = vmatpush.msra.mxu3 %v1255_v31 }
 0x4b0   : > { %v1055_v32 = vpop.f32.mrf.mxu1 }
 0x4b1   : > { %v1056_v12 = vadd.f32 %v1703_v10, %v1055_v32  ;;  %v1254_v32 = vld [vmem:[%s2337_s9 + $0x58] sm:$0xff] }
 0x4b2   : > { %1267 = vmatpush.msra.mxu3 %v1254_v32 }
 0x4b3   : > { %v1061_v15 = vadd.f32 %v1056_v12, %v1904_v4 }
 0x4b5   : > { %v1065_v33 = vsel %vm557_vm0, %v1061_v15, 0.0 }
 0x4b6   : > { %1066 = vadd.xlane.f32.xlu2 %v1065_v33 }
 0x4cc   : > { %v1058_v34 = vpop.f32.mrf.mxu1 }
 0x4cd   : > { %v1059_v35 = vadd.f32 %v1703_v10, %v1058_v34  ;;  %v1252_v34 = vld [vmem:[%s2337_s9 + $0x48] sm:$0xff] }
 0x4cf   : > { %v1062_v36 = vadd.f32 %v1059_v35, %v1906_v5 }
 0x4d1   : > { %v1068_v37 = vsel %vm557_vm0, %v1062_v36, 0.0 }
 0x4d2   : > { %1069 = vadd.xlane.f32.xlu0 %v1068_v37 }
 0x529   : > { %v1067_v4 = vpop.xlane.xlu2 %1066 }
 0x52a   : > { %v1078_v45 = vmul.f32 %v2066_v44, %v1067_v4 }
 0x52c   : > { %v1080_v46 = vsub.f32 %v1061_v15, %v1078_v45  ;;  %v1253_v15 = vld [vmem:[%s2337_s9 + $0x50] sm:$0xff] }
 0x52d   : > { %1268 = vmatpush.msra.mxu3 %v1253_v15  ;;  %v1245_v45 = vld [vmem:[%s2337_s9 + $0x10] sm:$0xff] }
 0x52e   : > { %v1082_v47 = vmul.f32 %v1080_v46, %v1080_v46 }
 0x52f   : > { %1269 = vmatpush.msra.mxu3 %v1252_v34 }
 0x530   : > { %v1084_v5 = vsel %vm557_vm0, %v1082_v47, 0.0 }
 0x531   : > { %1085 = vadd.xlane.f32.xlu1 %v1084_v5  ;;  %v1244_v5 = vld [vmem:[%s2337_s9 + $0x8] sm:$0xff] }
 0x545   : > { %v1070_v48 = vpop.xlane.xlu0 %1069 }
 0x546   : > { %v1079_v49 = vmul.f32 %v2066_v44, %v1070_v48 }
 0x548   : > { %v1081_v50 = vsub.f32 %v1062_v36, %v1079_v49  ;;  %v1251_v36 = vld [vmem:[%s2337_s9 + $0x40] sm:$0xff] }
 0x549   : > { %1270 = vmatpush.msra.mxu3 %v1251_v36 }
 0x54a   : > { %v1083_v51 = vmul.f32 %v1081_v50, %v1081_v50 }
 0x54b   : > { %1271 = vmatpush.msra.mxu3 %v1250_v38 }
 0x54c   : > { %v1087_v52 = vsel %vm557_vm0, %v1083_v51, 0.0 }
 0x54d   : > { %1088 = vadd.xlane.f32.xlu2 %v1087_v52  ;;  %1272 = vmatpush.msra.mxu3 %v1249_v39 }
 0x54f   : > { %1273 = vmatpush.msra.mxu3 %v1248_v40 }
 0x551   : > { %1274 = vmatpush.msra.mxu3 %v1247_v41 }
 0x553   : > { %1275 = vmatpush.msra.mxu3 %v1246_v43 }
 0x555   : > { %1276 = vmatpush.msra.mxu3 %v1245_v45 }
 0x557   : > { %1277 = vmatpush.msra.mxu3 %v1244_v5 }
 0x5a4   : > { %v1086_v57 = vpop.xlane.xlu1 %1085 }
 0x5a5   : > { %v1090_v58 = vmul.f32 %v1086_v57, %v2066_v44 }
 0x5a7   : > { %v1092_v59 = vadd.f32 1e-06, %v1090_v58 }
 0x5a9   : > { %1747 = vrsqrt.f32 %v1092_v59  ;;  %vm1100_vm6 = vweird.f32 %v1092_v59 }
 0x5af   : > { %v1748_v60 = vpop.eup %1747 }
 0x5b0   : > { %v1095_v61 = vmul.f32 %v1748_v60, %v1092_v59  ;;  %vm1101_vm5 = vweird.f32 %v1748_v60 }
 0x5b1   : > { %vm1102_vm7 = vmor %vm1100_vm6, %vm1101_vm5 }
 0x5b2   : > { %v1096_v62 = vmul.f32 %v1748_v60, %v1095_v61 }
 0x5b4   : > { %v1097_v63 = vmul.f32 0.5, %v1096_v62 }
 0x5b6   : > { %v1098_v0 = vsub.f32 1.5, %v1097_v63 }
 0x5b8   : > { %v1099_v1 = vmul.f32 %v1748_v60, %v1098_v0 }
 0x5ba   : > { %v1103_v3 = vsel %vm1102_vm7, %v1748_v60, %v1099_v1 }
 0x5bb   : > { %v1114_v6 = vmul.f32 %v1103_v3, %v1080_v46 }
 0x5bd   : > { %v1119_v9 = vmul.f32 %v1704_v2, %v1114_v6 }
 0x5bf   : > { %v2091_v11 = vadd.f32 %v1705_v7, %v1119_v9 }
 0x5c0   : > { %v1089_v14 = vpop.xlane.xlu2 %1088 }
 0x5c1   : > { %v1091_v17 = vmul.f32 %v1089_v14, %v2066_v44  ;;  %1636 = vmatmul.msk.f32.vlgmr.msrb.gmra.mxu2 %vm557_vm0, %v2091_v11 }
 0x5c3   : > { %v1093_v18 = vadd.f32 1e-06, %v1091_v17 }
 0x5c5   : > { %1749 = vrsqrt.f32 %v1093_v18  ;;  %vm1110_vm9 = vweird.f32 %v1093_v18 }
 0x5cb   : > { %v1750_v19 = vpop.eup %1749 }
 0x5cc   : > { %v1105_v20 = vmul.f32 %v1750_v19, %v1093_v18  ;;  %vm1111_vm8 = vweird.f32 %v1750_v19 }
 0x5cd   : > { %vm1112_vm10 = vmor %vm1110_vm9, %vm1111_vm8  ;;  %vm1384_vm9 = vcmask 1040384  }
 0x5ce   : > { %v1106_v21 = vmul.f32 %v1750_v19, %v1105_v20 }
 0x5d0   : > { %v1107_v22 = vmul.f32 0.5, %v1106_v21 }
 0x5d2   : > { %v1108_v23 = vsub.f32 1.5, %v1107_v22 }
 0x5d4   : > { %v1109_v24 = vmul.f32 %v1750_v19, %v1108_v23 }
 0x5d6   : > { %v1113_v25 = vsel %vm1112_vm10, %v1750_v19, %v1109_v24  ;;  %v1784_v24 = vmov 1.0   ;;  %vm1399_vm10 = vcmask 1045504  }
 0x5d7   : > { %v1115_v26 = vmul.f32 %v1113_v25, %v1081_v50  ;;  %v1243_v50 = vld [vmem:[%s2337_s9] sm:$0xff] }
 0x5d8   : > { %1278 = vmatpush.msra.mxu3 %v1243_v50 }
 0x5d9   : > { %v1120_v27 = vmul.f32 %v1704_v2, %v1115_v26 }
 0x5db   : > { %v2096_v28 = vadd.f32 %v1705_v7, %v1120_v27 }
 0x5dd   : > { %1637 = vmatmul.msk.f32.gmra.mxu2 %vm557_vm0, %v2096_v28 }
 0x644   : > { %v1157_v8 = vpop.f32.mrf.mxu2 }
 0x645   : > { %v2115_v10 = vadd.f32 %v1706_v16, %v1157_v8 }
 0x647   : > { %v2121_v12 = vmul.f32 0.70710677, %v2115_v10 }
 0x649   : > { %v1171_v33 = vand.u32 2147483647, %v2121_v12  ;;  %vm1167_vm15 = vcmp.lt.f32.partialorder %v2121_v12, 0.0 }
 0x64a   : > { %v1169_v25 = vsel %vm1167_vm15, -1.0, %v1784_v24  ;;  %vm1435_vm15 = vcmask 523264  }
 0x64b   : > { %v1173_v35 = vmul.f32 0.3275911, %v1171_v33  ;;  %v1225_v54 = vsub.f32 0.0, %v1171_v33 }
 0x64d   : > { %v1175_v37 = vadd.f32 1.0, %v1173_v35  ;;  %v1227_v60 = vmul.f32 %v1225_v54, %v1171_v33 }
 0x64f   : > { %1751 = vrcp.f32 %v1175_v37  ;;  %v1188_v47 = vand.u32 2147483648, %v1175_v37  ;;  %v1186_v49 = vand.u32 2147483647, %v1175_v37  ;;  %vm1182_vm12 = vweird.f32 %v1175_v37 }
 0x650   : > { %v1229_v1 = vmul.f32 1.442695, %v1227_v60 }
 0x651   : > { %v1189_v52 = vor.u32 1.1754944e-38, %v1188_v47  ;;  %vm1187_vm14 = vcmp.eq.f32.partialorder %v1186_v49, 8.507059e+37 }
 0x652   : > { %1753 = vpow2.f32 %v1229_v1 }
 0x655   : > { %v1752_v42 = vpop.eup %1751 }
 0x656   : > { %v1178_v4 = vmul.f32 %v1752_v42, %v1175_v37  ;;  %vm1183_vm11 = vweird.f32 %v1752_v42 }
 0x657   : > { %vm1184_vm13 = vmor %vm1182_vm12, %vm1183_vm11  ;;  %vm1393_vm11 = vcmask 1046528  }
 0x658   : > { %v1179_v46 = vsub.f32 1.0, %v1178_v4  ;;  %v1754_v17 = vpop.eup %1753 }
 0x65a   : > { %v1180_v48 = vmul.f32 %v1752_v42, %v1179_v46 }
 0x65c   : > { %v1181_v51 = vadd.f32 %v1752_v42, %v1180_v48 }
 0x65e   : > { %v1185_v53 = vsel %vm1184_vm13, %v1752_v42, %v1181_v51  ;;  %v1707_v51 = vld [vmem:[%s2338_s10] ss:$0 sm:$0xff] }
 0x65f   : > { %v1190_v55 = vsel %vm1187_vm14, %v1189_v52, %v1185_v53 }
 0x660   : > { %v1207_v56 = vmul.f32 1.0614054, %v1190_v55  ;;  %v1160_v57 = vpop.f32.mrf.mxu2 }
 0x661   : > { %v1161_v58 = vadd.f32 %v1706_v16, %v1160_v57  ;;  %v1163_v16 = vmul.f32 0.5, %v2115_v10 }
 0x662   : > { %v1209_v59 = vadd.f32 -1.4531521, %v1207_v56 }
 0x663   : > { %v1166_v61 = vmul.f32 0.70710677, %v1161_v58  ;;  %v1164_v48 = vmul.f32 0.5, %v1161_v58 }
 0x664   : > { %v1211_v62 = vmul.f32 %v1209_v59, %v1190_v55 }
 0x665   : > { %v1172_v63 = vand.u32 2147483647, %v1166_v61  ;;  %vm1168_vm5 = vcmp.lt.f32.partialorder %v1166_v61, 0.0 }
 0x666   : > { %v1213_v0 = vadd.f32 1.4214138, %v1211_v62  ;;  %v1170_v47 = vsel %vm1168_vm5, -1.0, %v1784_v24  ;;  %v1708_v24 = vld [vmem:[%s2339_s11] ss:$0 sm:$0xff] }
 0x667   : > { %v1174_v2 = vmul.f32 0.3275911, %v1172_v63  ;;  %v1226_v15 = vsub.f32 0.0, %v1172_v63 }
 0x668   : > { %v1215_v3 = vmul.f32 %v1213_v0, %v1190_v55 }
 0x669   : > { %v1176_v6 = vadd.f32 1.0, %v1174_v2  ;;  %v1228_v36 = vmul.f32 %v1226_v15, %v1172_v63 }
 0x66a   : > { %v1217_v7 = vadd.f32 -0.28449672, %v1215_v3 }
 0x66b   : > { %1755 = vrcp.f32 %v1176_v6  ;;  %v1203_v26 = vand.u32 2147483648, %v1176_v6  ;;  %v1201_v13 = vand.u32 2147483647, %v1176_v6  ;;  %vm1197_vm2 = vweird.f32 %v1176_v6 }
 0x66c   : > { %v1219_v9 = vmul.f32 %v1217_v7, %v1190_v55  ;;  %v1231_v39 = vmul.f32 1.442695, %v1228_v36 }
 0x66d   : > { %v1204_v8 = vor.u32 1.1754944e-38, %v1203_v26  ;;  %vm1202_vm4 = vcmp.eq.f32.partialorder %v1201_v13, 8.507059e+37  ;;  %v1376_v13 = vld [vmem:[%s2341_s13 + $0x100] sm:$0xff] }
 0x66e   : > { %v1221_v14 = vadd.f32 0.2548296, %v1219_v9  ;;  %1757 = vpow2.f32 %v1231_v39 }
 0x670   : > { %v1223_v18 = vmul.f32 %v1221_v14, %v1190_v55 }
 0x671   : > { %v1756_v19 = vpop.eup %1755 }
 0x672   : > { %v1233_v20 = vmul.f32 %v1754_v17, %v1223_v18  ;;  %v1193_v21 = vmul.f32 %v1756_v19, %v1176_v6  ;;  %vm1198_vm1 = vweird.f32 %v1756_v19 }
 0x673   : > { %vm1199_vm3 = vmor %vm1197_vm2, %vm1198_vm1  ;;  %vm1437_vm1 = vcmask 785408  }
 0x674   : > { %v1235_v22 = vsub.f32 1.0, %v1233_v20  ;;  %v1194_v23 = vsub.f32 1.0, %v1193_v21  ;;  %v1758_v4 = vpop.eup %1757  ;;  %v1379_v21 = vld [vmem:[%s2341_s13 + $0x118] sm:$0xff] }
 0x675   : > { %1499 = vmatpush.msra.mxu2 %v1379_v21  ;;  %v1351_v21 = vld [vmem:[%s2341_s13 + $0x38] sm:$0xff] }
 0x676   : > { %v1237_v27 = vmul.f32 %v1235_v22, %v1169_v25  ;;  %v1195_v29 = vmul.f32 %v1756_v19, %v1194_v23  ;;  %v1378_v22 = vld [vmem:[%s2341_s13 + $0x110] sm:$0xff]  ;;  %v1377_v25 = vld [vmem:[%s2341_s13 + $0x108] sm:$0xff] }
 0x677   : > { %1500 = vmatpush.msra.mxu2 %v1378_v22  ;;  %v1367_v22 = vld [vmem:[%s2341_s13 + $0xb8] sm:$0xff] }
 0x678   : > { %v1239_v30 = vadd.f32 1.0, %v1237_v27  ;;  %v1196_v31 = vadd.f32 %v1756_v19, %v1195_v29  ;;  %v1709_v29 = vld [vmem:[%s2340_s12] ss:$0 sm:$0xff] }
 0x679   : > { %1501 = vmatpush.msra.mxu2 %v1377_v25  ;;  %v1349_v25 = vld [vmem:[%s2341_s13 + $0x28] sm:$0xff] }
 0x67a   : > { %v1241_v32 = vmul.f32 %v1239_v30, %v1163_v16  ;;  %v1200_v12 = vsel %vm1199_vm3, %v1756_v19, %v1196_v31 }
 0x67b   : > { %v1205_v33 = vsel %vm1202_vm4, %v1204_v8, %v1200_v12  ;;  %1502 = vmatpush.msra.mxu2 %v1376_v13  ;;  %v1785_v12 = vmov 0.0   ;;  %v1347_v13 = vld [vmem:[%s2341_s13 + $0x18] sm:$0xff] }
 0x67c   : > { %1279 = vmatmul.f32.vlgmr.msra.gmra.mxu3 %v1241_v32  ;;  %v1208_v34 = vmul.f32 1.0614054, %v1205_v33  ;;  %v1394_v15 = vrot.slane %v1785_v12, 1 }
 0x67e   : > { %v1210_v35 = vadd.f32 -1.4531521, %v1208_v34 }
 0x680   : > { %v1212_v37 = vmul.f32 %v1210_v35, %v1205_v33 }
 0x682   : > { %v1214_v38 = vadd.f32 1.4214138, %v1212_v37 }
 0x684   : > { %v1216_v40 = vmul.f32 %v1214_v38, %v1205_v33 }
 0x686   : > { %v1218_v41 = vadd.f32 -0.28449672, %v1216_v40 }
 0x688   : > { %v1220_v10 = vmul.f32 %v1218_v41, %v1205_v33 }
 0x68a   : > { %v1222_v42 = vadd.f32 0.2548296, %v1220_v10 }
 0x68c   : > { %v1224_v43 = vmul.f32 %v1222_v42, %v1205_v33 }
 0x68e   : > { %v1234_v45 = vmul.f32 %v1758_v4, %v1224_v43 }
 0x690   : > { %v1236_v46 = vsub.f32 1.0, %v1234_v45 }
 0x692   : > { %v1238_v5 = vmul.f32 %v1236_v46, %v1170_v47 }
 0x694   : > { %v1240_v49 = vadd.f32 1.0, %v1238_v5 }
 0x696   : > { %v1242_v50 = vmul.f32 %v1240_v49, %v1164_v48 }
 0x698   : > { %1282 = vmatmul.f32.gmra.mxu3 %v1242_v50  ;;  %v1400_v50 = vrot.slane %v1785_v12, 2  ;;  %v1344_v12 = vld [vmem:[%s2341_s13] sm:$0xff] }
 0x6ff   : > { %v1280_v52 = vpop.f32.mrf.mxu3 }
 0x700   : > { %v1281_v53 = vadd.f32 %v1707_v51, %v1280_v52 }
 0x702   : > { %v1286_v54 = vadd.f32 %v1281_v53, %v2091_v11 }
 0x704   : > { %v1290_v55 = vsel %vm557_vm0, %v1286_v54, 0.0 }
 0x705   : > { %1291 = vadd.xlane.f32.xlu0 %v1290_v55 }
 0x71b   : > { %v1283_v56 = vpop.f32.mrf.mxu3 }
 0x71c   : > { %v1284_v57 = vadd.f32 %v1707_v51, %v1283_v56 }
 0x71e   : > { %v1287_v59 = vadd.f32 %v1284_v57, %v2096_v28 }
 0x720   : > { %v1293_v58 = vsel %vm557_vm0, %v1287_v59, 0.0 }
 0x721   : > { %1294 = vadd.xlane.f32.xlu1 %v1293_v58 }
 0x778   : > { %v1292_v60 = vpop.xlane.xlu0 %1291 }
 0x779   : > { %v1296_v61 = vmul.f32 %v1292_v60, %v2066_v44 }
 0x77b   : > { %v1298_v62 = vsub.f32 %v1286_v54, %v1296_v61 }
 0x77d   : > { %v1300_v63 = vmul.f32 %v1298_v62, %v1298_v62 }
 0x77f   : > { %v1302_v0 = vsel %vm557_vm0, %v1300_v63, 0.0  ;;  %v1375_v63 = vld [vmem:[%s2341_s13 + $0xf8] sm:$0xff] }
 0x780   : > { %1303 = vadd.xlane.f32.xlu2 %v1302_v0  ;;  %1467 = vmatpush.msrb.mxu1 %v1375_v63  ;;  %v1358_v0 = vld [vmem:[%s2341_s13 + $0x70] sm:$0xff] }
 0x794   : > { %v1295_v1 = vpop.xlane.xlu1 %1294 }
 0x795   : > { %v1297_v11 = vmul.f32 %v1295_v1, %v2066_v44  ;;  %v1374_v1 = vld [vmem:[%s2341_s13 + $0xf0] sm:$0xff] }
 0x796   : > { %1468 = vmatpush.msrb.mxu1 %v1374_v1 }
 0x797   : > { %v2169_v2 = vsub.f32 %v1287_v59, %v1297_v11  ;;  %v1357_v11 = vld [vmem:[%s2341_s13 + $0x68] sm:$0xff] }
 0x799   : > { %v1301_v3 = vmul.f32 %v2169_v2, %v2169_v2 }
 0x79b   : > { %v1305_v28 = vsel %vm557_vm0, %v1301_v3, 0.0  ;;  %v1356_v3 = vld [vmem:[%s2341_s13 + $0x60] sm:$0xff] }
 0x79c   : > { %1306 = vadd.xlane.f32.xlu0 %v1305_v28  ;;  %v1372_v28 = vld [vmem:[%s2341_s13 + $0xe0] sm:$0xff] }
 0x7f3   : > { %v1304_v6 = vpop.xlane.xlu2 %1303 }
 0x7f4   : > { %v1308_v7 = vmul.f32 %v1304_v6, %v2066_v44  ;;  %v1355_v6 = vld [vmem:[%s2341_s13 + $0x58] sm:$0xff] }
 0x7f6   : > { %v1310_v9 = vadd.f32 1e-06, %v1308_v7  ;;  %v1371_v7 = vld [vmem:[%s2341_s13 + $0xd8] sm:$0xff] }
 0x7f8   : > { %1759 = vrsqrt.f32 %v1310_v9  ;;  %vm1318_vm7 = vweird.f32 %v1310_v9 }
 0x7fe   : > { %v1760_v14 = vpop.eup %1759 }
 0x7ff   : > { %v1313_v17 = vmul.f32 %v1760_v14, %v1310_v9  ;;  %vm1319_vm6 = vweird.f32 %v1760_v14  ;;  %v1354_v9 = vld [vmem:[%s2341_s13 + $0x50] sm:$0xff] }
 0x800   : > { %vm1320_vm8 = vmor %vm1318_vm7, %vm1319_vm6 }
 0x801   : > { %v1314_v18 = vmul.f32 %v1760_v14, %v1313_v17  ;;  %v1353_v17 = vld [vmem:[%s2341_s13 + $0x48] sm:$0xff] }
 0x803   : > { %v1315_v19 = vmul.f32 0.5, %v1314_v18  ;;  %v1369_v18 = vld [vmem:[%s2341_s13 + $0xc8] sm:$0xff] }
 0x805   : > { %v1316_v20 = vsub.f32 1.5, %v1315_v19  ;;  %v1352_v19 = vld [vmem:[%s2341_s13 + $0x40] sm:$0xff] }
 0x807   : > { %v1317_v23 = vmul.f32 %v1760_v14, %v1316_v20  ;;  %v1368_v20 = vld [vmem:[%s2341_s13 + $0xc0] sm:$0xff] }
 0x809   : > { %v1321_v26 = vsel %vm1320_vm8, %v1760_v14, %v1317_v23  ;;  %v1370_v14 = vld [vmem:[%s2341_s13 + $0xd0] sm:$0xff] }
 0x80a   : > { %v1332_v27 = vmul.f32 %v1321_v26, %v1298_v62  ;;  %v1359_v62 = vld [vmem:[%s2341_s13 + $0x78] sm:$0xff]  ;;  %v1350_v23 = vld [vmem:[%s2341_s13 + $0x30] sm:$0xff]  ;;  %v1365_v26 = vld [vmem:[%s2341_s13 + $0xa8] sm:$0xff] }
 0x80b   : > { %1447 = vmatpush.msrb.mxu0 %v1359_v62 }
 0x80c   : > { %v1337_v16 = vmul.f32 %v1708_v24, %v1332_v27  ;;  %v1348_v27 = vld [vmem:[%s2341_s13 + $0x20] sm:$0xff] }
 0x80d   : > { %1448 = vmatpush.msrb.mxu0 %v1358_v0 }
 0x80e   : > { %v1342_v30 = vadd.f32 %v1709_v29, %v1337_v16  ;;  %v1363_v16 = vld [vmem:[%s2341_s13 + $0x98] sm:$0xff] }
 0x80f   : > { %v1307_v31 = vpop.xlane.xlu0 %1306  ;;  %1449 = vmatpush.msrb.mxu0 %v1357_v11 }
 0x810   : > { %v1309_v8 = vmul.f32 %v1307_v31, %v2066_v44  ;;  %v1382_v32 = vrot.slane %v1342_v30, 7  ;;  %v1346_v30 = vld [vmem:[%s2341_s13 + $0x10] sm:$0xff] }
 0x811   : > { %1450 = vmatpush.msrb.mxu0 %v1356_v3  ;;  %v1362_v31 = vld [vmem:[%s2341_s13 + $0x90] sm:$0xff] }
 0x812   : > { %v1311_v33 = vadd.f32 1e-06, %v1309_v8  ;;  %v1385_v34 = vsel %vm1384_vm9, 0.0, %v1382_v32  ;;  %v1386_v35 = vsel %vm1384_vm9, %v1382_v32, 0.0  ;;  %v1345_v8 = vld [vmem:[%s2341_s13 + $0x8] sm:$0xff] }
 0x813   : > { %v1411_v36 = vrot.slane %v1386_v35, 1  ;;  %v1414_v37 = vrot.slane %v1385_v34, 2  ;;  %v1415_v38 = vrot.slane %v1386_v35, 2  ;;  %v1410_v39 = vrot.slane %v1385_v34, 1  ;;  %1451 = vmatpush.msrb.mxu0 %v1355_v6  ;;  %v1361_v32 = vld [vmem:[%s2341_s13 + $0x88] sm:$0xff] }
 0x814   : > { %1761 = vrsqrt.f32 %v1311_v33  ;;  %vm1328_vm13 = vweird.f32 %v1311_v33 }
 0x815   : > { %v1416_v40 = vsel %vm1399_vm10, %v1414_v37, %v1415_v38  ;;  %v2198_v41 = vsel %vm1393_vm11, %v1410_v39, %v1411_v36  ;;  %1452 = vmatpush.msrb.mxu0 %v1354_v9 }
 0x816   : > { %v1687_v44 = vpack.i.bf16 %v1416_v40, %v1394_v15  ;;  %v1360_v15 = vld [vmem:[%s2341_s13 + $0x80] sm:$0xff] }
 0x817   : > { %1453 = vmatpush.msrb.mxu0 %v1353_v17  ;;  %v1711_v17 = vld [vmem:[%s2343_s15] ss:$0 sm:$0xff] }
 0x818   : > { %1688 = vrot.lane.b32.xlu1 %v1687_v44, %s1786_s23 }
 0x819   : > { %1454 = vmatpush.msrb.mxu0 %v1352_v19  ;;  %v1712_v19 = vld [vmem:[%s2344_s16] ss:$0 sm:$0xff] }
 0x81a   : > { %v1762_v10 = vpop.eup %1761 }
 0x81b   : > { %v1323_v42 = vmul.f32 %v1762_v10, %v1311_v33  ;;  %vm1329_vm12 = vweird.f32 %v1762_v10  ;;  %1455 = vmatpush.msrb.mxu0 %v1351_v21 }
 0x81c   : > { %vm1330_vm14 = vmor %vm1328_vm13, %vm1329_vm12 }
 0x81d   : > { %v1324_v43 = vmul.f32 %v1762_v10, %v1323_v42  ;;  %1456 = vmatpush.msrb.mxu0 %v1350_v23 }
 0x81f   : > { %v1325_v4 = vmul.f32 0.5, %v1324_v43  ;;  %1457 = vmatpush.msrb.mxu0 %v1349_v25 }
 0x821   : > { %v1326_v45 = vsub.f32 1.5, %v1325_v4  ;;  %1458 = vmatpush.msrb.mxu0 %v1348_v27 }
 0x823   : > { %v1327_v46 = vmul.f32 %v1762_v10, %v1326_v45  ;;  %1459 = vmatpush.msrb.mxu0 %v1347_v13 }
 0x825   : > { %v1331_v47 = vsel %vm1330_vm14, %v1762_v10, %v1327_v46  ;;  %1460 = vmatpush.msrb.mxu0 %v1346_v30 }
 0x826   : > { %v1333_v5 = vmul.f32 %v1331_v47, %v2169_v2  ;;  %v1373_v2 = vld [vmem:[%s2341_s13 + $0xe8] sm:$0xff]  ;;  %v1710_v47 = vld [vmem:[%s2342_s14] ss:$0 sm:$0xff] }
 0x827   : > { %1469 = vmatpush.msrb.mxu1 %v1373_v2  ;;  %1461 = vmatpush.msrb.mxu0 %v1345_v8 }
 0x828   : > { %v1338_v48 = vmul.f32 %v1708_v24, %v1333_v5  ;;  %v1366_v24 = vld [vmem:[%s2341_s13 + $0xb0] sm:$0xff] }
 0x829   : > { %1470 = vmatpush.msrb.mxu1 %v1372_v28  ;;  %1462 = vmatpush.msrb.mxu0 %v1344_v12 }
 0x82a   : > { %v1343_v49 = vadd.f32 %v1709_v29, %v1338_v48  ;;  %v1364_v29 = vld [vmem:[%s2341_s13 + $0xa0] sm:$0xff] }
 0x82b   : > { %1471 = vmatpush.msrb.mxu1 %v1371_v7 }
 0x82c   : > { %v1388_v51 = vrot.slane %v1343_v49, 7 }
 0x82d   : > { %1472 = vmatpush.msrb.mxu1 %v1370_v14 }
 0x82e   : > { %v1390_v52 = vsel %vm1384_vm9, 0.0, %v1388_v51  ;;  %v1391_v53 = vsel %vm1384_vm9, %v1388_v51, 0.0 }
 0x82f   : > { %v1692_v54 = vpack.i.bf16 %v1390_v52, %v1400_v50  ;;  %v1425_v55 = vrot.slane %v1390_v52, 1  ;;  %v1431_v56 = vrot.slane %v1390_v52, 2  ;;  %v1432_v57 = vrot.slane %v1391_v53, 2  ;;  %1473 = vmatpush.msrb.mxu1 %v1369_v18 }
 0x830   : > { %v1426_v59 = vrot.slane %v1391_v53, 1  ;;  %v1787_v53 = vmov 64.0  }
 0x831   : > { %1693 = vrot.lane.b32.xlu2 %v1692_v54, %s1779_s1  ;;  %v1433_v58 = vsel %vm1399_vm10, %v1431_v56, %v1432_v57  ;;  %1474 = vmatpush.msrb.mxu1 %v1368_v20  ;;  %1763 = vrcp.f32 %v1787_v53 }
 0x832   : > { %1638 = vmatmul.msk.f32.vlgmr.msra.gmra.mxu2 %vm557_vm0, %v1433_v58  ;;  %v1427_v60 = vsel %vm1393_vm11, %v1425_v55, %v1426_v59 }
 0x833   : > { %v1697_v61 = vpack.i.bf16 %v1427_v60, %v1385_v34  ;;  %1475 = vmatpush.msrb.mxu1 %v1367_v22 }
 0x835   : > { %1698 = vrot.lane.b32.xlu0 %v1697_v61, %s1778_s19  ;;  %1476 = vmatpush.msrb.mxu1 %v1366_v24  ;;  %s1607_s19 = sshll.u32 %s2352_s25, 3 }
 0x836   : > { %s546_s27 = scalar_lea.vmem %s2345_s17, %s1607_s19 }
 0x837   : > { %1477 = vmatpush.msrb.mxu1 %v1365_v26  ;;  %v1764_v54 = vpop.eup %1763 }
 0x838   : > { %v1513_v55 = vmul.f32 64.0, %v1764_v54 }
 0x839   : > { %1478 = vmatpush.msrb.mxu1 %v1364_v29 }
 0x83a   : > { %v1514_v56 = vsub.f32 1.0, %v1513_v55 }
 0x83b   : > { %1479 = vmatpush.msrb.mxu1 %v1363_v16 }
 0x83c   : > { %v1515_v57 = vmul.f32 %v1764_v54, %v1514_v56 }
 0x83d   : > { %1480 = vmatpush.msrb.mxu1 %v1362_v31 }
 0x83e   : > { %v1516_v59 = vadd.f32 %v1764_v54, %v1515_v57 }
 0x83f   : > { %1481 = vmatpush.msrb.mxu1 %v1361_v32 }
 0x841   : > { %1482 = vmatpush.msrb.mxu1 %v1360_v15 }
 0x88a   : > { %v1689_v33 = vpop.permute.xlu1 %1688 }
 0x88b   : > { %v1691_v34 = vunpack.i.h.bf16 %v1689_v33  ;;  %v1690_v35 = vunpack.i.l.bf16 %v1689_v33  ;;  %v1694_v36 = vpop.permute.xlu2 %1693 }
 0x88c   : > { %v1696_v37 = vunpack.i.h.bf16 %v1694_v36  ;;  %v1695_v38 = vunpack.i.l.bf16 %v1694_v36 }
 0x88d   : > { %v1434_v39 = vsel %vm557_vm0, 0.0, %v1690_v35  ;;  %v1439_v40 = vsel %vm557_vm0, %v2198_v41, %v1691_v34  ;;  %vm1517_vm0 = vweird.f32 %v1764_v54 }
 0x88e   : > { %v1440_v43 = vsel %vm1435_vm15, %v1439_v40, %v1696_v37  ;;  %v1436_v4 = vsel %vm1435_vm15, %v1434_v39, %v1695_v38  ;;  %v1518_v58 = vsel %vm1517_vm0, %v1764_v54, %v1516_v59 }
 0x8a7   : > { %v1699_v44 = vpop.permute.xlu0 %1698 }
 0x8a8   : > { %v1701_v10 = vunpack.i.h.bf16 %v1699_v44  ;;  %v1700_v42 = vunpack.i.l.bf16 %v1699_v44 }
 0x8aa   : > { %v1438_v45 = vsel %vm1437_vm1, %v1436_v4, %v1700_v42  ;;  %v1441_v46 = vsel %vm1437_vm1, %v1440_v43, %v1701_v10 }
 0x8ab   : > { %1463 = vmatmul.f32.vlgmr.msrb.gmra.mxu0 %v1438_v45  ;;  %1483 = vmatmul.f32.vlgmr.msrb.gmra.mxu1 %v1441_v46 }
 0x8b5   : > { %v1504_v50 = vpop.f32.mrf.mxu2 }
 0x928   : > { %v1464_v5 = vpop.f32.mrf.mxu0  ;;  %v1484_v41 = vpop.f32.mrf.mxu1 }
 0x929   : > { %v1465_v48 = vadd.f32 %v1710_v47, %v1464_v5 }
 0x92b   : > { %v1485_v49 = vadd.f32 %v1484_v41, %v1465_v48 }
 0x92d   : > { %v1505_v51 = vadd.f32 %v1504_v50, %v1485_v49 }
 0x92f   : > { %v1509_v52 = vsel %vm1435_vm15, %v1505_v51, 0.0 }
 0x930   : > { %1510 = vadd.xlane.f32.xlu1 %v1509_v52 }
 0x9a3   : > { %v1511_v60 = vpop.xlane.xlu1 %1510 }
 0x9a4   : > { %v1519_v61 = vmul.f32 %v1518_v58, %v1511_v60 }
 0x9a6   : > { %v1520_v62 = vsub.f32 %v1505_v51, %v1519_v61 }
 0x9a8   : > { %v1521_v63 = vmul.f32 %v1520_v62, %v1520_v62 }
 0x9aa   : > { %v1522_v0 = vsel %vm1435_vm15, %v1521_v63, 0.0 }
 0x9ab   : > { %1523 = vadd.xlane.f32.xlu0 %v1522_v0 }
 0xa1e   : > { %v1524_v1 = vpop.xlane.xlu0 %1523 }
 0xa1f   : > { %v1525_v11 = vmul.f32 %v1524_v1, %v1518_v58 }
 0xa21   : > { %v1526_v2 = vadd.f32 1e-05, %v1525_v11 }
 0xa23   : > { %1765 = vrsqrt.f32 %v1526_v2  ;;  %vm1533_vm3 = vweird.f32 %v1526_v2 }
 0xa29   : > { %v1766_v3 = vpop.eup %1765 }
 0xa2a   : > { %v1528_v28 = vmul.f32 %v1766_v3, %v1526_v2  ;;  %vm1534_vm2 = vweird.f32 %v1766_v3 }
 0xa2b   : > { %vm1535_vm4 = vmor %vm1533_vm3, %vm1534_vm2 }
 0xa2c   : > { %v1529_v6 = vmul.f32 %v1766_v3, %v1528_v28 }
 0xa2e   : > { %v1530_v7 = vmul.f32 0.5, %v1529_v6 }
 0xa30   : > { %v1531_v9 = vsub.f32 1.5, %v1530_v7 }
 0xa32   : > { %v1532_v14 = vmul.f32 %v1766_v3, %v1531_v9 }
 0xa34   : > { %v1536_v18 = vsel %vm1535_vm4, %v1766_v3, %v1532_v14 }
 0xa35   : > { %v1537_v20 = vmul.f32 %v1536_v18, %v1520_v62 }
 0xa37   : > { %v1541_v21 = vmul.f32 %v1711_v17, %v1537_v20 }
 0xa39   : > { %v1545_v22 = vadd.f32 %v1712_v19, %v1541_v21 }
 0xa3b   : > { %1546 = vst.msk [vmem:[%s546_s27] sm:$0xff] %vm1435_vm15, %v1545_v22 }
 0xa3c PF: > { %s27_s24 = sadd.s32 1, %s1773_s24  }
 0xa3d   : > { %p24_p4 = scmp.ge.s32.totalorder %s27_s24, 4  }
 0xa3f   :  { %26 = sbr.rel (!%p24_p4) target bundleno = 3 (0x3), region = 118 }

// kernel: _lambda_.9
= control target key start
LH: loop header
LB: loop body
LE: loop exit
PB: predicated region body
PF: predicated region fallthrough
CT: control target
= control target key end

     0   :  { %s2905_s0 = inlined_call_operand.vmem [shape: f32[2,8,64], index: 0, kind: input, shape index: {}]   ;;  %s2906_s1 = inlined_call_operand.vmem [shape: f32[1,64,192], index: 1, kind: input, shape index: {}]   ;;  %s2907_s2 = inlined_call_operand.vmem [shape: f32[1,1,192], index: 2, kind: input, shape index: {}]   ;;  %s2908_s3 = inlined_call_operand.vmem [shape: f32[1,64,64], index: 3, kind: input, shape index: {}]   ;;  %s2909_s4 = inlined_call_operand.hbm [shape: f32[1,1,64], index: 4, kind: input, shape index: {}]   ;;  %s2910_s5 = inlined_call_operand.hbm [shape: f32[1,1,64], index: 5, kind: input, shape index: {}]   ;;  %s2911_s6 = inlined_call_operand.hbm [shape: f32[1,1,64], index: 6, kind: input, shape index: {}]   ;;  %s2912_s7 = inlined_call_operand.vmem [shape: f32[1,64,256], index: 7, kind: input, shape index: {}]   ;;  %s2913_s8 = inlined_call_operand.vmem [shape: f32[1,1,256], index: 8, kind: input, shape index: {}]   ;;  %s2914_s9 = inlined_call_operand.vmem [shape: f32[1,256,64], index: 9, kind: input, shape index: {}]   ;;  %s2915_s10 = inlined_call_operand.hbm [shape: f32[1,1,64], index: 10, kind: input, shape index: {}]   ;;  %s2916_s11 = inlined_call_operand.hbm [shape: f32[1,1,64], index: 11, kind: input, shape index: {}]   ;;  %s2917_s12 = inlined_call_operand.hbm [shape: f32[1,1,64], index: 12, kind: input, shape index: {}]   ;;  %s2918_s13 = inlined_call_operand.vmem [shape: f32[4,8], index: 13, kind: input, shape index: {}]   ;;  %s2919_s14 = inlined_call_operand.vmem [shape: f32[64,64], index: 14, kind: input, shape index: {}]   ;;  %s2920_s15 = inlined_call_operand.vmem [shape: f32[64,96], index: 15, kind: input, shape index: {}]   ;;  %s2921_s16 = inlined_call_operand.hbm [shape: f32[1,96], index: 16, kind: input, shape index: {}]   ;;  %s2922_s17 = inlined_call_operand.vmem [shape: f32[2,4,96], index: 17, kind: output, shape index: {}]  }
   0x1   :  { %2926 = sst [smem:[#allocation17_spill]] %s2905_s0 }
   0x2   :  { %2927 = sst [smem:[#allocation18_spill]] %s2906_s1 }
   0x3   :  { %2928 = sst [smem:[#allocation19_spill]] %s2910_s5 }
   0x4   :  { %2929 = sst [smem:[#allocation20_spill]] %s2915_s10 }
   0x5   :  { %2930 = sst [smem:[#allocation21_spill]] %s2917_s12 }
   0x6   :  { %22 = vsyncpa [#allocation3], 0 }
   0x7   :  { %23 = vsyncpa [#allocation5], 0 }
   0x8   :  { %24 = vsyncpa [#allocation8], 0 }
   0x9   :  { %25 = vsyncpa [#allocation11], 0  ;;  %s2395_s24 = smov 0  }
   0xa LB: > { %s2931_s5 = sld [smem:[#allocation19_spill]]  ;;  %s2404_s28 = sadd.s32 4294967295, %s2279_s24   ;;  %s2279_s24 = sphi %s2395_s24, %s31_s24  }
   0xb   : > { %p1845_p0 = scmp.ge.s32.totalorder %s2279_s24, 1  ;;  %p424_p1 = scmp.lt.s32.totalorder %s2279_s24, 3 }
   0xc   : > { %p1948_p2 = scmp.eq.s32.totalorder %s2404_s28, 0  ;;  %s2281_s0 = smov [#allocation4]  }
   0xd   : > { %p2409_p3 = pnand %p1845_p0, %p424_p1  ;;  %s459_s30 = sshll.u32 %s2281_s0, 4  ;;  %s460_s30 = int_to_ptr.vmem [resolvable:$true] %s459_s30 }
   0xe   : > { %s2933_s10 = sld [smem:[#allocation20_spill]]  ;;  %s2282_s25 = smov [#allocation7]  }
   0xf   : > { %p1926_p4 = pneg %p2409_p3  ;;  %s2934_s12 = sld [smem:[#allocation21_spill]] }
  0x10   : > { %s457_s27 = sshll.u32 %s2931_s5, 4  ;;  %s492_s26 = sshll.u32 %s2282_s25, 4  ;;  %s458_s27 = int_to_ptr.hbm [resolvable:$true] %s457_s27  ;;  %s493_s26 = int_to_ptr.vmem [resolvable:$true] %s492_s26 }
  0x11   : > { %p2423_p5 = pnand %p1948_p2, %p1926_p4  ;;  %s2283_s0 = smov [#allocation10]  }
  0x12   : > { %s516_s18 = sshll.u32 %s2283_s0, 4  ;;  %s445_s21 = sshll.u32 %s2909_s4, 4  ;;  %s517_s18 = int_to_ptr.vmem [resolvable:$true] %s516_s18  ;;  %s446_s21 = int_to_ptr.hbm [resolvable:$true] %s445_s21 }
  0x13   : > { %1932 = dma.hbm_to_vmem [thread:$0]  (!%p2423_p5), %s458_s27, 16, %s460_s30, [#allocation5]  }
  0x14   : > { %s490_s1 = sshll.u32 %s2933_s10, 4  ;;  %s469_s10 = sshll.u32 %s2911_s6, 4  ;;  %s491_s1 = int_to_ptr.hbm [resolvable:$true] %s490_s1  ;;  %s470_s10 = int_to_ptr.hbm [resolvable:$true] %s469_s10 }
  0x15   : > { %s514_s22 = sshll.u32 %s2934_s12, 4  ;;  %s2284_s12 = smov [#allocation2]   ;;  %s515_s22 = int_to_ptr.hbm [resolvable:$true] %s514_s22 }
  0x16   : > { %1938 = dma.hbm_to_vmem [thread:$0]  (!%p2423_p5), %s491_s1, 16, %s493_s26, [#allocation8]  }
  0x17   : > { %1944 = dma.hbm_to_vmem [thread:$0]  (!%p2423_p5), %s515_s22, 16, %s517_s18, [#allocation11]  }
  0x18   : > { %s447_s27 = sshll.u32 %s2284_s12, 4  ;;  %s2285_s30 = smov [#allocation6]   ;;  %s448_s27 = int_to_ptr.vmem [resolvable:$true] %s447_s27 }
  0x19   : > { %1929 = dma.hbm_to_vmem [thread:$0]  (!%p2423_p5), %s446_s21, 16, %s448_s27, [#allocation3]  }
  0x1a   : > { %s471_s1 = sshll.u32 %s2285_s30, 4  ;;  %s502_s19 = sshll.u32 %s2916_s11, 4  ;;  %s472_s1 = int_to_ptr.vmem [resolvable:$true] %s471_s1  ;;  %s503_s19 = int_to_ptr.hbm [resolvable:$true] %s502_s19 }
  0x1b   : > { %1935 = dma.hbm_to_vmem [thread:$0]  (!%p2423_p5), %s470_s10, 16, %s472_s1, [#allocation5]  }
  0x1c   : > { %s535_s18 = sshll.u32 %s2921_s16, 4  ;;  %s2286_s12 = smov [#allocation9]   ;;  %s536_s18 = int_to_ptr.hbm [resolvable:$true] %s535_s18 }
  0x1d   : > { %s504_s20 = sshll.u32 %s2286_s12, 4  ;;  %s2287_s21 = smov [#allocation12]   ;;  %s505_s20 = int_to_ptr.vmem [resolvable:$true] %s504_s20 }
  0x1e   : > { %1941 = dma.hbm_to_vmem [thread:$0]  (!%p2423_p5), %s503_s19, 16, %s505_s20, [#allocation8]  }
  0x1f   : > { %s537_s25 = sshll.u32 %s2287_s21, 4  ;;  %557 = sbr.rel (%p2409_p3) target bundleno = 2599 (0xa27), region = 88  ;;  %s538_s25 = int_to_ptr.vmem [resolvable:$true] %s537_s25 }
  0x20   : > { %1947 = dma.hbm_to_vmem [thread:$0]  (!%p2423_p5), %s536_s18, 16, %s538_s25, [#allocation11]  }
  0x24   : > { %2262 = dma.done.wait (%p1948_p2), [#allocation3], 16  }
  0x25   : > { %2264 = vsyncadd (%p1948_p2), [#allocation3], 4294967280 }
  0x26   : > { %2266 = dma.done.wait (%p1948_p2), [#allocation5], 32  }
  0x27   : > { %2268 = vsyncadd (%p1948_p2), [#allocation5], 4294967264 }
  0x28   : > { %2270 = dma.done.wait (%p1948_p2), [#allocation8], 32  }
  0x29   : > { %2272 = vsyncadd (%p1948_p2), [#allocation8], 4294967264 }
  0x2a   : > { %2274 = dma.done.wait (%p1948_p2), [#allocation11], 32  }
  0x2b   : > { %2276 = vsyncadd (%p1948_p2), [#allocation11], 4294967264  ;;  %p638_p6 = scmp.lt.s32.totalorder %s2404_s28, 1  ;;  %s2936_s23 = sld [smem:[#allocation18_spill]]  ;;  %vm669_vm0 = vcmask 523264   ;;  %vm767_vm1 = vcmask 64512  }
  0x2c   : > { %s2937_s27 = sld [smem:[#allocation17_spill]]  ;;  %v2510_v9 = vld [vmem:[%s2907_s2] sm:$0x3]  ;;  %s2288_s5 = smov 88   ;;  %vm1283_vm2 = vcmask 130048   ;;  %vm1285_vm3 = vcmask 195584  }
  0x2d   : > { %s2941_s28 = smov (!%p638_p6, %s2404_s28), 1  ;;  %v665_v10 = vperm.slane %v2510_v9, 0  ;;  %s2289_s22 = smov 104   ;;  %v666_v44 = vperm.slane %v2510_v9, 1  ;;  %vm1287_vm4 = vcmask 261120   ;;  %vm1289_vm5 = vcmask 326656  }
  0x2e   : > { %s1862_s18 = sshll.u32 %s2941_s28, 3  ;;  %s2925_s12 = smov 80   ;;  %vm1291_vm6 = vcmask 392192   ;;  %vm1293_vm7 = vcmask 457728  }
  0x2f   : > { %s2292_s20 = smov 96   ;;  %s2293_s21 = smov 112  }
  0x30   : > { %s2924_s25 = smov 72   ;;  %s2295_s1 = smov 64  }
  0x31   : > { %v661_v0 = vld [vmem:[%s2936_s23 + $0x70] sm:$0xff]  ;;  %v659_v1 = vld [vmem:[%s2936_s23 + $0x60] sm:$0xff]  ;;  %v662_v13 = vld [vmem:[%s2936_s23 + $0x78] sm:$0xff]  ;;  %s2301_s19 = smov 40   ;;  %s2302_s10 = smov 56  }
  0x32   : > { %681 = vmatpush.msra.mxu0 %v661_v0  ;;  %v657_v2 = vld [vmem:[%s2936_s23 + $0x50] sm:$0xff]  ;;  %v655_v3 = vld [vmem:[%s2936_s23 + $0x40] sm:$0xff]  ;;  %s641_s30 = scalar_lea.vmem %s2937_s27, %s1862_s18  ;;  %s2290_s18 = smov 120   ;;  %v660_v14 = vld [vmem:[%s2936_s23 + $0x68] sm:$0xff]  ;;  %701 = vmatpush.msra.mxu1 %v662_v13 }
  0x33   : > { %v653_v4 = vld [vmem:[%s2936_s23 + $0x30] sm:$0xff]  ;;  %v651_v5 = vld [vmem:[%s2936_s23 + $0x20] sm:$0xff]  ;;  %v658_v22 = vld [vmem:[%s2936_s23 + $0x58] sm:$0xff] }
  0x34   : > { %682 = vmatpush.msra.mxu0 %v659_v1  ;;  %v649_v6 = vld [vmem:[%s2936_s23 + $0x10] sm:$0xff]  ;;  %v647_v7 = vld [vmem:[%s2936_s23] sm:$0xff]  ;;  %702 = vmatpush.msra.mxu1 %v660_v14  ;;  %v656_v23 = vld [vmem:[%s2936_s23 + $0x48] sm:$0xff] }
  0x35   : > { %v2503_v8 = vld [vmem:[%s641_s30] sm:$0xff]  ;;  %v654_v24 = vld [vmem:[%s2936_s23 + $0x38] sm:$0xff]  ;;  %v652_v25 = vld [vmem:[%s2936_s23 + $0x28] sm:$0xff] }
  0x36   : > { %683 = vmatpush.msra.mxu0 %v657_v2  ;;  %703 = vmatpush.msra.mxu1 %v658_v22  ;;  %v650_v26 = vld [vmem:[%s2936_s23 + $0x18] sm:$0xff]  ;;  %v648_v27 = vld [vmem:[%s2936_s23 + $0x8] sm:$0xff] }
  0x38   : > { %684 = vmatpush.msra.mxu0 %v655_v3  ;;  %704 = vmatpush.msra.mxu1 %v656_v23 }
  0x3a   : > { %685 = vmatpush.msra.mxu0 %v653_v4  ;;  %705 = vmatpush.msra.mxu1 %v654_v24 }
  0x3c   : > { %686 = vmatpush.msra.mxu0 %v651_v5  ;;  %706 = vmatpush.msra.mxu1 %v652_v25 }
  0x3e   : > { %687 = vmatpush.msra.mxu0 %v649_v6  ;;  %707 = vmatpush.msra.mxu1 %v650_v26 }
  0x40   : > { %688 = vmatpush.msra.mxu0 %v647_v7  ;;  %708 = vmatpush.msra.mxu1 %v648_v27 }
  0x41   : > { %1864 = vmatmul.msk.f32.vlgmr.msra.gmra.mxu0 %vm669_vm0, %v2503_v8  ;;  %1865 = vmatmul.msk.f32.vlgmr.msra.gmra.mxu1 %vm669_vm0, %v2503_v8 }
  0xbe   : > { %v690_v11 = vpop.f32.mrf.mxu0  ;;  %v710_v45 = vpop.f32.mrf.mxu1 }
  0xbf   : > { %v2513_v12 = vadd.f32 %v690_v11, %v665_v10  ;;  %v2574_v46 = vadd.f32 %v710_v45, %v666_v44 }
  0xc1   : > { %726 = vrot.lane.b32.xlu2 %v2513_v12, %s2288_s5  ;;  %720 = vrot.lane.b32.xlu1 %v2513_v12, %s2289_s22  ;;  %v735_v40 = vmul.f32 0.35355338, %v2513_v12 }
  0xc2   : > { %714 = vrot.lane.b32.xlu0 %v2513_v12, %s2290_s18 }
  0xc9   : > { %729 = vrot.lane.b32.xlu2 %v2513_v12, %s2925_s12  ;;  %723 = vrot.lane.b32.xlu1 %v2513_v12, %s2292_s20  ;;  %s2297_s12 = smov 32  }
  0xca   : > { %717 = vrot.lane.b32.xlu0 %v2513_v12, %s2293_s21 }
  0xd2   : > { %732 = vrot.lane.b32.xlu0 %v2513_v12, %s2924_s25  ;;  %s2300_s25 = smov 48  }
 0x11b   : > { %v727_v17 = vpop.permute.xlu2 %726 }
 0x11c   : > { %v740_v42 = vmul.f32 0.35355338, %v727_v17 }
 0x123   : > { %v730_v19 = vpop.permute.xlu2 %729 }
 0x124   : > { %v741_v43 = vmul.f32 0.35355338, %v730_v19 }
 0x133   : > { %v721_v15 = vpop.permute.xlu1 %720 }
 0x134   : > { %v715_v16 = vpop.permute.xlu0 %714  ;;  %847 = vrot.lane.b32.xlu0 %v721_v15, %s2295_s1  ;;  %v738_v39 = vmul.f32 0.35355338, %v721_v15 }
 0x135   : > { %793 = vrot.lane.b32.xlu1 %v715_v16, %s2295_s1  ;;  %v736_v35 = vmul.f32 0.35355338, %v715_v16 }
 0x13b   : > { %v724_v20 = vpop.permute.xlu1 %723 }
 0x13c   : > { %v718_v18 = vpop.permute.xlu0 %717  ;;  %901 = vrot.lane.b32.xlu0 %v727_v17, %s2295_s1  ;;  %v739_v31 = vmul.f32 0.35355338, %v724_v20 }
 0x13d   : > { %765 = vrot.lane.b32.xlu1 %v2513_v12, %s2295_s1  ;;  %820 = vrot.lane.b32.xlu2 %v718_v18, %s2295_s1  ;;  %v737_v29 = vmul.f32 0.35355338, %v718_v18 }
 0x144   : > { %v733_v21 = vpop.permute.xlu0 %732 }
 0x145   : > { %928 = vrot.lane.b32.xlu1 %v730_v19, %s2295_s1  ;;  %874 = vrot.lane.b32.xlu2 %v724_v20, %s2295_s1  ;;  %v742_v36 = vmul.f32 0.35355338, %v733_v21 }
 0x14d   : > { %955 = vrot.lane.b32.xlu2 %v733_v21, %s2295_s1 }
 0x197   : > { %v821_v28 = vpop.permute.xlu2 %820 }
 0x198   : > { %1870 = vmatpush.xpose.msk.msra.mxu2 %vm767_vm1, %v821_v28 }
 0x19b   : > { %1871 = vmatmul.msk.f32.vlgmr.msra.gmra.mxu2 %vm767_vm1, %v737_v29 }
 0x19f   : > { %v875_v30 = vpop.permute.xlu2 %874 }
 0x1a0   : > { %1874 = vmatpush.xpose.msk.msrb.mxu2 %vm767_vm1, %v875_v30 }
 0x1a3   : > { %1875 = vmatmul.msk.f32.vlgmr.msrb.gmra.mxu2 %vm767_vm1, %v739_v31 }
 0x1a4   : > { %1088 = vmatpush.msra.mxu2 %v2574_v46 }
 0x1a6   : > { %v848_v32 = vpop.permute.xlu0 %847 }
 0x1a7   : > { %v794_v33 = vpop.permute.xlu1 %793  ;;  %v956_v34 = vpop.permute.xlu2 %955 }
 0x1a8   : > { %1868 = vmatpush.xpose.msk.msra.mxu3 %vm767_vm1, %v794_v33  ;;  %1880 = vmatpush.xpose.msk.msrb.mxu1 %vm767_vm1, %v956_v34 }
 0x1ab   : > { %1869 = vmatmul.msk.f32.vlgmr.msra.gmra.mxu3 %vm767_vm1, %v736_v35  ;;  %1881 = vmatmul.msk.f32.vlgmr.msrb.gmra.mxu1 %vm767_vm1, %v742_v36 }
 0x1ac   : > { %1872 = vmatpush.xpose.msk.msrb.mxu3 %vm767_vm1, %v848_v32 }
 0x1ae   : > { %v902_v37 = vpop.permute.xlu0 %901 }
 0x1af   : > { %v766_v38 = vpop.permute.xlu1 %765 }
 0x1b0   : > { %1876 = vmatpush.xpose.msk.msra.mxu3 %vm767_vm1, %v902_v37  ;;  %1866 = vmatpush.xpose.msk.msrb.mxu0 %vm767_vm1, %v766_v38 }
 0x1b3   : > { %1867 = vmatmul.msk.f32.vlgmr.msrb.gmra.mxu0 %vm767_vm1, %v735_v40  ;;  %1873 = vmatmul.msk.f32.vlgmr.msrb.gmra.mxu3 %vm767_vm1, %v738_v39 }
 0x1b7   : > { %v929_v41 = vpop.permute.xlu1 %928 }
 0x1b8   : > { %1878 = vmatpush.xpose.msk.msra.mxu0 %vm767_vm1, %v929_v41 }
 0x1bb   : > { %1877 = vmatmul.msk.f32.vlgmr.msra.gmra.mxu3 %vm767_vm1, %v740_v42  ;;  %1879 = vmatmul.msk.f32.vlgmr.msra.gmra.mxu0 %vm767_vm1, %v741_v43 }
 0x21e   : > { %v844_v55 = vpop.f32.mrf.mxu2 }
 0x21f   : > { %v988_v58 = vsel %vm767_vm1, %v844_v55, -inf }
 0x226   : > { %v898_v59 = vpop.f32.mrf.mxu2 }
 0x227   : > { %v994_v60 = vsel %vm767_vm1, %v898_v59, -inf }
 0x228   : > { %v2579_v51 = vpop.f32.mrf.mxu1 }
 0x229   : > { %v1003_v53 = vsel %vm767_vm1, %v2579_v51, -inf }
 0x22e   : > { %v817_v47 = vpop.f32.mrf.mxu3 }
 0x22f   : > { %v985_v48 = vsel %vm767_vm1, %v817_v47, -inf }
 0x230   : > { %986 = vmax.xlane.f32.xlu1 %v985_v48  ;;  %v790_v49 = vpop.f32.mrf.mxu0 }
 0x231   : > { %v982_v50 = vsel %vm767_vm1, %v790_v49, -inf }
 0x232   : > { %983 = vmax.xlane.f32.xlu0 %v982_v50 }
 0x236   : > { %v871_v56 = vpop.f32.mrf.mxu3 }
 0x237   : > { %v991_v57 = vsel %vm767_vm1, %v871_v56, -inf }
 0x238   : > { %v952_v52 = vpop.f32.mrf.mxu0 }
 0x239   : > { %v1000_v54 = vsel %vm767_vm1, %v952_v52, -inf }
 0x23a   : > { %1004 = vmax.xlane.f32.xlu0 %v1003_v53  ;;  %1001 = vmax.xlane.f32.xlu2 %v1000_v54 }
 0x23e   : > { %v925_v12 = vpop.f32.mrf.mxu3 }
 0x23f   : > { %v997_v16 = vsel %vm767_vm1, %v925_v12, -inf }
 0x242   : > { %992 = vmax.xlane.f32.xlu0 %v991_v57  ;;  %989 = vmax.xlane.f32.xlu2 %v988_v58 }
 0x24a   : > { %995 = vmax.xlane.f32.xlu2 %v994_v60 }
 0x2a3   : > { %v987_v61 = vpop.xlane.xlu1 %986 }
 0x2a4   : > { %v1007_v62 = vsub.f32 %v817_v47, %v987_v61 }
 0x2a5   : > { %v984_v63 = vpop.xlane.xlu0 %983 }
 0x2a6   : > { %v1016_v0 = vmul.f32 1.442695, %v1007_v62  ;;  %v1006_v1 = vsub.f32 %v790_v49, %v984_v63 }
 0x2a8   : > { %2001 = vpow2.f32 %v1016_v0  ;;  %v1014_v2 = vmul.f32 1.442695, %v1006_v1 }
 0x2aa   : > { %2003 = vpow2.f32 %v1014_v2 }
 0x2ad   : > { %v1002_v3 = vpop.xlane.xlu2 %1001  ;;  %v1005_v25 = vpop.xlane.xlu0 %1004 }
 0x2ae   : > { %v2587_v4 = vpop.eup %2001  ;;  %v1012_v5 = vsub.f32 %v952_v52, %v1002_v3  ;;  %v1013_v30 = vsub.f32 %v2579_v51, %v1005_v25 }
 0x2af   : > { %v1033_v6 = vsel %vm767_vm1, %v2587_v4, 0.0 }
 0x2b0   : > { %v2004_v7 = vpop.eup %2003  ;;  %v1026_v9 = vmul.f32 1.442695, %v1012_v5  ;;  %1034 = vadd.xlane.f32.xlu2 %v1033_v6  ;;  %v1028_v32 = vmul.f32 1.442695, %v1013_v30 }
 0x2b1   : > { %v1030_v10 = vsel %vm767_vm1, %v2004_v7, 0.0 }
 0x2b2   : > { %1031 = vadd.xlane.f32.xlu1 %v1030_v10  ;;  %2005 = vpow2.f32 %v1026_v9 }
 0x2b5   : > { %v990_v11 = vpop.xlane.xlu2 %989  ;;  %v993_v26 = vpop.xlane.xlu0 %992 }
 0x2b6   : > { %v1008_v13 = vsub.f32 %v844_v55, %v990_v11  ;;  %v1009_v27 = vsub.f32 %v871_v56, %v993_v26 }
 0x2b8   : > { %v1018_v14 = vmul.f32 1.442695, %v1008_v13  ;;  %v2592_v15 = vpop.eup %2005  ;;  %v1020_v28 = vmul.f32 1.442695, %v1009_v27 }
 0x2b9   : > { %v1048_v17 = vsel %vm767_vm1, %v2592_v15, 0.0 }
 0x2ba   : > { %998 = vmax.xlane.f32.xlu1 %v997_v16  ;;  %2007 = vpow2.f32 %v1018_v14  ;;  %1049 = vadd.xlane.f32.xlu2 %v1048_v17  ;;  %v1302_v16 = vld [vmem:[%s2908_s3 + $0x38] sm:$0xff]  ;;  %v1301_v17 = vld [vmem:[%s2908_s3 + $0x30] sm:$0xff] }
 0x2bd   : > { %v996_v18 = vpop.xlane.xlu2 %995 }
 0x2be   : > { %v1010_v19 = vsub.f32 %v898_v59, %v996_v18  ;;  %v1300_v18 = vld [vmem:[%s2908_s3 + $0x28] sm:$0xff] }
 0x2c0   : > { %v1022_v20 = vmul.f32 1.442695, %v1010_v19  ;;  %v2008_v21 = vpop.eup %2007  ;;  %v1299_v19 = vld [vmem:[%s2908_s3 + $0x20] sm:$0xff] }
 0x2c1   : > { %v1036_v22 = vsel %vm767_vm1, %v2008_v21, 0.0 }
 0x2c2   : > { %2009 = vpow2.f32 %v1022_v20  ;;  %1037 = vadd.xlane.f32.xlu0 %v1036_v22  ;;  %v1298_v20 = vld [vmem:[%s2908_s3 + $0x18] sm:$0xff]  ;;  %v1296_v22 = vld [vmem:[%s2908_s3 + $0x8] sm:$0xff] }
 0x2c3   : > { %2011 = vpow2.f32 %v1020_v28 }
 0x2c4   : > { %2013 = vpow2.f32 %v1028_v32 }
 0x2c8   : > { %v2010_v23 = vpop.eup %2009 }
 0x2c9   : > { %v1042_v24 = vsel %vm767_vm1, %v2010_v23, 0.0  ;;  %v2012_v29 = vpop.eup %2011 }
 0x2ca   : > { %1043 = vadd.xlane.f32.xlu1 %v1042_v24  ;;  %v1039_v31 = vsel %vm767_vm1, %v2012_v29, 0.0  ;;  %v2014_v33 = vpop.eup %2013 }
 0x2cb   : > { %v1051_v34 = vsel %vm767_vm1, %v2014_v33, 0.0 }
 0x2d2   : > { %753 = vrot.lane.b32.xlu2 %v2574_v46, %s2292_s20  ;;  %s2298_s20 = smov 8  }
 0x2d6   : > { %747 = vrot.lane.b32.xlu0 %v2574_v46, %s2293_s21  ;;  %s2299_s21 = smov 24  }
 0x2de   : > { %750 = vrot.lane.b32.xlu0 %v2574_v46, %s2289_s22  ;;  %s2938_s22 = smov 80  }
 0x2e3   : > { %744 = vrot.lane.b32.xlu1 %v2574_v46, %s2290_s18  ;;  %s2296_s18 = smov 16  }
 0x2e6   : > { %756 = vrot.lane.b32.xlu0 %v2574_v46, %s2288_s5  ;;  %s2939_s5 = smov 72  }
 0x2fb   : > { %1040 = vadd.xlane.f32.xlu2 %v1039_v31 }
 0x30d   : > { %1052 = vadd.xlane.f32.xlu1 %v1051_v34 }
 0x313   : > { %759 = vrot.lane.b32.xlu2 %v2574_v46, %s2938_s22 }
 0x323   : > { %v1035_v36 = vpop.xlane.xlu2 %1034 }
 0x325   : > { %v1032_v35 = vpop.xlane.xlu1 %1031 }
 0x326   : > { %2015 = vrcp.f32 %v1032_v35 }
 0x32c   : > { %v2016_v37 = vpop.eup %2015 }
 0x32d   : > { %v1062_v38 = vmul.f32 %v2016_v37, %v2004_v7  ;;  %v999_v39 = vpop.xlane.xlu1 %998  ;;  %v1050_v41 = vpop.xlane.xlu2 %1049 }
 0x32e   : > { %v1011_v40 = vsub.f32 %v925_v12, %v999_v39 }
 0x32f   : > { %1882 = vmatmul.msk.f32.vlgmr.msra.gmra.mxu2 %vm767_vm1, %v1062_v38  ;;  %v1994_v38 = vld [vmem:[#allocation2] ss:$0 sm:$0xff] }
 0x330   : > { %v1024_v42 = vmul.f32 1.442695, %v1011_v40 }
 0x332   : > { %2017 = vpow2.f32 %v1024_v42 }
 0x335   : > { %v754_v43 = vpop.permute.xlu2 %753  ;;  %v1038_v47 = vpop.xlane.xlu0 %1037 }
 0x336   : > { %1180 = vmatpush.msrb.mxu2 %v754_v43  ;;  %v2303_v43 = vmov 64.0  }
 0x338   : > { %v2018_v44 = vpop.eup %2017  ;;  %1318 = vmatpush.msra.mxu2 %v1302_v16  ;;  %v1995_v16 = vld [vmem:[#allocation4] ss:$0 sm:$0xff] }
 0x339   : > { %v1045_v45 = vsel %vm767_vm1, %v2018_v44, 0.0 }
 0x33a   : > { %1046 = vadd.xlane.f32.xlu0 %v1045_v45  ;;  %1319 = vmatpush.msra.mxu2 %v1301_v17 }
 0x33c   : > { %1320 = vmatpush.msra.mxu2 %v1300_v18 }
 0x33d   : > { %v1044_v48 = vpop.xlane.xlu1 %1043 }
 0x33e   : > { %2019 = vrcp.f32 %v1044_v48  ;;  %1321 = vmatpush.msra.mxu2 %v1299_v19  ;;  %v1996_v19 = vld [vmem:[#allocation6] ss:$0 sm:$0xff] }
 0x33f   : > { %2021 = vrcp.f32 %v1038_v47 }
 0x340   : > { %2023 = vrcp.f32 %v1035_v36  ;;  %1322 = vmatpush.msra.mxu2 %v1298_v20 }
 0x341   : > { %2025 = vrcp.f32 %v1050_v41 }
 0x344   : > { %v2020_v49 = vpop.eup %2019 }
 0x345   : > { %v1066_v50 = vmul.f32 %v2020_v49, %v2010_v23  ;;  %v2022_v51 = vpop.eup %2021  ;;  %v1295_v23 = vld [vmem:[%s2908_s3] sm:$0xff] }
 0x346   : > { %v1064_v52 = vmul.f32 %v2022_v51, %v2008_v21  ;;  %v2024_v55 = vpop.eup %2023  ;;  %v1297_v21 = vld [vmem:[%s2908_s3 + $0x10] sm:$0xff] }
 0x347   : > { %1886 = vmatmul.msk.f32.vlgmr.msrb.gmra.mxu2 %vm767_vm1, %v1066_v50  ;;  %v1063_v56 = vmul.f32 %v2024_v55, %v2587_v4  ;;  %v2026_v60 = vpop.eup %2025  ;;  %v1384_v55 = vld [vmem:[%s2912_s7 + $0x70] sm:$0xff] }
 0x348   : > { %v748_v53 = vpop.permute.xlu0 %747  ;;  %v1068_v62 = vmul.f32 %v2026_v60, %v2592_v15  ;;  %1323 = vmatpush.msra.mxu2 %v1297_v21  ;;  %v1381_v60 = vld [vmem:[%s2912_s7 + $0x58] sm:$0xff] }
 0x349   : > { %1134 = vmatpush.msrb.mxu0 %v748_v53 }
 0x34a   : > { %1884 = vmatmul.msk.f32.vlgmr.msrb.gmra.mxu0 %vm767_vm1, %v1064_v52  ;;  %1324 = vmatpush.msra.mxu2 %v1296_v22  ;;  %v1386_v22 = vld [vmem:[%s2913_s8] sm:$0x3] }
 0x34c   : > { %1325 = vmatpush.msra.mxu2 %v1295_v23  ;;  %v1546_v23 = vld [vmem:[%s2914_s9 + $0xf8] sm:$0xff] }
 0x34e   : > { %762 = vrot.lane.b32.xlu0 %v2574_v46, %s2939_s5  ;;  %1571 = vmatpush.msrb.mxu2 %v1546_v23 }
 0x350   : > { %v751_v54 = vpop.permute.xlu0 %750 }
 0x351   : > { %1157 = vmatpush.msra.mxu1 %v751_v54 }
 0x355   : > { %v745_v57 = vpop.permute.xlu1 %744 }
 0x356   : > { %1111 = vmatpush.msrb.mxu3 %v745_v57  ;;  %v1382_v57 = vld [vmem:[%s2912_s7 + $0x60] sm:$0xff] }
 0x357   : > { %1883 = vmatmul.msk.f32.vlgmr.msrb.gmra.mxu3 %vm767_vm1, %v1063_v56  ;;  %v1385_v56 = vld [vmem:[%s2912_s7 + $0x78] sm:$0xff] }
 0x358   : > { %v757_v58 = vpop.permute.xlu0 %756 }
 0x359   : > { %1203 = vmatpush.msra.mxu3 %v757_v58  ;;  %v1383_v58 = vld [vmem:[%s2912_s7 + $0x68] sm:$0xff] }
 0x35b   : > { %1403 = vmatpush.msrb.mxu3 %v1384_v55  ;;  %v1536_v55 = vld [vmem:[%s2914_s9 + $0xa8] sm:$0xff] }
 0x35d   : > { %1404 = vmatpush.msrb.mxu3 %v1382_v57  ;;  %v1522_v57 = vld [vmem:[%s2914_s9 + $0x38] sm:$0xff] }
 0x36e   : > { %v1041_v59 = vpop.xlane.xlu2 %1040 }
 0x36f   : > { %2027 = vrcp.f32 %v1041_v59  ;;  %v1380_v59 = vld [vmem:[%s2912_s7 + $0x50] sm:$0xff] }
 0x370   : > { %1405 = vmatpush.msrb.mxu3 %v1380_v59 }
 0x375   : > { %v2028_v61 = vpop.eup %2027 }
 0x376   : > { %v1065_v63 = vmul.f32 %v2028_v61, %v2012_v29  ;;  %v760_v46 = vpop.permute.xlu2 %759  ;;  %v1378_v61 = vld [vmem:[%s2912_s7 + $0x40] sm:$0xff] }
 0x377   : > { %1226 = vmatpush.msra.mxu0 %v760_v46  ;;  %1406 = vmatpush.msrb.mxu3 %v1378_v61  ;;  %v1377_v46 = vld [vmem:[%s2912_s7 + $0x38] sm:$0xff]  ;;  %v1521_v61 = vld [vmem:[%s2914_s9 + $0x30] sm:$0xff] }
 0x378   : > { %1885 = vmatmul.msk.f32.vlgmr.msra.gmra.mxu1 %vm767_vm1, %v1065_v63  ;;  %1888 = vmatmul.msk.f32.vlgmr.msra.gmra.mxu0 %vm767_vm1, %v1068_v62  ;;  %v1379_v62 = vld [vmem:[%s2912_s7 + $0x48] sm:$0xff]  ;;  %v1376_v63 = vld [vmem:[%s2912_s7 + $0x30] sm:$0xff] }
 0x379   : > { %1423 = vmatpush.msrb.mxu0 %v1385_v56  ;;  %1407 = vmatpush.msrb.mxu3 %v1376_v63 }
 0x37b   : > { %1424 = vmatpush.msrb.mxu0 %v1383_v58  ;;  %v1535_v58 = vld [vmem:[%s2914_s9 + $0xa0] sm:$0xff] }
 0x37d   : > { %1425 = vmatpush.msrb.mxu0 %v1381_v60 }
 0x37f   : > { %1426 = vmatpush.msrb.mxu0 %v1379_v62  ;;  %v1534_v62 = vld [vmem:[%s2914_s9 + $0x98] sm:$0xff] }
 0x380   : > { %v1053_v2 = vpop.xlane.xlu1 %1052 }
 0x381   : > { %1427 = vmatpush.msrb.mxu0 %v1377_v46  ;;  %v1520_v46 = vld [vmem:[%s2914_s9 + $0x28] sm:$0xff] }
 0x3ad   : > { %v1047_v0 = vpop.xlane.xlu0 %1046 }
 0x3ae   : > { %2029 = vrcp.f32 %v1047_v0  ;;  %v1374_v0 = vld [vmem:[%s2912_s7 + $0x20] sm:$0xff] }
 0x3af   : > { %2031 = vrcp.f32 %v1053_v2  ;;  %1408 = vmatpush.msrb.mxu3 %v1374_v0  ;;  %v1372_v2 = vld [vmem:[%s2912_s7 + $0x10] sm:$0xff] }
 0x3b0   : > { %2033 = vrcp.f32 %v2303_v43  ;;  %v1526_v43 = vld [vmem:[%s2914_s9 + $0x58] sm:$0xff]  ;;  %v1533_v0 = vld [vmem:[%s2914_s9 + $0x90] sm:$0xff] }
 0x3b1   : > { %1409 = vmatpush.msrb.mxu3 %v1372_v2 }
 0x3b2   : > { %v1090_v7 = vpop.f32.mrf.mxu2 }
 0x3b4   : > { %v2030_v1 = vpop.eup %2029 }
 0x3b5   : > { %v1067_v3 = vmul.f32 %v2030_v1, %v2018_v44  ;;  %v2032_v4 = vpop.eup %2031  ;;  %v1375_v1 = vld [vmem:[%s2912_s7 + $0x28] sm:$0xff] }
 0x3b6   : > { %v1069_v5 = vmul.f32 %v2032_v4, %v2014_v33  ;;  %v2034_v44 = vpop.eup %2033  ;;  %1428 = vmatpush.msrb.mxu0 %v1375_v1  ;;  %v1370_v4 = vld [vmem:[%s2912_s7] sm:$0xff] }
 0x3b7   : > { %1887 = vmatmul.msk.f32.vlgmr.msra.gmra.mxu3 %vm767_vm1, %v1067_v3  ;;  %v1337_v45 = vmul.f32 64.0, %v2034_v44  ;;  %vm1341_vm8 = vweird.f32 %v2034_v44  ;;  %v1373_v3 = vld [vmem:[%s2912_s7 + $0x18] sm:$0xff] }
 0x3b8   : > { %1429 = vmatpush.msrb.mxu0 %v1373_v3  ;;  %1410 = vmatpush.msrb.mxu3 %v1370_v4  ;;  %v1519_v4 = vld [vmem:[%s2914_s9 + $0x20] sm:$0xff] }
 0x3b9   : > { %v1338_v47 = vsub.f32 1.0, %v1337_v45 }
 0x3bb   : > { %v1339_v48 = vmul.f32 %v2034_v44, %v1338_v47 }
 0x3bd   : > { %v1340_v49 = vadd.f32 %v2034_v44, %v1339_v48  ;;  %v1525_v48 = vld [vmem:[%s2914_s9 + $0x50] sm:$0xff] }
 0x3bf   : > { %v2655_v50 = vsel %vm1341_vm8, %v2034_v44, %v1340_v49  ;;  %v1539_v44 = vld [vmem:[%s2914_s9 + $0xc0] sm:$0xff]  ;;  %v1538_v49 = vld [vmem:[%s2914_s9 + $0xb8] sm:$0xff] }
 0x3c0   : > { %v763_v6 = vpop.permute.xlu0 %762 }
 0x3c1   : > { %1249 = vmatpush.msrb.mxu1 %v763_v6 }
 0x3c2   : > { %1889 = vmatmul.msk.f32.vlgmr.msrb.gmra.mxu1 %vm767_vm1, %v1069_v5  ;;  %v1371_v5 = vld [vmem:[%s2912_s7 + $0x8] sm:$0xff] }
 0x3c3   : > { %1430 = vmatpush.msrb.mxu0 %v1371_v5  ;;  %v1532_v5 = vld [vmem:[%s2914_s9 + $0x88] sm:$0xff] }
 0x3c7   : > { %v1136_v9 = vpop.f32.mrf.mxu0 }
 0x3c8   : > { %1259 = vrot.lane.b32.xlu0 %v1136_v9, %s2296_s18 }
 0x3ca   : > { %v1182_v10 = vpop.f32.mrf.mxu2 }
 0x3d0   : > { %1267 = vrot.lane.b32.xlu0 %v1182_v10, %s2297_s12 }
 0x3da   : > { %v1113_v11 = vpop.f32.mrf.mxu3 }
 0x3db   : > { %1255 = vrot.lane.b32.xlu2 %v1113_v11, %s2298_s20 }
 0x3f5   : > { %v1159_v12 = vpop.f32.mrf.mxu1  ;;  %v1228_v13 = vpop.f32.mrf.mxu0 }
 0x3f6   : > { %1263 = vrot.lane.b32.xlu2 %v1159_v12, %s2299_s21  ;;  %1275 = vrot.lane.b32.xlu1 %v1228_v13, %s2300_s25 }
 0x435   : > { %v1256_v24 = vpop.permute.xlu2 %1255 }
 0x436   : > { %v1282_v27 = vsel %vm767_vm1, %v1090_v7, %v1256_v24  ;;  %v1545_v24 = vld [vmem:[%s2914_s9 + $0xf0] sm:$0xff] }
 0x437   : > { %1572 = vmatpush.msrb.mxu2 %v1545_v24  ;;  %v1515_v24 = vld [vmem:[%s2914_s9] sm:$0xff] }
 0x43a   : > { %v1205_v14 = vpop.f32.mrf.mxu3  ;;  %v1260_v25 = vpop.permute.xlu0 %1259 }
 0x43b   : > { %1271 = vrot.lane.b32.xlu2 %v1205_v14, %s2301_s19  ;;  %v1284_v28 = vsel %vm1283_vm2, %v1282_v27, %v1260_v25  ;;  %v1389_v25 = vperm.slane %v1386_v22, 1  ;;  %s1863_s19 = sshll.u32 %s2941_s28, 2 }
 0x43c   : > { %s645_s27 = scalar_lea.vmem %s2922_s17, %s1863_s19 }
 0x43f   : > { %v1251_v15 = vpop.f32.mrf.mxu1 }
 0x440   : > { %1279 = vrot.lane.b32.xlu0 %v1251_v15, %s2302_s10 }
 0x442   : > { %v1268_v29 = vpop.permute.xlu0 %1267 }
 0x450   : > { %v1264_v26 = vpop.permute.xlu2 %1263 }
 0x451   : > { %v1286_v30 = vsel %vm1285_vm3, %v1284_v28, %v1264_v26  ;;  %v1544_v26 = vld [vmem:[%s2914_s9 + $0xe8] sm:$0xff]  ;;  %v1530_v28 = vld [vmem:[%s2914_s9 + $0x78] sm:$0xff] }
 0x452   : > { %v1288_v32 = vsel %vm1287_vm4, %v1286_v30, %v1268_v29  ;;  %1573 = vmatpush.msrb.mxu2 %v1544_v26  ;;  %v1543_v29 = vld [vmem:[%s2914_s9 + $0xe0] sm:$0xff]  ;;  %1551 = vmatpush.msra.mxu1 %v1530_v28 }
 0x454   : > { %1574 = vmatpush.msrb.mxu2 %v1543_v29 }
 0x468   : > { %v1276_v34 = vpop.permute.xlu1 %1275 }
 0x495   : > { %v1272_v31 = vpop.permute.xlu2 %1271 }
 0x496   : > { %v1290_v33 = vsel %vm1289_vm5, %v1288_v32, %v1272_v31  ;;  %v1529_v31 = vld [vmem:[%s2914_s9 + $0x70] sm:$0xff]  ;;  %v1542_v32 = vld [vmem:[%s2914_s9 + $0xd8] sm:$0xff] }
 0x497   : > { %v1292_v36 = vsel %vm1291_vm6, %v1290_v33, %v1276_v34  ;;  %v1388_v34 = vperm.slane %v1386_v22, 0  ;;  %1552 = vmatpush.msra.mxu1 %v1529_v31  ;;  %1575 = vmatpush.msrb.mxu2 %v1542_v32 }
 0x4b2   : > { %v1280_v35 = vpop.permute.xlu0 %1279 }
 0x4b3   : > { %v1294_v37 = vsel %vm1293_vm7, %v1292_v36, %v1280_v35  ;;  %v1528_v35 = vld [vmem:[%s2914_s9 + $0x68] sm:$0xff]  ;;  %v1541_v36 = vld [vmem:[%s2914_s9 + $0xd0] sm:$0xff] }
 0x4b4   : > { %1890 = vmatmul.msk.f32.vlgmr.msra.gmra.mxu2 %vm669_vm0, %v1294_v37  ;;  %1553 = vmatpush.msra.mxu1 %v1528_v35 }
 0x4b5   : > { %1576 = vmatpush.msrb.mxu2 %v1541_v36 }
 0x537   : > { %v1327_v39 = vpop.f32.mrf.mxu2 }
 0x538   : > { %v1328_v40 = vadd.f32 %v1994_v38, %v1327_v39  ;;  %v1527_v39 = vld [vmem:[%s2914_s9 + $0x60] sm:$0xff] }
 0x539   : > { %1554 = vmatpush.msra.mxu1 %v1527_v39 }
 0x53a   : > { %v1330_v41 = vadd.f32 %v1328_v40, %v2503_v8  ;;  %v1540_v40 = vld [vmem:[%s2914_s9 + $0xc8] sm:$0xff] }
 0x53b   : > { %1577 = vmatpush.msrb.mxu2 %v1540_v40  ;;  %1555 = vmatpush.msra.mxu1 %v1526_v43 }
 0x53c   : > { %v1333_v42 = vsel %vm669_vm0, %v1330_v41, 0.0 }
 0x53d   : > { %1334 = vadd.xlane.f32.xlu2 %v1333_v42  ;;  %1578 = vmatpush.msrb.mxu2 %v1539_v44 }
 0x53e   : > { %1556 = vmatpush.msra.mxu1 %v1525_v48 }
 0x53f   : > { %1579 = vmatpush.msrb.mxu2 %v1538_v49 }
 0x5b0   : > { %v1335_v51 = vpop.xlane.xlu2 %1334 }
 0x5b1   : > { %v1343_v52 = vmul.f32 %v2655_v50, %v1335_v51 }
 0x5b3   : > { %v1344_v53 = vsub.f32 %v1330_v41, %v1343_v52  ;;  %v1524_v52 = vld [vmem:[%s2914_s9 + $0x48] sm:$0xff] }
 0x5b4   : > { %1557 = vmatpush.msra.mxu1 %v1524_v52 }
 0x5b5   : > { %v1345_v54 = vmul.f32 %v1344_v53, %v1344_v53 }
 0x5b7   : > { %v1346_v8 = vsel %vm669_vm0, %v1345_v54, 0.0 }
 0x5b8   : > { %1347 = vadd.xlane.f32.xlu0 %v1346_v8  ;;  %v1523_v8 = vld [vmem:[%s2914_s9 + $0x40] sm:$0xff] }
 0x5b9   : > { %1558 = vmatpush.msra.mxu1 %v1523_v8 }
 0x5bb   : > { %1559 = vmatpush.msra.mxu1 %v1522_v57 }
 0x5bd   : > { %1560 = vmatpush.msra.mxu1 %v1521_v61 }
 0x5bf   : > { %1561 = vmatpush.msra.mxu1 %v1520_v46 }
 0x5c1   : > { %1562 = vmatpush.msra.mxu1 %v1519_v4 }
 0x62b   : > { %v1348_v6 = vpop.xlane.xlu0 %1347 }
 0x62c   : > { %v1349_v7 = vmul.f32 %v1348_v6, %v2655_v50 }
 0x62e   : > { %v1350_v9 = vadd.f32 1e-06, %v1349_v7 }
 0x630   : > { %2035 = vrsqrt.f32 %v1350_v9  ;;  %vm1357_vm10 = vweird.f32 %v1350_v9 }
 0x636   : > { %v2036_v10 = vpop.eup %2035 }
 0x637   : > { %v1352_v11 = vmul.f32 %v2036_v10, %v1350_v9  ;;  %vm1358_vm9 = vweird.f32 %v2036_v10  ;;  %v1518_v9 = vld [vmem:[%s2914_s9 + $0x18] sm:$0xff] }
 0x638   : > { %vm1359_vm11 = vmor %vm1357_vm10, %vm1358_vm9  ;;  %1563 = vmatpush.msra.mxu1 %v1518_v9 }
 0x639   : > { %v1353_v12 = vmul.f32 %v2036_v10, %v1352_v11 }
 0x63b   : > { %v1354_v13 = vmul.f32 0.5, %v1353_v12 }
 0x63d   : > { %v1355_v14 = vsub.f32 1.5, %v1354_v13 }
 0x63f   : > { %v1356_v15 = vmul.f32 %v2036_v10, %v1355_v14  ;;  %v1517_v14 = vld [vmem:[%s2914_s9 + $0x10] sm:$0xff] }
 0x640   : > { %1564 = vmatpush.msra.mxu1 %v1517_v14 }
 0x641   : > { %v1360_v17 = vsel %vm1359_vm11, %v2036_v10, %v1356_v15  ;;  %v1531_v10 = vld [vmem:[%s2914_s9 + $0x80] sm:$0xff] }
 0x642   : > { %v1361_v18 = vmul.f32 %v1360_v17, %v1344_v53  ;;  %v1537_v53 = vld [vmem:[%s2914_s9 + $0xb0] sm:$0xff] }
 0x643   : > { %1580 = vmatpush.msrb.mxu2 %v1537_v53 }
 0x644   : > { %v1365_v20 = vmul.f32 %v1995_v16, %v1361_v18 }
 0x645   : > { %1581 = vmatpush.msrb.mxu2 %v1536_v55 }
 0x646   : > { %v2708_v21 = vadd.f32 %v1996_v19, %v1365_v20  ;;  %v1516_v20 = vld [vmem:[%s2914_s9 + $0x8] sm:$0xff] }
 0x647   : > { %1582 = vmatpush.msrb.mxu2 %v1535_v58  ;;  %1565 = vmatpush.msra.mxu1 %v1516_v20  ;;  %v2304_v58 = vmov 1.0  }
 0x648   : > { %1891 = vmatmul.msk.f32.vlgmr.msrb.gmra.mxu3 %vm669_vm0, %v2708_v21  ;;  %1892 = vmatmul.msk.f32.vlgmr.msrb.gmra.mxu0 %vm669_vm0, %v2708_v21 }
 0x649   : > { %1583 = vmatpush.msrb.mxu2 %v1534_v62  ;;  %1566 = vmatpush.msra.mxu1 %v1515_v24  ;;  %v1651_v24 = vld [vmem:[%s2919_s14 + $0x18] sm:$0xff] }
 0x64b   : > { %1584 = vmatpush.msrb.mxu2 %v1533_v0 }
 0x64d   : > { %1585 = vmatpush.msrb.mxu2 %v1532_v5 }
 0x64f   : > { %1586 = vmatpush.msrb.mxu2 %v1531_v10 }
 0x6c5   : > { %v1432_v27 = vpop.f32.mrf.mxu0 }
 0x6c6   : > { %v2732_v30 = vadd.f32 %v1432_v27, %v1389_v25 }
 0x6c8   : > { %v2741_v33 = vmul.f32 0.70710677, %v2732_v30 }
 0x6ca   : > { %v2750_v37 = vand.u32 2147483647, %v2741_v33  ;;  %vm1440_vm6 = vcmp.lt.f32.partialorder %v2741_v33, 0.0 }
 0x6cb   : > { %v1412_v38 = vpop.f32.mrf.mxu3 }
 0x6cc   : > { %v1446_v41 = vmul.f32 0.3275911, %v2750_v37  ;;  %v2759_v42 = vadd.f32 %v1412_v38, %v1388_v34  ;;  %v1498_v16 = vsub.f32 0.0, %v2750_v37 }
 0x6ce   : > { %v1448_v45 = vadd.f32 1.0, %v1446_v41  ;;  %v2768_v47 = vmul.f32 0.70710677, %v2759_v42  ;;  %v1500_v26 = vmul.f32 %v1498_v16, %v2750_v37  ;;  %v1435_v4 = vmul.f32 0.5, %v2759_v42 }
 0x6d0   : > { %2037 = vrcp.f32 %v1448_v45  ;;  %v2777_v51 = vand.u32 2147483647, %v2768_v47  ;;  %v1475_v1 = vand.u32 2147483648, %v1448_v45  ;;  %v1473_v3 = vand.u32 2147483647, %v1448_v45 }
 0x6d1   : > { %vm1469_vm13 = vweird.f32 %v1448_v45  ;;  %v1503_v36 = vmul.f32 1.442695, %v1500_v26  ;;  %vm1439_vm7 = vcmp.lt.f32.partialorder %v2768_v47, 0.0 }
 0x6d2   : > { %v1445_v54 = vmul.f32 0.3275911, %v2777_v51  ;;  %v1476_v11 = vor.u32 1.1754944e-38, %v1475_v1  ;;  %vm1474_vm15 = vcmp.eq.f32.partialorder %v1473_v3, 8.507059e+37  ;;  %v1497_v35 = vsub.f32 0.0, %v2777_v51 }
 0x6d3   : > { %v1441_v3 = vsel %vm1439_vm7, -1.0, %v2304_v58 }
 0x6d4   : > { %v1447_v56 = vadd.f32 1.0, %v1445_v54  ;;  %v1499_v43 = vmul.f32 %v1497_v35, %v2777_v51 }
 0x6d6   : > { %v2038_v59 = vpop.eup %2037  ;;  %2039 = vrcp.f32 %v1447_v56  ;;  %v1460_v19 = vand.u32 2147483648, %v1447_v56  ;;  %v1458_v23 = vand.u32 2147483647, %v1447_v56  ;;  %vm1454_vm3 = vweird.f32 %v1447_v56 }
 0x6d7   : > { %v1465_v60 = vmul.f32 %v2038_v59, %v1448_v45  ;;  %vm1470_vm12 = vweird.f32 %v2038_v59  ;;  %2041 = vpow2.f32 %v1503_v36  ;;  %v1501_v49 = vmul.f32 1.442695, %v1499_v43  ;;  %v1648_v43 = vld [vmem:[%s2919_s14] sm:$0xff] }
 0x6d8   : > { %vm1471_vm14 = vmor %vm1469_vm13, %vm1470_vm12  ;;  %v1461_v29 = vor.u32 1.1754944e-38, %v1460_v19  ;;  %vm1459_vm5 = vcmp.eq.f32.partialorder %v1458_v23, 8.507059e+37  ;;  %v1653_v19 = vld [vmem:[%s2919_s14 + $0x28] sm:$0xff] }
 0x6d9   : > { %v1466_v63 = vsub.f32 1.0, %v1465_v60  ;;  %2043 = vpow2.f32 %v1501_v49  ;;  %v1688_v49 = vld [vmem:[%s2920_s15 + $0x20] sm:$0xff] }
 0x6db   : > { %v1467_v2 = vmul.f32 %v2038_v59, %v1466_v63  ;;  %v1436_v63 = vmul.f32 0.5, %v2732_v30 }
 0x6dc   : > { %v2040_v6 = vpop.eup %2039 }
 0x6dd   : > { %v1468_v7 = vadd.f32 %v2038_v59, %v1467_v2  ;;  %v1450_v12 = vmul.f32 %v2040_v6, %v1447_v56  ;;  %vm1455_vm2 = vweird.f32 %v2040_v6  ;;  %v2042_v54 = vpop.eup %2041 }
 0x6de   : > { %vm1456_vm4 = vmor %vm1454_vm3, %vm1455_vm2 }
 0x6df   : > { %v1472_v13 = vsel %vm1471_vm14, %v2038_v59, %v1468_v7  ;;  %v1451_v17 = vsub.f32 1.0, %v1450_v12  ;;  %v1442_v59 = vsel %vm1440_vm6, -1.0, %v2304_v58  ;;  %v2044_v62 = vpop.eup %2043  ;;  %v1997_v7 = vld [vmem:[#allocation7] ss:$0 sm:$0xff] }
 0x6e0   : > { %v1477_v15 = vsel %vm1474_vm15, %v1476_v11, %v1472_v13 }
 0x6e1   : > { %v1480_v18 = vmul.f32 1.0614054, %v1477_v15  ;;  %v1452_v22 = vmul.f32 %v2040_v6, %v1451_v17  ;;  %v1655_v17 = vld [vmem:[%s2919_s14 + $0x38] sm:$0xff] }
 0x6e2   : > { %1667 = vmatpush.msra.mxu0 %v1655_v17 }
 0x6e3   : > { %v1482_v25 = vadd.f32 -1.4531521, %v1480_v18  ;;  %v1453_v27 = vadd.f32 %v2040_v6, %v1452_v22  ;;  %v1654_v18 = vld [vmem:[%s2919_s14 + $0x30] sm:$0xff]  ;;  %v1652_v22 = vld [vmem:[%s2919_s14 + $0x20] sm:$0xff] }
 0x6e4   : > { %1668 = vmatpush.msra.mxu0 %v1654_v18 }
 0x6e5   : > { %v1484_v28 = vmul.f32 %v1482_v25, %v1477_v15  ;;  %v1457_v31 = vsel %vm1456_vm4, %v2040_v6, %v1453_v27  ;;  %v1650_v25 = vld [vmem:[%s2919_s14 + $0x10] sm:$0xff] }
 0x6e6   : > { %v1462_v34 = vsel %vm1459_vm5, %v1461_v29, %v1457_v31  ;;  %1669 = vmatpush.msra.mxu0 %v1653_v19 }
 0x6e7   : > { %v1486_v32 = vadd.f32 1.4214138, %v1484_v28  ;;  %v1479_v38 = vmul.f32 1.0614054, %v1462_v34 }
 0x6e8   : > { %1670 = vmatpush.msra.mxu0 %v1652_v22 }
 0x6e9   : > { %v1488_v39 = vmul.f32 %v1486_v32, %v1477_v15  ;;  %v1481_v40 = vadd.f32 -1.4531521, %v1479_v38  ;;  %v1999_v38 = vld [vmem:[#allocation10] ss:$0 sm:$0xff] }
 0x6ea   : > { %1671 = vmatpush.msra.mxu0 %v1651_v24 }
 0x6eb   : > { %v1490_v41 = vadd.f32 -0.28449672, %v1488_v39  ;;  %v1483_v37 = vmul.f32 %v1481_v40, %v1462_v34 }
 0x6ec   : > { %1672 = vmatpush.msra.mxu0 %v1650_v25 }
 0x6ed   : > { %v1492_v44 = vmul.f32 %v1490_v41, %v1477_v15  ;;  %v1485_v45 = vadd.f32 1.4214138, %v1483_v37  ;;  %v1624_v41 = vld [vmem:[%s2918_s13] sm:$0xf]  ;;  %v1691_v37 = vld [vmem:[%s2920_s15 + $0x38] sm:$0xff] }
 0x6ef   : > { %v1494_v48 = vadd.f32 0.2548296, %v1492_v44  ;;  %v1487_v52 = vmul.f32 %v1485_v45, %v1462_v34  ;;  %v1690_v44 = vld [vmem:[%s2920_s15 + $0x30] sm:$0xff] }
 0x6f1   : > { %v1496_v53 = vmul.f32 %v1494_v48, %v1477_v15  ;;  %v1489_v8 = vadd.f32 -0.28449672, %v1487_v52  ;;  %v1689_v48 = vld [vmem:[%s2920_s15 + $0x28] sm:$0xff]  ;;  %v1687_v52 = vld [vmem:[%s2920_s15 + $0x18] sm:$0xff] }
 0x6f3   : > { %v1506_v55 = vmul.f32 %v2042_v54, %v1496_v53  ;;  %v1491_v56 = vmul.f32 %v1489_v8, %v1462_v34  ;;  %v1686_v53 = vld [vmem:[%s2920_s15 + $0x10] sm:$0xff]  ;;  %v1685_v54 = vld [vmem:[%s2920_s15 + $0x8] sm:$0xff]  ;;  %v1684_v8 = vld [vmem:[%s2920_s15] sm:$0xff] }
 0x6f5   : > { %v1508_v57 = vsub.f32 1.0, %v1506_v55  ;;  %v1493_v60 = vadd.f32 0.2548296, %v1491_v56 }
 0x6f7   : > { %v1510_v51 = vmul.f32 %v1508_v57, %v1442_v59  ;;  %v1495_v61 = vmul.f32 %v1493_v60, %v1462_v34  ;;  %v1998_v34 = vld [vmem:[#allocation9] ss:$0 sm:$0xff] }
 0x6f9   : > { %v1512_v46 = vadd.f32 1.0, %v1510_v51  ;;  %v1505_v0 = vmul.f32 %v2044_v62, %v1495_v61  ;;  %v2000_v51 = vld [vmem:[#allocation12] ss:$0 sm:$0xff] }
 0x6fb   : > { %v1514_v1 = vmul.f32 %v1512_v46, %v1436_v63  ;;  %v1507_v2 = vsub.f32 1.0, %v1505_v0 }
 0x6fd   : > { %1587 = vmatmul.f32.vlgmr.msrb.gmra.mxu2 %v1514_v1  ;;  %v1509_v33 = vmul.f32 %v1507_v2, %v1441_v3 }
 0x6ff   : > { %v1511_v5 = vadd.f32 1.0, %v1509_v33 }
 0x701   : > { %v1513_v6 = vmul.f32 %v1511_v5, %v1435_v4 }
 0x703   : > { %1567 = vmatmul.f32.vlgmr.msra.gmra.mxu1 %v1513_v6 }
 0x780   : > { %v1568_v9 = vpop.f32.mrf.mxu1  ;;  %v1588_v11 = vpop.f32.mrf.mxu2 }
 0x781   : > { %v1569_v10 = vadd.f32 %v1997_v7, %v1568_v9 }
 0x783   : > { %v1589_v12 = vadd.f32 %v1588_v11, %v1569_v10 }
 0x785   : > { %v1591_v30 = vadd.f32 %v1589_v12, %v2708_v21 }
 0x787   : > { %v1594_v47 = vsel %vm669_vm0, %v1591_v30, 0.0 }
 0x788   : > { %1595 = vadd.xlane.f32.xlu1 %v1594_v47 }
 0x7fb   : > { %v1596_v13 = vpop.xlane.xlu1 %1595 }
 0x7fc   : > { %v1597_v14 = vmul.f32 %v1596_v13, %v2655_v50 }
 0x7fe   : > { %v1598_v15 = vsub.f32 %v1591_v30, %v1597_v14 }
 0x800   : > { %v1599_v16 = vmul.f32 %v1598_v15, %v1598_v15 }
 0x802   : > { %v1600_v42 = vsel %vm669_vm0, %v1599_v16, 0.0 }
 0x803   : > { %1601 = vadd.xlane.f32.xlu2 %v1600_v42 }
 0x876   : > { %v1602_v21 = vpop.xlane.xlu2 %1601 }
 0x877   : > { %v1603_v20 = vmul.f32 %v1602_v21, %v2655_v50  ;;  %v1649_v50 = vld [vmem:[%s2919_s14 + $0x8] sm:$0xff] }
 0x878   : > { %1673 = vmatpush.msra.mxu0 %v1649_v50 }
 0x879   : > { %v1604_v23 = vadd.f32 1e-06, %v1603_v20 }
 0x87a   : > { %1674 = vmatpush.msra.mxu0 %v1648_v43 }
 0x87b   : > { %2045 = vrsqrt.f32 %v1604_v23  ;;  %vm1611_vm9 = vweird.f32 %v1604_v23 }
 0x881   : > { %v2046_v26 = vpop.eup %2045 }
 0x882   : > { %v1606_v27 = vmul.f32 %v2046_v26, %v1604_v23  ;;  %vm1612_vm8 = vweird.f32 %v2046_v26 }
 0x883   : > { %vm1613_vm10 = vmor %vm1611_vm9, %vm1612_vm8 }
 0x884   : > { %v1607_v28 = vmul.f32 %v2046_v26, %v1606_v27 }
 0x886   : > { %v1608_v29 = vmul.f32 0.5, %v1607_v28 }
 0x888   : > { %v1609_v31 = vsub.f32 1.5, %v1608_v29 }
 0x88a   : > { %v1610_v32 = vmul.f32 %v2046_v26, %v1609_v31 }
 0x88c   : > { %v1614_v35 = vsel %vm1613_vm10, %v2046_v26, %v1610_v32 }
 0x88d   : > { %v1615_v36 = vmul.f32 %v1614_v35, %v1598_v15 }
 0x88f   : > { %v1619_v39 = vmul.f32 %v1998_v34, %v1615_v36 }
 0x891   : > { %v1623_v40 = vadd.f32 %v1999_v38, %v1619_v39 }
 0x893   : > { %1643 = vmatpush.msra.mxu3 %v1623_v40 }
 0x894   : > { %1893 = vmatmul.msk.f32.vlgmr.msra.gmra.mxu3 %vm767_vm1, %v1624_v41  ;;  %vm1719_vm1 = vcmask 781312  }
 0x895   : > { %1707 = vmatpush.msrb.mxu3 %v1691_v37 }
 0x897   : > { %1708 = vmatpush.msrb.mxu3 %v1690_v44 }
 0x899   : > { %1709 = vmatpush.msrb.mxu3 %v1689_v48 }
 0x89b   : > { %1710 = vmatpush.msrb.mxu3 %v1688_v49 }
 0x89d   : > { %1711 = vmatpush.msrb.mxu3 %v1687_v52 }
 0x89f   : > { %1712 = vmatpush.msrb.mxu3 %v1686_v53 }
 0x8a1   : > { %1713 = vmatpush.msrb.mxu3 %v1685_v54 }
 0x8a3   : > { %1714 = vmatpush.msrb.mxu3 %v1684_v8 }
 0x917   : > { %v1645_v45 = vpop.f32.mrf.mxu3 }
 0x918   : > { %1894 = vmatmul.msk.f32.vlgmr.msra.gmra.mxu0 %vm669_vm0, %v1645_v45 }
 0x995   : > { %v1676_v55 = vpop.f32.mrf.mxu0 }
 0x996   : > { %v1679_v56 = vadd.f32 3.0, %v1676_v55 }
 0x998   : > { %v1680_v57 = vmax.f32 %v1679_v56, 0.0 }
 0x99a   : > { %v1681_v58 = vmin.f32 %v1680_v57, 6.0 }
 0x99c   : > { %v1682_v59 = vmul.f32 %v1681_v58, %v1676_v55 }
 0x99e   : > { %v1683_v60 = vmul.f32 0.16666667, %v1682_v59 }
 0x9a0   : > { %1895 = vmatmul.msk.f32.vlgmr.msrb.gmra.mxu3 %vm669_vm0, %v1683_v60 }
 0xa23   : > { %v1716_v61 = vpop.f32.mrf.mxu3 }
 0xa24   : > { %v1717_v62 = vadd.f32 %v2000_v51, %v1716_v61 }
 0xa26   : > { %1720 = vst.msk [vmem:[%s645_s27] sm:$0xf] %vm1719_vm1, %v1717_v62 }
 0xa27 PF: > { %s31_s24 = sadd.s32 1, %s2279_s24  }
 0xa28   : > { %p28_p7 = scmp.ge.s32.totalorder %s31_s24, 4  }
 0xa2a   :  { %30 = sbr.rel (!%p28_p7) target bundleno = 10 (0xa), region = 147 }
 0xa2f   :  { %1740 = vsyncpa [#allocation3], 1 }
 0xa30   :  { %1742 = vsyncpa [#allocation3 + $0x1], 1 }
 0xa31   :  { %1743 = vsyncpa [#allocation5], 1 }
 0xa32   :  { %1744 = vsyncpa [#allocation8], 1 }
 0xa33   :  { %1745 = vsyncpa [#allocation11], 1 }

</bundles_post_ra>
